<compile_context>
chip_gen: v6e
topology: v6e:2x2x1
jax: 0.10.0
libtpu: 0.0.40
codegen_flags: <defaults>
</compile_context>

<pallas_src>
import numpy as np
import jax
import jax.numpy as jnp
from jax.experimental import pallas as pl
from jax.experimental.pallas import tpu as pltpu


# (Cin, Cout, MaxPool?) of the four conv blocks in SmallCNN.
_CFG = [(3, 64, True), (64, 128, True), (128, 256, False), (256, 256, True)]
_HIDDEN = 512
_NCLASS = 10
_NCLASS_PAD = 128          # lane-dense logits block; sliced to 10 in the wrapper


def _rup(x, m):
    return ((x + m - 1) // m) * m


def _geometry(H, W):
    """Static per-layer geometry for an HxW input (H, W multiples of 8)."""
    layers = []
    h, w = H, W
    for cin, cout, pool in _CFG:
        wp = w + 2
        layers.append(dict(
            H=h, W=w, Wp=wp,
            M=h * wp,                          # conv-output rows (flat (h, w+2) grid)
            PP=_rup((h + 2) * wp + 2, 8),      # padded-input scratch rows (+ shift slack)
            cin=cin, cout=cout,
            cin_p=_rup(cin, 128), cout_p=_rup(cout, 128),
            pool=pool))
        if pool:
            h, w = h // 2, w // 2
    return layers


# ----------------------------------------------------------------------------
# Fused Pallas kernel (whole network, one batch element per grid step)
# ----------------------------------------------------------------------------
def _make_kernel(layers):
    l1, l4 = layers[0], layers[3]

    def kernel(x_ref,
               w1_ref, s1_ref, w2_ref, s2_ref, w3_ref, s3_ref, w4_ref, s4_ref,
               wf1_ref, bf1_ref, wf2_ref, bf2_ref,
               out_ref,
               xp1, xp2, xp3, xp4, ybuf):
        xps = (xp1, xp2, xp3, xp4)
        wss = (w1_ref, w2_ref, w3_ref, w4_ref)
        sss = (s1_ref, s2_ref, s3_ref, s4_ref)

        # Padded-input scratches must be zero (borders / tail) for every sample.
        for xp in xps:
            xp[...] = jnp.zeros_like(xp)

        # Scatter the flattened (H*W, Cin_pad) image into layer 1's padded scratch.
        H0, W0, Wp0 = l1["H"], l1["W"], l1["Wp"]
        for r in range(H0):
            xp1[pl.ds((r + 1) * Wp0 + 1, W0), :] = x_ref[0, pl.ds(r * W0, W0), :]

        def conv_bn_lrelu(l, xp, w_ref, s_ref):
            """3x3 conv (pad=1) as nine shift-and-accumulate MXU matmuls
            + folded eval-mode BatchNorm (+bias) + LeakyReLU(0.1)."""
            Wp, M, C = l["Wp"], l["M"], l["cin_p"]
            y = None
            for k in range(9):                       # nine lane-aligned shifted windows
                dy, dx = divmod(k, 3)
                part = jnp.dot(xp[pl.ds(dy * Wp + dx, M), :],
                               w_ref[pl.ds(k * C, C), :],
                               preferred_element_type=jnp.float32)
                y = part if y is None else y + part
            y = y * s_ref[0:1, :] + s_ref[1:2, :]    # eval-mode BatchNorm (+bias) folded
            return jnp.maximum(y, 0.1 * y)           # LeakyReLU(0.1)

        def pool_premax(l, y):
            """Elementwise max over each 2x2 window (anchored at every flat position)."""
            Wp, M = l["Wp"], l["M"]
            mv = M - Wp - 1
            return jnp.maximum(
                jnp.maximum(y[0:mv], y[1:mv + 1]),
                jnp.maximum(y[Wp:Wp + mv], y[Wp + 1:Wp + 1 + mv]))

        # ---- conv blocks 1..3: write the next block's padded input scratch ----
        for i in range(3):
            l, nxt = layers[i], layers[i + 1]
            y = conv_bn_lrelu(l, xps[i], wss[i], sss[i])
            cp = l["cout_p"]
            if l["pool"]:
                pm = pool_premax(l, y)
                mv = pm.shape[0]
                ybuf[0:mv, 0:cp] = pm
                ho, wo = l["H"] // 2, l["W"] // 2
                for io in range(ho):                 # stride-2 gather of pooled rows
                    row = ybuf[pl.ds(2 * io * l["Wp"], wo, stride=2), 0:cp]
                    xps[i + 1][pl.ds((io + 1) * nxt["Wp"] + 1, wo), :] = row
            else:
                for r in range(l["H"]):
                    xps[i + 1][pl.ds((r + 1) * nxt["Wp"] + 1, l["W"]), :] = \
                        y[r * l["Wp"]:r * l["Wp"] + l["W"], :]

        # ---- conv block 4 + head (MaxPool + AvgPool + FC + LeakyReLU + FC) ----
        y4 = conv_bn_lrelu(l4, xp4, w4_ref, s4_ref)
        pm4 = pool_premax(l4, y4)
        ho, wo = l4["H"] // 2, l4["W"] // 2
        f = None                                     # AdaptiveAvgPool2d(1) over pooled map
        for io in range(ho):
            for jo in range(wo):
                q = 2 * io * l4["Wp"] + 2 * jo
                v = pm4[q:q + 1, :]
                f = v if f is None else f + v
        f = f * (1.0 / (ho * wo))                    # (1, 256)

        fb = jnp.broadcast_to(f, (8, f.shape[1]))    # fill a full sublane tile for the MXU
        h = jnp.dot(fb, wf1_ref[...], preferred_element_type=jnp.float32) + bf1_ref[...]
        h = jnp.maximum(h, 0.1 * h)
        # TODO(synk): Dropout(0.4) is identity at inference; train-mode RNG dropout and
        # BatchNorm running-stat updates are intentionally not implemented.
        logits = jnp.dot(h, wf2_ref[...], preferred_element_type=jnp.float32) + bf2_ref[...]
        out_ref[0] = logits[0:1, :]

    return kernel


# ----------------------------------------------------------------------------
# Parameter packing + public forward
# ----------------------------------------------------------------------------
def pack_params(params, layers):
    """Fold/pad parameters into the kernel's MXU-friendly, 128-lane-padded layout."""
    packed = []
    for l, (w, scale, shift, _pool) in zip(layers, params["convs"]):
        cin, cout, cin_p, cout_p = l["cin"], l["cout"], l["cin_p"], l["cout_p"]
        w9 = w.astype(jnp.float32).reshape(9, cin, cout)
        wc = jnp.zeros((9, cin_p, cout_p), jnp.float32).at[:, :cin, :cout].set(w9)
        packed.append(wc.reshape(9 * cin_p, cout_p))
        s = jnp.zeros((2, cout_p), jnp.float32)
        s = s.at[0, :cout].set(scale).at[1, :cout].set(shift)
        packed.append(s)
    wf2 = jnp.zeros((_HIDDEN, _NCLASS_PAD), jnp.float32).at[:, :_NCLASS].set(params["w2"])
    bf2 = jnp.zeros((1, _NCLASS_PAD), jnp.float32).at[0, :_NCLASS].set(params["b2"])
    packed += [params["w1"], params["b1"].reshape(1, _HIDDEN), wf2, bf2]
    return packed


def smallcnn_forward(x_nchw, params):
    """Inference-mode SmallCNN forward.  x_nchw: (N, 3, H, W), H and W multiples of 8."""
    N, C, H, W = x_nchw.shape
    assert C == _CFG[0][0] and H % 8 == 0 and W % 8 == 0
    layers = _geometry(H, W)

    # NCHW (PyTorch) -> NHWC -> flat (N, H*W, Cin) with channels zero-padded to 128 lanes.
    x = jnp.transpose(x_nchw, (0, 2, 3, 1)).reshape(N, H * W, C)
    x = jnp.pad(x, ((0, 0), (0, 0), (0, layers[0]["cin_p"] - C)))

    packed = pack_params(params, layers)

    in_specs = [pl.BlockSpec((1, H * W, layers[0]["cin_p"]), lambda n: (n, 0, 0))]
    for l in layers:
        in_specs.append(pl.BlockSpec((9 * l["cin_p"], l["cout_p"]), lambda n: (0, 0)))
        in_specs.append(pl.BlockSpec((2, l["cout_p"]), lambda n: (0, 0)))
    in_specs += [
        pl.BlockSpec((_CFG[-1][1], _HIDDEN), lambda n: (0, 0)),
        pl.BlockSpec((1, _HIDDEN), lambda n: (0, 0)),
        pl.BlockSpec((_HIDDEN, _NCLASS_PAD), lambda n: (0, 0)),
        pl.BlockSpec((1, _NCLASS_PAD), lambda n: (0, 0)),
    ]

    pooled = [l for l in layers[:3] if l["pool"]]
    ybuf_shape = (max(l["M"] for l in pooled), max(l["cout_p"] for l in pooled))
    scratch_shapes = (
        [pltpu.VMEM((l["PP"], l["cin_p"]), jnp.float32) for l in layers] +     # xp1..xp4
        [pltpu.VMEM(ybuf_shape, jnp.float32)]                                  # ybuf
    )

    out = pl.pallas_call(
        _make_kernel(layers),
        out_shape=jax.ShapeDtypeStruct((N, 1, _NCLASS_PAD), jnp.float32),
        grid_spec=pltpu.PrefetchScalarGridSpec(
            num_scalar_prefetch=0,
            grid=(N,),
            in_specs=in_specs,
            out_specs=pl.BlockSpec((1, 1, _NCLASS_PAD), lambda n: (n, 0, 0)),
            scratch_shapes=scratch_shapes),
        compiler_params=pltpu.CompilerParams(
            dimension_semantics=("parallel",),          # batch items independent
            vmem_limit_bytes=32 * 1024 * 1024),
    )(x, *packed)
    return out.reshape(N, _NCLASS_PAD)[:, :_NCLASS]


# ----------------------------------------------------------------------------
# Deterministic parameter init (shapes from SmallCNN.__init__; eval-mode BN folded)
# ----------------------------------------------------------------------------
def init_params(key):
    eps = 1e-5
    params = {"convs": []}
    for cin, cout, pool in _CFG:
        key, k1, k2, k3, k4, k5, k6 = jax.random.split(key, 7)
        w = jax.random.normal(k1, (3, 3, cin, cout), jnp.float32) * np.sqrt(2.0 / (9 * cin))
        b = 0.01 * jax.random.normal(k2, (cout,), jnp.float32)
        gamma = 1.0 + 0.1 * jax.random.normal(k3, (cout,), jnp.float32)
        beta = 0.1 * jax.random.normal(k4, (cout,), jnp.float32)
        mean = 0.05 * jax.random.normal(k5, (cout,), jnp.float32)
        var = 1.0 + 0.1 * jnp.abs(jax.random.normal(k6, (cout,), jnp.float32))
        scale = gamma / jnp.sqrt(var + eps)
        shift = beta + (b - mean) * scale
        params["convs"].append((w, scale, shift, pool))
    key, k1, k2, k3, k4 = jax.random.split(key, 5)
    params["w1"] = jax.random.normal(k1, (256, _HIDDEN), jnp.float32) / np.sqrt(256.0)
    params["b1"] = 0.01 * jax.random.normal(k2, (_HIDDEN,), jnp.float32)
    params["w2"] = jax.random.normal(k3, (_HIDDEN, _NCLASS), jnp.float32) / np.sqrt(float(_HIDDEN))
    params["b2"] = 0.01 * jax.random.normal(k4, (_NCLASS,), jnp.float32)
    return params


# ----------------------------------------------------------------------------
# Pure-JAX reference (high-precision) for the correctness check
# ----------------------------------------------------------------------------
def reference_forward(x_nhwc, params):
    prec = jax.lax.Precision.HIGHEST
    y = x_nhwc
    for (w, scale, shift, pool) in params["convs"]:
        y = jax.lax.conv_general_dilated(
            y, w, window_strides=(1, 1), padding="SAME",
            dimension_numbers=("NHWC", "HWIO", "NHWC"), precision=prec)
        y = y * scale + shift
        y = jnp.where(y >= 0.0, y, 0.1 * y)
        if pool:
            y = jax.lax.reduce_window(y, -jnp.inf, jax.lax.max,
                                      (1, 2, 2, 1), (1, 2, 2, 1), "VALID")
    f = jnp.mean(y, axis=(1, 2))
    h = jnp.dot(f, params["w1"], precision=prec) + params["b1"]
    h = jnp.where(h >= 0.0, h, 0.1 * h)
    return jnp.dot(h, params["w2"], precision=prec) + params["b2"]


if __name__ == "__main__":
    key = jax.random.PRNGKey(0)
    kx, kp = jax.random.split(key)
    x = jax.random.normal(kx, (2, 3, 16, 16), jnp.float32)   # PyTorch NCHW input
    params = init_params(kp)

    out = jax.block_until_ready(smallcnn_forward(x, params))
    assert out.shape == (2, _NCLASS)

    ref = reference_forward(jnp.transpose(x, (0, 2, 3, 1)), params)
    np.testing.assert_allclose(np.asarray(out), np.asarray(ref), rtol=1e-3, atol=1e-3)

    print("KERNEL_OK")
</pallas_src>

<mosaic_0001>
module attributes {stable_mosaic.version = 11 : i64} {
  func.func @kernel(%arg0: i32, %arg1: memref<1x256x128xf32, #tpu.memory_space<vmem>>, %arg2: memref<1152x128xf32, #tpu.memory_space<vmem>>, %arg3: memref<2x128xf32, #tpu.memory_space<vmem>>, %arg4: memref<1152x128xf32, #tpu.memory_space<vmem>>, %arg5: memref<2x128xf32, #tpu.memory_space<vmem>>, %arg6: memref<1152x256xf32, #tpu.memory_space<vmem>>, %arg7: memref<2x256xf32, #tpu.memory_space<vmem>>, %arg8: memref<2304x256xf32, #tpu.memory_space<vmem>>, %arg9: memref<2x256xf32, #tpu.memory_space<vmem>>, %arg10: memref<256x512xf32, #tpu.memory_space<vmem>>, %arg11: memref<1x512xf32, #tpu.memory_space<vmem>>, %arg12: memref<512x128xf32, #tpu.memory_space<vmem>>, %arg13: memref<1x128xf32, #tpu.memory_space<vmem>>, %arg14: memref<1x1x128xf32, #tpu.memory_space<vmem>>, %arg15: memref<328x128xf32, #tpu.memory_space<vmem>>, %arg16: memref<104x128xf32, #tpu.memory_space<vmem>>, %arg17: memref<40x128xf32, #tpu.memory_space<vmem>>, %arg18: memref<40x256xf32, #tpu.memory_space<vmem>>, %arg19: memref<288x128xf32, #tpu.memory_space<vmem>>) attributes {dimension_semantics = [#tpu.dimension_semantics<parallel>], iteration_bounds = array<i64: 2>, scalar_prefetch = 0 : i64, scratch_operands = 5 : i64, tpu.core_type = #tpu.core_type<tc>, window_params = [{transform_indices = @transform_0, window_bounds = array<i64: 1, 256, 128>}, {pipeline_mode = #tpu.pipeline_mode<synchronous>, transform_indices = @transform_1, window_bounds = array<i64: 1152, 128>}, {pipeline_mode = #tpu.pipeline_mode<synchronous>, transform_indices = @transform_2, window_bounds = array<i64: 2, 128>}, {pipeline_mode = #tpu.pipeline_mode<synchronous>, transform_indices = @transform_3, window_bounds = array<i64: 1152, 128>}, {pipeline_mode = #tpu.pipeline_mode<synchronous>, transform_indices = @transform_4, window_bounds = array<i64: 2, 128>}, {pipeline_mode = #tpu.pipeline_mode<synchronous>, transform_indices = @transform_5, window_bounds = array<i64: 1152, 256>}, {pipeline_mode = #tpu.pipeline_mode<synchronous>, transform_indices = @transform_6, window_bounds = array<i64: 2, 256>}, {pipeline_mode = #tpu.pipeline_mode<synchronous>, transform_indices = @transform_7, window_bounds = array<i64: 2304, 256>}, {pipeline_mode = #tpu.pipeline_mode<synchronous>, transform_indices = @transform_8, window_bounds = array<i64: 2, 256>}, {pipeline_mode = #tpu.pipeline_mode<synchronous>, transform_indices = @transform_9, window_bounds = array<i64: 256, 512>}, {pipeline_mode = #tpu.pipeline_mode<synchronous>, transform_indices = @transform_10, window_bounds = array<i64: 1, 512>}, {pipeline_mode = #tpu.pipeline_mode<synchronous>, transform_indices = @transform_11, window_bounds = array<i64: 512, 128>}, {pipeline_mode = #tpu.pipeline_mode<synchronous>, transform_indices = @transform_12, window_bounds = array<i64: 1, 128>}, {transform_indices = @transform_13, window_bounds = array<i64: 1, 1, 128>}]} {
    %cst = arith.constant 0.000000e+00 : f32
    %0 = vector.broadcast %cst : f32 to vector<328x128xf32>
    %c0 = arith.constant 0 : index
    %c0_0 = arith.constant 0 : index
    %1 = vector.load %arg15[%c0, %c0_0] : memref<328x128xf32, #tpu.memory_space<vmem>>, vector<328x128xf32>
    tpu.vector_store %arg15[%c0, %c0_0], %0 {strides = array<i32>} : memref<328x128xf32, #tpu.memory_space<vmem>>, vector<328x128xf32>,
    %cst_1 = arith.constant 0.000000e+00 : f32
    %2 = vector.broadcast %cst_1 : f32 to vector<104x128xf32>
    %c0_2 = arith.constant 0 : index
    %c0_3 = arith.constant 0 : index
    %3 = vector.load %arg16[%c0_2, %c0_3] : memref<104x128xf32, #tpu.memory_space<vmem>>, vector<104x128xf32>
    tpu.vector_store %arg16[%c0_2, %c0_3], %2 {strides = array<i32>} : memref<104x128xf32, #tpu.memory_space<vmem>>, vector<104x128xf32>,
    %cst_4 = arith.constant 0.000000e+00 : f32
    %4 = vector.broadcast %cst_4 : f32 to vector<40x128xf32>
    %c0_5 = arith.constant 0 : index
    %c0_6 = arith.constant 0 : index
    %5 = vector.load %arg17[%c0_5, %c0_6] : memref<40x128xf32, #tpu.memory_space<vmem>>, vector<40x128xf32>
    tpu.vector_store %arg17[%c0_5, %c0_6], %4 {strides = array<i32>} : memref<40x128xf32, #tpu.memory_space<vmem>>, vector<40x128xf32>,
    %cst_7 = arith.constant 0.000000e+00 : f32
    %6 = vector.broadcast %cst_7 : f32 to vector<40x256xf32>
    %c0_8 = arith.constant 0 : index
    %c0_9 = arith.constant 0 : index
    %7 = vector.load %arg18[%c0_8, %c0_9] : memref<40x256xf32, #tpu.memory_space<vmem>>, vector<40x256xf32>
    tpu.vector_store %arg18[%c0_8, %c0_9], %6 {strides = array<i32>} : memref<40x256xf32, #tpu.memory_space<vmem>>, vector<40x256xf32>,
    %c0_10 = arith.constant 0 : index
    %c0_11 = arith.constant 0 : index
    %c0_12 = arith.constant 0 : index
    %8 = vector.load %arg1[%c0_10, %c0_11, %c0_12] : memref<1x256x128xf32, #tpu.memory_space<vmem>>, vector<1x16x128xf32>
    %9 = vector.shape_cast %8 : vector<1x16x128xf32> to vector<16x128xf32>
    %c19 = arith.constant 19 : index
    %c0_13 = arith.constant 0 : index
    %10 = vector.load %arg15[%c19, %c0_13] : memref<328x128xf32, #tpu.memory_space<vmem>>, vector<16x128xf32>
    tpu.vector_store %arg15[%c19, %c0_13], %9 {strides = array<i32>} : memref<328x128xf32, #tpu.memory_space<vmem>>, vector<16x128xf32>,
    %c0_14 = arith.constant 0 : index
    %c16 = arith.constant 16 : index
    %c0_15 = arith.constant 0 : index
    %11 = vector.load %arg1[%c0_14, %c16, %c0_15] : memref<1x256x128xf32, #tpu.memory_space<vmem>>, vector<1x16x128xf32>
    %12 = vector.shape_cast %11 : vector<1x16x128xf32> to vector<16x128xf32>
    %c37 = arith.constant 37 : index
    %c0_16 = arith.constant 0 : index
    %13 = vector.load %arg15[%c37, %c0_16] : memref<328x128xf32, #tpu.memory_space<vmem>>, vector<16x128xf32>
    tpu.vector_store %arg15[%c37, %c0_16], %12 {strides = array<i32>} : memref<328x128xf32, #tpu.memory_space<vmem>>, vector<16x128xf32>,
    %c0_17 = arith.constant 0 : index
    %c32 = arith.constant 32 : index
    %c0_18 = arith.constant 0 : index
    %14 = vector.load %arg1[%c0_17, %c32, %c0_18] : memref<1x256x128xf32, #tpu.memory_space<vmem>>, vector<1x16x128xf32>
    %15 = vector.shape_cast %14 : vector<1x16x128xf32> to vector<16x128xf32>
    %c55 = arith.constant 55 : index
    %c0_19 = arith.constant 0 : index
    %16 = vector.load %arg15[%c55, %c0_19] : memref<328x128xf32, #tpu.memory_space<vmem>>, vector<16x128xf32>
    tpu.vector_store %arg15[%c55, %c0_19], %15 {strides = array<i32>} : memref<328x128xf32, #tpu.memory_space<vmem>>, vector<16x128xf32>,
    %c0_20 = arith.constant 0 : index
    %c48 = arith.constant 48 : index
    %c0_21 = arith.constant 0 : index
    %17 = vector.load %arg1[%c0_20, %c48, %c0_21] : memref<1x256x128xf32, #tpu.memory_space<vmem>>, vector<1x16x128xf32>
    %18 = vector.shape_cast %17 : vector<1x16x128xf32> to vector<16x128xf32>
    %c73 = arith.constant 73 : index
    %c0_22 = arith.constant 0 : index
    %19 = vector.load %arg15[%c73, %c0_22] : memref<328x128xf32, #tpu.memory_space<vmem>>, vector<16x128xf32>
    tpu.vector_store %arg15[%c73, %c0_22], %18 {strides = array<i32>} : memref<328x128xf32, #tpu.memory_space<vmem>>, vector<16x128xf32>,
    %c0_23 = arith.constant 0 : index
    %c64 = arith.constant 64 : index
    %c0_24 = arith.constant 0 : index
    %20 = vector.load %arg1[%c0_23, %c64, %c0_24] : memref<1x256x128xf32, #tpu.memory_space<vmem>>, vector<1x16x128xf32>
    %21 = vector.shape_cast %20 : vector<1x16x128xf32> to vector<16x128xf32>
    %c91 = arith.constant 91 : index
    %c0_25 = arith.constant 0 : index
    %22 = vector.load %arg15[%c91, %c0_25] : memref<328x128xf32, #tpu.memory_space<vmem>>, vector<16x128xf32>
    tpu.vector_store %arg15[%c91, %c0_25], %21 {strides = array<i32>} : memref<328x128xf32, #tpu.memory_space<vmem>>, vector<16x128xf32>,
    %c0_26 = arith.constant 0 : index
    %c80 = arith.constant 80 : index
    %c0_27 = arith.constant 0 : index
    %23 = vector.load %arg1[%c0_26, %c80, %c0_27] : memref<1x256x128xf32, #tpu.memory_space<vmem>>, vector<1x16x128xf32>
    %24 = vector.shape_cast %23 : vector<1x16x128xf32> to vector<16x128xf32>
    %c109 = arith.constant 109 : index
    %c0_28 = arith.constant 0 : index
    %25 = vector.load %arg15[%c109, %c0_28] : memref<328x128xf32, #tpu.memory_space<vmem>>, vector<16x128xf32>
    tpu.vector_store %arg15[%c109, %c0_28], %24 {strides = array<i32>} : memref<328x128xf32, #tpu.memory_space<vmem>>, vector<16x128xf32>,
    %c0_29 = arith.constant 0 : index
    %c96 = arith.constant 96 : index
    %c0_30 = arith.constant 0 : index
    %26 = vector.load %arg1[%c0_29, %c96, %c0_30] : memref<1x256x128xf32, #tpu.memory_space<vmem>>, vector<1x16x128xf32>
    %27 = vector.shape_cast %26 : vector<1x16x128xf32> to vector<16x128xf32>
    %c127 = arith.constant 127 : index
    %c0_31 = arith.constant 0 : index
    %28 = vector.load %arg15[%c127, %c0_31] : memref<328x128xf32, #tpu.memory_space<vmem>>, vector<16x128xf32>
    tpu.vector_store %arg15[%c127, %c0_31], %27 {strides = array<i32>} : memref<328x128xf32, #tpu.memory_space<vmem>>, vector<16x128xf32>,
    %c0_32 = arith.constant 0 : index
    %c112 = arith.constant 112 : index
    %c0_33 = arith.constant 0 : index
    %29 = vector.load %arg1[%c0_32, %c112, %c0_33] : memref<1x256x128xf32, #tpu.memory_space<vmem>>, vector<1x16x128xf32>
    %30 = vector.shape_cast %29 : vector<1x16x128xf32> to vector<16x128xf32>
    %c145 = arith.constant 145 : index
    %c0_34 = arith.constant 0 : index
    %31 = vector.load %arg15[%c145, %c0_34] : memref<328x128xf32, #tpu.memory_space<vmem>>, vector<16x128xf32>
    tpu.vector_store %arg15[%c145, %c0_34], %30 {strides = array<i32>} : memref<328x128xf32, #tpu.memory_space<vmem>>, vector<16x128xf32>,
    %c0_35 = arith.constant 0 : index
    %c128 = arith.constant 128 : index
    %c0_36 = arith.constant 0 : index
    %32 = vector.load %arg1[%c0_35, %c128, %c0_36] : memref<1x256x128xf32, #tpu.memory_space<vmem>>, vector<1x16x128xf32>
    %33 = vector.shape_cast %32 : vector<1x16x128xf32> to vector<16x128xf32>
    %c163 = arith.constant 163 : index
    %c0_37 = arith.constant 0 : index
    %34 = vector.load %arg15[%c163, %c0_37] : memref<328x128xf32, #tpu.memory_space<vmem>>, vector<16x128xf32>
    tpu.vector_store %arg15[%c163, %c0_37], %33 {strides = array<i32>} : memref<328x128xf32, #tpu.memory_space<vmem>>, vector<16x128xf32>,
    %c0_38 = arith.constant 0 : index
    %c144 = arith.constant 144 : index
    %c0_39 = arith.constant 0 : index
    %35 = vector.load %arg1[%c0_38, %c144, %c0_39] : memref<1x256x128xf32, #tpu.memory_space<vmem>>, vector<1x16x128xf32>
    %36 = vector.shape_cast %35 : vector<1x16x128xf32> to vector<16x128xf32>
    %c181 = arith.constant 181 : index
    %c0_40 = arith.constant 0 : index
    %37 = vector.load %arg15[%c181, %c0_40] : memref<328x128xf32, #tpu.memory_space<vmem>>, vector<16x128xf32>
    tpu.vector_store %arg15[%c181, %c0_40], %36 {strides = array<i32>} : memref<328x128xf32, #tpu.memory_space<vmem>>, vector<16x128xf32>,
    %c0_41 = arith.constant 0 : index
    %c160 = arith.constant 160 : index
    %c0_42 = arith.constant 0 : index
    %38 = vector.load %arg1[%c0_41, %c160, %c0_42] : memref<1x256x128xf32, #tpu.memory_space<vmem>>, vector<1x16x128xf32>
    %39 = vector.shape_cast %38 : vector<1x16x128xf32> to vector<16x128xf32>
    %c199 = arith.constant 199 : index
    %c0_43 = arith.constant 0 : index
    %40 = vector.load %arg15[%c199, %c0_43] : memref<328x128xf32, #tpu.memory_space<vmem>>, vector<16x128xf32>
    tpu.vector_store %arg15[%c199, %c0_43], %39 {strides = array<i32>} : memref<328x128xf32, #tpu.memory_space<vmem>>, vector<16x128xf32>,
    %c0_44 = arith.constant 0 : index
    %c176 = arith.constant 176 : index
    %c0_45 = arith.constant 0 : index
    %41 = vector.load %arg1[%c0_44, %c176, %c0_45] : memref<1x256x128xf32, #tpu.memory_space<vmem>>, vector<1x16x128xf32>
    %42 = vector.shape_cast %41 : vector<1x16x128xf32> to vector<16x128xf32>
    %c217 = arith.constant 217 : index
    %c0_46 = arith.constant 0 : index
    %43 = vector.load %arg15[%c217, %c0_46] : memref<328x128xf32, #tpu.memory_space<vmem>>, vector<16x128xf32>
    tpu.vector_store %arg15[%c217, %c0_46], %42 {strides = array<i32>} : memref<328x128xf32, #tpu.memory_space<vmem>>, vector<16x128xf32>,
    %c0_47 = arith.constant 0 : index
    %c192 = arith.constant 192 : index
    %c0_48 = arith.constant 0 : index
    %44 = vector.load %arg1[%c0_47, %c192, %c0_48] : memref<1x256x128xf32, #tpu.memory_space<vmem>>, vector<1x16x128xf32>
    %45 = vector.shape_cast %44 : vector<1x16x128xf32> to vector<16x128xf32>
    %c235 = arith.constant 235 : index
    %c0_49 = arith.constant 0 : index
    %46 = vector.load %arg15[%c235, %c0_49] : memref<328x128xf32, #tpu.memory_space<vmem>>, vector<16x128xf32>
    tpu.vector_store %arg15[%c235, %c0_49], %45 {strides = array<i32>} : memref<328x128xf32, #tpu.memory_space<vmem>>, vector<16x128xf32>,
    %c0_50 = arith.constant 0 : index
    %c208 = arith.constant 208 : index
    %c0_51 = arith.constant 0 : index
    %47 = vector.load %arg1[%c0_50, %c208, %c0_51] : memref<1x256x128xf32, #tpu.memory_space<vmem>>, vector<1x16x128xf32>
    %48 = vector.shape_cast %47 : vector<1x16x128xf32> to vector<16x128xf32>
    %c253 = arith.constant 253 : index
    %c0_52 = arith.constant 0 : index
    %49 = vector.load %arg15[%c253, %c0_52] : memref<328x128xf32, #tpu.memory_space<vmem>>, vector<16x128xf32>
    tpu.vector_store %arg15[%c253, %c0_52], %48 {strides = array<i32>} : memref<328x128xf32, #tpu.memory_space<vmem>>, vector<16x128xf32>,
    %c0_53 = arith.constant 0 : index
    %c224 = arith.constant 224 : index
    %c0_54 = arith.constant 0 : index
    %50 = vector.load %arg1[%c0_53, %c224, %c0_54] : memref<1x256x128xf32, #tpu.memory_space<vmem>>, vector<1x16x128xf32>
    %51 = vector.shape_cast %50 : vector<1x16x128xf32> to vector<16x128xf32>
    %c271 = arith.constant 271 : index
    %c0_55 = arith.constant 0 : index
    %52 = vector.load %arg15[%c271, %c0_55] : memref<328x128xf32, #tpu.memory_space<vmem>>, vector<16x128xf32>
    tpu.vector_store %arg15[%c271, %c0_55], %51 {strides = array<i32>} : memref<328x128xf32, #tpu.memory_space<vmem>>, vector<16x128xf32>,
    %c0_56 = arith.constant 0 : index
    %c240 = arith.constant 240 : index
    %c0_57 = arith.constant 0 : index
    %53 = vector.load %arg1[%c0_56, %c240, %c0_57] : memref<1x256x128xf32, #tpu.memory_space<vmem>>, vector<1x16x128xf32>
    %54 = vector.shape_cast %53 : vector<1x16x128xf32> to vector<16x128xf32>
    %c289 = arith.constant 289 : index
    %c0_58 = arith.constant 0 : index
    %55 = vector.load %arg15[%c289, %c0_58] : memref<328x128xf32, #tpu.memory_space<vmem>>, vector<16x128xf32>
    tpu.vector_store %arg15[%c289, %c0_58], %54 {strides = array<i32>} : memref<328x128xf32, #tpu.memory_space<vmem>>, vector<16x128xf32>,
    %c0_59 = arith.constant 0 : index
    %c0_60 = arith.constant 0 : index
    %56 = vector.load %arg15[%c0_59, %c0_60] : memref<328x128xf32, #tpu.memory_space<vmem>>, vector<288x128xf32>
    %c0_61 = arith.constant 0 : index
    %c0_62 = arith.constant 0 : index
    %57 = vector.load %arg2[%c0_61, %c0_62] : memref<1152x128xf32, #tpu.memory_space<vmem>>, vector<128x128xf32>
    %cst_63 = arith.constant dense<0.000000e+00> : vector<288x128xf32>
    %58 = tpu.matmul %56, %57, %cst_63 {dimension_numbers = #tpu.dot_dimension_numbers<[1], [0], [0], [1], [0, 0, 1, 1], [], []>} : vector<288x128xf32>, vector<128x128xf32>, vector<288x128xf32> -> vector<288x128xf32>
    %c1 = arith.constant 1 : index
    %c0_64 = arith.constant 0 : index
    %59 = vector.load %arg15[%c1, %c0_64] : memref<328x128xf32, #tpu.memory_space<vmem>>, vector<288x128xf32>
    %c128_65 = arith.constant 128 : index
    %c0_66 = arith.constant 0 : index
    %60 = vector.load %arg2[%c128_65, %c0_66] : memref<1152x128xf32, #tpu.memory_space<vmem>>, vector<128x128xf32>
    %cst_67 = arith.constant dense<0.000000e+00> : vector<288x128xf32>
    %61 = tpu.matmul %59, %60, %cst_67 {dimension_numbers = #tpu.dot_dimension_numbers<[1], [0], [0], [1], [0, 0, 1, 1], [], []>} : vector<288x128xf32>, vector<128x128xf32>, vector<288x128xf32> -> vector<288x128xf32>
    %62 = arith.addf %58, %61 : vector<288x128xf32>
    %c2 = arith.constant 2 : index
    %c0_68 = arith.constant 0 : index
    %63 = vector.load %arg15[%c2, %c0_68] : memref<328x128xf32, #tpu.memory_space<vmem>>, vector<288x128xf32>
    %c256 = arith.constant 256 : index
    %c0_69 = arith.constant 0 : index
    %64 = vector.load %arg2[%c256, %c0_69] : memref<1152x128xf32, #tpu.memory_space<vmem>>, vector<128x128xf32>
    %cst_70 = arith.constant dense<0.000000e+00> : vector<288x128xf32>
    %65 = tpu.matmul %63, %64, %cst_70 {dimension_numbers = #tpu.dot_dimension_numbers<[1], [0], [0], [1], [0, 0, 1, 1], [], []>} : vector<288x128xf32>, vector<128x128xf32>, vector<288x128xf32> -> vector<288x128xf32>
    %66 = arith.addf %62, %65 : vector<288x128xf32>
    %c18 = arith.constant 18 : index
    %c0_71 = arith.constant 0 : index
    %67 = vector.load %arg15[%c18, %c0_71] : memref<328x128xf32, #tpu.memory_space<vmem>>, vector<288x128xf32>
    %c384 = arith.constant 384 : index
    %c0_72 = arith.constant 0 : index
    %68 = vector.load %arg2[%c384, %c0_72] : memref<1152x128xf32, #tpu.memory_space<vmem>>, vector<128x128xf32>
    %cst_73 = arith.constant dense<0.000000e+00> : vector<288x128xf32>
    %69 = tpu.matmul %67, %68, %cst_73 {dimension_numbers = #tpu.dot_dimension_numbers<[1], [0], [0], [1], [0, 0, 1, 1], [], []>} : vector<288x128xf32>, vector<128x128xf32>, vector<288x128xf32> -> vector<288x128xf32>
    %70 = arith.addf %66, %69 : vector<288x128xf32>
    %c19_74 = arith.constant 19 : index
    %c0_75 = arith.constant 0 : index
    %71 = vector.load %arg15[%c19_74, %c0_75] : memref<328x128xf32, #tpu.memory_space<vmem>>, vector<288x128xf32>
    %c512 = arith.constant 512 : index
    %c0_76 = arith.constant 0 : index
    %72 = vector.load %arg2[%c512, %c0_76] : memref<1152x128xf32, #tpu.memory_space<vmem>>, vector<128x128xf32>
    %cst_77 = arith.constant dense<0.000000e+00> : vector<288x128xf32>
    %73 = tpu.matmul %71, %72, %cst_77 {dimension_numbers = #tpu.dot_dimension_numbers<[1], [0], [0], [1], [0, 0, 1, 1], [], []>} : vector<288x128xf32>, vector<128x128xf32>, vector<288x128xf32> -> vector<288x128xf32>
    %74 = arith.addf %70, %73 : vector<288x128xf32>
    %c20 = arith.constant 20 : index
    %c0_78 = arith.constant 0 : index
    %75 = vector.load %arg15[%c20, %c0_78] : memref<328x128xf32, #tpu.memory_space<vmem>>, vector<288x128xf32>
    %c640 = arith.constant 640 : index
    %c0_79 = arith.constant 0 : index
    %76 = vector.load %arg2[%c640, %c0_79] : memref<1152x128xf32, #tpu.memory_space<vmem>>, vector<128x128xf32>
    %cst_80 = arith.constant dense<0.000000e+00> : vector<288x128xf32>
    %77 = tpu.matmul %75, %76, %cst_80 {dimension_numbers = #tpu.dot_dimension_numbers<[1], [0], [0], [1], [0, 0, 1, 1], [], []>} : vector<288x128xf32>, vector<128x128xf32>, vector<288x128xf32> -> vector<288x128xf32>
    %78 = arith.addf %74, %77 : vector<288x128xf32>
    %c36 = arith.constant 36 : index
    %c0_81 = arith.constant 0 : index
    %79 = vector.load %arg15[%c36, %c0_81] : memref<328x128xf32, #tpu.memory_space<vmem>>, vector<288x128xf32>
    %c768 = arith.constant 768 : index
    %c0_82 = arith.constant 0 : index
    %80 = vector.load %arg2[%c768, %c0_82] : memref<1152x128xf32, #tpu.memory_space<vmem>>, vector<128x128xf32>
    %cst_83 = arith.constant dense<0.000000e+00> : vector<288x128xf32>
    %81 = tpu.matmul %79, %80, %cst_83 {dimension_numbers = #tpu.dot_dimension_numbers<[1], [0], [0], [1], [0, 0, 1, 1], [], []>} : vector<288x128xf32>, vector<128x128xf32>, vector<288x128xf32> -> vector<288x128xf32>
    %82 = arith.addf %78, %81 : vector<288x128xf32>
    %c37_84 = arith.constant 37 : index
    %c0_85 = arith.constant 0 : index
    %83 = vector.load %arg15[%c37_84, %c0_85] : memref<328x128xf32, #tpu.memory_space<vmem>>, vector<288x128xf32>
    %c896 = arith.constant 896 : index
    %c0_86 = arith.constant 0 : index
    %84 = vector.load %arg2[%c896, %c0_86] : memref<1152x128xf32, #tpu.memory_space<vmem>>, vector<128x128xf32>
    %cst_87 = arith.constant dense<0.000000e+00> : vector<288x128xf32>
    %85 = tpu.matmul %83, %84, %cst_87 {dimension_numbers = #tpu.dot_dimension_numbers<[1], [0], [0], [1], [0, 0, 1, 1], [], []>} : vector<288x128xf32>, vector<128x128xf32>, vector<288x128xf32> -> vector<288x128xf32>
    %86 = arith.addf %82, %85 : vector<288x128xf32>
    %c38 = arith.constant 38 : index
    %c0_88 = arith.constant 0 : index
    %87 = vector.load %arg15[%c38, %c0_88] : memref<328x128xf32, #tpu.memory_space<vmem>>, vector<288x128xf32>
    %c1024 = arith.constant 1024 : index
    %c0_89 = arith.constant 0 : index
    %88 = vector.load %arg2[%c1024, %c0_89] : memref<1152x128xf32, #tpu.memory_space<vmem>>, vector<128x128xf32>
    %cst_90 = arith.constant dense<0.000000e+00> : vector<288x128xf32>
    %89 = tpu.matmul %87, %88, %cst_90 {dimension_numbers = #tpu.dot_dimension_numbers<[1], [0], [0], [1], [0, 0, 1, 1], [], []>} : vector<288x128xf32>, vector<128x128xf32>, vector<288x128xf32> -> vector<288x128xf32>
    %90 = arith.addf %86, %89 : vector<288x128xf32>
    %c0_91 = arith.constant 0 : index
    %c0_92 = arith.constant 0 : index
    %91 = vector.load %arg3[%c0_91, %c0_92] : memref<2x128xf32, #tpu.memory_space<vmem>>, vector<1x128xf32>
    %92 = vector.broadcast %91 : vector<1x128xf32> to vector<288x128xf32>
    %93 = arith.mulf %90, %92 : vector<288x128xf32>
    %c1_93 = arith.constant 1 : index
    %c0_94 = arith.constant 0 : index
    %94 = vector.load %arg3[%c1_93, %c0_94] : memref<2x128xf32, #tpu.memory_space<vmem>>, vector<1x128xf32>
    %95 = vector.broadcast %94 : vector<1x128xf32> to vector<288x128xf32>
    %96 = arith.addf %93, %95 : vector<288x128xf32>
    %cst_95 = arith.constant 1.000000e-01 : f32
    %97 = vector.broadcast %cst_95 : f32 to vector<288x128xf32>
    %98 = arith.mulf %97, %96 : vector<288x128xf32>
    %99 = arith.maximumf %96, %98 : vector<288x128xf32>
    %100 = vector.extract_strided_slice %99 {offsets = [0, 0], sizes = [269, 128], strides = [1, 1]} : vector<288x128xf32> to vector<269x128xf32>
    %101 = vector.extract_strided_slice %99 {offsets = [1, 0], sizes = [269, 128], strides = [1, 1]} : vector<288x128xf32> to vector<269x128xf32>
    %102 = arith.maximumf %100, %101 : vector<269x128xf32>
    %103 = vector.extract_strided_slice %99 {offsets = [18, 0], sizes = [269, 128], strides = [1, 1]} : vector<288x128xf32> to vector<269x128xf32>
    %104 = vector.extract_strided_slice %99 {offsets = [19, 0], sizes = [269, 128], strides = [1, 1]} : vector<288x128xf32> to vector<269x128xf32>
    %105 = arith.maximumf %103, %104 : vector<269x128xf32>
    %106 = arith.maximumf %102, %105 : vector<269x128xf32>
    %c0_96 = arith.constant 0 : index
    %c0_97 = arith.constant 0 : index
    %107 = vector.load %arg19[%c0_96, %c0_97] : memref<288x128xf32, #tpu.memory_space<vmem>>, vector<269x128xf32>
    tpu.vector_store %arg19[%c0_96, %c0_97], %106 {strides = array<i32>} : memref<288x128xf32, #tpu.memory_space<vmem>>, vector<269x128xf32>,
    %c0_98 = arith.constant 0 : index
    %c0_99 = arith.constant 0 : index
    %108 = tpu.strided_load %arg19[%c0_98, %c0_99] {strides = array<i32: 2, 1>} : memref<288x128xf32, #tpu.memory_space<vmem>>, vector<8x128xf32>
    %c11 = arith.constant 11 : index
    %c0_100 = arith.constant 0 : index
    %109 = vector.load %arg16[%c11, %c0_100] : memref<104x128xf32, #tpu.memory_space<vmem>>, vector<8x128xf32>
    tpu.vector_store %arg16[%c11, %c0_100], %108 {strides = array<i32>} : memref<104x128xf32, #tpu.memory_space<vmem>>, vector<8x128xf32>,
    %c36_101 = arith.constant 36 : index
    %c0_102 = arith.constant 0 : index
    %110 = tpu.strided_load %arg19[%c36_101, %c0_102] {strides = array<i32: 2, 1>} : memref<288x128xf32, #tpu.memory_space<vmem>>, vector<8x128xf32>
    %c21 = arith.constant 21 : index
    %c0_103 = arith.constant 0 : index
    %111 = vector.load %arg16[%c21, %c0_103] : memref<104x128xf32, #tpu.memory_space<vmem>>, vector<8x128xf32>
    tpu.vector_store %arg16[%c21, %c0_103], %110 {strides = array<i32>} : memref<104x128xf32, #tpu.memory_space<vmem>>, vector<8x128xf32>,
    %c72 = arith.constant 72 : index
    %c0_104 = arith.constant 0 : index
    %112 = tpu.strided_load %arg19[%c72, %c0_104] {strides = array<i32: 2, 1>} : memref<288x128xf32, #tpu.memory_space<vmem>>, vector<8x128xf32>
    %c31 = arith.constant 31 : index
    %c0_105 = arith.constant 0 : index
    %113 = vector.load %arg16[%c31, %c0_105] : memref<104x128xf32, #tpu.memory_space<vmem>>, vector<8x128xf32>
    tpu.vector_store %arg16[%c31, %c0_105], %112 {strides = array<i32>} : memref<104x128xf32, #tpu.memory_space<vmem>>, vector<8x128xf32>,
    %c108 = arith.constant 108 : index
    %c0_106 = arith.constant 0 : index
    %114 = tpu.strided_load %arg19[%c108, %c0_106] {strides = array<i32: 2, 1>} : memref<288x128xf32, #tpu.memory_space<vmem>>, vector<8x128xf32>
    %c41 = arith.constant 41 : index
    %c0_107 = arith.constant 0 : index
    %115 = vector.load %arg16[%c41, %c0_107] : memref<104x128xf32, #tpu.memory_space<vmem>>, vector<8x128xf32>
    tpu.vector_store %arg16[%c41, %c0_107], %114 {strides = array<i32>} : memref<104x128xf32, #tpu.memory_space<vmem>>, vector<8x128xf32>,
    %c144_108 = arith.constant 144 : index
    %c0_109 = arith.constant 0 : index
    %116 = tpu.strided_load %arg19[%c144_108, %c0_109] {strides = array<i32: 2, 1>} : memref<288x128xf32, #tpu.memory_space<vmem>>, vector<8x128xf32>
    %c51 = arith.constant 51 : index
    %c0_110 = arith.constant 0 : index
    %117 = vector.load %arg16[%c51, %c0_110] : memref<104x128xf32, #tpu.memory_space<vmem>>, vector<8x128xf32>
    tpu.vector_store %arg16[%c51, %c0_110], %116 {strides = array<i32>} : memref<104x128xf32, #tpu.memory_space<vmem>>, vector<8x128xf32>,
    %c180 = arith.constant 180 : index
    %c0_111 = arith.constant 0 : index
    %118 = tpu.strided_load %arg19[%c180, %c0_111] {strides = array<i32: 2, 1>} : memref<288x128xf32, #tpu.memory_space<vmem>>, vector<8x128xf32>
    %c61 = arith.constant 61 : index
    %c0_112 = arith.constant 0 : index
    %119 = vector.load %arg16[%c61, %c0_112] : memref<104x128xf32, #tpu.memory_space<vmem>>, vector<8x128xf32>
    tpu.vector_store %arg16[%c61, %c0_112], %118 {strides = array<i32>} : memref<104x128xf32, #tpu.memory_space<vmem>>, vector<8x128xf32>,
    %c216 = arith.constant 216 : index
    %c0_113 = arith.constant 0 : index
    %120 = tpu.strided_load %arg19[%c216, %c0_113] {strides = array<i32: 2, 1>} : memref<288x128xf32, #tpu.memory_space<vmem>>, vector<8x128xf32>
    %c71 = arith.constant 71 : index
    %c0_114 = arith.constant 0 : index
    %121 = vector.load %arg16[%c71, %c0_114] : memref<104x128xf32, #tpu.memory_space<vmem>>, vector<8x128xf32>
    tpu.vector_store %arg16[%c71, %c0_114], %120 {strides = array<i32>} : memref<104x128xf32, #tpu.memory_space<vmem>>, vector<8x128xf32>,
    %c252 = arith.constant 252 : index
    %c0_115 = arith.constant 0 : index
    %122 = tpu.strided_load %arg19[%c252, %c0_115] {strides = array<i32: 2, 1>} : memref<288x128xf32, #tpu.memory_space<vmem>>, vector<8x128xf32>
    %c81 = arith.constant 81 : index
    %c0_116 = arith.constant 0 : index
    %123 = vector.load %arg16[%c81, %c0_116] : memref<104x128xf32, #tpu.memory_space<vmem>>, vector<8x128xf32>
    tpu.vector_store %arg16[%c81, %c0_116], %122 {strides = array<i32>} : memref<104x128xf32, #tpu.memory_space<vmem>>, vector<8x128xf32>,
    %c0_117 = arith.constant 0 : index
    %c0_118 = arith.constant 0 : index
    %124 = vector.load %arg16[%c0_117, %c0_118] : memref<104x128xf32, #tpu.memory_space<vmem>>, vector<80x128xf32>
    %c0_119 = arith.constant 0 : index
    %c0_120 = arith.constant 0 : index
    %125 = vector.load %arg4[%c0_119, %c0_120] : memref<1152x128xf32, #tpu.memory_space<vmem>>, vector<128x128xf32>
    %cst_121 = arith.constant dense<0.000000e+00> : vector<80x128xf32>
    %126 = tpu.matmul %124, %125, %cst_121 {dimension_numbers = #tpu.dot_dimension_numbers<[1], [0], [0], [1], [0, 0, 1, 1], [], []>} : vector<80x128xf32>, vector<128x128xf32>, vector<80x128xf32> -> vector<80x128xf32>
    %c1_122 = arith.constant 1 : index
    %c0_123 = arith.constant 0 : index
    %127 = vector.load %arg16[%c1_122, %c0_123] : memref<104x128xf32, #tpu.memory_space<vmem>>, vector<80x128xf32>
    %c128_124 = arith.constant 128 : index
    %c0_125 = arith.constant 0 : index
    %128 = vector.load %arg4[%c128_124, %c0_125] : memref<1152x128xf32, #tpu.memory_space<vmem>>, vector<128x128xf32>
    %cst_126 = arith.constant dense<0.000000e+00> : vector<80x128xf32>
    %129 = tpu.matmul %127, %128, %cst_126 {dimension_numbers = #tpu.dot_dimension_numbers<[1], [0], [0], [1], [0, 0, 1, 1], [], []>} : vector<80x128xf32>, vector<128x128xf32>, vector<80x128xf32> -> vector<80x128xf32>
    %130 = arith.addf %126, %129 : vector<80x128xf32>
    %c2_127 = arith.constant 2 : index
    %c0_128 = arith.constant 0 : index
    %131 = vector.load %arg16[%c2_127, %c0_128] : memref<104x128xf32, #tpu.memory_space<vmem>>, vector<80x128xf32>
    %c256_129 = arith.constant 256 : index
    %c0_130 = arith.constant 0 : index
    %132 = vector.load %arg4[%c256_129, %c0_130] : memref<1152x128xf32, #tpu.memory_space<vmem>>, vector<128x128xf32>
    %cst_131 = arith.constant dense<0.000000e+00> : vector<80x128xf32>
    %133 = tpu.matmul %131, %132, %cst_131 {dimension_numbers = #tpu.dot_dimension_numbers<[1], [0], [0], [1], [0, 0, 1, 1], [], []>} : vector<80x128xf32>, vector<128x128xf32>, vector<80x128xf32> -> vector<80x128xf32>
    %134 = arith.addf %130, %133 : vector<80x128xf32>
    %c10 = arith.constant 10 : index
    %c0_132 = arith.constant 0 : index
    %135 = vector.load %arg16[%c10, %c0_132] : memref<104x128xf32, #tpu.memory_space<vmem>>, vector<80x128xf32>
    %c384_133 = arith.constant 384 : index
    %c0_134 = arith.constant 0 : index
    %136 = vector.load %arg4[%c384_133, %c0_134] : memref<1152x128xf32, #tpu.memory_space<vmem>>, vector<128x128xf32>
    %cst_135 = arith.constant dense<0.000000e+00> : vector<80x128xf32>
    %137 = tpu.matmul %135, %136, %cst_135 {dimension_numbers = #tpu.dot_dimension_numbers<[1], [0], [0], [1], [0, 0, 1, 1], [], []>} : vector<80x128xf32>, vector<128x128xf32>, vector<80x128xf32> -> vector<80x128xf32>
    %138 = arith.addf %134, %137 : vector<80x128xf32>
    %c11_136 = arith.constant 11 : index
    %c0_137 = arith.constant 0 : index
    %139 = vector.load %arg16[%c11_136, %c0_137] : memref<104x128xf32, #tpu.memory_space<vmem>>, vector<80x128xf32>
    %c512_138 = arith.constant 512 : index
    %c0_139 = arith.constant 0 : index
    %140 = vector.load %arg4[%c512_138, %c0_139] : memref<1152x128xf32, #tpu.memory_space<vmem>>, vector<128x128xf32>
    %cst_140 = arith.constant dense<0.000000e+00> : vector<80x128xf32>
    %141 = tpu.matmul %139, %140, %cst_140 {dimension_numbers = #tpu.dot_dimension_numbers<[1], [0], [0], [1], [0, 0, 1, 1], [], []>} : vector<80x128xf32>, vector<128x128xf32>, vector<80x128xf32> -> vector<80x128xf32>
    %142 = arith.addf %138, %141 : vector<80x128xf32>
    %c12 = arith.constant 12 : index
    %c0_141 = arith.constant 0 : index
    %143 = vector.load %arg16[%c12, %c0_141] : memref<104x128xf32, #tpu.memory_space<vmem>>, vector<80x128xf32>
    %c640_142 = arith.constant 640 : index
    %c0_143 = arith.constant 0 : index
    %144 = vector.load %arg4[%c640_142, %c0_143] : memref<1152x128xf32, #tpu.memory_space<vmem>>, vector<128x128xf32>
    %cst_144 = arith.constant dense<0.000000e+00> : vector<80x128xf32>
    %145 = tpu.matmul %143, %144, %cst_144 {dimension_numbers = #tpu.dot_dimension_numbers<[1], [0], [0], [1], [0, 0, 1, 1], [], []>} : vector<80x128xf32>, vector<128x128xf32>, vector<80x128xf32> -> vector<80x128xf32>
    %146 = arith.addf %142, %145 : vector<80x128xf32>
    %c20_145 = arith.constant 20 : index
    %c0_146 = arith.constant 0 : index
    %147 = vector.load %arg16[%c20_145, %c0_146] : memref<104x128xf32, #tpu.memory_space<vmem>>, vector<80x128xf32>
    %c768_147 = arith.constant 768 : index
    %c0_148 = arith.constant 0 : index
    %148 = vector.load %arg4[%c768_147, %c0_148] : memref<1152x128xf32, #tpu.memory_space<vmem>>, vector<128x128xf32>
    %cst_149 = arith.constant dense<0.000000e+00> : vector<80x128xf32>
    %149 = tpu.matmul %147, %148, %cst_149 {dimension_numbers = #tpu.dot_dimension_numbers<[1], [0], [0], [1], [0, 0, 1, 1], [], []>} : vector<80x128xf32>, vector<128x128xf32>, vector<80x128xf32> -> vector<80x128xf32>
    %150 = arith.addf %146, %149 : vector<80x128xf32>
    %c21_150 = arith.constant 21 : index
    %c0_151 = arith.constant 0 : index
    %151 = vector.load %arg16[%c21_150, %c0_151] : memref<104x128xf32, #tpu.memory_space<vmem>>, vector<80x128xf32>
    %c896_152 = arith.constant 896 : index
    %c0_153 = arith.constant 0 : index
    %152 = vector.load %arg4[%c896_152, %c0_153] : memref<1152x128xf32, #tpu.memory_space<vmem>>, vector<128x128xf32>
    %cst_154 = arith.constant dense<0.000000e+00> : vector<80x128xf32>
    %153 = tpu.matmul %151, %152, %cst_154 {dimension_numbers = #tpu.dot_dimension_numbers<[1], [0], [0], [1], [0, 0, 1, 1], [], []>} : vector<80x128xf32>, vector<128x128xf32>, vector<80x128xf32> -> vector<80x128xf32>
    %154 = arith.addf %150, %153 : vector<80x128xf32>
    %c22 = arith.constant 22 : index
    %c0_155 = arith.constant 0 : index
    %155 = vector.load %arg16[%c22, %c0_155] : memref<104x128xf32, #tpu.memory_space<vmem>>, vector<80x128xf32>
    %c1024_156 = arith.constant 1024 : index
    %c0_157 = arith.constant 0 : index
    %156 = vector.load %arg4[%c1024_156, %c0_157] : memref<1152x128xf32, #tpu.memory_space<vmem>>, vector<128x128xf32>
    %cst_158 = arith.constant dense<0.000000e+00> : vector<80x128xf32>
    %157 = tpu.matmul %155, %156, %cst_158 {dimension_numbers = #tpu.dot_dimension_numbers<[1], [0], [0], [1], [0, 0, 1, 1], [], []>} : vector<80x128xf32>, vector<128x128xf32>, vector<80x128xf32> -> vector<80x128xf32>
    %158 = arith.addf %154, %157 : vector<80x128xf32>
    %c0_159 = arith.constant 0 : index
    %c0_160 = arith.constant 0 : index
    %159 = vector.load %arg5[%c0_159, %c0_160] : memref<2x128xf32, #tpu.memory_space<vmem>>, vector<1x128xf32>
    %160 = vector.broadcast %159 : vector<1x128xf32> to vector<80x128xf32>
    %161 = arith.mulf %158, %160 : vector<80x128xf32>
    %c1_161 = arith.constant 1 : index
    %c0_162 = arith.constant 0 : index
    %162 = vector.load %arg5[%c1_161, %c0_162] : memref<2x128xf32, #tpu.memory_space<vmem>>, vector<1x128xf32>
    %163 = vector.broadcast %162 : vector<1x128xf32> to vector<80x128xf32>
    %164 = arith.addf %161, %163 : vector<80x128xf32>
    %cst_163 = arith.constant 1.000000e-01 : f32
    %165 = vector.broadcast %cst_163 : f32 to vector<80x128xf32>
    %166 = arith.mulf %165, %164 : vector<80x128xf32>
    %167 = arith.maximumf %164, %166 : vector<80x128xf32>
    %168 = vector.extract_strided_slice %167 {offsets = [0, 0], sizes = [69, 128], strides = [1, 1]} : vector<80x128xf32> to vector<69x128xf32>
    %169 = vector.extract_strided_slice %167 {offsets = [1, 0], sizes = [69, 128], strides = [1, 1]} : vector<80x128xf32> to vector<69x128xf32>
    %170 = arith.maximumf %168, %169 : vector<69x128xf32>
    %171 = vector.extract_strided_slice %167 {offsets = [10, 0], sizes = [69, 128], strides = [1, 1]} : vector<80x128xf32> to vector<69x128xf32>
    %172 = vector.extract_strided_slice %167 {offsets = [11, 0], sizes = [69, 128], strides = [1, 1]} : vector<80x128xf32> to vector<69x128xf32>
    %173 = arith.maximumf %171, %172 : vector<69x128xf32>
    %174 = arith.maximumf %170, %173 : vector<69x128xf32>
    %c0_164 = arith.constant 0 : index
    %c0_165 = arith.constant 0 : index
    %175 = vector.load %arg19[%c0_164, %c0_165] : memref<288x128xf32, #tpu.memory_space<vmem>>, vector<69x128xf32>
    tpu.vector_store %arg19[%c0_164, %c0_165], %174 {strides = array<i32>} : memref<288x128xf32, #tpu.memory_space<vmem>>, vector<69x128xf32>,
    %c0_166 = arith.constant 0 : index
    %c0_167 = arith.constant 0 : index
    %176 = tpu.strided_load %arg19[%c0_166, %c0_167] {strides = array<i32: 2, 1>} : memref<288x128xf32, #tpu.memory_space<vmem>>, vector<4x128xf32>
    %c7 = arith.constant 7 : index
    %c0_168 = arith.constant 0 : index
    %177 = vector.load %arg17[%c7, %c0_168] : memref<40x128xf32, #tpu.memory_space<vmem>>, vector<4x128xf32>
    tpu.vector_store %arg17[%c7, %c0_168], %176 {strides = array<i32>} : memref<40x128xf32, #tpu.memory_space<vmem>>, vector<4x128xf32>,
    %c20_169 = arith.constant 20 : index
    %c0_170 = arith.constant 0 : index
    %178 = tpu.strided_load %arg19[%c20_169, %c0_170] {strides = array<i32: 2, 1>} : memref<288x128xf32, #tpu.memory_space<vmem>>, vector<4x128xf32>
    %c13 = arith.constant 13 : index
    %c0_171 = arith.constant 0 : index
    %179 = vector.load %arg17[%c13, %c0_171] : memref<40x128xf32, #tpu.memory_space<vmem>>, vector<4x128xf32>
    tpu.vector_store %arg17[%c13, %c0_171], %178 {strides = array<i32>} : memref<40x128xf32, #tpu.memory_space<vmem>>, vector<4x128xf32>,
    %c40 = arith.constant 40 : index
    %c0_172 = arith.constant 0 : index
    %180 = tpu.strided_load %arg19[%c40, %c0_172] {strides = array<i32: 2, 1>} : memref<288x128xf32, #tpu.memory_space<vmem>>, vector<4x128xf32>
    %c19_173 = arith.constant 19 : index
    %c0_174 = arith.constant 0 : index
    %181 = vector.load %arg17[%c19_173, %c0_174] : memref<40x128xf32, #tpu.memory_space<vmem>>, vector<4x128xf32>
    tpu.vector_store %arg17[%c19_173, %c0_174], %180 {strides = array<i32>} : memref<40x128xf32, #tpu.memory_space<vmem>>, vector<4x128xf32>,
    %c60 = arith.constant 60 : index
    %c0_175 = arith.constant 0 : index
    %182 = tpu.strided_load %arg19[%c60, %c0_175] {strides = array<i32: 2, 1>} : memref<288x128xf32, #tpu.memory_space<vmem>>, vector<4x128xf32>
    %c25 = arith.constant 25 : index
    %c0_176 = arith.constant 0 : index
    %183 = vector.load %arg17[%c25, %c0_176] : memref<40x128xf32, #tpu.memory_space<vmem>>, vector<4x128xf32>
    tpu.vector_store %arg17[%c25, %c0_176], %182 {strides = array<i32>} : memref<40x128xf32, #tpu.memory_space<vmem>>, vector<4x128xf32>,
    %c0_177 = arith.constant 0 : index
    %c0_178 = arith.constant 0 : index
    %184 = vector.load %arg17[%c0_177, %c0_178] : memref<40x128xf32, #tpu.memory_space<vmem>>, vector<24x128xf32>
    %c0_179 = arith.constant 0 : index
    %c0_180 = arith.constant 0 : index
    %185 = vector.load %arg6[%c0_179, %c0_180] : memref<1152x256xf32, #tpu.memory_space<vmem>>, vector<128x256xf32>
    %cst_181 = arith.constant dense<0.000000e+00> : vector<24x256xf32>
    %186 = tpu.matmul %184, %185, %cst_181 {dimension_numbers = #tpu.dot_dimension_numbers<[1], [0], [0], [1], [0, 0, 1, 1], [], []>} : vector<24x128xf32>, vector<128x256xf32>, vector<24x256xf32> -> vector<24x256xf32>
    %c1_182 = arith.constant 1 : index
    %c0_183 = arith.constant 0 : index
    %187 = vector.load %arg17[%c1_182, %c0_183] : memref<40x128xf32, #tpu.memory_space<vmem>>, vector<24x128xf32>
    %c128_184 = arith.constant 128 : index
    %c0_185 = arith.constant 0 : index
    %188 = vector.load %arg6[%c128_184, %c0_185] : memref<1152x256xf32, #tpu.memory_space<vmem>>, vector<128x256xf32>
    %cst_186 = arith.constant dense<0.000000e+00> : vector<24x256xf32>
    %189 = tpu.matmul %187, %188, %cst_186 {dimension_numbers = #tpu.dot_dimension_numbers<[1], [0], [0], [1], [0, 0, 1, 1], [], []>} : vector<24x128xf32>, vector<128x256xf32>, vector<24x256xf32> -> vector<24x256xf32>
    %190 = arith.addf %186, %189 : vector<24x256xf32>
    %c2_187 = arith.constant 2 : index
    %c0_188 = arith.constant 0 : index
    %191 = vector.load %arg17[%c2_187, %c0_188] : memref<40x128xf32, #tpu.memory_space<vmem>>, vector<24x128xf32>
    %c256_189 = arith.constant 256 : index
    %c0_190 = arith.constant 0 : index
    %192 = vector.load %arg6[%c256_189, %c0_190] : memref<1152x256xf32, #tpu.memory_space<vmem>>, vector<128x256xf32>
    %cst_191 = arith.constant dense<0.000000e+00> : vector<24x256xf32>
    %193 = tpu.matmul %191, %192, %cst_191 {dimension_numbers = #tpu.dot_dimension_numbers<[1], [0], [0], [1], [0, 0, 1, 1], [], []>} : vector<24x128xf32>, vector<128x256xf32>, vector<24x256xf32> -> vector<24x256xf32>
    %194 = arith.addf %190, %193 : vector<24x256xf32>
    %c6 = arith.constant 6 : index
    %c0_192 = arith.constant 0 : index
    %195 = vector.load %arg17[%c6, %c0_192] : memref<40x128xf32, #tpu.memory_space<vmem>>, vector<24x128xf32>
    %c384_193 = arith.constant 384 : index
    %c0_194 = arith.constant 0 : index
    %196 = vector.load %arg6[%c384_193, %c0_194] : memref<1152x256xf32, #tpu.memory_space<vmem>>, vector<128x256xf32>
    %cst_195 = arith.constant dense<0.000000e+00> : vector<24x256xf32>
    %197 = tpu.matmul %195, %196, %cst_195 {dimension_numbers = #tpu.dot_dimension_numbers<[1], [0], [0], [1], [0, 0, 1, 1], [], []>} : vector<24x128xf32>, vector<128x256xf32>, vector<24x256xf32> -> vector<24x256xf32>
    %198 = arith.addf %194, %197 : vector<24x256xf32>
    %c7_196 = arith.constant 7 : index
    %c0_197 = arith.constant 0 : index
    %199 = vector.load %arg17[%c7_196, %c0_197] : memref<40x128xf32, #tpu.memory_space<vmem>>, vector<24x128xf32>
    %c512_198 = arith.constant 512 : index
    %c0_199 = arith.constant 0 : index
    %200 = vector.load %arg6[%c512_198, %c0_199] : memref<1152x256xf32, #tpu.memory_space<vmem>>, vector<128x256xf32>
    %cst_200 = arith.constant dense<0.000000e+00> : vector<24x256xf32>
    %201 = tpu.matmul %199, %200, %cst_200 {dimension_numbers = #tpu.dot_dimension_numbers<[1], [0], [0], [1], [0, 0, 1, 1], [], []>} : vector<24x128xf32>, vector<128x256xf32>, vector<24x256xf32> -> vector<24x256xf32>
    %202 = arith.addf %198, %201 : vector<24x256xf32>
    %c8 = arith.constant 8 : index
    %c0_201 = arith.constant 0 : index
    %203 = vector.load %arg17[%c8, %c0_201] : memref<40x128xf32, #tpu.memory_space<vmem>>, vector<24x128xf32>
    %c640_202 = arith.constant 640 : index
    %c0_203 = arith.constant 0 : index
    %204 = vector.load %arg6[%c640_202, %c0_203] : memref<1152x256xf32, #tpu.memory_space<vmem>>, vector<128x256xf32>
    %cst_204 = arith.constant dense<0.000000e+00> : vector<24x256xf32>
    %205 = tpu.matmul %203, %204, %cst_204 {dimension_numbers = #tpu.dot_dimension_numbers<[1], [0], [0], [1], [0, 0, 1, 1], [], []>} : vector<24x128xf32>, vector<128x256xf32>, vector<24x256xf32> -> vector<24x256xf32>
    %206 = arith.addf %202, %205 : vector<24x256xf32>
    %c12_205 = arith.constant 12 : index
    %c0_206 = arith.constant 0 : index
    %207 = vector.load %arg17[%c12_205, %c0_206] : memref<40x128xf32, #tpu.memory_space<vmem>>, vector<24x128xf32>
    %c768_207 = arith.constant 768 : index
    %c0_208 = arith.constant 0 : index
    %208 = vector.load %arg6[%c768_207, %c0_208] : memref<1152x256xf32, #tpu.memory_space<vmem>>, vector<128x256xf32>
    %cst_209 = arith.constant dense<0.000000e+00> : vector<24x256xf32>
    %209 = tpu.matmul %207, %208, %cst_209 {dimension_numbers = #tpu.dot_dimension_numbers<[1], [0], [0], [1], [0, 0, 1, 1], [], []>} : vector<24x128xf32>, vector<128x256xf32>, vector<24x256xf32> -> vector<24x256xf32>
    %210 = arith.addf %206, %209 : vector<24x256xf32>
    %c13_210 = arith.constant 13 : index
    %c0_211 = arith.constant 0 : index
    %211 = vector.load %arg17[%c13_210, %c0_211] : memref<40x128xf32, #tpu.memory_space<vmem>>, vector<24x128xf32>
    %c896_212 = arith.constant 896 : index
    %c0_213 = arith.constant 0 : index
    %212 = vector.load %arg6[%c896_212, %c0_213] : memref<1152x256xf32, #tpu.memory_space<vmem>>, vector<128x256xf32>
    %cst_214 = arith.constant dense<0.000000e+00> : vector<24x256xf32>
    %213 = tpu.matmul %211, %212, %cst_214 {dimension_numbers = #tpu.dot_dimension_numbers<[1], [0], [0], [1], [0, 0, 1, 1], [], []>} : vector<24x128xf32>, vector<128x256xf32>, vector<24x256xf32> -> vector<24x256xf32>
    %214 = arith.addf %210, %213 : vector<24x256xf32>
    %c14 = arith.constant 14 : index
    %c0_215 = arith.constant 0 : index
    %215 = vector.load %arg17[%c14, %c0_215] : memref<40x128xf32, #tpu.memory_space<vmem>>, vector<24x128xf32>
    %c1024_216 = arith.constant 1024 : index
    %c0_217 = arith.constant 0 : index
    %216 = vector.load %arg6[%c1024_216, %c0_217] : memref<1152x256xf32, #tpu.memory_space<vmem>>, vector<128x256xf32>
    %cst_218 = arith.constant dense<0.000000e+00> : vector<24x256xf32>
    %217 = tpu.matmul %215, %216, %cst_218 {dimension_numbers = #tpu.dot_dimension_numbers<[1], [0], [0], [1], [0, 0, 1, 1], [], []>} : vector<24x128xf32>, vector<128x256xf32>, vector<24x256xf32> -> vector<24x256xf32>
    %218 = arith.addf %214, %217 : vector<24x256xf32>
    %c0_219 = arith.constant 0 : index
    %c0_220 = arith.constant 0 : index
    %219 = vector.load %arg7[%c0_219, %c0_220] : memref<2x256xf32, #tpu.memory_space<vmem>>, vector<1x256xf32>
    %220 = vector.broadcast %219 : vector<1x256xf32> to vector<24x256xf32>
    %221 = arith.mulf %218, %220 : vector<24x256xf32>
    %c1_221 = arith.constant 1 : index
    %c0_222 = arith.constant 0 : index
    %222 = vector.load %arg7[%c1_221, %c0_222] : memref<2x256xf32, #tpu.memory_space<vmem>>, vector<1x256xf32>
    %223 = vector.broadcast %222 : vector<1x256xf32> to vector<24x256xf32>
    %224 = arith.addf %221, %223 : vector<24x256xf32>
    %cst_223 = arith.constant 1.000000e-01 : f32
    %225 = vector.broadcast %cst_223 : f32 to vector<24x256xf32>
    %226 = arith.mulf %225, %224 : vector<24x256xf32>
    %227 = arith.maximumf %224, %226 : vector<24x256xf32>
    %228 = vector.extract_strided_slice %227 {offsets = [0, 0], sizes = [4, 256], strides = [1, 1]} : vector<24x256xf32> to vector<4x256xf32>
    %c7_224 = arith.constant 7 : index
    %c0_225 = arith.constant 0 : index
    %229 = vector.load %arg18[%c7_224, %c0_225] : memref<40x256xf32, #tpu.memory_space<vmem>>, vector<4x256xf32>
    tpu.vector_store %arg18[%c7_224, %c0_225], %228 {strides = array<i32>} : memref<40x256xf32, #tpu.memory_space<vmem>>, vector<4x256xf32>,
    %230 = vector.extract_strided_slice %227 {offsets = [6, 0], sizes = [4, 256], strides = [1, 1]} : vector<24x256xf32> to vector<4x256xf32>
    %c13_226 = arith.constant 13 : index
    %c0_227 = arith.constant 0 : index
    %231 = vector.load %arg18[%c13_226, %c0_227] : memref<40x256xf32, #tpu.memory_space<vmem>>, vector<4x256xf32>
    tpu.vector_store %arg18[%c13_226, %c0_227], %230 {strides = array<i32>} : memref<40x256xf32, #tpu.memory_space<vmem>>, vector<4x256xf32>,
    %232 = vector.extract_strided_slice %227 {offsets = [12, 0], sizes = [4, 256], strides = [1, 1]} : vector<24x256xf32> to vector<4x256xf32>
    %c19_228 = arith.constant 19 : index
    %c0_229 = arith.constant 0 : index
    %233 = vector.load %arg18[%c19_228, %c0_229] : memref<40x256xf32, #tpu.memory_space<vmem>>, vector<4x256xf32>
    tpu.vector_store %arg18[%c19_228, %c0_229], %232 {strides = array<i32>} : memref<40x256xf32, #tpu.memory_space<vmem>>, vector<4x256xf32>,
    %234 = vector.extract_strided_slice %227 {offsets = [18, 0], sizes = [4, 256], strides = [1, 1]} : vector<24x256xf32> to vector<4x256xf32>
    %c25_230 = arith.constant 25 : index
    %c0_231 = arith.constant 0 : index
    %235 = vector.load %arg18[%c25_230, %c0_231] : memref<40x256xf32, #tpu.memory_space<vmem>>, vector<4x256xf32>
    tpu.vector_store %arg18[%c25_230, %c0_231], %234 {strides = array<i32>} : memref<40x256xf32, #tpu.memory_space<vmem>>, vector<4x256xf32>,
    %c0_232 = arith.constant 0 : index
    %c0_233 = arith.constant 0 : index
    %236 = vector.load %arg18[%c0_232, %c0_233] : memref<40x256xf32, #tpu.memory_space<vmem>>, vector<24x256xf32>
    %c0_234 = arith.constant 0 : index
    %c0_235 = arith.constant 0 : index
    %237 = vector.load %arg8[%c0_234, %c0_235] : memref<2304x256xf32, #tpu.memory_space<vmem>>, vector<256x256xf32>
    %cst_236 = arith.constant dense<0.000000e+00> : vector<24x256xf32>
    %238 = tpu.matmul %236, %237, %cst_236 {dimension_numbers = #tpu.dot_dimension_numbers<[1], [0], [0], [1], [0, 0, 1, 1], [], []>} : vector<24x256xf32>, vector<256x256xf32>, vector<24x256xf32> -> vector<24x256xf32>
    %c1_237 = arith.constant 1 : index
    %c0_238 = arith.constant 0 : index
    %239 = vector.load %arg18[%c1_237, %c0_238] : memref<40x256xf32, #tpu.memory_space<vmem>>, vector<24x256xf32>
    %c256_239 = arith.constant 256 : index
    %c0_240 = arith.constant 0 : index
    %240 = vector.load %arg8[%c256_239, %c0_240] : memref<2304x256xf32, #tpu.memory_space<vmem>>, vector<256x256xf32>
    %cst_241 = arith.constant dense<0.000000e+00> : vector<24x256xf32>
    %241 = tpu.matmul %239, %240, %cst_241 {dimension_numbers = #tpu.dot_dimension_numbers<[1], [0], [0], [1], [0, 0, 1, 1], [], []>} : vector<24x256xf32>, vector<256x256xf32>, vector<24x256xf32> -> vector<24x256xf32>
    %242 = arith.addf %238, %241 : vector<24x256xf32>
    %c2_242 = arith.constant 2 : index
    %c0_243 = arith.constant 0 : index
    %243 = vector.load %arg18[%c2_242, %c0_243] : memref<40x256xf32, #tpu.memory_space<vmem>>, vector<24x256xf32>
    %c512_244 = arith.constant 512 : index
    %c0_245 = arith.constant 0 : index
    %244 = vector.load %arg8[%c512_244, %c0_245] : memref<2304x256xf32, #tpu.memory_space<vmem>>, vector<256x256xf32>
    %cst_246 = arith.constant dense<0.000000e+00> : vector<24x256xf32>
    %245 = tpu.matmul %243, %244, %cst_246 {dimension_numbers = #tpu.dot_dimension_numbers<[1], [0], [0], [1], [0, 0, 1, 1], [], []>} : vector<24x256xf32>, vector<256x256xf32>, vector<24x256xf32> -> vector<24x256xf32>
    %246 = arith.addf %242, %245 : vector<24x256xf32>
    %c6_247 = arith.constant 6 : index
    %c0_248 = arith.constant 0 : index
    %247 = vector.load %arg18[%c6_247, %c0_248] : memref<40x256xf32, #tpu.memory_space<vmem>>, vector<24x256xf32>
    %c768_249 = arith.constant 768 : index
    %c0_250 = arith.constant 0 : index
    %248 = vector.load %arg8[%c768_249, %c0_250] : memref<2304x256xf32, #tpu.memory_space<vmem>>, vector<256x256xf32>
    %cst_251 = arith.constant dense<0.000000e+00> : vector<24x256xf32>
    %249 = tpu.matmul %247, %248, %cst_251 {dimension_numbers = #tpu.dot_dimension_numbers<[1], [0], [0], [1], [0, 0, 1, 1], [], []>} : vector<24x256xf32>, vector<256x256xf32>, vector<24x256xf32> -> vector<24x256xf32>
    %250 = arith.addf %246, %249 : vector<24x256xf32>
    %c7_252 = arith.constant 7 : index
    %c0_253 = arith.constant 0 : index
    %251 = vector.load %arg18[%c7_252, %c0_253] : memref<40x256xf32, #tpu.memory_space<vmem>>, vector<24x256xf32>
    %c1024_254 = arith.constant 1024 : index
    %c0_255 = arith.constant 0 : index
    %252 = vector.load %arg8[%c1024_254, %c0_255] : memref<2304x256xf32, #tpu.memory_space<vmem>>, vector<256x256xf32>
    %cst_256 = arith.constant dense<0.000000e+00> : vector<24x256xf32>
    %253 = tpu.matmul %251, %252, %cst_256 {dimension_numbers = #tpu.dot_dimension_numbers<[1], [0], [0], [1], [0, 0, 1, 1], [], []>} : vector<24x256xf32>, vector<256x256xf32>, vector<24x256xf32> -> vector<24x256xf32>
    %254 = arith.addf %250, %253 : vector<24x256xf32>
    %c8_257 = arith.constant 8 : index
    %c0_258 = arith.constant 0 : index
    %255 = vector.load %arg18[%c8_257, %c0_258] : memref<40x256xf32, #tpu.memory_space<vmem>>, vector<24x256xf32>
    %c1280 = arith.constant 1280 : index
    %c0_259 = arith.constant 0 : index
    %256 = vector.load %arg8[%c1280, %c0_259] : memref<2304x256xf32, #tpu.memory_space<vmem>>, vector<256x256xf32>
    %cst_260 = arith.constant dense<0.000000e+00> : vector<24x256xf32>
    %257 = tpu.matmul %255, %256, %cst_260 {dimension_numbers = #tpu.dot_dimension_numbers<[1], [0], [0], [1], [0, 0, 1, 1], [], []>} : vector<24x256xf32>, vector<256x256xf32>, vector<24x256xf32> -> vector<24x256xf32>
    %258 = arith.addf %254, %257 : vector<24x256xf32>
    %c12_261 = arith.constant 12 : index
    %c0_262 = arith.constant 0 : index
    %259 = vector.load %arg18[%c12_261, %c0_262] : memref<40x256xf32, #tpu.memory_space<vmem>>, vector<24x256xf32>
    %c1536 = arith.constant 1536 : index
    %c0_263 = arith.constant 0 : index
    %260 = vector.load %arg8[%c1536, %c0_263] : memref<2304x256xf32, #tpu.memory_space<vmem>>, vector<256x256xf32>
    %cst_264 = arith.constant dense<0.000000e+00> : vector<24x256xf32>
    %261 = tpu.matmul %259, %260, %cst_264 {dimension_numbers = #tpu.dot_dimension_numbers<[1], [0], [0], [1], [0, 0, 1, 1], [], []>} : vector<24x256xf32>, vector<256x256xf32>, vector<24x256xf32> -> vector<24x256xf32>
    %262 = arith.addf %258, %261 : vector<24x256xf32>
    %c13_265 = arith.constant 13 : index
    %c0_266 = arith.constant 0 : index
    %263 = vector.load %arg18[%c13_265, %c0_266] : memref<40x256xf32, #tpu.memory_space<vmem>>, vector<24x256xf32>
    %c1792 = arith.constant 1792 : index
    %c0_267 = arith.constant 0 : index
    %264 = vector.load %arg8[%c1792, %c0_267] : memref<2304x256xf32, #tpu.memory_space<vmem>>, vector<256x256xf32>
    %cst_268 = arith.constant dense<0.000000e+00> : vector<24x256xf32>
    %265 = tpu.matmul %263, %264, %cst_268 {dimension_numbers = #tpu.dot_dimension_numbers<[1], [0], [0], [1], [0, 0, 1, 1], [], []>} : vector<24x256xf32>, vector<256x256xf32>, vector<24x256xf32> -> vector<24x256xf32>
    %266 = arith.addf %262, %265 : vector<24x256xf32>
    %c14_269 = arith.constant 14 : index
    %c0_270 = arith.constant 0 : index
    %267 = vector.load %arg18[%c14_269, %c0_270] : memref<40x256xf32, #tpu.memory_space<vmem>>, vector<24x256xf32>
    %c2048 = arith.constant 2048 : index
    %c0_271 = arith.constant 0 : index
    %268 = vector.load %arg8[%c2048, %c0_271] : memref<2304x256xf32, #tpu.memory_space<vmem>>, vector<256x256xf32>
    %cst_272 = arith.constant dense<0.000000e+00> : vector<24x256xf32>
    %269 = tpu.matmul %267, %268, %cst_272 {dimension_numbers = #tpu.dot_dimension_numbers<[1], [0], [0], [1], [0, 0, 1, 1], [], []>} : vector<24x256xf32>, vector<256x256xf32>, vector<24x256xf32> -> vector<24x256xf32>
    %270 = arith.addf %266, %269 : vector<24x256xf32>
    %c0_273 = arith.constant 0 : index
    %c0_274 = arith.constant 0 : index
    %271 = vector.load %arg9[%c0_273, %c0_274] : memref<2x256xf32, #tpu.memory_space<vmem>>, vector<1x256xf32>
    %272 = vector.broadcast %271 : vector<1x256xf32> to vector<24x256xf32>
    %273 = arith.mulf %270, %272 : vector<24x256xf32>
    %c1_275 = arith.constant 1 : index
    %c0_276 = arith.constant 0 : index
    %274 = vector.load %arg9[%c1_275, %c0_276] : memref<2x256xf32, #tpu.memory_space<vmem>>, vector<1x256xf32>
    %275 = vector.broadcast %274 : vector<1x256xf32> to vector<24x256xf32>
    %276 = arith.addf %273, %275 : vector<24x256xf32>
    %cst_277 = arith.constant 1.000000e-01 : f32
    %277 = vector.broadcast %cst_277 : f32 to vector<24x256xf32>
    %278 = arith.mulf %277, %276 : vector<24x256xf32>
    %279 = arith.maximumf %276, %278 : vector<24x256xf32>
    %280 = vector.extract_strided_slice %279 {offsets = [0, 0], sizes = [17, 256], strides = [1, 1]} : vector<24x256xf32> to vector<17x256xf32>
    %281 = vector.extract_strided_slice %279 {offsets = [1, 0], sizes = [17, 256], strides = [1, 1]} : vector<24x256xf32> to vector<17x256xf32>
    %282 = arith.maximumf %280, %281 : vector<17x256xf32>
    %283 = vector.extract_strided_slice %279 {offsets = [6, 0], sizes = [17, 256], strides = [1, 1]} : vector<24x256xf32> to vector<17x256xf32>
    %284 = vector.extract_strided_slice %279 {offsets = [7, 0], sizes = [17, 256], strides = [1, 1]} : vector<24x256xf32> to vector<17x256xf32>
    %285 = arith.maximumf %283, %284 : vector<17x256xf32>
    %286 = arith.maximumf %282, %285 : vector<17x256xf32>
    %287 = vector.extract_strided_slice %286 {offsets = [0, 0], sizes = [1, 256], strides = [1, 1]} : vector<17x256xf32> to vector<1x256xf32>
    %288 = vector.extract_strided_slice %286 {offsets = [2, 0], sizes = [1, 256], strides = [1, 1]} : vector<17x256xf32> to vector<1x256xf32>
    %289 = arith.addf %287, %288 : vector<1x256xf32>
    %290 = vector.extract_strided_slice %286 {offsets = [12, 0], sizes = [1, 256], strides = [1, 1]} : vector<17x256xf32> to vector<1x256xf32>
    %291 = arith.addf %289, %290 : vector<1x256xf32>
    %292 = vector.extract_strided_slice %286 {offsets = [14, 0], sizes = [1, 256], strides = [1, 1]} : vector<17x256xf32> to vector<1x256xf32>
    %293 = arith.addf %291, %292 : vector<1x256xf32>
    %cst_278 = arith.constant 2.500000e-01 : f32
    %294 = vector.broadcast %cst_278 : f32 to vector<1x256xf32>
    %295 = arith.mulf %293, %294 : vector<1x256xf32>
    %296 = vector.shape_cast %295 : vector<1x256xf32> to vector<1x256xf32>
    %297 = vector.broadcast %296 : vector<1x256xf32> to vector<8x256xf32>
    %c0_279 = arith.constant 0 : index
    %c0_280 = arith.constant 0 : index
    %298 = vector.load %arg10[%c0_279, %c0_280] : memref<256x512xf32, #tpu.memory_space<vmem>>, vector<256x512xf32>
    %cst_281 = arith.constant dense<0.000000e+00> : vector<8x512xf32>
    %299 = tpu.matmul %297, %298, %cst_281 {dimension_numbers = #tpu.dot_dimension_numbers<[1], [0], [0], [1], [0, 0, 1, 1], [], []>} : vector<8x256xf32>, vector<256x512xf32>, vector<8x512xf32> -> vector<8x512xf32>
    %c0_282 = arith.constant 0 : index
    %c0_283 = arith.constant 0 : index
    %300 = vector.load %arg11[%c0_282, %c0_283] : memref<1x512xf32, #tpu.memory_space<vmem>>, vector<1x512xf32>
    %301 = vector.broadcast %300 : vector<1x512xf32> to vector<8x512xf32>
    %302 = arith.addf %299, %301 : vector<8x512xf32>
    %cst_284 = arith.constant 1.000000e-01 : f32
    %303 = vector.broadcast %cst_284 : f32 to vector<8x512xf32>
    %304 = arith.mulf %303, %302 : vector<8x512xf32>
    %305 = arith.maximumf %302, %304 : vector<8x512xf32>
    %c0_285 = arith.constant 0 : index
    %c0_286 = arith.constant 0 : index
    %306 = vector.load %arg12[%c0_285, %c0_286] : memref<512x128xf32, #tpu.memory_space<vmem>>, vector<512x128xf32>
    %cst_287 = arith.constant dense<0.000000e+00> : vector<8x128xf32>
    %307 = tpu.matmul %305, %306, %cst_287 {dimension_numbers = #tpu.dot_dimension_numbers<[1], [0], [0], [1], [0, 0, 1, 1], [], []>} : vector<8x512xf32>, vector<512x128xf32>, vector<8x128xf32> -> vector<8x128xf32>
    %c0_288 = arith.constant 0 : index
    %c0_289 = arith.constant 0 : index
    %308 = vector.load %arg13[%c0_288, %c0_289] : memref<1x128xf32, #tpu.memory_space<vmem>>, vector<1x128xf32>
    %309 = vector.broadcast %308 : vector<1x128xf32> to vector<8x128xf32>
    %310 = arith.addf %307, %309 : vector<8x128xf32>
    %311 = vector.extract_strided_slice %310 {offsets = [0, 0], sizes = [1, 128], strides = [1, 1]} : vector<8x128xf32> to vector<1x128xf32>
    %c0_290 = arith.constant 0 : index
    %c0_291 = arith.constant 0 : index
    %c0_292 = arith.constant 0 : index
    %312 = vector.load %arg14[%c0_290, %c0_291, %c0_292] : memref<1x1x128xf32, #tpu.memory_space<vmem>>, vector<1x1x128xf32>
    %313 = vector.shape_cast %312 : vector<1x1x128xf32> to vector<1x128xf32>
    %314 = vector.shape_cast %311 : vector<1x128xf32> to vector<1x1x128xf32>
    tpu.vector_store %arg14[%c0_290, %c0_291, %c0_292], %314 {strides = array<i32>} : memref<1x1x128xf32, #tpu.memory_space<vmem>>, vector<1x1x128xf32>,
    return
  }
  func.func @transform_0(%arg0: i32) -> (i32, i32, i32) {
    %c0_i32 = arith.constant 0 : i32
    %c0_i32_0 = arith.constant 0 : i32
    %c0_i32_1 = arith.constant 0 : i32
    return %arg0, %c0_i32, %c0_i32_0 : i32, i32, i32
  }
  func.func @transform_1(%arg0: i32) -> (i32, i32) {
    %c0_i32 = arith.constant 0 : i32
    %c0_i32_0 = arith.constant 0 : i32
    %c0_i32_1 = arith.constant 0 : i32
    return %c0_i32, %c0_i32_0 : i32, i32
  }
  func.func @transform_2(%arg0: i32) -> (i32, i32) {
    %c0_i32 = arith.constant 0 : i32
    %c0_i32_0 = arith.constant 0 : i32
    %c0_i32_1 = arith.constant 0 : i32
    return %c0_i32, %c0_i32_0 : i32, i32
  }
  func.func @transform_3(%arg0: i32) -> (i32, i32) {
    %c0_i32 = arith.constant 0 : i32
    %c0_i32_0 = arith.constant 0 : i32
    %c0_i32_1 = arith.constant 0 : i32
    return %c0_i32, %c0_i32_0 : i32, i32
  }
  func.func @transform_4(%arg0: i32) -> (i32, i32) {
    %c0_i32 = arith.constant 0 : i32
    %c0_i32_0 = arith.constant 0 : i32
    %c0_i32_1 = arith.constant 0 : i32
    return %c0_i32, %c0_i32_0 : i32, i32
  }
  func.func @transform_5(%arg0: i32) -> (i32, i32) {
    %c0_i32 = arith.constant 0 : i32
    %c0_i32_0 = arith.constant 0 : i32
    %c0_i32_1 = arith.constant 0 : i32
    return %c0_i32, %c0_i32_0 : i32, i32
  }
  func.func @transform_6(%arg0: i32) -> (i32, i32) {
    %c0_i32 = arith.constant 0 : i32
    %c0_i32_0 = arith.constant 0 : i32
    %c0_i32_1 = arith.constant 0 : i32
    return %c0_i32, %c0_i32_0 : i32, i32
  }
  func.func @transform_7(%arg0: i32) -> (i32, i32) {
    %c0_i32 = arith.constant 0 : i32
    %c0_i32_0 = arith.constant 0 : i32
    %c0_i32_1 = arith.constant 0 : i32
    return %c0_i32, %c0_i32_0 : i32, i32
  }
  func.func @transform_8(%arg0: i32) -> (i32, i32) {
    %c0_i32 = arith.constant 0 : i32
    %c0_i32_0 = arith.constant 0 : i32
    %c0_i32_1 = arith.constant 0 : i32
    return %c0_i32, %c0_i32_0 : i32, i32
  }
  func.func @transform_9(%arg0: i32) -> (i32, i32) {
    %c0_i32 = arith.constant 0 : i32
    %c0_i32_0 = arith.constant 0 : i32
    %c0_i32_1 = arith.constant 0 : i32
    return %c0_i32, %c0_i32_0 : i32, i32
  }
  func.func @transform_10(%arg0: i32) -> (i32, i32) {
    %c0_i32 = arith.constant 0 : i32
    %c0_i32_0 = arith.constant 0 : i32
    %c0_i32_1 = arith.constant 0 : i32
    return %c0_i32, %c0_i32_0 : i32, i32
  }
  func.func @transform_11(%arg0: i32) -> (i32, i32) {
    %c0_i32 = arith.constant 0 : i32
    %c0_i32_0 = arith.constant 0 : i32
    %c0_i32_1 = arith.constant 0 : i32
    return %c0_i32, %c0_i32_0 : i32, i32
  }
  func.func @transform_12(%arg0: i32) -> (i32, i32) {
    %c0_i32 = arith.constant 0 : i32
    %c0_i32_0 = arith.constant 0 : i32
    %c0_i32_1 = arith.constant 0 : i32
    return %c0_i32, %c0_i32_0 : i32, i32
  }
  func.func @transform_13(%arg0: i32) -> (i32, i32, i32) {
    %c0_i32 = arith.constant 0 : i32
    %c0_i32_0 = arith.constant 0 : i32
    %c0_i32_1 = arith.constant 0 : i32
    return %arg0, %c0_i32, %c0_i32_0 : i32, i32, i32
  }
}

</mosaic_0001>

<bundles_post_ra>
// kernel: tpu_custom_call.1
= control target key start
LH: loop header
LB: loop body
LE: loop exit
PB: predicated region body
PF: predicated region fallthrough
CT: control target
= control target key end

     0   :  { %s14159_s0 = inlined_call_operand.hbm [shape: f32[2,256,128], index: 0, kind: input, shape index: {}]   ;;  %s14160_s1 = inlined_call_operand.hbm [shape: f32[1152,128], index: 1, kind: input, shape index: {}]   ;;  %s14161_s2 = inlined_call_operand.hbm [shape: f32[2,128], index: 2, kind: input, shape index: {}]   ;;  %s14162_s3 = inlined_call_operand.hbm [shape: f32[1152,128], index: 3, kind: input, shape index: {}]   ;;  %s14163_s4 = inlined_call_operand.hbm [shape: f32[2,128], index: 4, kind: input, shape index: {}]   ;;  %s14164_s5 = inlined_call_operand.hbm [shape: f32[1152,256], index: 5, kind: input, shape index: {}]   ;;  %s14165_s6 = inlined_call_operand.hbm [shape: f32[2,256], index: 6, kind: input, shape index: {}]   ;;  %s14166_s7 = inlined_call_operand.hbm [shape: f32[2304,256], index: 7, kind: input, shape index: {}]   ;;  %s14167_s8 = inlined_call_operand.hbm [shape: f32[2,256], index: 8, kind: input, shape index: {}]   ;;  %s14168_s9 = inlined_call_operand.hbm [shape: f32[256,512], index: 9, kind: input, shape index: {}]   ;;  %s14169_s10 = inlined_call_operand.hbm [shape: f32[1,512], index: 10, kind: input, shape index: {}]   ;;  %s14170_s11 = inlined_call_operand.hbm [shape: f32[512,128], index: 11, kind: input, shape index: {}]   ;;  %s14171_s12 = inlined_call_operand.hbm [shape: f32[1,128], index: 12, kind: input, shape index: {}]   ;;  %s14172_s13 = inlined_call_operand.hbm [shape: f32[2,1,128], index: 13, kind: output, shape index: {}]  }
   0x1   :  { %14183 = sst [smem:[#allocation115_spill]] %s14160_s1 }
   0x2   :  { %14184 = sst [smem:[#allocation116_spill]] %s14161_s2 }
   0x3   :  { %14185 = sst [smem:[#allocation117_spill]] %s14162_s3 }
   0x4   :  { %14186 = sst [smem:[#allocation118_spill]] %s14163_s4 }
   0x5   :  { %14187 = sst [smem:[#allocation119_spill]] %s14164_s5 }
   0x6   :  { %14188 = sst [smem:[#allocation120_spill]] %s14165_s6 }
   0x7   :  { %14189 = sst [smem:[#allocation121_spill]] %s14166_s7 }
   0x8   :  { %14190 = sst [smem:[#allocation122_spill]] %s14167_s8 }
   0x9   :  { %14191 = sst [smem:[#allocation123_spill]] %s14168_s9 }
   0xa   :  { %18 = vsyncpa [#allocation8], 0 }
   0xb   :  { %20 = vsyncpa [#allocation8 + $0x1], 0 }
   0xc   :  { %21 = vsyncpa [#allocation11], 0 }
   0xd   :  { %22 = vsyncpa [#allocation14], 0 }
   0xe   :  { %23 = vsyncpa [#allocation17], 0 }
   0xf   :  { %24 = vsyncpa [#allocation20], 0 }
  0x10   :  { %25 = vsyncpa [#allocation23], 0 }
  0x11   :  { %26 = vsyncpa [#allocation26], 0 }
  0x12   :  { %27 = vsyncpa [#allocation9], 0 }
  0x13   :  { %29 = vsyncpa [#allocation9 + $0x1], 0  ;;  %s12072_s25 = smov 0   ;;  %s12074_s26 = smov 0  }
  0x14   :  { %s12076_s27 = smov 0   ;;  %s12078_s28 = smov 0  }
  0x15 LB: > { %s11981_s29 = smov [#allocation10]   ;;  %s12093_s14 = sadd.s32 4294967295, %s11979_s28   ;;  %s11979_s28 = sphi %s12078_s28, %s14404_s28   ;;  %s11975_s27 = sphi %s12076_s27, %s14403_s27   ;;  %s11971_s26 = sphi %s12074_s26, %s14402_s26   ;;  %s11967_s25 = sphi %s12072_s25, %s14401_s25  }
  0x16   : > { %s356_s30 = sshll.u32 %s11981_s29, 4  ;;  %p9356_p0 = scmp.ge.s32.totalorder %s11979_s28, 1  ;;  %s357_s30 = int_to_ptr.vmem [resolvable:$true] %s356_s30 }
  0x17   : > { %p14177_p1 = scmp.eq.s32.totalorder %s12093_s14, 0  ;;  %p344_p2 = scmp.lt.s32.totalorder %s11979_s28, 3 }
  0x18   : > { %s11982_s16 = smov [#allocation13]   ;;  %s11983_s19 = smov [#allocation16]  }
  0x19   : > { %p12098_p3 = pnand %p9356_p0, %p344_p2  ;;  %s380_s17 = sshll.u32 %s11982_s16, 4  ;;  %s12111_s17 = int_to_ptr.vmem [resolvable:$true] %s380_s17 }
  0x1a   : > { %s404_s20 = sshll.u32 %s11983_s19, 4  ;;  %s11562_s22 = scalar_lea.vmem %s357_s30, 18432  ;;  %s12113_s20 = int_to_ptr.vmem [resolvable:$true] %s404_s20 }
  0x1b   : > { %s14192_s15 = scalar_select %p12098_p3, 1, 0 }
  0x1c   : > { %p11417_p5 = pneg %p12098_p3  ;;  %p11563_p8 = scmp.ne.s32.totalorder %s357_s30, %s11562_s22 }
  0x1d   : > { %p11570_p11 = scmp.lt.s32.totalorder %s357_s30, %s357_s30  ;;  %p11571_p12 = scmp.lt.s32.totalorder %s11562_s22, %s11562_s22 }
  0x1e   : > { %p12107_p6 = pnand %p11417_p5, %p14177_p1 }
  0x1f   : > { %p11572_p13 = por %p11571_p12, %p11570_p11 }
  0x20   : > { %p12117_p7 = pneg %p12107_p6 }
  0x22   : > { %p11565_p9 = pnand %p11563_p8, %p12117_p7 }
  0x24   : > { %p11566_p10 = pneg %p11565_p9 }
  0x26   : > { %p11573_p0 = pnand %p11572_p13, %p11566_p10 }
  0x28   : > { %11576 = shalt.err (!%p11573_p0)
}
  0x29   : > { %s14173_s23 = smov 128   ;;  %s14175_s24 = smov 8  }
  0x2a   : > { %s14195_s1 = sld [smem:[#allocation115_spill]]  ;;  %s11588_s19 = scalar_lea.vmem %s12111_s17, 18432 }
  0x2b   : > { %p11589_p2 = scmp.ne.s32.totalorder %s12111_s17, %s11588_s19  ;;  %p11596_p9 = scmp.lt.s32.totalorder %s12111_s17, %s12111_s17 }
  0x2c   : > { %p11597_p10 = scmp.lt.s32.totalorder %s11588_s19, %s11588_s19 }
  0x2d   : > { %p11591_p5 = pnand %p11589_p2, %p12117_p7 }
  0x2e   : > { %p11598_p11 = por %p11597_p10, %p11596_p9 }
  0x2f   : > { %p11592_p8 = pneg %p11591_p5 }
  0x30   : > { %11420 = dma.hbm_to_vmem [thread:$0]  (!%p12107_p6), %s14195_s1, 18432, %s357_s30, [#allocation11], %s14173_s23, %s14173_s23, %s14175_s24  }
  0x31   : > { %p11599_p12 = pnand %p11598_p11, %p11592_p8 }
  0x33   : > { %11602 = shalt.err (!%p11599_p12)
}
  0x34   : > { %s14196_s3 = sld [smem:[#allocation117_spill]]  ;;  %s11614_s30 = scalar_lea.vmem %s12113_s20, 36864 }
  0x35   : > { %p11615_p13 = scmp.ne.s32.totalorder %s12113_s20, %s11614_s30  ;;  %p11622_p5 = scmp.lt.s32.totalorder %s12113_s20, %s12113_s20 }
  0x36   : > { %p11623_p8 = scmp.lt.s32.totalorder %s11614_s30, %s11614_s30 }
  0x37   : > { %p11617_p0 = pnand %p11615_p13, %p12117_p7 }
  0x38   : > { %p11624_p9 = por %p11623_p8, %p11622_p5 }
  0x39   : > { %p11618_p2 = pneg %p11617_p0 }
  0x3a   : > { %11426 = dma.hbm_to_vmem [thread:$0]  (!%p12107_p6), %s14196_s3, 18432, %s12111_s17, [#allocation14], %s14173_s23, %s14173_s23, %s14175_s24  }
  0x3b   : > { %p11625_p10 = pnand %p11624_p9, %p11618_p2 }
  0x3d   : > { %11628 = shalt.err (!%p11625_p10)
}
  0x3e   : > { %s11986_s16 = smov 256   ;;  %s11987_s19 = smov 16  }
  0x3f   : > { %s14197_s5 = sld [smem:[#allocation119_spill]]  ;;  %s11988_s17 = smov [#allocation19]  }
  0x40   : > { %s428_s23 = sshll.u32 %s11988_s17, 4  ;;  %s11989_s24 = smov [#allocation22]   ;;  %s429_s23 = int_to_ptr.vmem [resolvable:$true] %s428_s23 }
  0x41   : > { %s452_s1 = sshll.u32 %s11989_s24, 4  ;;  %s11640_s3 = scalar_lea.vmem %s429_s23, 73728  ;;  %s453_s1 = int_to_ptr.vmem [resolvable:$true] %s452_s1 }
  0x42   : > { %p11641_p11 = scmp.ne.s32.totalorder %s429_s23, %s11640_s3  ;;  %p11648_p0 = scmp.lt.s32.totalorder %s429_s23, %s429_s23 }
  0x43   : > { %p11649_p2 = scmp.lt.s32.totalorder %s11640_s3, %s11640_s3 }
  0x44   : > { %p11643_p12 = pnand %p11641_p11, %p12117_p7 }
  0x45   : > { %11432 = dma.hbm_to_vmem [thread:$0]  (!%p12107_p6), %s14197_s5, 36864, %s12113_s20, [#allocation17], %s11986_s16, %s11986_s16, %s11987_s19  }
  0x46   : > { %p11644_p13 = pneg %p11643_p12  ;;  %p11650_p5 = por %p11649_p2, %p11648_p0 }
  0x48   : > { %p11651_p8 = pnand %p11650_p5, %p11644_p13 }
  0x4a   : > { %11654 = shalt.err (!%p11651_p8)
}
  0x4b   : > { %s14198_s7 = sld [smem:[#allocation121_spill]]  ;;  %s11666_s20 = scalar_lea.vmem %s453_s1, 16384 }
  0x4c   : > { %p11667_p9 = scmp.ne.s32.totalorder %s453_s1, %s11666_s20  ;;  %p11674_p11 = scmp.lt.s32.totalorder %s453_s1, %s453_s1 }
  0x4d   : > { %p11675_p12 = scmp.lt.s32.totalorder %s11666_s20, %s11666_s20 }
  0x4e   : > { %p11669_p10 = pnand %p11667_p9, %p12117_p7 }
  0x4f   : > { %p11676_p1 = por %p11675_p12, %p11674_p11 }
  0x50   : > { %p11670_p4 = pneg %p11669_p10 }
  0x51   : > { %11438 = dma.hbm_to_vmem [thread:$0]  (!%p12107_p6), %s14198_s7, 73728, %s429_s23, [#allocation20], %s11986_s16, %s11986_s16, %s11987_s19  }
  0x52   : > { %p11677_p3 = pnand %p11676_p1, %p11670_p4 }
  0x54   : > { %11680 = shalt.err (!%p11677_p3)
}
  0x55   : > { %s11990_s3 = smov 512   ;;  %s11991_s24 = smov 32  }
  0x56   : > { %s14199_s9 = sld [smem:[#allocation123_spill]]  ;;  %s11992_s23 = smov [#allocation25]  }
  0x57   : > { %s476_s16 = sshll.u32 %s11992_s23, 4  ;;  %s11993_s19 = smov [#allocation12]   ;;  %s477_s16 = int_to_ptr.vmem [resolvable:$true] %s476_s16 }
  0x58   : > { %s370_s30 = sshll.u32 %s11993_s19, 4  ;;  %s11692_s22 = scalar_lea.vmem %s477_s16, 8192  ;;  %s371_s30 = int_to_ptr.vmem [resolvable:$true] %s370_s30 }
  0x59   : > { %p11693_p13 = scmp.ne.s32.totalorder %s477_s16, %s11692_s22  ;;  %p11700_p3 = scmp.lt.s32.totalorder %s477_s16, %s477_s16 }
  0x5a   : > { %p11701_p4 = scmp.lt.s32.totalorder %s11692_s22, %s11692_s22 }
  0x5b   : > { %p11695_p0 = pnand %p11693_p13, %p12117_p7 }
  0x5c   : > { %11444 = dma.hbm_to_vmem [thread:$0]  (!%p12107_p6), %s14199_s9, 16384, %s453_s1, [#allocation23], %s11990_s3, %s11990_s3, %s11991_s24  }
  0x5d   : > { %p11696_p1 = pneg %p11695_p0  ;;  %p11702_p2 = por %p11701_p4, %p11700_p3 }
  0x5f   : > { %p11703_p5 = pnand %p11702_p2, %p11696_p1 }
  0x61   : > { %11706 = shalt.err (!%p11703_p5)
}
  0x62   : > { %s14200_s20 = smov 8   ;;  %s14201_s29 = smov 128  }
  0x63   : > { %11450 = dma.hbm_to_vmem [thread:$0]  (!%p12107_p6), %s14170_s11, 8192, %s477_s16, [#allocation26], %s14201_s29, %s14201_s29, %s14200_s20  }
  0x64   : > { %s11718_s24 = scalar_lea.vmem %s371_s30, 32  ;;  %p11726_p11 = scmp.lt.s32.totalorder %s371_s30, %s371_s30 }
  0x65   : > { %p11719_p8 = scmp.ne.s32.totalorder %s371_s30, %s11718_s24  ;;  %p11727_p12 = scmp.lt.s32.totalorder %s11718_s24, %s11718_s24 }
  0x67   : > { %p11721_p9 = pnand %p11719_p8, %p12117_p7  ;;  %p11728_p13 = por %p11727_p12, %p11726_p11 }
  0x69   : > { %p11722_p10 = pneg %p11721_p9 }
  0x6b   : > { %p11729_p0 = pnand %p11728_p13, %p11722_p10 }
  0x6d   : > { %11732 = shalt.err (!%p11729_p0)
}
  0x6e   : > { %s14202_s2 = sld [smem:[#allocation116_spill]]  ;;  %s11994_s19 = smov [#allocation15]  }
  0x6f   : > { %s394_s16 = sshll.u32 %s11994_s19, 4  ;;  %s11995_s22 = smov [#allocation18]   ;;  %s395_s16 = int_to_ptr.vmem [resolvable:$true] %s394_s16 }
  0x70   : > { %s418_s1 = sshll.u32 %s11995_s22, 4  ;;  %s11744_s3 = scalar_lea.vmem %s395_s16, 32  ;;  %s419_s1 = int_to_ptr.vmem [resolvable:$true] %s418_s1 }
  0x71   : > { %p11745_p1 = scmp.ne.s32.totalorder %s395_s16, %s11744_s3  ;;  %p11752_p2 = scmp.lt.s32.totalorder %s395_s16, %s395_s16 }
  0x72   : > { %p11753_p5 = scmp.lt.s32.totalorder %s11744_s3, %s11744_s3 }
  0x73   : > { %p11747_p3 = pnand %p11745_p1, %p12117_p7 }
  0x74   : > { %11423 = dma.hbm_to_vmem [thread:$0]  (!%p12107_p6), %s14202_s2, 32, %s371_s30, [#allocation11]  }
  0x75   : > { %p11748_p4 = pneg %p11747_p3  ;;  %p11754_p8 = por %p11753_p5, %p11752_p2 }
  0x77   : > { %p11755_p9 = pnand %p11754_p8, %p11748_p4 }
  0x79   : > { %11758 = shalt.err (!%p11755_p9)
}
  0x7a   : > { %s14203_s4 = sld [smem:[#allocation118_spill]]  ;;  %s11770_s30 = scalar_lea.vmem %s419_s1, 64 }
  0x7b   : > { %p11771_p10 = scmp.ne.s32.totalorder %s419_s1, %s11770_s30  ;;  %p11778_p13 = scmp.lt.s32.totalorder %s419_s1, %s419_s1 }
  0x7c   : > { %p11779_p0 = scmp.lt.s32.totalorder %s11770_s30, %s11770_s30 }
  0x7d   : > { %p11773_p11 = pnand %p11771_p10, %p12117_p7 }
  0x7e   : > { %p11780_p1 = por %p11779_p0, %p11778_p13 }
  0x7f   : > { %p11774_p12 = pneg %p11773_p11 }
  0x80   : > { %11429 = dma.hbm_to_vmem [thread:$0]  (!%p12107_p6), %s14203_s4, 32, %s395_s16, [#allocation14]  }
  0x81   : > { %p11781_p3 = pnand %p11780_p1, %p11774_p12 }
  0x83   : > { %11784 = shalt.err (!%p11781_p3)
}
  0x84   : > { %s14204_s6 = sld [smem:[#allocation120_spill]]  ;;  %s11996_s22 = smov [#allocation21]  }
  0x85   : > { %s442_s16 = sshll.u32 %s11996_s22, 4  ;;  %s11997_s3 = smov [#allocation24]   ;;  %s443_s16 = int_to_ptr.vmem [resolvable:$true] %s442_s16 }
  0x86   : > { %s466_s24 = sshll.u32 %s11997_s3, 4  ;;  %s11796_s17 = scalar_lea.vmem %s443_s16, 64  ;;  %s467_s24 = int_to_ptr.vmem [resolvable:$true] %s466_s24 }
  0x87   : > { %p11797_p4 = scmp.ne.s32.totalorder %s443_s16, %s11796_s17  ;;  %p11804_p8 = scmp.lt.s32.totalorder %s443_s16, %s443_s16 }
  0x88   : > { %p11805_p9 = scmp.lt.s32.totalorder %s11796_s17, %s11796_s17 }
  0x89   : > { %p11799_p2 = pnand %p11797_p4, %p12117_p7 }
  0x8a   : > { %11435 = dma.hbm_to_vmem [thread:$0]  (!%p12107_p6), %s14204_s6, 64, %s419_s1, [#allocation17]  }
  0x8b   : > { %p11800_p5 = pneg %p11799_p2  ;;  %p11806_p10 = por %p11805_p9, %p11804_p8 }
  0x8d   : > { %p11807_p11 = pnand %p11806_p10, %p11800_p5 }
  0x8f   : > { %11810 = shalt.err (!%p11807_p11)
}
  0x90   : > { %s14205_s8 = sld [smem:[#allocation122_spill]]  ;;  %s11822_s1 = scalar_lea.vmem %s467_s24, 64 }
  0x91   : > { %p11823_p12 = scmp.ne.s32.totalorder %s467_s24, %s11822_s1  ;;  %p11830_p1 = scmp.lt.s32.totalorder %s467_s24, %s467_s24 }
  0x92   : > { %p11831_p3 = scmp.lt.s32.totalorder %s11822_s1, %s11822_s1 }
  0x93   : > { %p11825_p13 = pnand %p11823_p12, %p12117_p7 }
  0x94   : > { %p11832_p4 = por %p11831_p3, %p11830_p1 }
  0x95   : > { %p11826_p0 = pneg %p11825_p13 }
  0x96   : > { %11441 = dma.hbm_to_vmem [thread:$0]  (!%p12107_p6), %s14205_s8, 64, %s443_s16, [#allocation20]  }
  0x97   : > { %p11833_p2 = pnand %p11832_p4, %p11826_p0 }
  0x99   : > { %11836 = shalt.err (!%p11833_p2)
}
  0x9a   : > { %11447 = dma.hbm_to_vmem [thread:$0]  (!%p12107_p6), %s14169_s10, 64, %s467_s24, [#allocation23]  }
  0x9b   : > { %s11998_s3 = smov [#allocation27]  }
  0x9c   : > { %s490_s16 = sshll.u32 %s11998_s3, 4  ;;  %s491_s16 = int_to_ptr.vmem [resolvable:$true] %s490_s16 }
  0x9d   : > { %s11848_s17 = scalar_lea.vmem %s491_s16, 16  ;;  %s11855_s30 = scalar_lea.vmem %s491_s16, 32 }
  0x9e   : > { %p11849_p5 = scmp.ne.s32.totalorder %s491_s16, %s11848_s17  ;;  %p11856_p10 = scmp.lt.s32.totalorder %s491_s16, %s491_s16 }
  0x9f   : > { %p11857_p11 = scmp.lt.s32.totalorder %s11855_s30, %s11848_s17 }
  0xa0   : > { %p11851_p8 = pnand %p11849_p5, %p12117_p7 }
  0xa1   : > { %p11858_p12 = por %p11857_p11, %p11856_p10 }
  0xa2   : > { %p11852_p9 = pneg %p11851_p8 }
  0xa4   : > { %p11859_p13 = pnand %p11858_p12, %p11852_p9 }
  0xa6   : > { %11862 = shalt.err (!%p11859_p13)
}
  0xa7   : > { %11453 = dma.hbm_to_vmem [thread:$0]  (!%p12107_p6), %s14171_s12, 16, %s491_s16, [#allocation26]  }
  0xa8   : > { %s9355_s21 = sadd.s32 4294967294, %s11979_s28   ;;  %s12226_s18 = sadd.s32 1, %s11979_s28  }
  0xa9   : > { %s39_s24 = ssub.s32 %s11979_s28, %s12226_s18  ;;  %s42_s19 = sadd.s32 1, %s11975_s27 }
  0xaa   : > { %p40_p7 = scmp.eq.s32.totalorder %s39_s24, 0  ;;  %p49_p0 = scmp.ne.s32.totalorder %s11975_s27, %s11971_s26 }
  0xab   : > { %p50_p1 = scmp.eq.s32.totalorder %s11979_s28, 0  ;;  %p55_p3 = scmp.ne.s32.totalorder %s11971_s26, %s11967_s25 }
  0xac   : > { %s12237_s22 = scalar_select %p40_p7, %s11975_s27, %s42_s19  }
  0xad   : > { %p12239_p4 = por %p50_p1, %p49_p0  ;;  %p14207_p2 = scmp.eq.s32.totalorder %s12093_s14, 0 }
  0xae   : > { %p331_p5 = scmp.eq.s32.totalorder %s12093_s14, 1  ;;  %p337_p8 = scmp.eq.s32.totalorder %s9355_s21, 1 }
  0xaf   : > { %p12245_p6 = por %p14207_p2, %p55_p3  ;;  %p11474_p9 = scmp.lt.s32.totalorder %s11979_s28, 2 }
  0xb0   : > { %s501_s17 = sand.u32 1, %s11975_s27   ;;  %p12252_p10 = por %p331_p5, %p49_p0 }
  0xb1   : > { %s14208_s16 = scalar_select %p12245_p6, 1, 0 }
  0xb2   : > { %s14209_s30 = scalar_select %p12252_p10, 1, 0 }
  0xb3   : > { %p12256_p11 = por %p337_p8, %p55_p3  ;;  %s9370_s1 = sshll.u32 %s501_s17, 8 }
  0xb4   : > { %s9395_s24 = sshll.u32 %s11979_s28, 12  ;;  %s505_s21 = scalar_lea.vmem [#allocation7], %s9370_s1 }
  0xb5   : > { %s14210_s23 = scalar_select %p12256_p11, 1, 0 }
  0xb6   : > { %s12264_s4 = scalar_lea.hbm %s14159_s0, %s9395_s24  ;;  %s512_s5 = sshll.u32 %s505_s21, 4  ;;  %s12266_s5 = int_to_ptr.vmem [resolvable:$true] %s512_s5 }
  0xb7   : > { %p12270_p12 = pnand %p11474_p9, %p12239_p4  ;;  %s12274_s7 = scalar_lea.sflag [#allocation8], %s501_s17 }
  0xb8   : > { %s11863_s8 = scalar_lea.hbm %s12264_s4, 4096  ;;  %s11868_s1 = scalar_lea.hbm %s14159_s0, 8192 }
  0xb9   : > { %p11864_p13 = scmp.ne.s32.totalorder %s12264_s4, %s11863_s8  ;;  %p11865_p7 = pneg %p12270_p12 }
  0xba   : > { %p11869_p3 = scmp.lt.s32.totalorder %s12264_s4, %s14159_s0  ;;  %p11870_p4 = scmp.lt.s32.totalorder %s11868_s1, %s11863_s8 }
  0xbb   : > { %p11866_p0 = pnand %p11865_p7, %p11864_p13 }
  0xbc   : > { %p11871_p2 = por %p11870_p4, %p11869_p3 }
  0xbd   : > { %p11867_p1 = pneg %p11866_p0 }
  0xbf   : > { %p11872_p5 = pnand %p11871_p2, %p11867_p1 }
  0xc1   : > { %11875 = shalt.err (!%p11872_p5)
}
  0xc2   : > { %s11876_s3 = scalar_lea.vmem %s12266_s5, 4096  ;;  %s11999_s17 = smov [#allocation7]  }
  0xc3   : > { %p11877_p8 = scmp.ne.s32.totalorder %s12266_s5, %s11876_s3  ;;  %s11881_s9 = sshll.u32 %s11999_s17, 4  ;;  %s11882_s9 = int_to_ptr.vmem [resolvable:$false] %s11881_s9 }
  0xc4   : > { %s11883_s2 = scalar_lea.vmem %s11882_s9, 8192  ;;  %p11884_p0 = scmp.lt.s32.totalorder %s12266_s5, %s11882_s9 }
  0xc5   : > { %p11879_p9 = pnand %p11877_p8, %p11865_p7  ;;  %p11885_p11 = scmp.lt.s32.totalorder %s11883_s2, %s11876_s3 }
  0xc7   : > { %p11880_p13 = pneg %p11879_p9  ;;  %p11886_p10 = por %p11885_p11, %p11884_p0 }
  0xc9   : > { %p11887_p6 = pnand %p11886_p10, %p11880_p13 }
  0xcb   : > { %11890 = shalt.err (!%p11887_p6)
}
  0xcc   : > { %11457 = dma.hbm_to_vmem [thread:$0]  (!%p12270_p12), %s12264_s4, 4096, %s12266_s5, %s12274_s7, %s14201_s29, %s14201_s29, %s14200_s20  }
  0xcd   : > { %p14212_p7 = scmp.ne.s32.totalorder %s14192_s15, 0 }
  0xcf   : > { %524 = sbr.rel (%p14212_p7) target bundleno = 2582 (0xa16), region = 72 }
  0xd4   : > { %s12301_s8 = sand.u32 1, %s11971_s26   ;;  %p14213_p6 = scmp.ne.s32.totalorder %s14208_s16, 0 }
  0xd5   : > { %s9374_s9 = sshll.u32 %s12301_s8, 8  ;;  %s527_s24 = scalar_lea.sflag [#allocation8], %s12301_s8 }
  0xd6   : > { %s12305_s1 = scalar_lea.vmem [#allocation7], %s9374_s9 }
  0xd7   : > { %11934 = dma.done.wait (%p14213_p6), %s527_s24, 4096  }
  0xd8   : > { %11936 = vsyncadd (%p14213_p6), %s527_s24, 4294963200  ;;  %p14214_p10 = scmp.eq.s32.totalorder %s12093_s14, 0 }
  0xda   : > { %11938 = dma.done.wait (%p14214_p10), [#allocation11], 18464   ;;  %p14215_p11 = pmov %p14214_p10 }
  0xdb   : > { %p14216_p12 = pmov %p14214_p10 }
  0xdc   : > { %11940 = vsyncadd (%p14215_p11), [#allocation11], 4294948832 }
  0xdd   : > { %11942 = dma.done.wait (%p14216_p12), [#allocation14], 18464   ;;  %p14217_p1 = pmov %p14214_p10 }
  0xdf   : > { %11944 = vsyncadd (%p14217_p1), [#allocation14], 4294948832  ;;  %p14218_p3 = pmov %p14217_p1 }
  0xe0   : > { %p14219_p4 = pmov %p14217_p1 }
  0xe1   : > { %11946 = dma.done.wait (%p14218_p3), [#allocation17], 36928  }
  0xe2   : > { %11948 = vsyncadd (%p14219_p4), [#allocation17], 4294930368  ;;  %p14220_p2 = pmov %p14217_p1 }
  0xe3   : > { %p14221_p5 = pmov %p14217_p1 }
  0xe4   : > { %11950 = dma.done.wait (%p14220_p2), [#allocation20], 73792  }
  0xe5   : > { %11952 = vsyncadd (%p14221_p5), [#allocation20], 4294893504  ;;  %p14222_p8 = pmov %p14217_p1 }
  0xe6   : > { %p14223_p9 = pmov %p14217_p1 }
  0xe7   : > { %11954 = dma.done.wait (%p14222_p8), [#allocation23], 16448  }
  0xe8   : > { %11956 = vsyncadd (%p14223_p9), [#allocation23], 4294950848  ;;  %p14224_p13 = pmov %p14217_p1 }
  0xe9   : > { %p14225_p0 = pmov %p14217_p1 }
  0xea   : > { %11958 = dma.done.wait (%p14224_p13), [#allocation26], 8208  }
  0xeb   : > { %11960 = vsyncadd (%p14225_p0), [#allocation26], 4294959088  ;;  %v12000_v0 = vmov 0.0   ;;  %v856_v1 = vld [vmem:[#allocation10 + $0xf8] sm:$0xff]  ;;  %v855_v3 = vld [vmem:[#allocation10 + $0xf0] sm:$0xff]  ;;  %vm3866_vm0 = vcmask 1046528  }
  0xec   : > { %620 = vst [vmem:[#allocation2] sm:$0xff] %v12000_v0  ;;  %621 = vst [vmem:[#allocation2 + $0x8] sm:$0xff] %v12000_v0  ;;  %10286 = vmatprep.mubr.f32.mxu1 %v12000_v0  ;;  %v804_v2 = vld [vmem:[#allocation10 + $0x78] sm:$0xff]  ;;  %10168 = vmatprep.subr.mxu0 %v856_v1  ;;  %v803_v4 = vld [vmem:[#allocation10 + $0x70] sm:$0xff]  ;;  %vm4048_vm1 = vcmask 1045504   ;;  %vm7517_vm2 = vcmask 1041408  }
  0xed   : > { %622 = vst [vmem:[#allocation2 + $0x10] sm:$0xff] %v12000_v0  ;;  %623 = vst [vmem:[#allocation2 + $0x18] sm:$0xff] %v12000_v0  ;;  %10254 = vmatprep.subr.mxu1 %v804_v2  ;;  %10169 = vmatpush3.msra.mxu0 %v856_v1  ;;  %v854_v5 = vld [vmem:[#allocation10 + $0xe8] sm:$0xff]  ;;  %v853_v7 = vld [vmem:[#allocation10 + $0xe0] sm:$0xff]  ;;  %vm7699_vm3 = vcmask 1040384   ;;  %vm8226_vm4 = vcmask 1042432  }
  0xee   : > { %624 = vst [vmem:[#allocation2 + $0x20] sm:$0xff] %v12000_v0  ;;  %625 = vst [vmem:[#allocation2 + $0x28] sm:$0xff] %v12000_v0  ;;  %10255 = vmatpush3.msra.mxu1 %v804_v2  ;;  %v802_v6 = vld [vmem:[#allocation10 + $0x68] sm:$0xff]  ;;  %10170 = vmatprep.subr.mxu0 %v855_v3  ;;  %v801_v8 = vld [vmem:[#allocation10 + $0x60] sm:$0xff]  ;;  %vm8044_vm5 = vcmask 1043456   ;;  %s9392_s4 = sshll.u32 %s12093_s14, 4 }
  0xef   : > { %626 = vst [vmem:[#allocation2 + $0x30] sm:$0xff] %v12000_v0  ;;  %627 = vst [vmem:[#allocation2 + $0x38] sm:$0xff] %v12000_v0  ;;  %10256 = vmatprep.subr.mxu1 %v803_v4  ;;  %10171 = vmatpush3.msra.mxu0 %v855_v3  ;;  %v852_v9 = vld [vmem:[#allocation10 + $0xd8] sm:$0xff]  ;;  %v851_v11 = vld [vmem:[#allocation10 + $0xd0] sm:$0xff]  ;;  %s619_s5 = scalar_lea.vmem [#allocation28], %s12301_s8  ;;  %s9173_s20 = scalar_lea.hbm %s14172_s13, %s9392_s4 }
  0xf0   : > { %628 = vst [vmem:[#allocation2 + $0x40] sm:$0xff] %v12000_v0  ;;  %629 = vst [vmem:[#allocation2 + $0x48] sm:$0xff] %v12000_v0  ;;  %10257 = vmatpush3.msra.mxu1 %v803_v4  ;;  %10172 = vmatprep.subr.mxu0 %v854_v5  ;;  %v800_v10 = vld [vmem:[#allocation10 + $0x58] sm:$0xff]  ;;  %v799_v12 = vld [vmem:[#allocation10 + $0x50] sm:$0xff]  ;;  %s9175_s6 = sshll.u32 %s619_s5, 4  ;;  %s9163_s29 = scalar_lea.sflag [#allocation9], %s12301_s8  ;;  %s9176_s6 = int_to_ptr.vmem [resolvable:$true] %s9175_s6 }
  0xf1   : > { %630 = vst [vmem:[#allocation2 + $0x50] sm:$0xff] %v12000_v0  ;;  %631 = vst [vmem:[#allocation2 + $0x58] sm:$0xff] %v12000_v0  ;;  %10258 = vmatprep.subr.mxu1 %v802_v6  ;;  %10173 = vmatpush3.msra.mxu0 %v854_v5  ;;  %v850_v13 = vld [vmem:[#allocation10 + $0xc8] sm:$0xff]  ;;  %v849_v15 = vld [vmem:[#allocation10 + $0xc0] sm:$0xff]  ;;  %s11891_s16 = scalar_lea.vmem %s9176_s6, 16  ;;  %p14398_p6 = scmp.ne.s32.totalorder %s14209_s30, 0 }
  0xf2   : > { %632 = vst [vmem:[#allocation2 + $0x60] sm:$0xff] %v12000_v0  ;;  %633 = vst [vmem:[#allocation2 + $0x68] sm:$0xff] %v12000_v0  ;;  %10259 = vmatpush3.msra.mxu1 %v802_v6  ;;  %10174 = vmatprep.subr.mxu0 %v853_v7  ;;  %v798_v14 = vld [vmem:[#allocation10 + $0x48] sm:$0xff]  ;;  %v689_v16 = vld [vmem:[%s12305_s1] sm:$0xff]  ;;  %p11892_p7 = scmp.ne.s32.totalorder %s9176_s6, %s11891_s16  ;;  %s12001_s19 = smov [#allocation28]  }
  0xf3   : > { %634 = vst [vmem:[#allocation2 + $0x70] sm:$0xff] %v12000_v0  ;;  %635 = vst [vmem:[#allocation2 + $0x78] sm:$0xff] %v12000_v0  ;;  %10260 = vmatprep.subr.mxu1 %v801_v8  ;;  %10175 = vmatpush3.msra.mxu0 %v853_v7  ;;  %v797_v17 = vld [vmem:[#allocation10 + $0x40] sm:$0xff]  ;;  %v690_v18 = vld [vmem:[%s12305_s1 + $0x8] sm:$0xff]  ;;  %s11895_s21 = sshll.u32 %s12001_s19, 4  ;;  %s11896_s21 = int_to_ptr.vmem [resolvable:$false] %s11895_s21 }
  0xf4   : > { %636 = vst [vmem:[#allocation2 + $0x80] sm:$0xff] %v12000_v0  ;;  %637 = vst [vmem:[#allocation2 + $0x88] sm:$0xff] %v12000_v0  ;;  %10261 = vmatpush3.msra.mxu1 %v801_v8  ;;  %10176 = vmatprep.subr.mxu0 %v852_v9  ;;  %v693_v19 = vld [vmem:[%s12305_s1 + $0x10] sm:$0xff]  ;;  %v848_v20 = vld [vmem:[#allocation10 + $0xb8] sm:$0xff]  ;;  %p11893_p10 = pnand %p11892_p7, %p14398_p6  ;;  %s11897_s14 = scalar_lea.vmem %s11896_s21, 32 }
  0xf5   : > { %638 = vst [vmem:[#allocation2 + $0x90] sm:$0xff] %v12000_v0  ;;  %639 = vst [vmem:[#allocation2 + $0x98] sm:$0xff] %v12000_v0  ;;  %10262 = vmatprep.subr.mxu1 %v800_v10  ;;  %10177 = vmatpush3.msra.mxu0 %v852_v9  ;;  %v694_v21 = vld [vmem:[%s12305_s1 + $0x18] sm:$0xff]  ;;  %v697_v22 = vld [vmem:[%s12305_s1 + $0x20] sm:$0xff]  ;;  %p11898_p12 = scmp.lt.s32.totalorder %s9176_s6, %s11896_s21  ;;  %p11899_p1 = scmp.lt.s32.totalorder %s11897_s14, %s11891_s16 }
  0xf6   : > { %640 = vst [vmem:[#allocation2 + $0xa0] sm:$0xff] %v12000_v0  ;;  %641 = vst [vmem:[#allocation2 + $0xa8] sm:$0xff] %v12000_v0  ;;  %10263 = vmatpush3.msra.mxu1 %v800_v10  ;;  %10178 = vmatprep.subr.mxu0 %v851_v11  ;;  %v796_v23 = vld [vmem:[#allocation10 + $0x38] sm:$0xff]  ;;  %v698_v24 = vld [vmem:[%s12305_s1 + $0x28] sm:$0xff]  ;;  %p11894_p11 = pneg %p11893_p10 }
  0xf7   : > { %642 = vst [vmem:[#allocation2 + $0xb0] sm:$0xff] %v12000_v0  ;;  %643 = vst [vmem:[#allocation2 + $0xb8] sm:$0xff] %v12000_v0  ;;  %10264 = vmatprep.subr.mxu1 %v799_v12  ;;  %10179 = vmatpush3.msra.mxu0 %v851_v11  ;;  %v12412_v25 = vld [vmem:[%s12305_s1 + $0x30] sm:$0xff]  ;;  %v12416_v27 = vld [vmem:[%s12305_s1 + $0x38] sm:$0xff]  ;;  %p11900_p3 = por %p11899_p1, %p11898_p12 }
  0xf8   : > { %644 = vst [vmem:[#allocation2 + $0xc0] sm:$0xff] %v12000_v0  ;;  %645 = vst [vmem:[#allocation2 + $0xc8] sm:$0xff] %v12000_v0  ;;  %10265 = vmatpush3.msra.mxu1 %v799_v12  ;;  %10180 = vmatprep.subr.mxu0 %v850_v13  ;;  %v847_v26 = vld [vmem:[#allocation10 + $0xb0] sm:$0xff]  ;;  %v705_v28 = vld [vmem:[%s12305_s1 + $0x40] sm:$0xff] }
  0xf9   : > { %646 = vst [vmem:[#allocation2 + $0xd0] sm:$0xff] %v12000_v0  ;;  %647 = vst [vmem:[#allocation2 + $0xd8] sm:$0xff] %v12000_v0  ;;  %10266 = vmatprep.subr.mxu1 %v798_v14  ;;  %10181 = vmatpush3.msra.mxu0 %v850_v13  ;;  %v795_v29 = vld [vmem:[#allocation10 + $0x30] sm:$0xff]  ;;  %v706_v30 = vld [vmem:[%s12305_s1 + $0x48] sm:$0xff]  ;;  %p11901_p4 = pnand %p11900_p3, %p11894_p11 }
  0xfa   : > { %648 = vst [vmem:[#allocation2 + $0xe0] sm:$0xff] %v12000_v0  ;;  %649 = vst [vmem:[#allocation2 + $0xe8] sm:$0xff] %v12000_v0  ;;  %10267 = vmatpush3.msra.mxu1 %v798_v14  ;;  %10182 = vmatprep.subr.mxu0 %v849_v15  ;;  %v709_v31 = vld [vmem:[%s12305_s1 + $0x50] sm:$0xff]  ;;  %v846_v32 = vld [vmem:[#allocation10 + $0xa8] sm:$0xff] }
  0xfb   : > { %650 = vst [vmem:[#allocation2 + $0xf0] sm:$0xff] %v12000_v0  ;;  %651 = vst [vmem:[#allocation2 + $0xf8] sm:$0xff] %v12000_v0  ;;  %10268 = vmatprep.subr.mxu1 %v797_v17  ;;  %10183 = vmatpush3.msra.mxu0 %v849_v15  ;;  %v710_v33 = vld [vmem:[%s12305_s1 + $0x58] sm:$0xff]  ;;  %v713_v34 = vld [vmem:[%s12305_s1 + $0x60] sm:$0xff] }
  0xfc   : > { %652 = vst [vmem:[#allocation2 + $0x100] sm:$0xff] %v12000_v0  ;;  %653 = vst [vmem:[#allocation2 + $0x108] sm:$0xff] %v12000_v0  ;;  %10269 = vmatpush3.msra.mxu1 %v797_v17  ;;  %10184 = vmatprep.subr.mxu0 %v848_v20  ;;  %v794_v35 = vld [vmem:[#allocation10 + $0x28] sm:$0xff]  ;;  %v12426_v37 = vld [vmem:[%s12305_s1 + $0x70] sm:$0xff] }
  0xfd   : > { %654 = vst [vmem:[#allocation2 + $0x110] sm:$0xff] %v12000_v0  ;;  %655 = vst [vmem:[#allocation2 + $0x118] sm:$0xff] %v12000_v0  ;;  %10270 = vmatprep.subr.mxu1 %v796_v23  ;;  %10185 = vmatpush3.msra.mxu0 %v848_v20  ;;  %v714_v36 = vld [vmem:[%s12305_s1 + $0x68] sm:$0xff]  ;;  %v12430_v38 = vld [vmem:[%s12305_s1 + $0x78] sm:$0xff] }
  0xfe   : > { %656 = vst [vmem:[#allocation2 + $0x120] sm:$0xff] %v12000_v0  ;;  %657 = vst [vmem:[#allocation2 + $0x128] sm:$0xff] %v12000_v0  ;;  %10271 = vmatpush3.msra.mxu1 %v796_v23  ;;  %10186 = vmatprep.subr.mxu0 %v847_v26  ;;  %v845_v39 = vld [vmem:[#allocation10 + $0xa0] sm:$0xff]  ;;  %v844_v41 = vld [vmem:[#allocation10 + $0x98] sm:$0xff] }
  0xff   : > { %658 = vst [vmem:[#allocation2 + $0x130] sm:$0xff] %v12000_v0  ;;  %659 = vst [vmem:[#allocation2 + $0x138] sm:$0xff] %v12000_v0  ;;  %10272 = vmatprep.subr.mxu1 %v795_v29  ;;  %10187 = vmatpush3.msra.mxu0 %v847_v26  ;;  %v793_v40 = vld [vmem:[#allocation10 + $0x20] sm:$0xff]  ;;  %v792_v42 = vld [vmem:[#allocation10 + $0x18] sm:$0xff] }
 0x100   : > { %660 = vst [vmem:[#allocation2 + $0x140] sm:$0xff] %v12000_v0  ;;  %661 = vst [vmem:[#allocation3] sm:$0xff] %v12000_v0  ;;  %10273 = vmatpush3.msra.mxu1 %v795_v29  ;;  %10188 = vmatprep.subr.mxu0 %v846_v32  ;;  %v843_v43 = vld [vmem:[#allocation10 + $0x90] sm:$0xff]  ;;  %v842_v45 = vld [vmem:[#allocation10 + $0x88] sm:$0xff] }
 0x101   : > { %662 = vst [vmem:[#allocation3 + $0x8] sm:$0xff] %v12000_v0  ;;  %663 = vst [vmem:[#allocation3 + $0x10] sm:$0xff] %v12000_v0  ;;  %10274 = vmatprep.subr.mxu1 %v794_v35  ;;  %10189 = vmatpush3.msra.mxu0 %v846_v32  ;;  %v791_v44 = vld [vmem:[#allocation10 + $0x10] sm:$0xff]  ;;  %v790_v46 = vld [vmem:[#allocation10 + $0x8] sm:$0xff] }
 0x102   : > { %664 = vst [vmem:[#allocation3 + $0x18] sm:$0xff] %v12000_v0  ;;  %665 = vst [vmem:[#allocation3 + $0x20] sm:$0xff] %v12000_v0  ;;  %10275 = vmatpush3.msra.mxu1 %v794_v35  ;;  %10190 = vmatprep.subr.mxu0 %v845_v39  ;;  %v841_v47 = vld [vmem:[#allocation10 + $0x80] sm:$0xff]  ;;  %v722_v52 = vld [vmem:[%s12305_s1 + $0x88] sm:$0xff] }
 0x103   : > { %666 = vst [vmem:[#allocation3 + $0x28] sm:$0xff] %v12000_v0  ;;  %667 = vst [vmem:[#allocation3 + $0x30] sm:$0xff] %v12000_v0  ;;  %10276 = vmatprep.subr.mxu1 %v793_v40  ;;  %10191 = vmatpush3.msra.mxu0 %v845_v39  ;;  %v789_v48 = vld [vmem:[#allocation10] sm:$0xff]  ;;  %v1398_v53 = vld [vmem:[#allocation10 + $0x178] sm:$0xff] }
 0x104   : > { %668 = vst [vmem:[#allocation3 + $0x38] sm:$0xff] %v12000_v0  ;;  %669 = vst [vmem:[#allocation3 + $0x40] sm:$0xff] %v12000_v0  ;;  %10277 = vmatpush3.msra.mxu1 %v793_v40  ;;  %10192 = vmatprep.subr.mxu0 %v844_v41  ;;  %v805_v49 = vld [vmem:[#allocation2 + $0x1] sm:$0xff]  ;;  %v806_v50 = vld [vmem:[#allocation2 + $0x9] sm:$0xff] }
 0x105   : > { %670 = vst [vmem:[#allocation3 + $0x48] sm:$0xff] %v12000_v0  ;;  %671 = vst [vmem:[#allocation3 + $0x50] sm:$0xff] %v12000_v0  ;;  %10278 = vmatprep.subr.mxu1 %v792_v42  ;;  %10193 = vmatpush3.msra.mxu0 %v844_v41  ;;  %v721_v51 = vld [vmem:[%s12305_s1 + $0x80] sm:$0xff]  ;;  %v725_v54 = vld [vmem:[%s12305_s1 + $0x90] sm:$0xff] }
 0x106   : > { %672 = vst [vmem:[#allocation3 + $0x58] sm:$0xff] %v12000_v0  ;;  %673 = vst [vmem:[#allocation3 + $0x60] sm:$0xff] %v12000_v0  ;;  %10279 = vmatpush3.msra.mxu1 %v792_v42  ;;  %10194 = vmatprep.subr.mxu0 %v843_v43  ;;  %v1397_v56 = vld [vmem:[#allocation10 + $0x170] sm:$0xff]  ;;  %v726_v57 = vld [vmem:[%s12305_s1 + $0x98] sm:$0xff] }
 0x107   : > { %674 = vst [vmem:[#allocation4] sm:$0xff] %v12000_v0  ;;  %675 = vst [vmem:[#allocation4 + $0x8] sm:$0xff] %v12000_v0  ;;  %10280 = vmatprep.subr.mxu1 %v791_v44  ;;  %10195 = vmatpush3.msra.mxu0 %v843_v43  ;;  %v729_v59 = vld [vmem:[%s12305_s1 + $0xa0] sm:$0xff]  ;;  %v730_v60 = vld [vmem:[%s12305_s1 + $0xa8] sm:$0xff] }
 0x108   : > { %676 = vst [vmem:[#allocation4 + $0x10] sm:$0xff] %v12000_v0  ;;  %677 = vst [vmem:[#allocation4 + $0x18] sm:$0xff] %v12000_v0  ;;  %10281 = vmatpush3.msra.mxu1 %v791_v44  ;;  %10196 = vmatprep.subr.mxu0 %v842_v45  ;;  %v1731_v62 = vld [vmem:[#allocation10 + $0x1f8] sm:$0xff]  ;;  %v12441_v2 = vld [vmem:[%s12305_s1 + $0xb0] sm:$0xff] }
 0x109   : > { %678 = vst [vmem:[#allocation4 + $0x20] sm:$0xff] %v12000_v0  ;;  %679 = vst [vmem:[#allocation5 + $0x30] sm:$0xff] %v12000_v0  ;;  %10282 = vmatprep.subr.mxu1 %v790_v46  ;;  %10197 = vmatpush3.msra.mxu0 %v842_v45  ;;  %v12445_v4 = vld [vmem:[%s12305_s1 + $0xb8] sm:$0xff]  ;;  %v1396_v5 = vld [vmem:[#allocation10 + $0x168] sm:$0xff] }
 0x10a   : > { %680 = vst [vmem:[#allocation5] sm:$0xff] %v12000_v0  ;;  %681 = vst [vmem:[#allocation5 + $0x18] sm:$0xff] %v12000_v0  ;;  %10283 = vmatpush3.msra.mxu1 %v790_v46  ;;  %10198 = vmatprep.subr.mxu0 %v841_v47  ;;  %v738_v6 = vld [vmem:[%s12305_s1 + $0xc8] sm:$0xff]  ;;  %v1730_v8 = vld [vmem:[#allocation10 + $0x1f0] sm:$0xff] }
 0x10b   : > { %682 = vst [vmem:[#allocation5 + $0x10] sm:$0xff] %v12000_v0  ;;  %683 = vst [vmem:[#allocation5 + $0x48] sm:$0xff] %v12000_v0  ;;  %10284 = vmatprep.subr.mxu1 %v789_v48  ;;  %10199 = vmatpush3.msra.mxu0 %v841_v47  ;;  %v1395_v12 = vld [vmem:[#allocation10 + $0x160] sm:$0xff]  ;;  %v1729_v14 = vld [vmem:[#allocation10 + $0x1e8] sm:$0xff] }
 0x10c   : > { %684 = vst [vmem:[#allocation5 + $0x28] sm:$0xff] %v12000_v0  ;;  %685 = vst [vmem:[#allocation5 + $0x8] sm:$0xff] %v12000_v0  ;;  %10200 = vmatprep.mubr.f32.mxu0 %v805_v49  ;;  %10285 = vmatpush3.msra.mxu1 %v789_v48  ;;  %v741_v17 = vld [vmem:[%s12305_s1 + $0xd0] sm:$0xff]  ;;  %v1728_v20 = vld [vmem:[#allocation10 + $0x1e0] sm:$0xff] }
 0x10d   : > { %686 = vst [vmem:[#allocation5 + $0x20] sm:$0xff] %v12000_v0  ;;  %687 = vst [vmem:[#allocation5 + $0x40] sm:$0xff] %v12000_v0  ;;  %10201 = vmatmul.mubr.f32.vlgmr.msra.gmra.mxu0 %v806_v50  ;;  %10287 = vmatmul.mubr.f32.vlgmr.msra.gmra.mxu1 %v12000_v0  ;;  %v1726_v35 = vld [vmem:[#allocation10 + $0x1d0] sm:$0xff]  ;;  %v1391_v40 = vld [vmem:[#allocation10 + $0x140] sm:$0xff] }
 0x10e   : > { %688 = vst [vmem:[#allocation5 + $0x38] sm:$0xff] %v12000_v0  ;;  %691 = vst [vmem:[#allocation2 + $0x13] sm:$0xff] %v689_v16  ;;  %10340 = vmatprep.subr.mxu0 %v1398_v53  ;;  %v737_v0 = vld [vmem:[%s12305_s1 + $0xc0] sm:$0xff]  ;;  %10426 = vmatprep.subr.mxu1 %v1731_v62  ;;  %v1725_v42 = vld [vmem:[#allocation10 + $0x1c8] sm:$0xff] }
 0x10f   : > { %692 = vst [vmem:[#allocation2 + $0x1b] sm:$0xff] %v690_v18  ;;  %695 = vst [vmem:[#allocation2 + $0x25] sm:$0xff] %v693_v19  ;;  %10341 = vmatpush3.msra.mxu0 %v1398_v53  ;;  %10427 = vmatpush3.msra.mxu1 %v1731_v62  ;;  %v1394_v19 = vld [vmem:[#allocation10 + $0x158] sm:$0xff]  ;;  %v1724_v48 = vld [vmem:[#allocation10 + $0x1c0] sm:$0xff] }
 0x110   : > { %696 = vst [vmem:[#allocation2 + $0x2d] sm:$0xff] %v694_v21  ;;  %699 = vst [vmem:[#allocation2 + $0x37] sm:$0xff] %v697_v22  ;;  %10342 = vmatprep.subr.mxu0 %v1397_v56  ;;  %10428 = vmatprep.subr.mxu1 %v1730_v8  ;;  %v742_v21 = vld [vmem:[%s12305_s1 + $0xd8] sm:$0xff]  ;;  %v745_v22 = vld [vmem:[%s12305_s1 + $0xe0] sm:$0xff] }
 0x111   : > { %700 = vst [vmem:[#allocation2 + $0x3f] sm:$0xff] %v698_v24  ;;  %703 = vst [vmem:[#allocation2 + $0x49] sm:$0xff] %v12412_v25  ;;  %10343 = vmatpush3.msra.mxu0 %v1397_v56  ;;  %10429 = vmatpush3.msra.mxu1 %v1730_v8  ;;  %v746_v24 = vld [vmem:[%s12305_s1 + $0xe8] sm:$0xff]  ;;  %v1390_v46 = vld [vmem:[#allocation10 + $0x138] sm:$0xff] }
 0x112   : > { %704 = vst [vmem:[#allocation2 + $0x51] sm:$0xff] %v12416_v27  ;;  %707 = vst [vmem:[#allocation2 + $0x5b] sm:$0xff] %v705_v28  ;;  %10344 = vmatprep.subr.mxu0 %v1396_v5  ;;  %10430 = vmatprep.subr.mxu1 %v1729_v14  ;;  %v1393_v28 = vld [vmem:[#allocation10 + $0x150] sm:$0xff]  ;;  %v1388_v56 = vld [vmem:[#allocation10 + $0x128] sm:$0xff] }
 0x113   : > { %708 = vst [vmem:[#allocation2 + $0x63] sm:$0xff] %v706_v30  ;;  %711 = vst [vmem:[#allocation2 + $0x6d] sm:$0xff] %v709_v31  ;;  %10345 = vmatpush3.msra.mxu0 %v1396_v5  ;;  %10431 = vmatpush3.msra.mxu1 %v1729_v14  ;;  %v1727_v30 = vld [vmem:[#allocation10 + $0x1d8] sm:$0xff]  ;;  %v749_v62 = vld [vmem:[%s12305_s1 + $0xf0] sm:$0xff] }
 0x114   : > { %712 = vst [vmem:[#allocation2 + $0x75] sm:$0xff] %v710_v33  ;;  %715 = vst [vmem:[#allocation2 + $0x7f] sm:$0xff] %v713_v34  ;;  %10346 = vmatprep.subr.mxu0 %v1395_v12  ;;  %10432 = vmatprep.subr.mxu1 %v1728_v20  ;;  %v1392_v34 = vld [vmem:[#allocation10 + $0x148] sm:$0xff]  ;;  %v1720_v8 = vld [vmem:[#allocation10 + $0x1a0] sm:$0xff] }
 0x115   : > { %716 = vst [vmem:[#allocation2 + $0x87] sm:$0xff] %v714_v36  ;;  %719 = vst [vmem:[#allocation2 + $0x91] sm:$0xff] %v12426_v37  ;;  %v807_v55 = vld [vmem:[#allocation2 + $0x11] sm:$0xff]  ;;  %10347 = vmatpush3.msra.mxu0 %v1395_v12  ;;  %10433 = vmatpush3.msra.mxu1 %v1728_v20 }
 0x116   : > { %720 = vst [vmem:[#allocation2 + $0x99] sm:$0xff] %v12430_v38  ;;  %723 = vst [vmem:[#allocation2 + $0xa3] sm:$0xff] %v721_v51  ;;  %v755_v58 = vld [vmem:[#allocation2 + $0x10] sm:$0xff]  ;;  %v808_v61 = vld [vmem:[#allocation2 + $0x19] sm:$0xff]  ;;  %10203 = vmatprep.mubr.f32.mxu0 %v807_v55  ;;  %10348 = vmatprep.subr.mxu0 %v1394_v19 }
 0x117   : > { %724 = vst [vmem:[#allocation2 + $0xab] sm:$0xff] %v722_v52  ;;  %727 = vst [vmem:[#allocation2 + $0xb5] sm:$0xff] %v725_v54  ;;  %v756_v63 = vld [vmem:[#allocation2 + $0x18] sm:$0xff]  ;;  %v809_v1 = vld [vmem:[#allocation2 + $0x21] sm:$0xff]  ;;  %10289 = vmatprep.mubr.f32.mxu1 %v755_v58  ;;  %10204 = vmatmul.mubr.f32.gmra.mxu0 %v808_v61 }
 0x118   : > { %728 = vst [vmem:[#allocation2 + $0xbd] sm:$0xff] %v726_v57  ;;  %731 = vst [vmem:[#allocation2 + $0xc7] sm:$0xff] %v729_v59  ;;  %v757_v3 = vld [vmem:[#allocation2 + $0x20] sm:$0xff]  ;;  %10290 = vmatmul.mubr.f32.gmra.mxu1 %v756_v63  ;;  %v810_v7 = vld [vmem:[#allocation2 + $0x29] sm:$0xff]  ;;  %10206 = vmatprep.mubr.f32.mxu0 %v809_v1 }
 0x119   : > { %732 = vst [vmem:[#allocation2 + $0xcf] sm:$0xff] %v730_v60  ;;  %735 = vst [vmem:[#allocation2 + $0xd9] sm:$0xff] %v12441_v2  ;;  %10292 = vmatprep.mubr.f32.mxu1 %v757_v3  ;;  %v758_v9 = vld [vmem:[#allocation2 + $0x28] sm:$0xff]  ;;  %v811_v10 = vld [vmem:[#allocation2 + $0x31] sm:$0xff]  ;;  %10349 = vmatpush3.msra.mxu0 %v1394_v19 }
 0x11a   : > { %736 = vst [vmem:[#allocation2 + $0xe1] sm:$0xff] %v12445_v4  ;;  %739 = vst [vmem:[#allocation2 + $0xeb] sm:$0xff] %v737_v0  ;;  %v759_v11 = vld [vmem:[#allocation2 + $0x30] sm:$0xff]  ;;  %v812_v13 = vld [vmem:[#allocation2 + $0x39] sm:$0xff]  ;;  %10350 = vmatprep.subr.mxu0 %v1393_v28  ;;  %10434 = vmatprep.subr.mxu1 %v1727_v30 }
 0x11b   : > { %740 = vst [vmem:[#allocation2 + $0xf3] sm:$0xff] %v738_v6  ;;  %10207 = vmatmul.mubr.f32.gmra.mxu0 %v810_v7  ;;  %v760_v15 = vld [vmem:[#allocation2 + $0x38] sm:$0xff]  ;;  %v813_v16 = vld [vmem:[#allocation2 + $0x41] sm:$0xff]  ;;  %743 = vst [vmem:[#allocation2 + $0xfd] sm:$0xff] %v741_v17  ;;  %10435 = vmatpush3.msra.mxu1 %v1727_v30 }
 0x11c   : > { %10293 = vmatmul.mubr.f32.gmra.mxu1 %v758_v9  ;;  %10209 = vmatprep.mubr.f32.mxu0 %v811_v10  ;;  %v761_v18 = vld [vmem:[#allocation2 + $0x40] sm:$0xff]  ;;  %v762_v23 = vld [vmem:[#allocation2 + $0x48] sm:$0xff]  ;;  %744 = vst [vmem:[#allocation2 + $0x105] sm:$0xff] %v742_v21  ;;  %747 = vst [vmem:[#allocation2 + $0x10f] sm:$0xff] %v745_v22 }
 0x11d   : > { %10295 = vmatprep.mubr.f32.mxu1 %v759_v11  ;;  %v763_v26 = vld [vmem:[#allocation2 + $0x50] sm:$0xff]  ;;  %748 = vst [vmem:[#allocation2 + $0x117] sm:$0xff] %v746_v24  ;;  %v816_v29 = vld [vmem:[#allocation2 + $0x59] sm:$0xff]  ;;  %v817_v32 = vld [vmem:[#allocation2 + $0x61] sm:$0xff]  ;;  %10351 = vmatpush3.msra.mxu0 %v1393_v28 }
 0x11e   : > { %v764_v31 = vld [vmem:[#allocation2 + $0x58] sm:$0xff]  ;;  %v765_v33 = vld [vmem:[#allocation2 + $0x60] sm:$0xff]  ;;  %v766_v36 = vld [vmem:[#allocation2 + $0x68] sm:$0xff]  ;;  %10352 = vmatprep.subr.mxu0 %v1392_v34  ;;  %10436 = vmatprep.subr.mxu1 %v1726_v35  ;;  %751 = vst [vmem:[#allocation2 + $0x121] sm:$0xff] %v749_v62 }
 0x11f   : > { %10210 = vmatmul.mubr.f32.gmra.mxu0 %v812_v13  ;;  %v767_v39 = vld [vmem:[#allocation2 + $0x70] sm:$0xff]  ;;  %v820_v41 = vld [vmem:[#allocation2 + $0x79] sm:$0xff]  ;;  %v821_v44 = vld [vmem:[#allocation2 + $0x81] sm:$0xff]  ;;  %10437 = vmatpush3.msra.mxu1 %v1726_v35 }
 0x120   : > { %10296 = vmatmul.mubr.f32.gmra.mxu1 %v760_v15  ;;  %10212 = vmatprep.mubr.f32.mxu0 %v813_v16  ;;  %v768_v43 = vld [vmem:[#allocation2 + $0x78] sm:$0xff]  ;;  %v769_v45 = vld [vmem:[#allocation2 + $0x80] sm:$0xff]  ;;  %v822_v47 = vld [vmem:[#allocation2 + $0x89] sm:$0xff] }
 0x121   : > { %10298 = vmatprep.mubr.f32.mxu1 %v761_v18  ;;  %10353 = vmatpush3.msra.mxu0 %v1392_v34  ;;  %v770_v49 = vld [vmem:[#allocation2 + $0x88] sm:$0xff]  ;;  %v771_v50 = vld [vmem:[#allocation2 + $0x90] sm:$0xff]  ;;  %v1389_v51 = vld [vmem:[#allocation10 + $0x130] sm:$0xff] }
 0x122   : > { %10354 = vmatprep.subr.mxu0 %v1391_v40  ;;  %10438 = vmatprep.subr.mxu1 %v1725_v42  ;;  %v1723_v52 = vld [vmem:[#allocation10 + $0x1b8] sm:$0xff]  ;;  %v772_v53 = vld [vmem:[#allocation2 + $0x98] sm:$0xff]  ;;  %v826_v57 = vld [vmem:[#allocation2 + $0xa9] sm:$0xff] }
 0x123   : > { %10213 = vmatmul.mubr.f32.gmra.mxu0 %v12412_v25  ;;  %v818_v25 = vld [vmem:[#allocation2 + $0x69] sm:$0xff]  ;;  %10439 = vmatpush3.msra.mxu1 %v1725_v42  ;;  %v825_v54 = vld [vmem:[#allocation2 + $0xa1] sm:$0xff]  ;;  %v1722_v58 = vld [vmem:[#allocation10 + $0x1b0] sm:$0xff] }
 0x124   : > { %10299 = vmatmul.mubr.f32.gmra.mxu1 %v762_v23  ;;  %10215 = vmatprep.mubr.f32.mxu0 %v12416_v27  ;;  %v819_v27 = vld [vmem:[#allocation2 + $0x71] sm:$0xff]  ;;  %v773_v55 = vld [vmem:[#allocation2 + $0xa0] sm:$0xff]  ;;  %v1387_v61 = vld [vmem:[#allocation10 + $0x120] sm:$0xff] }
 0x125   : > { %10301 = vmatprep.mubr.f32.mxu1 %v763_v26  ;;  %10355 = vmatpush3.msra.mxu0 %v1391_v40  ;;  %v827_v59 = vld [vmem:[#allocation2 + $0xb1] sm:$0xff]  ;;  %v750_v1 = vld [vmem:[%s12305_s1 + $0xf8] sm:$0xff]  ;;  %v830_v7 = vld [vmem:[#allocation2 + $0xc9] sm:$0xff] }
 0x126   : > { %10356 = vmatprep.subr.mxu0 %v1390_v46  ;;  %10440 = vmatprep.subr.mxu1 %v1724_v48  ;;  %v775_v60 = vld [vmem:[#allocation2 + $0xb0] sm:$0xff]  ;;  %v776_v3 = vld [vmem:[#allocation2 + $0xb8] sm:$0xff]  ;;  %v829_v0 = vld [vmem:[#allocation2 + $0xc1] sm:$0xff]  ;;  %752 = vst [vmem:[#allocation2 + $0x129] sm:$0xff] %v750_v1 }
 0x127   : > { %10216 = vmatmul.mubr.f32.gmra.mxu0 %v816_v29  ;;  %10441 = vmatpush3.msra.mxu1 %v1724_v48  ;;  %v1721_v63 = vld [vmem:[#allocation10 + $0x1a8] sm:$0xff]  ;;  %v777_v5 = vld [vmem:[#allocation2 + $0xc0] sm:$0xff]  ;;  %v778_v9 = vld [vmem:[#allocation2 + $0xc8] sm:$0xff] }
 0x128   : > { %10302 = vmatmul.mubr.f32.gmra.mxu1 %v764_v31  ;;  %10218 = vmatprep.mubr.f32.mxu0 %v817_v32  ;;  %v1386_v6 = vld [vmem:[#allocation10 + $0x118] sm:$0xff]  ;;  %v831_v10 = vld [vmem:[#allocation2 + $0xd1] sm:$0xff]  ;;  %v834_v17 = vld [vmem:[#allocation2 + $0xe9] sm:$0xff] }
 0x129   : > { %10304 = vmatprep.mubr.f32.mxu1 %v765_v33  ;;  %10357 = vmatpush3.msra.mxu0 %v1390_v46  ;;  %v779_v11 = vld [vmem:[#allocation2 + $0xd0] sm:$0xff]  ;;  %v1385_v12 = vld [vmem:[#allocation10 + $0x110] sm:$0xff]  ;;  %v1719_v13 = vld [vmem:[#allocation10 + $0x198] sm:$0xff] }
 0x12a   : > { %10358 = vmatprep.subr.mxu0 %v1389_v51  ;;  %10442 = vmatprep.subr.mxu1 %v1723_v52  ;;  %v780_v14 = vld [vmem:[#allocation2 + $0xd8] sm:$0xff]  ;;  %v781_v15 = vld [vmem:[#allocation2 + $0xe0] sm:$0xff]  ;;  %v1384_v16 = vld [vmem:[#allocation10 + $0x108] sm:$0xff] }
 0x12b   : > { %10219 = vmatmul.mubr.f32.gmra.mxu0 %v818_v25  ;;  %10443 = vmatpush3.msra.mxu1 %v1723_v52  ;;  %v1718_v18 = vld [vmem:[#allocation10 + $0x190] sm:$0xff]  ;;  %v782_v19 = vld [vmem:[#allocation2 + $0xe8] sm:$0xff]  ;;  %v783_v21 = vld [vmem:[#allocation2 + $0xf0] sm:$0xff] }
 0x12c   : > { %10305 = vmatmul.mubr.f32.gmra.mxu1 %v766_v36  ;;  %10221 = vmatprep.mubr.f32.mxu0 %v819_v27  ;;  %v835_v20 = vld [vmem:[#allocation2 + $0xf1] sm:$0xff]  ;;  %v1383_v22 = vld [vmem:[#allocation10 + $0x100] sm:$0xff]  ;;  %v2064_v28 = vld [vmem:[#allocation10 + $0x278] sm:$0xff] }
 0x12d   : > { %10307 = vmatprep.mubr.f32.mxu1 %v767_v39  ;;  %10359 = vmatpush3.msra.mxu0 %v1389_v51  ;;  %v1717_v23 = vld [vmem:[#allocation10 + $0x188] sm:$0xff]  ;;  %v784_v24 = vld [vmem:[#allocation2 + $0xf8] sm:$0xff]  ;;  %v837_v26 = vld [vmem:[#allocation2 + $0x101] sm:$0xff] }
 0x12e   : > { %10360 = vmatprep.subr.mxu0 %v1388_v56  ;;  %10444 = vmatprep.subr.mxu1 %v1722_v58  ;;  %v838_v29 = vld [vmem:[#allocation2 + $0x109] sm:$0xff]  ;;  %v839_v32 = vld [vmem:[#allocation2 + $0x111] sm:$0xff]  ;;  %v2397_v34 = vld [vmem:[#allocation10 + $0x2f8] sm:$0xff] }
 0x12f   : > { %10222 = vmatmul.mubr.f32.gmra.mxu0 %v820_v41  ;;  %10445 = vmatpush3.msra.mxu1 %v1722_v58  ;;  %v1716_v30 = vld [vmem:[#allocation10 + $0x180] sm:$0xff]  ;;  %v787_v33 = vld [vmem:[#allocation2 + $0x110] sm:$0xff]  ;;  %v840_v25 = vld [vmem:[#allocation2 + $0x119] sm:$0xff] }
 0x130   : > { %10308 = vmatmul.mubr.f32.gmra.mxu1 %v768_v43  ;;  %10224 = vmatprep.mubr.f32.mxu0 %v821_v44  ;;  %v786_v31 = vld [vmem:[#allocation2 + $0x108] sm:$0xff]  ;;  %v788_v35 = vld [vmem:[#allocation2 + $0x118] sm:$0xff]  ;;  %v2062_v46 = vld [vmem:[#allocation10 + $0x268] sm:$0xff] }
 0x131   : > { %10310 = vmatprep.mubr.f32.mxu1 %v769_v45  ;;  %10361 = vmatpush3.msra.mxu0 %v1388_v56  ;;  %v1347_v36 = vld [vmem:[#allocation2 + $0x2] sm:$0xff]  ;;  %v1680_v27 = vld [vmem:[#allocation2 + $0x12] sm:$0xff]  ;;  %v1348_v39 = vld [vmem:[#allocation2 + $0xa] sm:$0xff] }
 0x132   : > { %10362 = vmatprep.subr.mxu0 %v1387_v61  ;;  %10446 = vmatprep.subr.mxu1 %v1721_v63  ;;  %v1681_v40 = vld [vmem:[#allocation2 + $0x1a] sm:$0xff]  ;;  %v1682_v41 = vld [vmem:[#allocation2 + $0x22] sm:$0xff]  ;;  %v1683_v44 = vld [vmem:[#allocation2 + $0x2a] sm:$0xff] }
 0x133   : > { %10225 = vmatmul.mubr.f32.gmra.mxu0 %v822_v47  ;;  %10447 = vmatpush3.msra.mxu1 %v1721_v63  ;;  %v2063_v42 = vld [vmem:[#allocation10 + $0x270] sm:$0xff]  ;;  %v2395_v47 = vld [vmem:[#allocation10 + $0x2e8] sm:$0xff]  ;;  %v2394_v51 = vld [vmem:[#allocation10 + $0x2e0] sm:$0xff] }
 0x134   : > { %10311 = vmatmul.mubr.f32.gmra.mxu1 %v770_v49  ;;  %10227 = vmatprep.mubr.f32.mxu0 %v12426_v37  ;;  %v774_v37 = vld [vmem:[#allocation2 + $0xa8] sm:$0xff]  ;;  %v2396_v43 = vld [vmem:[#allocation10 + $0x2f0] sm:$0xff]  ;;  %v2391_v62 = vld [vmem:[#allocation10 + $0x2c8] sm:$0xff] }
 0x135   : > { %10313 = vmatprep.mubr.f32.mxu1 %v771_v50  ;;  %10363 = vmatpush3.msra.mxu0 %v1387_v61  ;;  %v1684_v45 = vld [vmem:[#allocation2 + $0x32] sm:$0xff]  ;;  %v1685_v48 = vld [vmem:[#allocation2 + $0x3a] sm:$0xff]  ;;  %v1686_v49 = vld [vmem:[#allocation2 + $0x42] sm:$0xff] }
 0x136   : > { %10364 = vmatprep.subr.mxu0 %v1386_v6  ;;  %10448 = vmatprep.subr.mxu1 %v1720_v8  ;;  %v2061_v50 = vld [vmem:[#allocation10 + $0x260] sm:$0xff]  ;;  %v1689_v56 = vld [vmem:[#allocation2 + $0x5a] sm:$0xff]  ;;  %v2058_v61 = vld [vmem:[#allocation10 + $0x248] sm:$0xff] }
 0x137   : > { %10228 = vmatmul.mubr.f32.gmra.mxu0 %v12430_v38  ;;  %v828_v38 = vld [vmem:[#allocation2 + $0xb9] sm:$0xff]  ;;  %10449 = vmatpush3.msra.mxu1 %v1720_v8  ;;  %v1687_v52 = vld [vmem:[#allocation2 + $0x4a] sm:$0xff]  ;;  %v1694_v63 = vld [vmem:[#allocation2 + $0x82] sm:$0xff] }
 0x138   : > { %10314 = vmatmul.mubr.f32.gmra.mxu1 %v772_v53  ;;  %10230 = vmatprep.mubr.f32.mxu0 %v825_v54  ;;  %v1688_v53 = vld [vmem:[#allocation2 + $0x52] sm:$0xff]  ;;  %v2060_v54 = vld [vmem:[#allocation10 + $0x258] sm:$0xff]  ;;  %v2057_v1 = vld [vmem:[#allocation10 + $0x240] sm:$0xff] }
 0x139   : > { %10316 = vmatprep.mubr.f32.mxu1 %v773_v55  ;;  %10365 = vmatpush3.msra.mxu0 %v1386_v6  ;;  %v2393_v55 = vld [vmem:[#allocation10 + $0x2d8] sm:$0xff]  ;;  %v2059_v58 = vld [vmem:[#allocation10 + $0x250] sm:$0xff] }
 0x13a   : > { %10366 = vmatprep.subr.mxu0 %v1385_v12  ;;  %10450 = vmatprep.subr.mxu1 %v1719_v13  ;;  %v2056_v6 = vld [vmem:[#allocation10 + $0x238] sm:$0xff] }
 0x13b   : > { %10231 = vmatmul.mubr.f32.gmra.mxu0 %v826_v57  ;;  %10451 = vmatpush3.msra.mxu1 %v1719_v13  ;;  %v1690_v57 = vld [vmem:[#allocation2 + $0x62] sm:$0xff]  ;;  %v1697_v8 = vld [vmem:[#allocation2 + $0x9a] sm:$0xff]  ;;  %v1700_v13 = vld [vmem:[#allocation2 + $0xb2] sm:$0xff] }
 0x13c   : > { %10317 = vmatmul.mubr.f32.gmra.mxu1 %v774_v37  ;;  %10233 = vmatprep.mubr.f32.mxu0 %v827_v59  ;;  %v2392_v37 = vld [vmem:[#allocation10 + $0x2d0] sm:$0xff]  ;;  %v1691_v59 = vld [vmem:[#allocation2 + $0x6a] sm:$0xff] }
 0x13d   : > { %10319 = vmatprep.mubr.f32.mxu1 %v775_v60  ;;  %10367 = vmatpush3.msra.mxu0 %v1385_v12  ;;  %v1692_v60 = vld [vmem:[#allocation2 + $0x72] sm:$0xff]  ;;  %v1699_v12 = vld [vmem:[#allocation2 + $0xaa] sm:$0xff] }
 0x13e   : > { %10368 = vmatprep.subr.mxu0 %v1384_v16  ;;  %10452 = vmatprep.subr.mxu1 %v1718_v18 }
 0x13f   : > { %10234 = vmatmul.mubr.f32.gmra.mxu0 %v828_v38  ;;  %10453 = vmatpush3.msra.mxu1 %v1718_v18  ;;  %v1693_v38 = vld [vmem:[#allocation2 + $0x7a] sm:$0xff]  ;;  %v2053_v18 = vld [vmem:[#allocation10 + $0x220] sm:$0xff] }
 0x140   : > { %10320 = vmatmul.mubr.f32.gmra.mxu1 %v776_v3  ;;  %10236 = vmatprep.mubr.f32.mxu0 %v829_v0  ;;  %v2390_v3 = vld [vmem:[#allocation10 + $0x2c0] sm:$0xff] }
 0x141   : > { %10322 = vmatprep.mubr.f32.mxu1 %v777_v5  ;;  %10369 = vmatpush3.msra.mxu0 %v1384_v16  ;;  %v1695_v0 = vld [vmem:[#allocation2 + $0x8a] sm:$0xff]  ;;  %v1696_v5 = vld [vmem:[#allocation2 + $0x92] sm:$0xff]  ;;  %v1701_v16 = vld [vmem:[#allocation2 + $0xba] sm:$0xff] }
 0x142   : > { %10370 = vmatprep.subr.mxu0 %v1383_v22  ;;  %10454 = vmatprep.subr.mxu1 %v1717_v23 }
 0x143   : > { %10237 = vmatmul.mubr.f32.gmra.mxu0 %v830_v7  ;;  %10455 = vmatpush3.msra.mxu1 %v1717_v23  ;;  %v2389_v7 = vld [vmem:[#allocation10 + $0x2b8] sm:$0xff] }
 0x144   : > { %10323 = vmatmul.mubr.f32.gmra.mxu1 %v778_v9  ;;  %10239 = vmatprep.mubr.f32.mxu0 %v831_v10  ;;  %v1698_v9 = vld [vmem:[#allocation2 + $0xa2] sm:$0xff]  ;;  %v2055_v10 = vld [vmem:[#allocation10 + $0x230] sm:$0xff] }
 0x145   : > { %10325 = vmatprep.mubr.f32.mxu1 %v779_v11  ;;  %10371 = vmatpush3.msra.mxu0 %v1383_v22  ;;  %v2388_v11 = vld [vmem:[#allocation10 + $0x2b0] sm:$0xff]  ;;  %v2052_v22 = vld [vmem:[#allocation10 + $0x218] sm:$0xff] }
 0x146   : > { %10512 = vmatprep.subr.mxu0 %v2064_v28  ;;  %10456 = vmatprep.subr.mxu1 %v1716_v30  ;;  %v1705_v23 = vld [vmem:[#allocation2 + $0xda] sm:$0xff] }
 0x147   : > { %10240 = vmatmul.mubr.f32.gmra.mxu0 %v12441_v2  ;;  %v836_v2 = vld [vmem:[#allocation2 + $0xf9] sm:$0xff]  ;;  %10457 = vmatpush3.msra.mxu1 %v1716_v30  ;;  %v2050_v30 = vld [vmem:[#allocation10 + $0x208] sm:$0xff] }
 0x148   : > { %10326 = vmatmul.mubr.f32.gmra.mxu1 %v780_v14  ;;  %10242 = vmatprep.mubr.f32.mxu0 %v12445_v4  ;;  %v785_v4 = vld [vmem:[#allocation2 + $0x100] sm:$0xff]  ;;  %v2054_v14 = vld [vmem:[#allocation10 + $0x228] sm:$0xff] }
 0x149   : > { %10328 = vmatprep.mubr.f32.mxu1 %v781_v15  ;;  %10598 = vmatprep.subr.mxu1 %v2397_v34  ;;  %v2387_v15 = vld [vmem:[#allocation10 + $0x2a8] sm:$0xff] }
 0x14b   : > { %10243 = vmatmul.mubr.f32.gmra.mxu0 %v834_v17  ;;  %v1702_v17 = vld [vmem:[#allocation2 + $0xc2] sm:$0xff] }
 0x14c   : > { %10329 = vmatmul.mubr.f32.gmra.mxu1 %v782_v19  ;;  %10245 = vmatprep.mubr.f32.mxu0 %v835_v20  ;;  %v2386_v19 = vld [vmem:[#allocation10 + $0x2a0] sm:$0xff] }
 0x14d   : > { %10331 = vmatprep.mubr.f32.mxu1 %v783_v21  ;;  %v1703_v20 = vld [vmem:[#allocation2 + $0xca] sm:$0xff]  ;;  %v1704_v21 = vld [vmem:[#allocation2 + $0xd2] sm:$0xff] }
 0x14f   : > { %10246 = vmatmul.mubr.f32.gmra.mxu0 %v836_v2  ;;  %v2385_v2 = vld [vmem:[#allocation10 + $0x298] sm:$0xff] }
 0x150   : > { %10332 = vmatmul.mubr.f32.gmra.mxu1 %v784_v24  ;;  %10248 = vmatprep.mubr.f32.mxu0 %v837_v26  ;;  %v1706_v24 = vld [vmem:[#allocation2 + $0xe2] sm:$0xff]  ;;  %v2051_v26 = vld [vmem:[#allocation10 + $0x210] sm:$0xff] }
 0x151   : > { %10334 = vmatprep.mubr.f32.mxu1 %v785_v4  ;;  %v2384_v4 = vld [vmem:[#allocation10 + $0x290] sm:$0xff] }
 0x153   : > { %10249 = vmatmul.mubr.f32.gmra.mxu0 %v838_v29  ;;  %v1708_v29 = vld [vmem:[#allocation2 + $0xf2] sm:$0xff] }
 0x154   : > { %10335 = vmatmul.mubr.f32.gmra.mxu1 %v786_v31  ;;  %10251 = vmatprep.mubr.f32.mxu0 %v839_v32  ;;  %v2383_v31 = vld [vmem:[#allocation10 + $0x288] sm:$0xff]  ;;  %v1709_v32 = vld [vmem:[#allocation2 + $0xfa] sm:$0xff] }
 0x155   : > { %10337 = vmatprep.mubr.f32.mxu1 %v787_v33  ;;  %v1710_v33 = vld [vmem:[#allocation2 + $0x102] sm:$0xff] }
 0x157   : > { %10252 = vmatmul.mubr.f32.gmra.mxu0 %v840_v25  ;;  %v2382_v25 = vld [vmem:[#allocation10 + $0x280] sm:$0xff] }
 0x158   : > { %10338 = vmatmul.mubr.f32.gmra.mxu1 %v788_v35  ;;  %10372 = vmatprep.mubr.f32.mxu0 %v1347_v36  ;;  %v1711_v35 = vld [vmem:[#allocation2 + $0x10a] sm:$0xff]  ;;  %v1712_v36 = vld [vmem:[#allocation2 + $0x112] sm:$0xff] }
 0x159   : > { %10458 = vmatprep.mubr.f32.mxu1 %v1680_v27 }
 0x15b   : > { %10373 = vmatmul.mubr.f32.vlgmr.msra.gmra.mxu0 %v1348_v39  ;;  %v3063_v39 = vld [vmem:[#allocation10 + $0x3f8] sm:$0xff] }
 0x15c   : > { %10513 = vmatpush3.msra.mxu0 %v2064_v28  ;;  %10459 = vmatmul.mubr.f32.vlgmr.msra.gmra.mxu1 %v1681_v40  ;;  %v1707_v28 = vld [vmem:[#allocation2 + $0xea] sm:$0xff] }
 0x15d   : > { %10375 = vmatprep.mubr.f32.mxu0 %v1680_v27  ;;  %10461 = vmatprep.mubr.f32.mxu1 %v1682_v41  ;;  %v2730_v27 = vld [vmem:[#allocation10 + $0x378] sm:$0xff] }
 0x15e   : > { %10514 = vmatprep.subr.mxu0 %v2063_v42  ;;  %10599 = vmatpush3.msra.mxu1 %v2397_v34  ;;  %v2049_v34 = vld [vmem:[#allocation10 + $0x200] sm:$0xff] }
 0x15f   : > { %10376 = vmatmul.mubr.f32.gmra.mxu0 %v1681_v40  ;;  %10600 = vmatprep.subr.mxu1 %v2396_v43  ;;  %v1713_v40 = vld [vmem:[#allocation2 + $0x11a] sm:$0xff] }
 0x160   : > { %10462 = vmatmul.mubr.f32.gmra.mxu1 %v1683_v44  ;;  %10515 = vmatpush3.msra.mxu0 %v2063_v42  ;;  %v1715_v42 = vld [vmem:[#allocation2 + $0x12a] sm:$0xff] }
 0x161   : > { %10378 = vmatprep.mubr.f32.mxu0 %v1682_v41  ;;  %10464 = vmatprep.mubr.f32.mxu1 %v1684_v45  ;;  %v1714_v41 = vld [vmem:[#allocation2 + $0x122] sm:$0xff] }
 0x162   : > { %10516 = vmatprep.subr.mxu0 %v2062_v46  ;;  %10601 = vmatpush3.msra.mxu1 %v2396_v43  ;;  %v2013_v43 = vld [vmem:[#allocation2 + $0x13] sm:$0xff] }
 0x163   : > { %10379 = vmatmul.mubr.f32.gmra.mxu0 %v1683_v44  ;;  %10602 = vmatprep.subr.mxu1 %v2395_v47  ;;  %v2346_v44 = vld [vmem:[#allocation2 + $0x14] sm:$0xff] }
 0x164   : > { %10465 = vmatmul.mubr.f32.gmra.mxu1 %v1685_v48  ;;  %10517 = vmatpush3.msra.mxu0 %v2062_v46  ;;  %v2347_v46 = vld [vmem:[#allocation2 + $0x1c] sm:$0xff] }
 0x165   : > { %10381 = vmatprep.mubr.f32.mxu0 %v1684_v45  ;;  %10467 = vmatprep.mubr.f32.mxu1 %v1686_v49  ;;  %v2014_v45 = vld [vmem:[#allocation2 + $0x1b] sm:$0xff] }
 0x166   : > { %10518 = vmatprep.subr.mxu0 %v2061_v50  ;;  %10603 = vmatpush3.msra.mxu1 %v2395_v47  ;;  %v2015_v47 = vld [vmem:[#allocation2 + $0x23] sm:$0xff] }
 0x167   : > { %10382 = vmatmul.mubr.f32.gmra.mxu0 %v1685_v48  ;;  %10604 = vmatprep.subr.mxu1 %v2394_v51  ;;  %v12462_v48 = vld [vmem:[#allocation2 + $0x24] sm:$0xff] }
 0x168   : > { %10468 = vmatmul.mubr.f32.gmra.mxu1 %v1687_v52  ;;  %10384 = vmatprep.mubr.f32.mxu0 %v1686_v49  ;;  %v2729_v49 = vld [vmem:[#allocation10 + $0x370] sm:$0xff] }
 0x169   : > { %10519 = vmatpush3.msra.mxu0 %v2061_v50  ;;  %10470 = vmatprep.mubr.f32.mxu1 %v1688_v53  ;;  %v2016_v50 = vld [vmem:[#allocation2 + $0x2b] sm:$0xff] }
 0x16a   : > { %10520 = vmatprep.subr.mxu0 %v2060_v54  ;;  %10605 = vmatpush3.msra.mxu1 %v2394_v51  ;;  %v3062_v51 = vld [vmem:[#allocation10 + $0x3f0] sm:$0xff] }
 0x16b   : > { %10385 = vmatmul.mubr.f32.gmra.mxu0 %v1687_v52  ;;  %10606 = vmatprep.subr.mxu1 %v2393_v55  ;;  %v12465_v52 = vld [vmem:[#allocation2 + $0x2c] sm:$0xff] }
 0x16c   : > { %10471 = vmatmul.mubr.f32.gmra.mxu1 %v1689_v56  ;;  %10387 = vmatprep.mubr.f32.mxu0 %v1688_v53  ;;  %v2017_v53 = vld [vmem:[#allocation2 + $0x33] sm:$0xff] }
 0x16d   : > { %10521 = vmatpush3.msra.mxu0 %v2060_v54  ;;  %10473 = vmatprep.mubr.f32.mxu1 %v1690_v57  ;;  %v12467_v54 = vld [vmem:[#allocation2 + $0x34] sm:$0xff] }
 0x16e   : > { %10522 = vmatprep.subr.mxu0 %v2059_v58  ;;  %10607 = vmatpush3.msra.mxu1 %v2393_v55  ;;  %v2728_v55 = vld [vmem:[#allocation10 + $0x368] sm:$0xff] }
 0x16f   : > { %10388 = vmatmul.mubr.f32.gmra.mxu0 %v1689_v56  ;;  %10608 = vmatprep.subr.mxu1 %v2392_v37  ;;  %v2018_v56 = vld [vmem:[#allocation2 + $0x3b] sm:$0xff] }
 0x170   : > { %10474 = vmatmul.mubr.f32.gmra.mxu1 %v1691_v59  ;;  %10390 = vmatprep.mubr.f32.mxu0 %v1690_v57  ;;  %v3061_v57 = vld [vmem:[#allocation10 + $0x3e8] sm:$0xff] }
 0x171   : > { %10523 = vmatpush3.msra.mxu0 %v2059_v58  ;;  %10476 = vmatprep.mubr.f32.mxu1 %v1692_v60  ;;  %v12471_v58 = vld [vmem:[#allocation2 + $0x3c] sm:$0xff] }
 0x172   : > { %10524 = vmatprep.subr.mxu0 %v2058_v61  ;;  %10609 = vmatpush3.msra.mxu1 %v2392_v37  ;;  %v2019_v37 = vld [vmem:[#allocation2 + $0x43] sm:$0xff] }
 0x173   : > { %10391 = vmatmul.mubr.f32.gmra.mxu0 %v1691_v59  ;;  %10610 = vmatprep.subr.mxu1 %v2391_v62  ;;  %v12473_v59 = vld [vmem:[#allocation2 + $0x44] sm:$0xff] }
 0x174   : > { %10477 = vmatmul.mubr.f32.gmra.mxu1 %v1693_v38  ;;  %10393 = vmatprep.mubr.f32.mxu0 %v1692_v60  ;;  %v2727_v60 = vld [vmem:[#allocation10 + $0x360] sm:$0xff] }
 0x175   : > { %10525 = vmatpush3.msra.mxu0 %v2058_v61  ;;  %10479 = vmatprep.mubr.f32.mxu1 %v1694_v63  ;;  %v2020_v61 = vld [vmem:[#allocation2 + $0x4b] sm:$0xff] }
 0x176   : > { %10526 = vmatprep.subr.mxu0 %v2057_v1  ;;  %10611 = vmatpush3.msra.mxu1 %v2391_v62  ;;  %v3060_v62 = vld [vmem:[#allocation10 + $0x3e0] sm:$0xff] }
 0x177   : > { %10394 = vmatmul.mubr.f32.gmra.mxu0 %v1693_v38  ;;  %10612 = vmatprep.subr.mxu1 %v2390_v3  ;;  %v12477_v38 = vld [vmem:[#allocation2 + $0x4c] sm:$0xff] }
 0x178   : > { %10480 = vmatmul.mubr.f32.gmra.mxu1 %v1695_v0  ;;  %10396 = vmatprep.mubr.f32.mxu0 %v1694_v63  ;;  %v2021_v63 = vld [vmem:[#allocation2 + $0x53] sm:$0xff] }
 0x179   : > { %10482 = vmatprep.mubr.f32.mxu1 %v1696_v5  ;;  %10527 = vmatpush3.msra.mxu0 %v2057_v1  ;;  %v12479_v1 = vld [vmem:[#allocation2 + $0x54] sm:$0xff] }
 0x17a   : > { %10528 = vmatprep.subr.mxu0 %v2056_v6  ;;  %10613 = vmatpush3.msra.mxu1 %v2390_v3  ;;  %v2726_v3 = vld [vmem:[#allocation10 + $0x358] sm:$0xff] }
 0x17b   : > { %10397 = vmatmul.mubr.f32.gmra.mxu0 %v1695_v0  ;;  %10614 = vmatprep.subr.mxu1 %v2389_v7  ;;  %v2022_v0 = vld [vmem:[#allocation2 + $0x5b] sm:$0xff] }
 0x17c   : > { %10483 = vmatmul.mubr.f32.gmra.mxu1 %v1697_v8  ;;  %10399 = vmatprep.mubr.f32.mxu0 %v1696_v5  ;;  %v3059_v5 = vld [vmem:[#allocation10 + $0x3d8] sm:$0xff] }
 0x17d   : > { %10485 = vmatprep.mubr.f32.mxu1 %v1698_v9  ;;  %10529 = vmatpush3.msra.mxu0 %v2056_v6  ;;  %v12483_v6 = vld [vmem:[#allocation2 + $0x5c] sm:$0xff] }
 0x17e   : > { %10530 = vmatprep.subr.mxu0 %v2055_v10  ;;  %10615 = vmatpush3.msra.mxu1 %v2389_v7  ;;  %v2023_v7 = vld [vmem:[#allocation2 + $0x63] sm:$0xff] }
 0x17f   : > { %10400 = vmatmul.mubr.f32.gmra.mxu0 %v1697_v8  ;;  %10616 = vmatprep.subr.mxu1 %v2388_v11  ;;  %v12485_v8 = vld [vmem:[#allocation2 + $0x64] sm:$0xff] }
 0x180   : > { %10486 = vmatmul.mubr.f32.gmra.mxu1 %v1699_v12  ;;  %10402 = vmatprep.mubr.f32.mxu0 %v1698_v9  ;;  %v2725_v9 = vld [vmem:[#allocation10 + $0x350] sm:$0xff] }
 0x181   : > { %10488 = vmatprep.mubr.f32.mxu1 %v1700_v13  ;;  %10531 = vmatpush3.msra.mxu0 %v2055_v10  ;;  %v2024_v10 = vld [vmem:[#allocation2 + $0x6b] sm:$0xff] }
 0x182   : > { %10532 = vmatprep.subr.mxu0 %v2054_v14  ;;  %10617 = vmatpush3.msra.mxu1 %v2388_v11  ;;  %v3058_v11 = vld [vmem:[#allocation10 + $0x3d0] sm:$0xff] }
 0x183   : > { %10403 = vmatmul.mubr.f32.gmra.mxu0 %v1699_v12  ;;  %10618 = vmatprep.subr.mxu1 %v2387_v15  ;;  %v12489_v12 = vld [vmem:[#allocation2 + $0x6c] sm:$0xff] }
 0x184   : > { %10489 = vmatmul.mubr.f32.gmra.mxu1 %v1701_v16  ;;  %10405 = vmatprep.mubr.f32.mxu0 %v1700_v13  ;;  %v2025_v13 = vld [vmem:[#allocation2 + $0x73] sm:$0xff] }
 0x185   : > { %10491 = vmatprep.mubr.f32.mxu1 %v1702_v17  ;;  %10533 = vmatpush3.msra.mxu0 %v2054_v14  ;;  %v12491_v14 = vld [vmem:[#allocation2 + $0x74] sm:$0xff] }
 0x186   : > { %10534 = vmatprep.subr.mxu0 %v2053_v18  ;;  %10619 = vmatpush3.msra.mxu1 %v2387_v15  ;;  %v2724_v15 = vld [vmem:[#allocation10 + $0x348] sm:$0xff] }
 0x187   : > { %10406 = vmatmul.mubr.f32.gmra.mxu0 %v1701_v16  ;;  %10620 = vmatprep.subr.mxu1 %v2386_v19  ;;  %v2026_v16 = vld [vmem:[#allocation2 + $0x7b] sm:$0xff] }
 0x188   : > { %10492 = vmatmul.mubr.f32.gmra.mxu1 %v1703_v20  ;;  %10408 = vmatprep.mubr.f32.mxu0 %v1702_v17  ;;  %v3057_v17 = vld [vmem:[#allocation10 + $0x3c8] sm:$0xff] }
 0x189   : > { %10494 = vmatprep.mubr.f32.mxu1 %v1704_v21  ;;  %10535 = vmatpush3.msra.mxu0 %v2053_v18  ;;  %v12495_v18 = vld [vmem:[#allocation2 + $0x7c] sm:$0xff] }
 0x18a   : > { %10536 = vmatprep.subr.mxu0 %v2052_v22  ;;  %10621 = vmatpush3.msra.mxu1 %v2386_v19  ;;  %v2027_v19 = vld [vmem:[#allocation2 + $0x83] sm:$0xff] }
 0x18b   : > { %10409 = vmatmul.mubr.f32.gmra.mxu0 %v1703_v20  ;;  %10622 = vmatprep.subr.mxu1 %v2385_v2  ;;  %v12497_v20 = vld [vmem:[#allocation2 + $0x84] sm:$0xff] }
 0x18c   : > { %10495 = vmatmul.mubr.f32.gmra.mxu1 %v1705_v23  ;;  %10411 = vmatprep.mubr.f32.mxu0 %v1704_v21  ;;  %v2723_v21 = vld [vmem:[#allocation10 + $0x340] sm:$0xff] }
 0x18d   : > { %10497 = vmatprep.mubr.f32.mxu1 %v1706_v24  ;;  %10537 = vmatpush3.msra.mxu0 %v2052_v22  ;;  %v2028_v22 = vld [vmem:[#allocation2 + $0x8b] sm:$0xff] }
 0x18e   : > { %10538 = vmatprep.subr.mxu0 %v2051_v26  ;;  %10623 = vmatpush3.msra.mxu1 %v2385_v2  ;;  %v3056_v2 = vld [vmem:[#allocation10 + $0x3c0] sm:$0xff] }
 0x18f   : > { %10412 = vmatmul.mubr.f32.gmra.mxu0 %v1705_v23  ;;  %10624 = vmatprep.subr.mxu1 %v2384_v4  ;;  %v12501_v23 = vld [vmem:[#allocation2 + $0x8c] sm:$0xff] }
 0x190   : > { %10498 = vmatmul.mubr.f32.gmra.mxu1 %v1707_v28  ;;  %10414 = vmatprep.mubr.f32.mxu0 %v1706_v24  ;;  %v2029_v24 = vld [vmem:[#allocation2 + $0x93] sm:$0xff] }
 0x191   : > { %10500 = vmatprep.mubr.f32.mxu1 %v1708_v29  ;;  %10539 = vmatpush3.msra.mxu0 %v2051_v26  ;;  %v12503_v26 = vld [vmem:[#allocation2 + $0x94] sm:$0xff] }
 0x192   : > { %10540 = vmatprep.subr.mxu0 %v2050_v30  ;;  %10625 = vmatpush3.msra.mxu1 %v2384_v4  ;;  %v2722_v4 = vld [vmem:[#allocation10 + $0x338] sm:$0xff] }
 0x193   : > { %10415 = vmatmul.mubr.f32.gmra.mxu0 %v1707_v28  ;;  %10626 = vmatprep.subr.mxu1 %v2383_v31  ;;  %v2030_v28 = vld [vmem:[#allocation2 + $0x9b] sm:$0xff] }
 0x194   : > { %10501 = vmatmul.mubr.f32.gmra.mxu1 %v1709_v32  ;;  %10417 = vmatprep.mubr.f32.mxu0 %v1708_v29  ;;  %v3055_v29 = vld [vmem:[#allocation10 + $0x3b8] sm:$0xff] }
 0x195   : > { %10503 = vmatprep.mubr.f32.mxu1 %v1710_v33  ;;  %10541 = vmatpush3.msra.mxu0 %v2050_v30  ;;  %v12507_v30 = vld [vmem:[#allocation2 + $0x9c] sm:$0xff] }
 0x196   : > { %10542 = vmatprep.subr.mxu0 %v2049_v34  ;;  %10627 = vmatpush3.msra.mxu1 %v2383_v31  ;;  %v12509_v31 = vld [vmem:[#allocation2 + $0xa4] sm:$0xff] }
 0x197   : > { %10418 = vmatmul.mubr.f32.gmra.mxu0 %v1709_v32  ;;  %10628 = vmatprep.subr.mxu1 %v2382_v25  ;;  %v2721_v32 = vld [vmem:[#allocation10 + $0x330] sm:$0xff] }
 0x198   : > { %10504 = vmatmul.mubr.f32.gmra.mxu1 %v1711_v35  ;;  %10420 = vmatprep.mubr.f32.mxu0 %v1710_v33  ;;  %v11539_v33 = vld [vmem:[#allocation2 + $0xa3] sm:$0xff] }
 0x199   : > { %10506 = vmatprep.mubr.f32.mxu1 %v1712_v36  ;;  %10543 = vmatpush3.msra.mxu0 %v2049_v34  ;;  %v3054_v34 = vld [vmem:[#allocation10 + $0x3b0] sm:$0xff] }
 0x19a   : > { %10684 = vmatprep.subr.mxu0 %v2730_v27  ;;  %10629 = vmatpush3.msra.mxu1 %v2382_v25  ;;  %v12513_v25 = vld [vmem:[#allocation2 + $0xac] sm:$0xff] }
 0x19b   : > { %10421 = vmatmul.mubr.f32.gmra.mxu0 %v1711_v35  ;;  %10770 = vmatprep.subr.mxu1 %v3063_v39  ;;  %v2033_v35 = vld [vmem:[#allocation2 + $0xb3] sm:$0xff] }
 0x19c   : > { %10507 = vmatmul.mubr.f32.gmra.mxu1 %v1713_v40  ;;  %10423 = vmatprep.mubr.f32.mxu0 %v1712_v36  ;;  %v12515_v36 = vld [vmem:[#allocation2 + $0xb4] sm:$0xff] }
 0x19d   : > { %10509 = vmatprep.mubr.f32.mxu1 %v1714_v41  ;;  %v3053_v41 = vld [vmem:[#allocation10 + $0x3a8] sm:$0xff] }
 0x19f   : > { %10424 = vmatmul.mubr.f32.gmra.mxu0 %v1713_v40  ;;  %v2034_v40 = vld [vmem:[#allocation2 + $0xbb] sm:$0xff] }
 0x1a0   : > { %10510 = vmatmul.mubr.f32.gmra.mxu1 %v1715_v42  ;;  %10544 = vmatprep.mubr.f32.mxu0 %v2013_v43  ;;  %v12519_v42 = vld [vmem:[#allocation2 + $0xbc] sm:$0xff] }
 0x1a1   : > { %10630 = vmatprep.mubr.f32.mxu1 %v2346_v44  ;;  %v2035_v43 = vld [vmem:[#allocation2 + $0xc3] sm:$0xff] }
 0x1a2   : > { %v12521_v44 = vld [vmem:[#allocation2 + $0xc4] sm:$0xff] }
 0x1a3   : > { %10545 = vmatmul.mubr.f32.vlgmr.msra.gmra.mxu0 %v2014_v45  ;;  %v2719_v45 = vld [vmem:[#allocation10 + $0x320] sm:$0xff] }
 0x1a4   : > { %10685 = vmatpush3.msra.mxu0 %v2730_v27  ;;  %10631 = vmatmul.mubr.f32.vlgmr.msra.gmra.mxu1 %v2347_v46  ;;  %v11540_v27 = vld [vmem:[#allocation2 + $0xab] sm:$0xff] }
 0x1a5   : > { %10547 = vmatprep.mubr.f32.mxu0 %v2015_v47  ;;  %10633 = vmatprep.mubr.f32.mxu1 %v12462_v48  ;;  %v2036_v46 = vld [vmem:[#allocation2 + $0xcb] sm:$0xff] }
 0x1a6   : > { %10686 = vmatprep.subr.mxu0 %v2729_v49  ;;  %10771 = vmatpush3.msra.mxu1 %v3063_v39  ;;  %v2720_v39 = vld [vmem:[#allocation10 + $0x328] sm:$0xff]  ;;  %v3052_v47 = vld [vmem:[#allocation10 + $0x3a0] sm:$0xff] }
 0x1a7   : > { %10548 = vmatmul.mubr.f32.gmra.mxu0 %v2016_v50  ;;  %10772 = vmatprep.subr.mxu1 %v3062_v51  ;;  %v2037_v50 = vld [vmem:[#allocation2 + $0xd3] sm:$0xff] }
 0x1a8   : > { %10634 = vmatmul.mubr.f32.gmra.mxu1 %v12465_v52  ;;  %10687 = vmatpush3.msra.mxu0 %v2729_v49  ;;  %v12525_v49 = vld [vmem:[#allocation2 + $0xcc] sm:$0xff] }
 0x1a9   : > { %10550 = vmatprep.mubr.f32.mxu0 %v2017_v53  ;;  %10636 = vmatprep.mubr.f32.mxu1 %v12467_v54  ;;  %v2718_v53 = vld [vmem:[#allocation10 + $0x318] sm:$0xff] }
 0x1aa   : > { %10688 = vmatprep.subr.mxu0 %v2728_v55  ;;  %10773 = vmatpush3.msra.mxu1 %v3062_v51  ;;  %v12527_v51 = vld [vmem:[#allocation2 + $0xd4] sm:$0xff] }
 0x1ab   : > { %10551 = vmatmul.mubr.f32.gmra.mxu0 %v2018_v56  ;;  %10774 = vmatprep.subr.mxu1 %v3061_v57  ;;  %v3051_v56 = vld [vmem:[#allocation10 + $0x398] sm:$0xff] }
 0x1ac   : > { %10637 = vmatmul.mubr.f32.gmra.mxu1 %v12471_v58  ;;  %10689 = vmatpush3.msra.mxu0 %v2728_v55  ;;  %v2038_v55 = vld [vmem:[#allocation2 + $0xdb] sm:$0xff] }
 0x1ad   : > { %10553 = vmatprep.mubr.f32.mxu0 %v2019_v37  ;;  %10639 = vmatprep.mubr.f32.mxu1 %v12473_v59  ;;  %v2039_v37 = vld [vmem:[#allocation2 + $0xe3] sm:$0xff] }
 0x1ae   : > { %10690 = vmatprep.subr.mxu0 %v2727_v60  ;;  %10775 = vmatpush3.msra.mxu1 %v3061_v57  ;;  %v12531_v57 = vld [vmem:[#allocation2 + $0xdc] sm:$0xff] }
 0x1af   : > { %10554 = vmatmul.mubr.f32.gmra.mxu0 %v2020_v61  ;;  %10776 = vmatprep.subr.mxu1 %v3060_v62 }
 0x1b0   : > { %10640 = vmatmul.mubr.f32.gmra.mxu1 %v12477_v38  ;;  %10556 = vmatprep.mubr.f32.mxu0 %v2021_v63 }
 0x1b1   : > { %10691 = vmatpush3.msra.mxu0 %v2727_v60  ;;  %10642 = vmatprep.mubr.f32.mxu1 %v12479_v1  ;;  %v12533_v60 = vld [vmem:[#allocation2 + $0xe4] sm:$0xff] }
 0x1b2   : > { %10692 = vmatprep.subr.mxu0 %v2726_v3  ;;  %10777 = vmatpush3.msra.mxu1 %v3060_v62  ;;  %v2717_v62 = vld [vmem:[#allocation10 + $0x310] sm:$0xff] }
 0x1b3   : > { %10557 = vmatmul.mubr.f32.gmra.mxu0 %v2022_v0  ;;  %10778 = vmatprep.subr.mxu1 %v3059_v5 }
 0x1b4   : > { %10643 = vmatmul.mubr.f32.gmra.mxu1 %v12483_v6  ;;  %10559 = vmatprep.mubr.f32.mxu0 %v2023_v7  ;;  %v12539_v7 = vld [vmem:[#allocation2 + $0xec] sm:$0xff] }
 0x1b5   : > { %10693 = vmatpush3.msra.mxu0 %v2726_v3  ;;  %10645 = vmatprep.mubr.f32.mxu1 %v12485_v8  ;;  %v3050_v3 = vld [vmem:[#allocation10 + $0x390] sm:$0xff] }
 0x1b6   : > { %10694 = vmatprep.subr.mxu0 %v2725_v9  ;;  %10779 = vmatpush3.msra.mxu1 %v3059_v5 }
 0x1b7   : > { %10560 = vmatmul.mubr.f32.gmra.mxu0 %v2024_v10  ;;  %10780 = vmatprep.subr.mxu1 %v3058_v11  ;;  %v12541_v10 = vld [vmem:[#allocation2 + $0xf4] sm:$0xff] }
 0x1b8   : > { %10646 = vmatmul.mubr.f32.gmra.mxu1 %v12489_v12  ;;  %10562 = vmatprep.mubr.f32.mxu0 %v2025_v13 }
 0x1b9   : > { %10695 = vmatpush3.msra.mxu0 %v2725_v9  ;;  %10648 = vmatprep.mubr.f32.mxu1 %v12491_v14 }
 0x1ba   : > { %10696 = vmatprep.subr.mxu0 %v2724_v15  ;;  %10781 = vmatpush3.msra.mxu1 %v3058_v11 }
 0x1bb   : > { %10563 = vmatmul.mubr.f32.gmra.mxu0 %v2026_v16  ;;  %10782 = vmatprep.subr.mxu1 %v3057_v17  ;;  %v2716_v16 = vld [vmem:[#allocation10 + $0x308] sm:$0xff] }
 0x1bc   : > { %10649 = vmatmul.mubr.f32.gmra.mxu1 %v12495_v18  ;;  %10565 = vmatprep.mubr.f32.mxu0 %v2027_v19  ;;  %v11542_v19 = vld [vmem:[#allocation2 + $0xf3] sm:$0xff] }
 0x1bd   : > { %10697 = vmatpush3.msra.mxu0 %v2724_v15  ;;  %10651 = vmatprep.mubr.f32.mxu1 %v12497_v20  ;;  %v11541_v15 = vld [vmem:[#allocation2 + $0xeb] sm:$0xff] }
 0x1be   : > { %10698 = vmatprep.subr.mxu0 %v2723_v21  ;;  %10783 = vmatpush3.msra.mxu1 %v3057_v17 }
 0x1bf   : > { %10566 = vmatmul.mubr.f32.gmra.mxu0 %v2028_v22  ;;  %10784 = vmatprep.subr.mxu1 %v3056_v2  ;;  %v3049_v22 = vld [vmem:[#allocation10 + $0x388] sm:$0xff] }
 0x1c0   : > { %10652 = vmatmul.mubr.f32.gmra.mxu1 %v12501_v23  ;;  %10568 = vmatprep.mubr.f32.mxu0 %v2029_v24 }
 0x1c1   : > { %10654 = vmatprep.mubr.f32.mxu1 %v12503_v26  ;;  %10699 = vmatpush3.msra.mxu0 %v2723_v21  ;;  %v2042_v21 = vld [vmem:[#allocation2 + $0xfb] sm:$0xff] }
 0x1c2   : > { %10700 = vmatprep.subr.mxu0 %v2722_v4  ;;  %10785 = vmatpush3.msra.mxu1 %v3056_v2 }
 0x1c3   : > { %10569 = vmatmul.mubr.f32.gmra.mxu0 %v2030_v28  ;;  %10786 = vmatprep.subr.mxu1 %v3055_v29  ;;  %v2043_v28 = vld [vmem:[#allocation2 + $0x103] sm:$0xff] }
 0x1c4   : > { %10655 = vmatmul.mubr.f32.gmra.mxu1 %v12507_v30  ;;  %10571 = vmatprep.mubr.f32.mxu0 %v11539_v33 }
 0x1c5   : > { %10657 = vmatprep.mubr.f32.mxu1 %v12509_v31  ;;  %10701 = vmatpush3.msra.mxu0 %v2722_v4  ;;  %v12549_v4 = vld [vmem:[#allocation2 + $0xfc] sm:$0xff] }
 0x1c6   : > { %10702 = vmatprep.subr.mxu0 %v2721_v32  ;;  %10787 = vmatpush3.msra.mxu1 %v3055_v29 }
 0x1c7   : > { %10572 = vmatmul.mubr.f32.gmra.mxu0 %v11540_v27  ;;  %10788 = vmatprep.subr.mxu1 %v3054_v34 }
 0x1c8   : > { %10658 = vmatmul.mubr.f32.gmra.mxu1 %v12513_v25  ;;  %10574 = vmatprep.mubr.f32.mxu0 %v2033_v35  ;;  %v2715_v35 = vld [vmem:[#allocation10 + $0x300] sm:$0xff] }
 0x1c9   : > { %10660 = vmatprep.mubr.f32.mxu1 %v12515_v36  ;;  %10703 = vmatpush3.msra.mxu0 %v2721_v32  ;;  %v12551_v32 = vld [vmem:[#allocation2 + $0x104] sm:$0xff] }
 0x1ca   : > { %10704 = vmatprep.subr.mxu0 %v2720_v39  ;;  %10789 = vmatpush3.msra.mxu1 %v3054_v34 }
 0x1cb   : > { %10575 = vmatmul.mubr.f32.gmra.mxu0 %v2034_v40  ;;  %10790 = vmatprep.subr.mxu1 %v3053_v41  ;;  %v3048_v40 = vld [vmem:[#allocation10 + $0x380] sm:$0xff] }
 0x1cc   : > { %10661 = vmatmul.mubr.f32.gmra.mxu1 %v12519_v42  ;;  %10577 = vmatprep.mubr.f32.mxu0 %v2035_v43 }
 0x1cd   : > { %10663 = vmatprep.mubr.f32.mxu1 %v12521_v44  ;;  %10705 = vmatpush3.msra.mxu0 %v2720_v39  ;;  %v10202_v61 = vpop.f32.mrf.mxu0  ;;  %v10288_v63 = vpop.f32.mrf.mxu1  ;;  %v2044_v39 = vld [vmem:[#allocation2 + $0x10b] sm:$0xff] }
 0x1ce   : > { %10706 = vmatprep.subr.mxu0 %v2719_v45  ;;  %10791 = vmatpush3.msra.mxu1 %v3053_v41  ;;  %v12536_v0 = vadd.f32 %v10288_v63, %v10202_v61  ;;  %v2046_v61 = vld [vmem:[#allocation2 + $0x11b] sm:$0xff] }
 0x1cf   : > { %10578 = vmatmul.mubr.f32.gmra.mxu0 %v2036_v46  ;;  %10792 = vmatprep.subr.mxu1 %v3052_v47  ;;  %v923_v5 = vpop.f32.mrf.mxu0  ;;  %v1168_v9 = vpop.f32.mrf.mxu1  ;;  %v2045_v46 = vld [vmem:[#allocation2 + $0x113] sm:$0xff] }
 0x1d0   : > { %10664 = vmatmul.mubr.f32.gmra.mxu1 %v12525_v49  ;;  %10580 = vmatprep.mubr.f32.mxu0 %v2037_v50  ;;  %v12543_v11 = vadd.f32 %v1168_v9, %v923_v5  ;;  %v12561_v50 = vld [vmem:[#allocation2 + $0x114] sm:$0xff]  ;;  %v2047_v5 = vld [vmem:[#allocation2 + $0x123] sm:$0xff] }
 0x1d1   : > { %10666 = vmatprep.mubr.f32.mxu1 %v12527_v51  ;;  %10707 = vmatpush3.msra.mxu0 %v2719_v45  ;;  %v12559_v45 = vld [vmem:[#allocation2 + $0x10c] sm:$0xff] }
 0x1d2   : > { %10708 = vmatprep.subr.mxu0 %v2718_v53  ;;  %10793 = vmatpush3.msra.mxu1 %v3052_v47 }
 0x1d3   : > { %10581 = vmatmul.mubr.f32.gmra.mxu0 %v2038_v55  ;;  %10794 = vmatprep.subr.mxu1 %v3051_v56 }
 0x1d4   : > { %10667 = vmatmul.mubr.f32.gmra.mxu1 %v12531_v57  ;;  %10583 = vmatprep.mubr.f32.mxu0 %v2039_v37 }
 0x1d5   : > { %10669 = vmatprep.mubr.f32.mxu1 %v12533_v60  ;;  %10709 = vmatpush3.msra.mxu0 %v2718_v53 }
 0x1d6   : > { %10710 = vmatprep.subr.mxu0 %v2717_v62  ;;  %10795 = vmatpush3.msra.mxu1 %v3051_v56  ;;  %v3396_v56 = vld [vmem:[#allocation10 + $0x478] sm:$0xff] }
 0x1d7   : > { %v10205_v13 = vpop.f32.mrf.mxu0  ;;  %10584 = vmatmul.mubr.f32.gmra.mxu0 %v11541_v15  ;;  %10796 = vmatprep.subr.mxu1 %v3050_v3 }
 0x1d8   : > { %v10291_v17 = vpop.f32.mrf.mxu1  ;;  %10670 = vmatmul.mubr.f32.gmra.mxu1 %v12539_v7  ;;  %10586 = vmatprep.mubr.f32.mxu0 %v11542_v19  ;;  %v2048_v19 = vld [vmem:[#allocation2 + $0x12b] sm:$0xff] }
 0x1d9   : > { %v12546_v2 = vadd.f32 %v10291_v17, %v10205_v13  ;;  %v933_v24 = vpop.f32.mrf.mxu0  ;;  %10672 = vmatprep.mubr.f32.mxu1 %v12541_v10  ;;  %10711 = vmatpush3.msra.mxu0 %v2717_v62  ;;  %v12571_v13 = vld [vmem:[#allocation2 + $0x124] sm:$0xff] }
 0x1da   : > { %v1178_v29 = vpop.f32.mrf.mxu1  ;;  %10712 = vmatprep.subr.mxu0 %v2716_v16  ;;  %10797 = vmatpush3.msra.mxu1 %v3050_v3  ;;  %v12569_v3 = vld [vmem:[#allocation2 + $0x11c] sm:$0xff] }
 0x1db   : > { %v12553_v33 = vadd.f32 %v1178_v29, %v933_v24  ;;  %v10208_v34 = vpop.f32.mrf.mxu0  ;;  %10587 = vmatmul.mubr.f32.gmra.mxu0 %v2042_v21  ;;  %10798 = vmatprep.subr.mxu1 %v3049_v22  ;;  %v12579_v24 = vld [vmem:[#allocation2 + $0x12c] sm:$0xff] }
 0x1dc   : > { %v10294_v27 = vpop.f32.mrf.mxu1  ;;  %10673 = vmatmul.mubr.f32.gmra.mxu1 %v12549_v4  ;;  %10589 = vmatprep.mubr.f32.mxu0 %v2043_v28  ;;  %v3012_v29 = vld [vmem:[#allocation2 + $0x25] sm:$0xff] }
 0x1dd   : > { %v12556_v41 = vadd.f32 %v10294_v27, %v10208_v34  ;;  %v943_v43 = vpop.f32.mrf.mxu0  ;;  %10675 = vmatprep.mubr.f32.mxu1 %v12551_v32  ;;  %10713 = vmatpush3.msra.mxu0 %v2716_v16 }
 0x1de   : > { %v1188_v47 = vpop.f32.mrf.mxu1  ;;  %10714 = vmatprep.subr.mxu0 %v2715_v35  ;;  %10799 = vmatpush3.msra.mxu1 %v3049_v22 }
 0x1df   : > { %v12563_v53 = vadd.f32 %v1188_v47, %v943_v43  ;;  %v10211_v55 = vpop.f32.mrf.mxu0  ;;  %10590 = vmatmul.mubr.f32.gmra.mxu0 %v2044_v39  ;;  %10800 = vmatprep.subr.mxu1 %v3048_v40  ;;  %v3013_v43 = vld [vmem:[#allocation2 + $0x2d] sm:$0xff]  ;;  %v3014_v47 = vld [vmem:[#allocation2 + $0x35] sm:$0xff] }
 0x1e0   : > { %v10297_v37 = vpop.f32.mrf.mxu1  ;;  %10676 = vmatmul.mubr.f32.gmra.mxu1 %v12559_v45  ;;  %10592 = vmatprep.mubr.f32.mxu0 %v2045_v46 }
 0x1e1   : > { %v12566_v62 = vadd.f32 %v10297_v37, %v10211_v55  ;;  %v953_v63 = vpop.f32.mrf.mxu0  ;;  %10678 = vmatprep.mubr.f32.mxu1 %v12561_v50  ;;  %10715 = vmatpush3.msra.mxu0 %v2715_v35 }
 0x1e2   : > { %v1198_v9 = vpop.f32.mrf.mxu1  ;;  %10856 = vmatprep.subr.mxu0 %v3396_v56  ;;  %10801 = vmatpush3.msra.mxu1 %v3048_v40 }
 0x1e3   : > { %v12573_v15 = vadd.f32 %v1198_v9, %v953_v63  ;;  %v10214_v16 = vpop.f32.mrf.mxu0  ;;  %10593 = vmatmul.mubr.f32.gmra.mxu0 %v2046_v61  ;;  %v3395_v61 = vld [vmem:[#allocation10 + $0x470] sm:$0xff] }
 0x1e4   : > { %v10300_v17 = vpop.f32.mrf.mxu1  ;;  %10679 = vmatmul.mubr.f32.gmra.mxu1 %v12569_v3  ;;  %10595 = vmatprep.mubr.f32.mxu0 %v2047_v5 }
 0x1e5   : > { %v12576_v21 = vadd.f32 %v10300_v17, %v10214_v16  ;;  %v963_v22 = vpop.f32.mrf.mxu0  ;;  %10681 = vmatprep.mubr.f32.mxu1 %v12571_v13  ;;  %v3016_v17 = vld [vmem:[#allocation2 + $0x45] sm:$0xff] }
 0x1e6   : > { %v1208_v28 = vpop.f32.mrf.mxu1 }
 0x1e7   : > { %v12581_v34 = vadd.f32 %v1208_v28, %v963_v22  ;;  %v10217_v35 = vpop.f32.mrf.mxu0  ;;  %10596 = vmatmul.mubr.f32.gmra.mxu0 %v2048_v19 }
 0x1e8   : > { %v10303_v27 = vpop.f32.mrf.mxu1  ;;  %10682 = vmatmul.mubr.f32.gmra.mxu1 %v12579_v24  ;;  %10716 = vmatprep.mubr.f32.mxu0 %v12462_v48  ;;  %v3015_v48 = vld [vmem:[#allocation2 + $0x3d] sm:$0xff] }
 0x1e9   : > { %v12585_v39 = vadd.f32 %v10303_v27, %v10217_v35  ;;  %v973_v40 = vpop.f32.mrf.mxu0  ;;  %10802 = vmatprep.mubr.f32.mxu1 %v3012_v29  ;;  %v3018_v27 = vld [vmem:[#allocation2 + $0x55] sm:$0xff] }
 0x1ea   : > { %v1218_v46 = vpop.f32.mrf.mxu1 }
 0x1eb   : > { %v12587_v55 = vadd.f32 %v1218_v46, %v973_v40  ;;  %v10220_v37 = vpop.f32.mrf.mxu0  ;;  %10717 = vmatmul.mubr.f32.vlgmr.msra.gmra.mxu0 %v12465_v52  ;;  %v3394_v52 = vld [vmem:[#allocation10 + $0x468] sm:$0xff] }
 0x1ec   : > { %v10306_v63 = vpop.f32.mrf.mxu1  ;;  %10857 = vmatpush3.msra.mxu0 %v3396_v56  ;;  %10803 = vmatmul.mubr.f32.vlgmr.msra.gmra.mxu1 %v3013_v43 }
 0x1ed   : > { %v12590_v5 = vadd.f32 %v10306_v63, %v10220_v37  ;;  %v983_v9 = vpop.f32.mrf.mxu0  ;;  %10719 = vmatprep.mubr.f32.mxu0 %v12467_v54  ;;  %10805 = vmatprep.mubr.f32.mxu1 %v3014_v47  ;;  %v3017_v54 = vld [vmem:[#allocation2 + $0x4d] sm:$0xff]  ;;  %v3020_v63 = vld [vmem:[#allocation2 + $0x65] sm:$0xff] }
 0x1ee   : > { %v1228_v16 = vpop.f32.mrf.mxu1  ;;  %10858 = vmatprep.subr.mxu0 %v3395_v61 }
 0x1ef   : > { %v12593_v19 = vadd.f32 %v1228_v16, %v983_v9  ;;  %v10223_v22 = vpop.f32.mrf.mxu0  ;;  %10720 = vmatmul.mubr.f32.gmra.mxu0 %v12471_v58  ;;  %v3393_v58 = vld [vmem:[#allocation10 + $0x460] sm:$0xff] }
 0x1f0   : > { %v10309_v28 = vpop.f32.mrf.mxu1  ;;  %10806 = vmatmul.mubr.f32.gmra.mxu1 %v3015_v48  ;;  %10859 = vmatpush3.msra.mxu0 %v3395_v61 }
 0x1f1   : > { %v12596_v56 = vadd.f32 %v10309_v28, %v10223_v22  ;;  %v993_v29 = vpop.f32.mrf.mxu0  ;;  %10722 = vmatprep.mubr.f32.mxu0 %v12473_v59  ;;  %10808 = vmatprep.mubr.f32.mxu1 %v3016_v17  ;;  %v3019_v59 = vld [vmem:[#allocation2 + $0x5d] sm:$0xff]  ;;  %v3022_v28 = vld [vmem:[#allocation2 + $0x75] sm:$0xff] }
 0x1f2   : > { %v1238_v35 = vpop.f32.mrf.mxu1  ;;  %10860 = vmatprep.subr.mxu0 %v3394_v52 }
 0x1f3   : > { %v12599_v40 = vadd.f32 %v1238_v35, %v993_v29  ;;  %v10226_v43 = vpop.f32.mrf.mxu0  ;;  %10723 = vmatmul.mubr.f32.gmra.mxu0 %v12477_v38  ;;  %v3392_v38 = vld [vmem:[#allocation10 + $0x458] sm:$0xff] }
 0x1f4   : > { %v10312_v46 = vpop.f32.mrf.mxu1  ;;  %10809 = vmatmul.mubr.f32.gmra.mxu1 %v3017_v54  ;;  %10861 = vmatpush3.msra.mxu0 %v3394_v52 }
 0x1f5   : > { %v12602_v47 = vadd.f32 %v10312_v46, %v10226_v43  ;;  %v1003_v37 = vpop.f32.mrf.mxu0  ;;  %10725 = vmatprep.mubr.f32.mxu0 %v12479_v1  ;;  %10811 = vmatprep.mubr.f32.mxu1 %v3018_v27  ;;  %v3021_v1 = vld [vmem:[#allocation2 + $0x6d] sm:$0xff]  ;;  %v3023_v43 = vld [vmem:[#allocation2 + $0x7d] sm:$0xff]  ;;  %v3024_v46 = vld [vmem:[#allocation2 + $0x85] sm:$0xff] }
 0x1f6   : > { %v1248_v61 = vpop.f32.mrf.mxu1  ;;  %10862 = vmatprep.subr.mxu0 %v3393_v58 }
 0x1f7   : > { %v12605_v9 = vadd.f32 %v1248_v61, %v1003_v37  ;;  %v10229_v48 = vpop.f32.mrf.mxu0  ;;  %10726 = vmatmul.mubr.f32.gmra.mxu0 %v12483_v6  ;;  %v3391_v6 = vld [vmem:[#allocation10 + $0x450] sm:$0xff] }
 0x1f8   : > { %v10315_v16 = vpop.f32.mrf.mxu1  ;;  %10812 = vmatmul.mubr.f32.gmra.mxu1 %v3019_v59  ;;  %10728 = vmatprep.mubr.f32.mxu0 %v12485_v8 }
 0x1f9   : > { %v12609_v17 = vadd.f32 %v10315_v16, %v10229_v48  ;;  %v1013_v22 = vpop.f32.mrf.mxu0  ;;  %10863 = vmatpush3.msra.mxu0 %v3393_v58  ;;  %10814 = vmatprep.mubr.f32.mxu1 %v3020_v63  ;;  %v3025_v48 = vld [vmem:[#allocation2 + $0x8d] sm:$0xff]  ;;  %v3026_v16 = vld [vmem:[#allocation2 + $0x95] sm:$0xff] }
 0x1fa   : > { %v1258_v52 = vpop.f32.mrf.mxu1  ;;  %10864 = vmatprep.subr.mxu0 %v3392_v38 }
 0x1fb   : > { %v12611_v29 = vadd.f32 %v1258_v52, %v1013_v22  ;;  %v10232_v54 = vpop.f32.mrf.mxu0  ;;  %10729 = vmatmul.mubr.f32.gmra.mxu0 %v12489_v12  ;;  %v3390_v12 = vld [vmem:[#allocation10 + $0x448] sm:$0xff] }
 0x1fc   : > { %v10318_v35 = vpop.f32.mrf.mxu1  ;;  %10815 = vmatmul.mubr.f32.gmra.mxu1 %v3021_v1  ;;  %10731 = vmatprep.mubr.f32.mxu0 %v12491_v14 }
 0x1fd   : > { %v12615_v8 = vadd.f32 %v10318_v35, %v10232_v54  ;;  %v1023_v27 = vpop.f32.mrf.mxu0  ;;  %10865 = vmatpush3.msra.mxu0 %v3392_v38  ;;  %10817 = vmatprep.mubr.f32.mxu1 %v3022_v28  ;;  %v3027_v54 = vld [vmem:[#allocation2 + $0x9d] sm:$0xff]  ;;  %v3028_v35 = vld [vmem:[#allocation2 + $0xa5] sm:$0xff] }
 0x1fe   : > { %v1268_v58 = vpop.f32.mrf.mxu1  ;;  %10866 = vmatprep.subr.mxu0 %v3391_v6 }
 0x1ff   : > { %v12617_v37 = vadd.f32 %v1268_v58, %v1023_v27  ;;  %v10235_v59 = vpop.f32.mrf.mxu0  ;;  %10732 = vmatmul.mubr.f32.gmra.mxu0 %v12495_v18  ;;  %v3389_v18 = vld [vmem:[#allocation10 + $0x440] sm:$0xff] }
 0x200   : > { %v10321_v61 = vpop.f32.mrf.mxu1  ;;  %10818 = vmatmul.mubr.f32.gmra.mxu1 %v3023_v43  ;;  %10734 = vmatprep.mubr.f32.mxu0 %v12497_v20 }
 0x201   : > { %v12621_v14 = vadd.f32 %v10321_v61, %v10235_v59  ;;  %v1033_v63 = vpop.f32.mrf.mxu0  ;;  %10867 = vmatpush3.msra.mxu0 %v3391_v6  ;;  %10820 = vmatprep.mubr.f32.mxu1 %v3024_v46  ;;  %v3029_v59 = vld [vmem:[#allocation2 + $0xad] sm:$0xff]  ;;  %v3030_v61 = vld [vmem:[#allocation2 + $0xb5] sm:$0xff] }
 0x202   : > { %v1278_v38 = vpop.f32.mrf.mxu1  ;;  %10868 = vmatprep.subr.mxu0 %v3390_v12 }
 0x203   : > { %v12623_v22 = vadd.f32 %v1278_v38, %v1033_v63  ;;  %v10238_v1 = vpop.f32.mrf.mxu0  ;;  %10735 = vmatmul.mubr.f32.gmra.mxu0 %v12501_v23  ;;  %v3388_v23 = vld [vmem:[#allocation10 + $0x438] sm:$0xff] }
 0x204   : > { %v10324_v52 = vpop.f32.mrf.mxu1  ;;  %10821 = vmatmul.mubr.f32.gmra.mxu1 %v3025_v48  ;;  %10737 = vmatprep.mubr.f32.mxu0 %v12503_v26 }
 0x205   : > { %v12627_v20 = vadd.f32 %v10324_v52, %v10238_v1  ;;  %v1043_v28 = vpop.f32.mrf.mxu0  ;;  %10869 = vmatpush3.msra.mxu0 %v3390_v12  ;;  %10823 = vmatprep.mubr.f32.mxu1 %v3026_v16  ;;  %v3031_v1 = vld [vmem:[#allocation2 + $0xbd] sm:$0xff]  ;;  %v3032_v52 = vld [vmem:[#allocation2 + $0xc5] sm:$0xff] }
 0x206   : > { %v1288_v6 = vpop.f32.mrf.mxu1  ;;  %10870 = vmatprep.subr.mxu0 %v3389_v18 }
 0x207   : > { %v12629_v27 = vadd.f32 %v1288_v6, %v1043_v28  ;;  %v10241_v43 = vpop.f32.mrf.mxu0  ;;  %10738 = vmatmul.mubr.f32.gmra.mxu0 %v12507_v30  ;;  %v3387_v30 = vld [vmem:[#allocation10 + $0x430] sm:$0xff] }
 0x208   : > { %v10327_v58 = vpop.f32.mrf.mxu1  ;;  %10824 = vmatmul.mubr.f32.gmra.mxu1 %v3027_v54  ;;  %10740 = vmatprep.mubr.f32.mxu0 %v12509_v31 }
 0x209   : > { %v12633_v26 = vadd.f32 %v10327_v58, %v10241_v43  ;;  %v1053_v46 = vpop.f32.mrf.mxu0  ;;  %10826 = vmatprep.mubr.f32.mxu1 %v3028_v35  ;;  %10871 = vmatpush3.msra.mxu0 %v3389_v18  ;;  %v3033_v43 = vld [vmem:[#allocation2 + $0xcd] sm:$0xff]  ;;  %v3034_v58 = vld [vmem:[#allocation2 + $0xd5] sm:$0xff] }
 0x20a   : > { %v1298_v12 = vpop.f32.mrf.mxu1  ;;  %10872 = vmatprep.subr.mxu0 %v3388_v23 }
 0x20b   : > { %v12635_v63 = vadd.f32 %v1298_v12, %v1053_v46  ;;  %v10244_v48 = vpop.f32.mrf.mxu0  ;;  %10741 = vmatmul.mubr.f32.gmra.mxu0 %v12513_v25  ;;  %v3386_v25 = vld [vmem:[#allocation10 + $0x428] sm:$0xff] }
 0x20c   : > { %v10330_v38 = vpop.f32.mrf.mxu1  ;;  %10827 = vmatmul.mubr.f32.gmra.mxu1 %v3029_v59  ;;  %10743 = vmatprep.mubr.f32.mxu0 %v12515_v36 }
 0x20d   : > { %v12639_v31 = vadd.f32 %v10330_v38, %v10244_v48  ;;  %v1063_v16 = vpop.f32.mrf.mxu0  ;;  %10829 = vmatprep.mubr.f32.mxu1 %v3030_v61  ;;  %10873 = vmatpush3.msra.mxu0 %v3388_v23  ;;  %v3035_v48 = vld [vmem:[#allocation2 + $0xdd] sm:$0xff]  ;;  %v3036_v38 = vld [vmem:[#allocation2 + $0xe5] sm:$0xff] }
 0x20e   : > { %v1308_v18 = vpop.f32.mrf.mxu1  ;;  %10874 = vmatprep.subr.mxu0 %v3387_v30 }
 0x20f   : > { %v12641_v28 = vadd.f32 %v1308_v18, %v1063_v16  ;;  %v10247_v54 = vpop.f32.mrf.mxu0  ;;  %10744 = vmatmul.mubr.f32.gmra.mxu0 %v12519_v42  ;;  %v3385_v42 = vld [vmem:[#allocation10 + $0x420] sm:$0xff] }
 0x210   : > { %v10333_v6 = vpop.f32.mrf.mxu1  ;;  %10830 = vmatmul.mubr.f32.gmra.mxu1 %v3031_v1  ;;  %10746 = vmatprep.mubr.f32.mxu0 %v12521_v44 }
 0x211   : > { %v12645_v36 = vadd.f32 %v10333_v6, %v10247_v54  ;;  %v1073_v35 = vpop.f32.mrf.mxu0  ;;  %10832 = vmatprep.mubr.f32.mxu1 %v3032_v52  ;;  %10875 = vmatpush3.msra.mxu0 %v3387_v30  ;;  %v3037_v52 = vld [vmem:[#allocation2 + $0xed] sm:$0xff] }
 0x212   : > { %v1318_v23 = vpop.f32.mrf.mxu1  ;;  %10876 = vmatprep.subr.mxu0 %v3386_v25 }
 0x213   : > { %v12647_v46 = vadd.f32 %v1318_v23, %v1073_v35  ;;  %v10250_v59 = vpop.f32.mrf.mxu0  ;;  %10747 = vmatmul.mubr.f32.gmra.mxu0 %v12525_v49  ;;  %v3384_v49 = vld [vmem:[#allocation10 + $0x418] sm:$0xff] }
 0x214   : > { %v10336_v12 = vpop.f32.mrf.mxu1  ;;  %10833 = vmatmul.mubr.f32.gmra.mxu1 %v3033_v43  ;;  %10749 = vmatprep.mubr.f32.mxu0 %v12527_v51  ;;  %v3039_v23 = vld [vmem:[#allocation2 + $0xfd] sm:$0xff] }
 0x215   : > { %v12651_v44 = vadd.f32 %v10336_v12, %v10250_v59  ;;  %v12653_v61 = vpop.f32.mrf.mxu0  ;;  %10835 = vmatprep.mubr.f32.mxu1 %v3034_v58  ;;  %10877 = vmatpush3.msra.mxu0 %v3386_v25  ;;  %v3038_v25 = vld [vmem:[#allocation2 + $0xf5] sm:$0xff]  ;;  %v3040_v12 = vld [vmem:[#allocation2 + $0x105] sm:$0xff] }
 0x216   : > { %v12655_v30 = vpop.f32.mrf.mxu1  ;;  %10878 = vmatprep.subr.mxu0 %v3385_v42 }
 0x217   : > { %v10253_v16 = vpop.f32.mrf.mxu0  ;;  %10750 = vmatmul.mubr.f32.gmra.mxu0 %v12531_v57  ;;  %v3383_v57 = vld [vmem:[#allocation10 + $0x410] sm:$0xff] }
 0x218   : > { %v10339_v1 = vpop.f32.mrf.mxu1  ;;  %10836 = vmatmul.mubr.f32.gmra.mxu1 %v3035_v48  ;;  %10752 = vmatprep.mubr.f32.mxu0 %v12533_v60 }
 0x219   : > { %v12659_v51 = vadd.f32 %v10339_v1, %v10253_v16  ;;  %v12661_v18 = vpop.f32.mrf.mxu0  ;;  %10838 = vmatprep.mubr.f32.mxu1 %v3036_v38  ;;  %10879 = vmatpush3.msra.mxu0 %v3385_v42 }
 0x21a   : > { %v12663_v54 = vpop.f32.mrf.mxu1  ;;  %10880 = vmatprep.subr.mxu0 %v3384_v49 }
 0x21b   : > { %v10374_v6 = vpop.f32.mrf.mxu0  ;;  %10753 = vmatmul.mubr.f32.gmra.mxu0 %v12539_v7 }
 0x21c   : > { %v1645_v35 = vadd.f32 %v10374_v6, %v12536_v0  ;;  %v10460_v43 = vpop.f32.mrf.mxu1  ;;  %10839 = vmatmul.mubr.f32.gmra.mxu1 %v3037_v52  ;;  %10755 = vmatprep.mubr.f32.mxu0 %v12541_v10  ;;  %v3382_v0 = vld [vmem:[#allocation10 + $0x408] sm:$0xff] }
 0x21d   : > { %v1465_v60 = vpop.f32.mrf.mxu0  ;;  %10841 = vmatprep.mubr.f32.mxu1 %v3038_v25  ;;  %10881 = vmatpush3.msra.mxu0 %v3384_v49  ;;  %v3042_v52 = vld [vmem:[#allocation2 + $0x115] sm:$0xff] }
 0x21e   : > { %v12669_v58 = vadd.f32 %v1465_v60, %v12543_v11  ;;  %v12671_v59 = vadd.f32 %v10460_v43, %v1645_v35  ;;  %v12673_v42 = vpop.f32.mrf.mxu1  ;;  %10882 = vmatprep.subr.mxu0 %v3383_v57  ;;  %v3041_v11 = vld [vmem:[#allocation2 + $0x10d] sm:$0xff]  ;;  %v3044_v60 = vld [vmem:[#allocation2 + $0x125] sm:$0xff] }
 0x21f   : > { %v10377_v7 = vpop.f32.mrf.mxu0  ;;  %10756 = vmatmul.mubr.f32.gmra.mxu0 %v12549_v4 }
 0x220   : > { %v1647_v48 = vadd.f32 %v10377_v7, %v12546_v2  ;;  %v10463_v10 = vpop.f32.mrf.mxu1  ;;  %10842 = vmatmul.mubr.f32.gmra.mxu1 %v3039_v23  ;;  %10758 = vmatprep.mubr.f32.mxu0 %v12551_v32  ;;  %v3381_v2 = vld [vmem:[#allocation10 + $0x400] sm:$0xff] }
 0x221   : > { %v1475_v38 = vpop.f32.mrf.mxu0  ;;  %10844 = vmatprep.mubr.f32.mxu1 %v3040_v12  ;;  %10883 = vmatpush3.msra.mxu0 %v3383_v57  ;;  %v3045_v12 = vld [vmem:[#allocation2 + $0x12d] sm:$0xff] }
 0x222   : > { %v12679_v16 = vadd.f32 %v1475_v38, %v12553_v33  ;;  %v12681_v49 = vadd.f32 %v10463_v10, %v1647_v48  ;;  %v12683_v1 = vpop.f32.mrf.mxu1  ;;  %10884 = vmatprep.subr.mxu0 %v3382_v0  ;;  %v3043_v33 = vld [vmem:[#allocation2 + $0x11d] sm:$0xff]  ;;  %v3046_v10 = vld [vmem:[#allocation2 + $0x135] sm:$0xff] }
 0x223   : > { %v10380_v4 = vpop.f32.mrf.mxu0  ;;  %10759 = vmatmul.mubr.f32.gmra.mxu0 %v12559_v45 }
 0x224   : > { %v1649_v25 = vadd.f32 %v10380_v4, %v12556_v41  ;;  %v10466_v32 = vpop.f32.mrf.mxu1  ;;  %10845 = vmatmul.mubr.f32.gmra.mxu1 %v3041_v11  ;;  %10761 = vmatprep.mubr.f32.mxu0 %v12561_v50  ;;  %v3345_v4 = vld [vmem:[#allocation2 + $0x26] sm:$0xff] }
 0x225   : > { %v1485_v6 = vpop.f32.mrf.mxu0  ;;  %10847 = vmatprep.mubr.f32.mxu1 %v3042_v52  ;;  %10885 = vmatpush3.msra.mxu0 %v3382_v0  ;;  %v3047_v52 = vld [vmem:[#allocation2 + $0x13d] sm:$0xff] }
 0x226   : > { %v12689_v57 = vadd.f32 %v1485_v6, %v12563_v53  ;;  %v12691_v35 = vadd.f32 %v10466_v32, %v1649_v25  ;;  %v12693_v43 = vpop.f32.mrf.mxu1  ;;  %10886 = vmatprep.subr.mxu0 %v3381_v2  ;;  %v2713_v53 = vld [vmem:[#allocation2 + $0x134] sm:$0xff] }
 0x227   : > { %v10383_v45 = vpop.f32.mrf.mxu0  ;;  %10762 = vmatmul.mubr.f32.gmra.mxu0 %v12569_v3  ;;  %v3346_v6 = vld [vmem:[#allocation2 + $0x2e] sm:$0xff] }
 0x228   : > { %v1651_v41 = vadd.f32 %v10383_v45, %v12566_v62  ;;  %v10469_v23 = vpop.f32.mrf.mxu1  ;;  %10848 = vmatmul.mubr.f32.gmra.mxu1 %v3043_v33  ;;  %10764 = vmatprep.mubr.f32.mxu0 %v12571_v13  ;;  %v2714_v13 = vld [vmem:[#allocation2 + $0x13c] sm:$0xff] }
 0x229   : > { %v1495_v50 = vpop.f32.mrf.mxu0  ;;  %10850 = vmatprep.mubr.f32.mxu1 %v3044_v60  ;;  %10887 = vmatpush3.msra.mxu0 %v3381_v2  ;;  %v3347_v60 = vld [vmem:[#allocation2 + $0x36] sm:$0xff] }
 0x22a   : > { %v12699_v7 = vadd.f32 %v1495_v50, %v12573_v15  ;;  %v12701_v0 = vadd.f32 %v10469_v23, %v1651_v41  ;;  %v12703_v48 = vpop.f32.mrf.mxu1 }
 0x22b   : > { %v10386_v3 = vpop.f32.mrf.mxu0  ;;  %10765 = vmatmul.mubr.f32.gmra.mxu0 %v12579_v24 }
 0x22c   : > { %v1653_v62 = vadd.f32 %v10386_v3, %v12576_v21  ;;  %v10472_v38 = vpop.f32.mrf.mxu1  ;;  %10851 = vmatmul.mubr.f32.gmra.mxu1 %v3045_v12  ;;  %10767 = vmatprep.mubr.f32.mxu0 %v2713_v53 }
 0x22d   : > { %v1505_v11 = vpop.f32.mrf.mxu0  ;;  %10853 = vmatprep.mubr.f32.mxu1 %v3046_v10  ;;  %v3349_v10 = vld [vmem:[#allocation2 + $0x46] sm:$0xff] }
 0x22e   : > { %v12708_v15 = vadd.f32 %v1505_v11, %v12581_v34  ;;  %v12710_v2 = vadd.f32 %v10472_v38, %v1653_v62  ;;  %v12712_v25 = vpop.f32.mrf.mxu1 }
 0x22f   : > { %v10389_v32 = vpop.f32.mrf.mxu0  ;;  %10768 = vmatmul.mubr.f32.gmra.mxu0 %v2714_v13 }
 0x230   : > { %v1655_v24 = vadd.f32 %v10389_v32, %v12585_v39  ;;  %v10475_v21 = vpop.f32.mrf.mxu1  ;;  %10854 = vmatmul.mubr.f32.gmra.mxu1 %v3047_v52  ;;  %10888 = vmatprep.mubr.f32.mxu0 %v3345_v4  ;;  %v3348_v39 = vld [vmem:[#allocation2 + $0x3e] sm:$0xff]  ;;  %v3350_v52 = vld [vmem:[#allocation2 + $0x4e] sm:$0xff]  ;;  %v3351_v4 = vld [vmem:[#allocation2 + $0x56] sm:$0xff] }
 0x231   : > { %v1515_v33 = vpop.f32.mrf.mxu0 }
 0x232   : > { %v12716_v45 = vadd.f32 %v1515_v33, %v12587_v55  ;;  %v12718_v41 = vadd.f32 %v10475_v21, %v1655_v24  ;;  %v12720_v34 = vpop.f32.mrf.mxu1 }
 0x233   : > { %v10392_v23 = vpop.f32.mrf.mxu0  ;;  %10889 = vmatmul.mubr.f32.vlgmr.msra.gmra.mxu0 %v3346_v6 }
 0x234   : > { %v1657_v50 = vadd.f32 %v10392_v23, %v12590_v5  ;;  %v10478_v12 = vpop.f32.mrf.mxu1  ;;  %10891 = vmatprep.mubr.f32.mxu0 %v3347_v60  ;;  %v3352_v60 = vld [vmem:[#allocation2 + $0x5e] sm:$0xff]  ;;  %v3353_v23 = vld [vmem:[#allocation2 + $0x66] sm:$0xff] }
 0x235   : > { %v1525_v53 = vpop.f32.mrf.mxu0 }
 0x236   : > { %v12724_v3 = vadd.f32 %v1525_v53, %v12593_v19  ;;  %v12726_v62 = vadd.f32 %v10478_v12, %v1657_v50  ;;  %v12728_v55 = vpop.f32.mrf.mxu1 }
 0x237   : > { %v10395_v38 = vpop.f32.mrf.mxu0  ;;  %10892 = vmatmul.mubr.f32.gmra.mxu0 %v3348_v39 }
 0x238   : > { %v1659_v13 = vadd.f32 %v10395_v38, %v12596_v56  ;;  %v10481_v11 = vpop.f32.mrf.mxu1  ;;  %10894 = vmatprep.mubr.f32.mxu0 %v3349_v10  ;;  %v3354_v38 = vld [vmem:[#allocation2 + $0x6e] sm:$0xff] }
 0x239   : > { %v1535_v5 = vpop.f32.mrf.mxu0 }
 0x23a   : > { %v12732_v32 = vadd.f32 %v1535_v5, %v12599_v40  ;;  %v12734_v24 = vadd.f32 %v10481_v11, %v1659_v13  ;;  %v12736_v19 = vpop.f32.mrf.mxu1  ;;  %v3355_v13 = vld [vmem:[#allocation2 + $0x76] sm:$0xff] }
 0x23b   : > { %v10398_v21 = vpop.f32.mrf.mxu0  ;;  %10895 = vmatmul.mubr.f32.gmra.mxu0 %v3350_v52 }
 0x23c   : > { %v1661_v6 = vadd.f32 %v10398_v21, %v12602_v47  ;;  %v10484_v33 = vpop.f32.mrf.mxu1  ;;  %10897 = vmatprep.mubr.f32.mxu0 %v3351_v4 }
 0x23d   : > { %v1545_v56 = vpop.f32.mrf.mxu0 }
 0x23e   : > { %v12740_v50 = vadd.f32 %v1545_v56, %v12605_v9  ;;  %v12742_v12 = vadd.f32 %v10484_v33, %v1661_v6  ;;  %v12744_v40 = vpop.f32.mrf.mxu1  ;;  %v3356_v6 = vld [vmem:[#allocation2 + $0x7e] sm:$0xff]  ;;  %v3357_v33 = vld [vmem:[#allocation2 + $0x86] sm:$0xff] }
 0x23f   : > { %v10401_v39 = vpop.f32.mrf.mxu0  ;;  %10898 = vmatmul.mubr.f32.gmra.mxu0 %v3352_v60 }
 0x240   : > { %v1663_v53 = vadd.f32 %v10401_v39, %v12609_v17  ;;  %v10487_v10 = vpop.f32.mrf.mxu1  ;;  %10900 = vmatprep.mubr.f32.mxu0 %v3353_v23 }
 0x241   : > { %v1555_v47 = vpop.f32.mrf.mxu0 }
 0x242   : > { %v12748_v11 = vadd.f32 %v1555_v47, %v12611_v29  ;;  %v12750_v52 = vadd.f32 %v10487_v10, %v1663_v53  ;;  %v12752_v9 = vpop.f32.mrf.mxu1  ;;  %v3358_v10 = vld [vmem:[#allocation2 + $0x8e] sm:$0xff] }
 0x243   : > { %v10404_v5 = vpop.f32.mrf.mxu0  ;;  %10901 = vmatmul.mubr.f32.gmra.mxu0 %v3354_v38  ;;  %v3359_v38 = vld [vmem:[#allocation2 + $0x96] sm:$0xff] }
 0x244   : > { %v1665_v4 = vadd.f32 %v10404_v5, %v12615_v8  ;;  %v10490_v21 = vpop.f32.mrf.mxu1  ;;  %10903 = vmatprep.mubr.f32.mxu0 %v3355_v13 }
 0x245   : > { %v1565_v17 = vpop.f32.mrf.mxu0 }
 0x246   : > { %v12756_v60 = vadd.f32 %v1565_v17, %v12617_v37  ;;  %v12758_v56 = vadd.f32 %v10490_v21, %v1665_v4  ;;  %v12760_v29 = vpop.f32.mrf.mxu1  ;;  %v3361_v17 = vld [vmem:[#allocation2 + $0xa6] sm:$0xff] }
 0x247   : > { %v10407_v23 = vpop.f32.mrf.mxu0  ;;  %10904 = vmatmul.mubr.f32.gmra.mxu0 %v3356_v6  ;;  %v3360_v6 = vld [vmem:[#allocation2 + $0x9e] sm:$0xff] }
 0x248   : > { %v1667_v39 = vadd.f32 %v10407_v23, %v12621_v14  ;;  %v10493_v53 = vpop.f32.mrf.mxu1  ;;  %10906 = vmatprep.mubr.f32.mxu0 %v3357_v33 }
 0x249   : > { %v1575_v8 = vpop.f32.mrf.mxu0 }
 0x24a   : > { %v12764_v47 = vadd.f32 %v1575_v8, %v12623_v22  ;;  %v12766_v13 = vadd.f32 %v10493_v53, %v1667_v39  ;;  %v12768_v37 = vpop.f32.mrf.mxu1 }
 0x24b   : > { %14226 = vst [vmem:[#allocation37_spill] sm:$0xff] %v12768_v37  ;;  %v10410_v5 = vpop.f32.mrf.mxu0  ;;  %10907 = vmatmul.mubr.f32.gmra.mxu0 %v3358_v10  ;;  %v3362_v10 = vld [vmem:[#allocation2 + $0xae] sm:$0xff] }
 0x24c   : > { %v1669_v4 = vadd.f32 %v10410_v5, %v12627_v20  ;;  %v10496_v21 = vpop.f32.mrf.mxu1  ;;  %10909 = vmatprep.mubr.f32.mxu0 %v3359_v38  ;;  %v3363_v5 = vld [vmem:[#allocation2 + $0xb6] sm:$0xff] }
 0x24d   : > { %v1585_v14 = vpop.f32.mrf.mxu0 }
 0x24e   : > { %v12772_v33 = vadd.f32 %v1585_v14, %v12629_v27  ;;  %v12774_v23 = vadd.f32 %v10496_v21, %v1669_v4  ;;  %v12776_v22 = vpop.f32.mrf.mxu1 }
 0x24f   : > { %14228 = vst [vmem:[#allocation39_spill] sm:$0xff] %v12776_v22  ;;  %v10413_v39 = vpop.f32.mrf.mxu0  ;;  %10910 = vmatmul.mubr.f32.gmra.mxu0 %v3360_v6  ;;  %v3364_v6 = vld [vmem:[#allocation2 + $0xbe] sm:$0xff] }
 0x250   : > { %14227 = vst [vmem:[#allocation38_spill] sm:$0xff] %v12772_v33  ;;  %v1671_v53 = vadd.f32 %v10413_v39, %v12633_v26  ;;  %v10499_v8 = vpop.f32.mrf.mxu1  ;;  %10912 = vmatprep.mubr.f32.mxu0 %v3361_v17  ;;  %v3365_v39 = vld [vmem:[#allocation2 + $0xc6] sm:$0xff] }
 0x251   : > { %v1595_v20 = vpop.f32.mrf.mxu0 }
 0x252   : > { %v12780_v38 = vadd.f32 %v1595_v20, %v12635_v63  ;;  %v12782_v37 = vadd.f32 %v10499_v8, %v1671_v53  ;;  %v12784_v27 = vpop.f32.mrf.mxu1 }
 0x253   : > { %14230 = vst [vmem:[#allocation41_spill] sm:$0xff] %v12784_v27  ;;  %v10416_v4 = vpop.f32.mrf.mxu0  ;;  %10913 = vmatmul.mubr.f32.gmra.mxu0 %v3362_v10  ;;  %v3366_v10 = vld [vmem:[#allocation2 + $0xce] sm:$0xff] }
 0x254   : > { %14229 = vst [vmem:[#allocation40_spill] sm:$0xff] %v12780_v38  ;;  %v1673_v21 = vadd.f32 %v10416_v4, %v12639_v31  ;;  %v10502_v14 = vpop.f32.mrf.mxu1  ;;  %10915 = vmatprep.mubr.f32.mxu0 %v3363_v5  ;;  %v3367_v4 = vld [vmem:[#allocation2 + $0xd6] sm:$0xff] }
 0x255   : > { %v1605_v26 = vpop.f32.mrf.mxu0 }
 0x256   : > { %v12788_v17 = vadd.f32 %v1605_v26, %v12641_v28  ;;  %v12790_v22 = vadd.f32 %v10502_v14, %v1673_v21  ;;  %v12792_v63 = vpop.f32.mrf.mxu1 }
 0x257   : > { %14232 = vst [vmem:[#allocation43_spill] sm:$0xff] %v12792_v63  ;;  %v10419_v53 = vpop.f32.mrf.mxu0  ;;  %10916 = vmatmul.mubr.f32.gmra.mxu0 %v3364_v6  ;;  %v3368_v6 = vld [vmem:[#allocation2 + $0xde] sm:$0xff] }
 0x258   : > { %14231 = vst [vmem:[#allocation42_spill] sm:$0xff] %v12788_v17  ;;  %v1675_v8 = vadd.f32 %v10419_v53, %v12645_v36  ;;  %v10505_v20 = vpop.f32.mrf.mxu1  ;;  %10918 = vmatprep.mubr.f32.mxu0 %v3365_v39  ;;  %v3369_v39 = vld [vmem:[#allocation2 + $0xe6] sm:$0xff] }
 0x259   : > { %v1615_v31 = vpop.f32.mrf.mxu0 }
 0x25a   : > { %v12796_v5 = vadd.f32 %v1615_v31, %v12647_v46  ;;  %v12798_v27 = vadd.f32 %v10505_v20, %v1675_v8  ;;  %v12800_v28 = vpop.f32.mrf.mxu1  ;;  %v3370_v31 = vld [vmem:[#allocation2 + $0xee] sm:$0xff] }
 0x25b   : > { %14234 = vst [vmem:[#allocation45_spill] sm:$0xff] %v12800_v28  ;;  %v10422_v21 = vpop.f32.mrf.mxu0  ;;  %10919 = vmatmul.mubr.f32.gmra.mxu0 %v3366_v10 }
 0x25c   : > { %14233 = vst [vmem:[#allocation44_spill] sm:$0xff] %v12796_v5  ;;  %v1677_v14 = vadd.f32 %v10422_v21, %v12651_v44  ;;  %v10508_v26 = vpop.f32.mrf.mxu1  ;;  %10921 = vmatprep.mubr.f32.mxu0 %v3367_v4  ;;  %v3371_v44 = vld [vmem:[#allocation2 + $0xf6] sm:$0xff] }
 0x25d   : > { %v12803_v36 = vpop.f32.mrf.mxu0 }
 0x25e   : > { %v12805_v53 = vadd.f32 %v10508_v26, %v1677_v14  ;;  %v12807_v63 = vpop.f32.mrf.mxu1 }
 0x25f   : > { %14235 = vst [vmem:[#allocation46_spill] sm:$0xff] %v12807_v63  ;;  %v10425_v46 = vpop.f32.mrf.mxu0  ;;  %10922 = vmatmul.mubr.f32.gmra.mxu0 %v3368_v6  ;;  %v3372_v63 = vld [vmem:[#allocation2 + $0xfe] sm:$0xff] }
 0x260   : > { %v1679_v8 = vadd.f32 %v10425_v46, %v12659_v51  ;;  %v10511_v20 = vpop.f32.mrf.mxu1  ;;  %10924 = vmatprep.mubr.f32.mxu0 %v3369_v39  ;;  %v3373_v51 = vld [vmem:[#allocation2 + $0x106] sm:$0xff] }
 0x261   : > { %v12810_v10 = vpop.f32.mrf.mxu0 }
 0x262   : > { %v12812_v21 = vadd.f32 %v10511_v20, %v1679_v8  ;;  %v12814_v4 = vpop.f32.mrf.mxu1 }
 0x263   : > { %14236 = vst [vmem:[#allocation47_spill] sm:$0xff] %v12814_v4  ;;  %v10546_v28 = vpop.f32.mrf.mxu0  ;;  %10925 = vmatmul.mubr.f32.gmra.mxu0 %v3370_v31  ;;  %v3374_v4 = vld [vmem:[#allocation2 + $0x10e] sm:$0xff] }
 0x264   : > { %v2311_v14 = vadd.f32 %v10546_v28, %v12671_v59  ;;  %v10632_v26 = vpop.f32.mrf.mxu1  ;;  %10927 = vmatprep.mubr.f32.mxu0 %v3371_v44  ;;  %v3375_v59 = vld [vmem:[#allocation2 + $0x116] sm:$0xff] }
 0x265   : > { %v12817_v6 = vpop.f32.mrf.mxu0 }
 0x266   : > { %v12819_v46 = vadd.f32 %v10632_v26, %v2311_v14  ;;  %v12821_v39 = vpop.f32.mrf.mxu1 }
 0x267   : > { %14237 = vst [vmem:[#allocation48_spill] sm:$0xff] %v12821_v39  ;;  %v10549_v5 = vpop.f32.mrf.mxu0  ;;  %10928 = vmatmul.mubr.f32.gmra.mxu0 %v3372_v63  ;;  %v3376_v39 = vld [vmem:[#allocation2 + $0x11e] sm:$0xff] }
 0x268   : > { %v2313_v8 = vadd.f32 %v10549_v5, %v12681_v49  ;;  %v10635_v20 = vpop.f32.mrf.mxu1  ;;  %10930 = vmatprep.mubr.f32.mxu0 %v3373_v51  ;;  %v3377_v49 = vld [vmem:[#allocation2 + $0x126] sm:$0xff] }
 0x269   : > { %v12824_v31 = vpop.f32.mrf.mxu0 }
 0x26a   : > { %v12826_v28 = vadd.f32 %v10635_v20, %v2313_v8  ;;  %v12828_v44 = vpop.f32.mrf.mxu1 }
 0x26b   : > { %14238 = vst [vmem:[#allocation49_spill] sm:$0xff] %v12828_v44  ;;  %v10552_v17 = vpop.f32.mrf.mxu0  ;;  %10931 = vmatmul.mubr.f32.gmra.mxu0 %v3374_v4  ;;  %v3378_v44 = vld [vmem:[#allocation2 + $0x12e] sm:$0xff] }
 0x26c   : > { %v2315_v14 = vadd.f32 %v10552_v17, %v12691_v35  ;;  %v10638_v26 = vpop.f32.mrf.mxu1  ;;  %10933 = vmatprep.mubr.f32.mxu0 %v3375_v59  ;;  %v3379_v35 = vld [vmem:[#allocation2 + $0x136] sm:$0xff] }
 0x26d   : > { %v12831_v63 = vpop.f32.mrf.mxu0 }
 0x26e   : > { %v12833_v5 = vadd.f32 %v10638_v26, %v2315_v14  ;;  %v12835_v51 = vpop.f32.mrf.mxu1 }
 0x26f   : > { %14239 = vst [vmem:[#allocation50_spill] sm:$0xff] %v12835_v51  ;;  %v10555_v38 = vpop.f32.mrf.mxu0  ;;  %10934 = vmatmul.mubr.f32.gmra.mxu0 %v3376_v39  ;;  %v3380_v51 = vld [vmem:[#allocation2 + $0x13e] sm:$0xff] }
 0x270   : > { %v2317_v8 = vadd.f32 %v10555_v38, %v12701_v0  ;;  %v10641_v20 = vpop.f32.mrf.mxu1  ;;  %10936 = vmatprep.mubr.f32.mxu0 %v3377_v49 }
 0x271   : > { %v12838_v4 = vpop.f32.mrf.mxu0 }
 0x272   : > { %14240 = vst [vmem:[#allocation51_spill] sm:$0xff] %v12838_v4  ;;  %v12840_v17 = vadd.f32 %v10641_v20, %v2317_v8  ;;  %v12842_v59 = vpop.f32.mrf.mxu1 }
 0x273   : > { %14241 = vst [vmem:[#allocation52_spill] sm:$0xff] %v12842_v59  ;;  %v10558_v33 = vpop.f32.mrf.mxu0  ;;  %10937 = vmatmul.mubr.f32.gmra.mxu0 %v3378_v44 }
 0x274   : > { %v2319_v14 = vadd.f32 %v10558_v33, %v12710_v2  ;;  %v10644_v26 = vpop.f32.mrf.mxu1  ;;  %10939 = vmatprep.mubr.f32.mxu0 %v3379_v35 }
 0x275   : > { %v12845_v39 = vpop.f32.mrf.mxu0 }
 0x276   : > { %14242 = vst [vmem:[#allocation53_spill] sm:$0xff] %v12845_v39  ;;  %v12847_v0 = vadd.f32 %v10644_v26, %v2319_v14  ;;  %v12849_v38 = vpop.f32.mrf.mxu1 }
 0x277   : > { %14243 = vst [vmem:[#allocation54_spill] sm:$0xff] %v12849_v38  ;;  %v10561_v49 = vpop.f32.mrf.mxu0  ;;  %10940 = vmatmul.mubr.f32.gmra.mxu0 %v3380_v51 }
 0x278   : > { %v2321_v8 = vadd.f32 %v10561_v49, %v12718_v41  ;;  %v10647_v20 = vpop.f32.mrf.mxu1 }
 0x279   : > { %v12852_v4 = vpop.f32.mrf.mxu0 }
 0x27a   : > { %14244 = vst [vmem:[#allocation55_spill] sm:$0xff] %v12852_v4  ;;  %v12854_v59 = vadd.f32 %v10647_v20, %v2321_v8  ;;  %v12856_v44 = vpop.f32.mrf.mxu1 }
 0x27b   : > { %14245 = vst [vmem:[#allocation56_spill] sm:$0xff] %v12856_v44  ;;  %v10564_v2 = vpop.f32.mrf.mxu0  ;;  %v4292_v44 = vld [vmem:[#allocation13 + $0xf8] sm:$0xff] }
 0x27c   : > { %v2323_v33 = vadd.f32 %v10564_v2, %v12726_v62  ;;  %v10650_v35 = vpop.f32.mrf.mxu1  ;;  %10942 = vmatprep.subr.mxu1 %v4292_v44 }
 0x27d   : > { %v12859_v39 = vpop.f32.mrf.mxu0  ;;  %10943 = vmatpush3.msra.mxu1 %v4292_v44 }
 0x27e   : > { %14246 = vst [vmem:[#allocation57_spill] sm:$0xff] %v12859_v39  ;;  %v12861_v14 = vadd.f32 %v10650_v35, %v2323_v33  ;;  %v12863_v26 = vpop.f32.mrf.mxu1  ;;  %v4291_v33 = vld [vmem:[#allocation13 + $0xf0] sm:$0xff] }
 0x27f   : > { %14247 = vst [vmem:[#allocation58_spill] sm:$0xff] %v12863_v26  ;;  %v10567_v51 = vpop.f32.mrf.mxu0  ;;  %10944 = vmatprep.subr.mxu1 %v4291_v33 }
 0x280   : > { %v2325_v41 = vadd.f32 %v10567_v51, %v12734_v24  ;;  %v10653_v49 = vpop.f32.mrf.mxu1  ;;  %10945 = vmatpush3.msra.mxu1 %v4291_v33  ;;  %v4290_v51 = vld [vmem:[#allocation13 + $0xe8] sm:$0xff] }
 0x281   : > { %v12866_v38 = vpop.f32.mrf.mxu0  ;;  %10946 = vmatprep.subr.mxu1 %v4290_v51 }
 0x282   : > { %14248 = vst [vmem:[#allocation59_spill] sm:$0xff] %v12866_v38  ;;  %v12868_v8 = vadd.f32 %v10653_v49, %v2325_v41  ;;  %v12870_v20 = vpop.f32.mrf.mxu1  ;;  %10947 = vmatpush3.msra.mxu1 %v4290_v51 }
 0x283   : > { %14249 = vst [vmem:[#allocation60_spill] sm:$0xff] %v12870_v20  ;;  %v10570_v4 = vpop.f32.mrf.mxu0 }
 0x284   : > { %v2327_v62 = vadd.f32 %v10570_v4, %v12742_v12  ;;  %v10656_v2 = vpop.f32.mrf.mxu1 }
 0x285   : > { %v12873_v35 = vpop.f32.mrf.mxu0 }
 0x286   : > { %14250 = vst [vmem:[#allocation61_spill] sm:$0xff] %v12873_v35  ;;  %v12875_v26 = vadd.f32 %v10656_v2, %v2327_v62  ;;  %v12877_v24 = vpop.f32.mrf.mxu1  ;;  %v4289_v35 = vld [vmem:[#allocation13 + $0xe0] sm:$0xff] }
 0x287   : > { %14251 = vst [vmem:[#allocation62_spill] sm:$0xff] %v12877_v24  ;;  %v10573_v41 = vpop.f32.mrf.mxu0  ;;  %10948 = vmatprep.subr.mxu1 %v4289_v35  ;;  %v4288_v24 = vld [vmem:[#allocation13 + $0xd8] sm:$0xff] }
 0x288   : > { %v2329_v49 = vadd.f32 %v10573_v41, %v12750_v52  ;;  %v10659_v20 = vpop.f32.mrf.mxu1  ;;  %10949 = vmatpush3.msra.mxu1 %v4289_v35 }
 0x289   : > { %v12880_v38 = vpop.f32.mrf.mxu0  ;;  %10950 = vmatprep.subr.mxu1 %v4288_v24 }
 0x28a   : > { %v12882_v12 = vadd.f32 %v10659_v20, %v2329_v49  ;;  %v12884_v4 = vpop.f32.mrf.mxu1  ;;  %10951 = vmatpush3.msra.mxu1 %v4288_v24  ;;  %v4287_v20 = vld [vmem:[#allocation13 + $0xd0] sm:$0xff] }
 0x28b   : > { %14252 = vst [vmem:[#allocation63_spill] sm:$0xff] %v12884_v4  ;;  %v10576_v44 = vpop.f32.mrf.mxu0  ;;  %10952 = vmatprep.subr.mxu1 %v4287_v20 }
 0x28c   : > { %v2331_v62 = vadd.f32 %v10576_v44, %v12758_v56  ;;  %v10662_v2 = vpop.f32.mrf.mxu1  ;;  %10953 = vmatpush3.msra.mxu1 %v4287_v20 }
 0x28d   : > { %v12887_v33 = vpop.f32.mrf.mxu0 }
 0x28e   : > { %14253 = vst [vmem:[#allocation64_spill] sm:$0xff] %v12887_v33  ;;  %v12889_v39 = vadd.f32 %v10662_v2, %v2331_v62  ;;  %v12891_v52 = vpop.f32.mrf.mxu1  ;;  %v4286_v62 = vld [vmem:[#allocation13 + $0xc8] sm:$0xff]  ;;  %v4699_v2 = vld [vmem:[#allocation13 + $0x1f8] sm:$0xff] }
 0x28f   : > { %14254 = vst [vmem:[#allocation65_spill] sm:$0xff] %v12891_v52  ;;  %v10579_v51 = vpop.f32.mrf.mxu0  ;;  %10954 = vmatprep.subr.mxu1 %v4286_v62  ;;  %11083 = vmatprep.subr.mxu0 %v4699_v2 }
 0x290   : > { %v2333_v41 = vadd.f32 %v10579_v51, %v12766_v13  ;;  %v10665_v49 = vpop.f32.mrf.mxu1  ;;  %10955 = vmatpush3.msra.mxu1 %v4286_v62  ;;  %11084 = vmatpush3.msra.mxu0 %v4699_v2  ;;  %v4285_v13 = vld [vmem:[#allocation13 + $0xc0] sm:$0xff]  ;;  %v4698_v51 = vld [vmem:[#allocation13 + $0x1f0] sm:$0xff] }
 0x291   : > { %v12894_v4 = vpop.f32.mrf.mxu0  ;;  %10956 = vmatprep.subr.mxu1 %v4285_v13  ;;  %11085 = vmatprep.subr.mxu0 %v4698_v51 }
 0x292   : > { %14255 = vst [vmem:[#allocation66_spill] sm:$0xff] %v12894_v4  ;;  %v12896_v56 = vadd.f32 %v10665_v49, %v2333_v41  ;;  %v12898_v44 = vpop.f32.mrf.mxu1  ;;  %10957 = vmatpush3.msra.mxu1 %v4285_v13  ;;  %11086 = vmatpush3.msra.mxu0 %v4698_v51  ;;  %v4284_v49 = vld [vmem:[#allocation13 + $0xb8] sm:$0xff] }
 0x293   : > { %14256 = vst [vmem:[#allocation67_spill] sm:$0xff] %v12898_v44  ;;  %v10582_v35 = vpop.f32.mrf.mxu0  ;;  %10958 = vmatprep.subr.mxu1 %v4284_v49 }
 0x294   : > { %v2335_v52 = vadd.f32 %v10582_v35, %v12774_v23  ;;  %v10668_v33 = vpop.f32.mrf.mxu1  ;;  %v4697_v23 = vld [vmem:[#allocation13 + $0x1e8] sm:$0xff]  ;;  %10959 = vmatpush3.msra.mxu1 %v4284_v49 }
 0x295   : > { %v12901_v24 = vpop.f32.mrf.mxu0  ;;  %11087 = vmatprep.subr.mxu0 %v4697_v23 }
 0x296   : > { %14257 = vst [vmem:[#allocation68_spill] sm:$0xff] %v12901_v24  ;;  %v12903_v4 = vadd.f32 %v10668_v33, %v2335_v52  ;;  %v12905_v20 = vpop.f32.mrf.mxu1  ;;  %11088 = vmatpush3.msra.mxu0 %v4697_v23  ;;  %v4283_v33 = vld [vmem:[#allocation13 + $0xb0] sm:$0xff]  ;;  %v4696_v52 = vld [vmem:[#allocation13 + $0x1e0] sm:$0xff]  ;;  %v4282_v24 = vld [vmem:[#allocation13 + $0xa8] sm:$0xff] }
 0x297   : > { %14258 = vst [vmem:[#allocation69_spill] sm:$0xff] %v12905_v20  ;;  %v10585_v41 = vpop.f32.mrf.mxu0  ;;  %10960 = vmatprep.subr.mxu1 %v4283_v33  ;;  %11089 = vmatprep.subr.mxu0 %v4696_v52 }
 0x298   : > { %v2337_v35 = vadd.f32 %v10585_v41, %v12782_v37  ;;  %v10671_v44 = vpop.f32.mrf.mxu1  ;;  %10961 = vmatpush3.msra.mxu1 %v4283_v33  ;;  %11090 = vmatpush3.msra.mxu0 %v4696_v52 }
 0x299   : > { %v12908_v62 = vpop.f32.mrf.mxu0  ;;  %10962 = vmatprep.subr.mxu1 %v4282_v24 }
 0x29a   : > { %14259 = vst [vmem:[#allocation70_spill] sm:$0xff] %v12908_v62  ;;  %v12910_v2 = vadd.f32 %v10671_v44, %v2337_v35  ;;  %v12912_v20 = vpop.f32.mrf.mxu1  ;;  %v4695_v62 = vld [vmem:[#allocation13 + $0x1d8] sm:$0xff]  ;;  %10963 = vmatpush3.msra.mxu1 %v4282_v24  ;;  %v4281_v35 = vld [vmem:[#allocation13 + $0xa0] sm:$0xff] }
 0x29b   : > { %14260 = vst [vmem:[#allocation71_spill] sm:$0xff] %v12912_v20  ;;  %v10588_v13 = vpop.f32.mrf.mxu0  ;;  %11091 = vmatprep.subr.mxu0 %v4695_v62  ;;  %v4694_v20 = vld [vmem:[#allocation13 + $0x1d0] sm:$0xff]  ;;  %10964 = vmatprep.subr.mxu1 %v4281_v35 }
 0x29c   : > { %v2339_v37 = vadd.f32 %v10588_v13, %v12790_v22  ;;  %v10674_v51 = vpop.f32.mrf.mxu1  ;;  %11092 = vmatpush3.msra.mxu0 %v4695_v62  ;;  %10965 = vmatpush3.msra.mxu1 %v4281_v35  ;;  %v4280_v13 = vld [vmem:[#allocation13 + $0x98] sm:$0xff] }
 0x29d   : > { %v12915_v41 = vpop.f32.mrf.mxu0  ;;  %11093 = vmatprep.subr.mxu0 %v4694_v20  ;;  %10966 = vmatprep.subr.mxu1 %v4280_v13 }
 0x29e   : > { %14261 = vst [vmem:[#allocation72_spill] sm:$0xff] %v12915_v41  ;;  %v12917_v49 = vadd.f32 %v10674_v51, %v2339_v37  ;;  %v12919_v23 = vpop.f32.mrf.mxu1  ;;  %11094 = vmatpush3.msra.mxu0 %v4694_v20  ;;  %v4693_v37 = vld [vmem:[#allocation13 + $0x1c8] sm:$0xff]  ;;  %10967 = vmatpush3.msra.mxu1 %v4280_v13  ;;  %v4279_v20 = vld [vmem:[#allocation13 + $0x90] sm:$0xff] }
 0x29f   : > { %14262 = vst [vmem:[#allocation73_spill] sm:$0xff] %v12919_v23  ;;  %v10591_v44 = vpop.f32.mrf.mxu0  ;;  %11095 = vmatprep.subr.mxu0 %v4693_v37  ;;  %10968 = vmatprep.subr.mxu1 %v4279_v20  ;;  %v4278_v13 = vld [vmem:[#allocation13 + $0x88] sm:$0xff] }
 0x2a0   : > { %v2341_v33 = vadd.f32 %v10591_v44, %v12798_v27  ;;  %v10677_v52 = vpop.f32.mrf.mxu1  ;;  %11096 = vmatpush3.msra.mxu0 %v4693_v37  ;;  %10969 = vmatpush3.msra.mxu1 %v4279_v20  ;;  %v4691_v37 = vld [vmem:[#allocation13 + $0x1b8] sm:$0xff] }
 0x2a1   : > { %v12922_v22 = vpop.f32.mrf.mxu0  ;;  %10970 = vmatprep.subr.mxu1 %v4278_v13 }
 0x2a2   : > { %14263 = vst [vmem:[#allocation74_spill] sm:$0xff] %v12922_v22  ;;  %v12924_v51 = vadd.f32 %v10677_v52, %v2341_v33  ;;  %v12926_v23 = vpop.f32.mrf.mxu1  ;;  %v4692_v22 = vld [vmem:[#allocation13 + $0x1c0] sm:$0xff]  ;;  %10971 = vmatpush3.msra.mxu1 %v4278_v13 }
 0x2a3   : > { %14264 = vst [vmem:[#allocation75_spill] sm:$0xff] %v12926_v23  ;;  %v10594_v24 = vpop.f32.mrf.mxu0  ;;  %11097 = vmatprep.subr.mxu0 %v4692_v22  ;;  %v4688_v13 = vld [vmem:[#allocation13 + $0x1a0] sm:$0xff] }
 0x2a4   : > { %v2343_v27 = vadd.f32 %v10594_v24, %v12805_v53  ;;  %v10680_v62 = vpop.f32.mrf.mxu1  ;;  %11098 = vmatpush3.msra.mxu0 %v4692_v22 }
 0x2a5   : > { %v12929_v44 = vpop.f32.mrf.mxu0  ;;  %11099 = vmatprep.subr.mxu0 %v4691_v37 }
 0x2a6   : > { %v12931_v41 = vadd.f32 %v10680_v62, %v2343_v27  ;;  %v12933_v35 = vpop.f32.mrf.mxu1  ;;  %11100 = vmatpush3.msra.mxu0 %v4691_v37  ;;  %v4277_v62 = vld [vmem:[#allocation13 + $0x80] sm:$0xff] }
 0x2a7   : > { %14266 = vst [vmem:[#allocation77_spill] sm:$0xff] %v12933_v35  ;;  %v10597_v33 = vpop.f32.mrf.mxu0  ;;  %v4690_v35 = vld [vmem:[#allocation13 + $0x1b0] sm:$0xff]  ;;  %10972 = vmatprep.subr.mxu1 %v4277_v62 }
 0x2a8   : > { %14265 = vst [vmem:[#allocation76_spill] sm:$0xff] %v12931_v41  ;;  %v2345_v52 = vadd.f32 %v10597_v33, %v12812_v21  ;;  %v10683_v23 = vpop.f32.mrf.mxu1  ;;  %11101 = vmatprep.subr.mxu0 %v4690_v35  ;;  %v4267_v21 = vld [vmem:[#allocation3 + $0x1] sm:$0xff]  ;;  %10973 = vmatpush3.msra.mxu1 %v4277_v62  ;;  %v4689_v33 = vld [vmem:[#allocation13 + $0x1a8] sm:$0xff] }
 0x2a9   : > { %v12936_v53 = vpop.f32.mrf.mxu0  ;;  %10974 = vmatprep.mubr.f32.mxu1 %v4267_v21  ;;  %11102 = vmatpush3.msra.mxu0 %v4690_v35  ;;  %v4687_v21 = vld [vmem:[#allocation13 + $0x198] sm:$0xff] }
 0x2aa   : > { %v12938_v24 = vadd.f32 %v10683_v23, %v2345_v52  ;;  %v12940_v27 = vpop.f32.mrf.mxu1  ;;  %11103 = vmatprep.subr.mxu0 %v4689_v33 }
 0x2ab   : > { %14268 = vst [vmem:[#allocation79_spill] sm:$0xff] %v12940_v27  ;;  %v10718_v41 = vpop.f32.mrf.mxu0  ;;  %11104 = vmatpush3.msra.mxu0 %v4689_v33 }
 0x2ac   : > { %14267 = vst [vmem:[#allocation78_spill] sm:$0xff] %v12938_v24  ;;  %v12943_v22 = vadd.f32 %v10718_v41, %v12819_v46  ;;  %v12945_v20 = vpop.f32.mrf.mxu1  ;;  %11105 = vmatprep.subr.mxu0 %v4688_v13 }
 0x2ad   : > { %v12947_v23 = vpop.f32.mrf.mxu0  ;;  %11106 = vmatpush3.msra.mxu0 %v4688_v13  ;;  %v4685_v13 = vld [vmem:[#allocation13 + $0x188] sm:$0xff] }
 0x2ae   : > { %v12949_v52 = vpop.f32.mrf.mxu1  ;;  %11107 = vmatprep.subr.mxu0 %v4687_v21 }
 0x2af   : > { %14269 = vst [vmem:[#allocation80_spill] sm:$0xff] %v12949_v52  ;;  %v10721_v37 = vpop.f32.mrf.mxu0  ;;  %11108 = vmatpush3.msra.mxu0 %v4687_v21 }
 0x2b0   : > { %v12952_v24 = vadd.f32 %v10721_v37, %v12826_v28  ;;  %v12954_v27 = vpop.f32.mrf.mxu1  ;;  %v4686_v28 = vld [vmem:[#allocation13 + $0x190] sm:$0xff] }
 0x2b1   : > { %14271 = vst [vmem:[#allocation82_spill] sm:$0xff] %v12954_v27  ;;  %v12956_v46 = vpop.f32.mrf.mxu0  ;;  %11109 = vmatprep.subr.mxu0 %v4686_v28 }
 0x2b2   : > { %14270 = vst [vmem:[#allocation81_spill] sm:$0xff] %v12952_v24  ;;  %v12958_v41 = vpop.f32.mrf.mxu1  ;;  %11110 = vmatpush3.msra.mxu0 %v4686_v28 }
 0x2b3   : > { %14272 = vst [vmem:[#allocation83_spill] sm:$0xff] %v12958_v41  ;;  %v10724_v62 = vpop.f32.mrf.mxu0  ;;  %11111 = vmatprep.subr.mxu0 %v4685_v13 }
 0x2b4   : > { %v12961_v35 = vadd.f32 %v10724_v62, %v12833_v5  ;;  %v12963_v52 = vpop.f32.mrf.mxu1  ;;  %11112 = vmatpush3.msra.mxu0 %v4685_v13 }
 0x2b5   : > { %14274 = vst [vmem:[#allocation85_spill] sm:$0xff] %v12963_v52  ;;  %v12965_v33 = vpop.f32.mrf.mxu0 }
 0x2b6   : > { %14273 = vst [vmem:[#allocation84_spill] sm:$0xff] %v12961_v35  ;;  %v12967_v37 = vpop.f32.mrf.mxu1  ;;  %v4684_v35 = vld [vmem:[#allocation13 + $0x180] sm:$0xff] }
 0x2b7   : > { %14275 = vst [vmem:[#allocation86_spill] sm:$0xff] %v12967_v37  ;;  %v10727_v27 = vpop.f32.mrf.mxu0  ;;  %11113 = vmatprep.subr.mxu0 %v4684_v35 }
 0x2b8   : > { %v12970_v41 = vadd.f32 %v10727_v27, %v12840_v17  ;;  %v12972_v24 = vpop.f32.mrf.mxu1  ;;  %11114 = vmatpush3.msra.mxu0 %v4684_v35 }
 0x2b9   : > { %14277 = vst [vmem:[#allocation88_spill] sm:$0xff] %v12972_v24  ;;  %v12974_v5 = vpop.f32.mrf.mxu0 }
 0x2ba   : > { %14276 = vst [vmem:[#allocation87_spill] sm:$0xff] %v12970_v41  ;;  %v12976_v62 = vpop.f32.mrf.mxu1 }
 0x2bb   : > { %14278 = vst [vmem:[#allocation89_spill] sm:$0xff] %v12976_v62  ;;  %v10730_v52 = vpop.f32.mrf.mxu0 }
 0x2bc   : > { %v12979_v21 = vadd.f32 %v10730_v52, %v12847_v0  ;;  %v12981_v37 = vpop.f32.mrf.mxu1 }
 0x2bd   : > { %14280 = vst [vmem:[#allocation91_spill] sm:$0xff] %v12981_v37  ;;  %v12983_v28 = vpop.f32.mrf.mxu0 }
 0x2be   : > { %14279 = vst [vmem:[#allocation90_spill] sm:$0xff] %v12979_v21  ;;  %v12985_v17 = vpop.f32.mrf.mxu1 }
 0x2bf   : > { %14281 = vst [vmem:[#allocation92_spill] sm:$0xff] %v12985_v17  ;;  %v10733_v27 = vpop.f32.mrf.mxu0 }
 0x2c0   : > { %v12988_v24 = vadd.f32 %v10733_v27, %v12854_v59  ;;  %v12990_v13 = vpop.f32.mrf.mxu1 }
 0x2c1   : > { %14283 = vst [vmem:[#allocation94_spill] sm:$0xff] %v12990_v13  ;;  %v12992_v62 = vpop.f32.mrf.mxu0 }
 0x2c2   : > { %14282 = vst [vmem:[#allocation93_spill] sm:$0xff] %v12988_v24  ;;  %v12994_v41 = vpop.f32.mrf.mxu1 }
 0x2c3   : > { %14284 = vst [vmem:[#allocation95_spill] sm:$0xff] %v12994_v41  ;;  %v10736_v0 = vpop.f32.mrf.mxu0 }
 0x2c4   : > { %v12997_v52 = vadd.f32 %v10736_v0, %v12861_v14  ;;  %v12999_v37 = vpop.f32.mrf.mxu1 }
 0x2c5   : > { %14286 = vst [vmem:[#allocation97_spill] sm:$0xff] %v12999_v37  ;;  %v13001_v21 = vpop.f32.mrf.mxu0 }
 0x2c6   : > { %14285 = vst [vmem:[#allocation96_spill] sm:$0xff] %v12997_v52  ;;  %v13003_v17 = vpop.f32.mrf.mxu1 }
 0x2c7   : > { %14287 = vst [vmem:[#allocation98_spill] sm:$0xff] %v13003_v17  ;;  %v10739_v35 = vpop.f32.mrf.mxu0 }
 0x2c8   : > { %v13006_v59 = vadd.f32 %v10739_v35, %v12868_v8  ;;  %v13008_v27 = vpop.f32.mrf.mxu1 }
 0x2c9   : > { %14289 = vst [vmem:[#allocation100_spill] sm:$0xff] %v13008_v27  ;;  %v13010_v13 = vpop.f32.mrf.mxu0 }
 0x2ca   : > { %14288 = vst [vmem:[#allocation99_spill] sm:$0xff] %v13006_v59  ;;  %v13012_v24 = vpop.f32.mrf.mxu1 }
 0x2cb   : > { %14290 = vst [vmem:[#allocation101_spill] sm:$0xff] %v13012_v24  ;;  %v10742_v41 = vpop.f32.mrf.mxu0  ;;  %v13032_v24 = vld [vmem:[#allocation13 + $0x78] sm:$0xff] }
 0x2cc   : > { %v13015_v14 = vadd.f32 %v10742_v41, %v12875_v26  ;;  %v13017_v0 = vpop.f32.mrf.mxu1  ;;  %14296 = vst [vmem:[#allocation107_spill] sm:$0xff] %v13032_v24  ;;  %10989 = vmatprep.subr.mxu1 %v13032_v24 }
 0x2cd   : > { %14291 = vst [vmem:[#allocation102_spill] sm:$0xff] %v13017_v0  ;;  %v13019_v37 = vpop.f32.mrf.mxu0 }
 0x2ce   : > { %v13021_v52 = vpop.f32.mrf.mxu1 }
 0x2cf   : > { %14292 = vst [vmem:[#allocation103_spill] sm:$0xff] %v13021_v52  ;;  %v10745_v17 = vpop.f32.mrf.mxu0 }
 0x2d0   : > { %v13024_v8 = vadd.f32 %v10745_v17, %v12882_v12  ;;  %v13026_v35 = vpop.f32.mrf.mxu1  ;;  %v13044_v17 = vld [vmem:[#allocation13 + $0x2f8] sm:$0xff] }
 0x2d1   : > { %14294 = vst [vmem:[#allocation105_spill] sm:$0xff] %v13026_v35  ;;  %v13028_v27 = vpop.f32.mrf.mxu0  ;;  %14300 = vst [vmem:[#allocation111_spill] sm:$0xff] %v13044_v17  ;;  %11177 = vmatprep.subr.mxu0 %v13044_v17  ;;  %v1329_v17 = vadd.f32 %v12655_v30, %v12653_v61  ;;  %v1985_v61 = vadd.f32 %v12712_v25, %v12708_v15  ;;  %v14304_v15 = vld [vmem:[#allocation37_spill] sm:$0xff] }
 0x2d2   : > { %14293 = vst [vmem:[#allocation104_spill] sm:$0xff] %v13024_v8  ;;  %v13030_v59 = vpop.f32.mrf.mxu1  ;;  %v1999_v25 = vadd.f32 %v14304_v15, %v12764_v47  ;;  %v14313_v47 = vld [vmem:[#allocation43_spill] sm:$0xff] }
 0x2d3   : > { %14295 = vst [vmem:[#allocation106_spill] sm:$0xff] %v13030_v59  ;;  %v10748_v26 = vpop.f32.mrf.mxu0 }
 0x2d4   : > { %v13036_v41 = vadd.f32 %v10748_v26, %v12889_v39  ;;  %v13038_v0 = vpop.f32.mrf.mxu1 }
 0x2d5   : > { %14298 = vst [vmem:[#allocation109_spill] sm:$0xff] %v13038_v0  ;;  %v13040_v52 = vpop.f32.mrf.mxu0 }
 0x2d6   : > { %14297 = vst [vmem:[#allocation108_spill] sm:$0xff] %v13036_v41  ;;  %v13042_v12 = vpop.f32.mrf.mxu1 }
 0x2d7   : > { %14299 = vst [vmem:[#allocation110_spill] sm:$0xff] %v13042_v12  ;;  %v10751_v35 = vpop.f32.mrf.mxu0 }
 0x2d8   : > { %v13048_v59 = vadd.f32 %v10751_v35, %v12896_v56  ;;  %v13050_v8 = vpop.f32.mrf.mxu1  ;;  %v1339_v56 = vadd.f32 %v12663_v54, %v12661_v18  ;;  %v1977_v35 = vadd.f32 %v12673_v42, %v12669_v58  ;;  %v1987_v18 = vadd.f32 %v12720_v34, %v12716_v45 }
 0x2d9   : > { %14302 = vst [vmem:[#allocation113_spill] sm:$0xff] %v13050_v8  ;;  %v13052_v24 = vpop.f32.mrf.mxu0  ;;  %v1989_v54 = vadd.f32 %v12728_v55, %v12724_v3  ;;  %v1991_v58 = vadd.f32 %v12736_v19, %v12732_v32  ;;  %v1676_v42 = vadd.f32 %v12803_v36, %v1329_v17  ;;  %v14306_v32 = vld [vmem:[#allocation38_spill] sm:$0xff]  ;;  %v14307_v19 = vld [vmem:[#allocation39_spill] sm:$0xff] }
 0x2da   : > { %14301 = vst [vmem:[#allocation112_spill] sm:$0xff] %v13048_v59  ;;  %v13054_v39 = vpop.f32.mrf.mxu1  ;;  %v14310_v36 = vld [vmem:[#allocation51_spill] sm:$0xff] }
 0x2db   : > { %14303 = vst [vmem:[#allocation114_spill] sm:$0xff] %v13054_v39  ;;  %v10754_v26 = vpop.f32.mrf.mxu0  ;;  %v1979_v39 = vadd.f32 %v12683_v1, %v12679_v16  ;;  %v1993_v1 = vadd.f32 %v12744_v40, %v12740_v50  ;;  %v2001_v50 = vadd.f32 %v14307_v19, %v14306_v32  ;;  %v14308_v40 = vld [vmem:[#allocation40_spill] sm:$0xff] }
 0x2dc   : > { %v13057_v0 = vadd.f32 %v10754_v26, %v12903_v4  ;;  %v13059_v41 = vpop.f32.mrf.mxu1  ;;  %v1981_v4 = vadd.f32 %v12693_v43, %v12689_v57  ;;  %v1983_v26 = vadd.f32 %v12703_v48, %v12699_v7  ;;  %v1995_v57 = vadd.f32 %v12752_v9, %v12748_v11  ;;  %v14309_v11 = vld [vmem:[#allocation41_spill] sm:$0xff]  ;;  %v14319_v32 = vld [vmem:[#allocation48_spill] sm:$0xff] }
 0x2dd   : > { %v13061_v12 = vpop.f32.mrf.mxu0  ;;  %v1678_v43 = vadd.f32 %v12810_v10, %v1339_v56  ;;  %v2310_v7 = vadd.f32 %v12817_v6, %v1977_v35  ;;  %v1997_v48 = vadd.f32 %v12760_v29, %v12756_v60  ;;  %v2312_v45 = vadd.f32 %v12824_v31, %v1979_v39  ;;  %v14312_v29 = vld [vmem:[#allocation42_spill] sm:$0xff]  ;;  %v14314_v31 = vld [vmem:[#allocation44_spill] sm:$0xff]  ;;  %v14317_v39 = vld [vmem:[#allocation53_spill] sm:$0xff] }
 0x2de   : > { %v13071_v59 = vpop.f32.mrf.mxu1  ;;  %v2314_v34 = vadd.f32 %v12831_v63, %v1981_v4  ;;  %v2003_v9 = vadd.f32 %v14309_v11, %v14308_v40  ;;  %v2316_v10 = vadd.f32 %v14310_v36, %v1983_v26  ;;  %v2005_v6 = vadd.f32 %v14313_v47, %v14312_v29  ;;  %v14318_v4 = vld [vmem:[#allocation47_spill] sm:$0xff]  ;;  %v14322_v11 = vld [vmem:[#allocation49_spill] sm:$0xff]  ;;  %v14323_v29 = vld [vmem:[#allocation50_spill] sm:$0xff] }
 0x2df   : > { %v10757_v8 = vpop.f32.mrf.mxu0  ;;  %v2318_v56 = vadd.f32 %v14317_v39, %v1985_v61  ;;  %v2011_v15 = vadd.f32 %v14318_v4, %v1678_v43  ;;  %v2643_v19 = vadd.f32 %v14319_v32, %v2310_v7  ;;  %v14320_v26 = vld [vmem:[#allocation55_spill] sm:$0xff]  ;;  %v2645_v36 = vadd.f32 %v14322_v11, %v2312_v45  ;;  %v14326_v39 = vld [vmem:[#allocation52_spill] sm:$0xff]  ;;  %v14329_v32 = vld [vmem:[#allocation66_spill] sm:$0xff] }
 0x2e0   : > { %v13080_v30 = vadd.f32 %v10757_v8, %v12910_v2  ;;  %v13103_v3 = vpop.f32.mrf.mxu1  ;;  %v14315_v2 = vld [vmem:[#allocation45_spill] sm:$0xff]  ;;  %v14316_v8 = vld [vmem:[#allocation46_spill] sm:$0xff]  ;;  %v2320_v40 = vadd.f32 %v14320_v26, %v1987_v18  ;;  %v2647_v47 = vadd.f32 %v14323_v29, %v2314_v34  ;;  %v2328_v43 = vadd.f32 %v12880_v38, %v1995_v57  ;;  %v14327_v7 = vld [vmem:[#allocation64_spill] sm:$0xff] }
 0x2e1   : > { %v13089_v16 = vpop.f32.mrf.mxu0  ;;  %14305 = vst [vmem:[#allocation37_spill] sm:$0xff] %v13103_v3  ;;  %v2007_v63 = vadd.f32 %v14315_v2, %v14314_v31  ;;  %v2009_v17 = vadd.f32 %v14316_v8, %v1676_v42  ;;  %v14325_v2 = vld [vmem:[#allocation61_spill] sm:$0xff]  ;;  %v2649_v3 = vadd.f32 %v14326_v39, %v2316_v10  ;;  %v2330_v4 = vadd.f32 %v14327_v7, %v1997_v48  ;;  %v14330_v26 = vld [vmem:[#allocation68_spill] sm:$0xff]  ;;  %v14333_v10 = vld [vmem:[#allocation58_spill] sm:$0xff] }
 0x2e2   : > { %v2326_v42 = vadd.f32 %v14325_v2, %v1993_v1  ;;  %v13129_v8 = vpop.f32.mrf.mxu1  ;;  %v2332_v34 = vadd.f32 %v14329_v32, %v1999_v25  ;;  %v14332_v11 = vld [vmem:[#allocation56_spill] sm:$0xff]  ;;  %v14335_v48 = vld [vmem:[#allocation74_spill] sm:$0xff]  ;;  %v14338_v32 = vld [vmem:[#allocation63_spill] sm:$0xff] }
 0x2e3   : > { %v10760_v55 = vpop.f32.mrf.mxu0  ;;  %v2653_v29 = vadd.f32 %v14332_v11, %v2320_v40  ;;  %v14334_v38 = vld [vmem:[#allocation72_spill] sm:$0xff]  ;;  %v2340_v39 = vadd.f32 %v14335_v48, %v2007_v63  ;;  %v14337_v7 = vld [vmem:[#allocation62_spill] sm:$0xff]  ;;  %v2342_v25 = vadd.f32 %v12929_v44, %v2009_v17  ;;  %v14339_v40 = vld [vmem:[#allocation65_spill] sm:$0xff] }
 0x2e4   : > { %v13111_v60 = vadd.f32 %v10760_v55, %v12917_v49  ;;  %v14321_v49 = vld [vmem:[#allocation57_spill] sm:$0xff]  ;;  %v2338_v57 = vadd.f32 %v14334_v38, %v2005_v6  ;;  %v14340_v6 = vld [vmem:[#allocation76_spill] sm:$0xff]  ;;  %v14341_v63 = vld [vmem:[#allocation67_spill] sm:$0xff] }
 0x2e5   : > { %v13119_v35 = vpop.f32.mrf.mxu0  ;;  %v2322_v55 = vadd.f32 %v14321_v49, %v1989_v54  ;;  %v14328_v54 = vld [vmem:[#allocation54_spill] sm:$0xff]  ;;  %v14343_v38 = vld [vmem:[#allocation71_spill] sm:$0xff] }
 0x2e6   : > { %14311 = vst [vmem:[#allocation38_spill] sm:$0xff] %v13111_v60  ;;  %v14324_v60 = vld [vmem:[#allocation59_spill] sm:$0xff]  ;;  %v2651_v45 = vadd.f32 %v14328_v54, %v2318_v56  ;;  %v2659_v56 = vadd.f32 %v14337_v7, %v2326_v42  ;;  %v13151_v54 = vpop.f32.mrf.mxu1 }
 0x2e7   : > { %v2324_v31 = vadd.f32 %v14324_v60, %v1991_v58  ;;  %v10763_v61 = vpop.f32.mrf.mxu0  ;;  %v2334_v58 = vadd.f32 %v14330_v26, %v2001_v50  ;;  %v14331_v60 = vld [vmem:[#allocation70_spill] sm:$0xff]  ;;  %v2655_v2 = vadd.f32 %v14333_v10, %v2322_v55  ;;  %v2344_v50 = vadd.f32 %v12936_v53, %v2011_v15  ;;  %v14342_v10 = vld [vmem:[#allocation69_spill] sm:$0xff] }
 0x2e8   : > { %v13135_v18 = vadd.f32 %v10763_v61, %v12924_v51  ;;  %v2336_v1 = vadd.f32 %v14331_v60, %v2003_v9  ;;  %v14336_v51 = vld [vmem:[#allocation60_spill] sm:$0xff]  ;;  %v2661_v26 = vadd.f32 %v14338_v32, %v2328_v43  ;;  %v2663_v60 = vadd.f32 %v14339_v40, %v2330_v4  ;;  %v14344_v15 = vld [vmem:[#allocation73_spill] sm:$0xff]  ;;  %v14345_v43 = vld [vmem:[#allocation75_spill] sm:$0xff] }
 0x2e9   : > { %v13141_v49 = vpop.f32.mrf.mxu0  ;;  %v2657_v61 = vadd.f32 %v14336_v51, %v2324_v31  ;;  %v2976_v55 = vadd.f32 %v12947_v23, %v2643_v19  ;;  %v2665_v31 = vadd.f32 %v14341_v63, %v2332_v34  ;;  %v2667_v42 = vadd.f32 %v14342_v10, %v2334_v58  ;;  %v14346_v4 = vld [vmem:[#allocation77_spill] sm:$0xff]  ;;  %v14347_v34 = vld [vmem:[#allocation79_spill] sm:$0xff] }
 0x2ea   : > { %v2669_v44 = vadd.f32 %v14343_v38, %v2336_v1  ;;  %v2978_v53 = vadd.f32 %v12956_v46, %v2645_v36  ;;  %v2671_v48 = vadd.f32 %v14344_v15, %v2338_v57  ;;  %v13167_v51 = vadd.f32 %v14345_v43, %v2340_v39  ;;  %v13180_v1 = vpop.f32.mrf.mxu1  ;;  %v14348_v39 = vld [vmem:[#allocation80_spill] sm:$0xff]  ;;  %v14352_v40 = vld [vmem:[#allocation83_spill] sm:$0xff] }
 0x2eb   : > { %v10766_v9 = vpop.f32.mrf.mxu0  ;;  %v2980_v23 = vadd.f32 %v12965_v33, %v2647_v47  ;;  %v2982_v19 = vadd.f32 %v12974_v5, %v2649_v3  ;;  %v13172_v7 = vadd.f32 %v14346_v4, %v2342_v25  ;;  %v13175_v58 = vadd.f32 %v14347_v34, %v2344_v50  ;;  %v14349_v3 = vld [vmem:[#allocation78_spill] sm:$0xff]  ;;  %v14350_v25 = vld [vmem:[#allocation81_spill] sm:$0xff]  ;;  %v14360_v43 = vld [vmem:[#allocation91_spill] sm:$0xff] }
 0x2ec   : > { %v13157_v11 = vadd.f32 %v10766_v9, %v14340_v6  ;;  %v3310_v46 = vadd.f32 %v12945_v20, %v12943_v22  ;;  %v2984_v36 = vadd.f32 %v12983_v28, %v2651_v45  ;;  %v3309_v9 = vadd.f32 %v14348_v39, %v2976_v55  ;;  %v14351_v50 = vld [vmem:[#allocation82_spill] sm:$0xff]  ;;  %v14353_v22 = vld [vmem:[#allocation84_spill] sm:$0xff]  ;;  %v14354_v20 = vld [vmem:[#allocation85_spill] sm:$0xff] }
 0x2ed   : > { %v13163_v17 = vpop.f32.mrf.mxu0  ;;  %v2986_v33 = vadd.f32 %v12992_v62, %v2653_v29  ;;  %v2988_v5 = vadd.f32 %v13001_v21, %v2655_v2  ;;  %v3312_v32 = vadd.f32 %v14351_v50, %v14350_v25  ;;  %v3311_v6 = vadd.f32 %v14352_v40, %v2978_v53  ;;  %v14355_v55 = vld [vmem:[#allocation86_spill] sm:$0xff]  ;;  %v14356_v62 = vld [vmem:[#allocation87_spill] sm:$0xff]  ;;  %v14357_v21 = vld [vmem:[#allocation88_spill] sm:$0xff] }
 0x2ee   : > { %v3314_v28 = vadd.f32 %v14354_v20, %v14353_v22  ;;  %v2990_v45 = vadd.f32 %v13010_v13, %v2657_v61  ;;  %v13197_v10 = vadd.f32 %v14355_v55, %v2980_v23  ;;  %v13201_v29 = vadd.f32 %v14357_v21, %v14356_v62  ;;  %v14358_v2 = vld [vmem:[#allocation89_spill] sm:$0xff]  ;;  %v14359_v53 = vld [vmem:[#allocation90_spill] sm:$0xff]  ;;  %v14361_v34 = vld [vmem:[#allocation92_spill] sm:$0xff] }
 0x2ef   : > { %v10769_v57 = vpop.f32.mrf.mxu0  ;;  %v13204_v38 = vadd.f32 %v14358_v2, %v2982_v19  ;;  %v2992_v15 = vadd.f32 %v13019_v37, %v2659_v56  ;;  %v13209_v4 = vadd.f32 %v14360_v43, %v14359_v53  ;;  %v13212_v13 = vadd.f32 %v14361_v34, %v2984_v36  ;;  %v14362_v61 = vld [vmem:[#allocation93_spill] sm:$0xff]  ;;  %v13219_v50 = vld [vmem:[#allocation12] ss:$0 sm:$0xff]  ;;  %v14364_v19 = vld [vmem:[#allocation95_spill] sm:$0xff] }
 0x2f0   : > { %v13186_v47 = vadd.f32 %v10769_v57, %v14349_v3  ;;  %v14363_v57 = vld [vmem:[#allocation94_spill] sm:$0xff]  ;;  %v2994_v39 = vadd.f32 %v13028_v27, %v2661_v26  ;;  %v10849_v3 = vpop.f32.mrf.mxu1  ;;  %v13222_v40 = vadd.f32 %v14364_v19, %v2986_v33  ;;  %v14365_v37 = vld [vmem:[#allocation96_spill] sm:$0xff]  ;;  %v14366_v56 = vld [vmem:[#allocation97_spill] sm:$0xff]  ;;  %v2996_v53 = vadd.f32 %v13040_v52, %v2663_v60 }
 0x2f1   : > { %v13194_v63 = vpop.f32.mrf.mxu0  ;;  %v13216_v23 = vadd.f32 %v14363_v57, %v14362_v61  ;;  %v13226_v22 = vadd.f32 %v14366_v56, %v14365_v37  ;;  %v14367_v20 = vld [vmem:[#allocation98_spill] sm:$0xff]  ;;  %v14368_v62 = vld [vmem:[#allocation99_spill] sm:$0xff]  ;;  %v14369_v21 = vld [vmem:[#allocation100_spill] sm:$0xff]  ;;  %v2998_v33 = vadd.f32 %v13052_v24, %v2665_v31  ;;  %v3000_v24 = vadd.f32 %v13061_v12, %v2667_v42 }
 0x2f2   : > { %v13229_v36 = vadd.f32 %v14367_v20, %v2988_v5  ;;  %v13233_v2 = vadd.f32 %v14369_v21, %v14368_v62  ;;  %v14370_v27 = vld [vmem:[#allocation101_spill] sm:$0xff]  ;;  %v13240_v43 = vld [vmem:[#allocation12 + $0x1] ss:$0 sm:$0xff]  ;;  %v14372_v5 = vld [vmem:[#allocation103_spill] sm:$0xff]  ;;  %v3002_v31 = vadd.f32 %v13089_v16, %v2669_v44  ;;  %v3280_v20 = vpop.f32.mrf.mxu1  ;;  %v3004_v44 = vadd.f32 %v13119_v35, %v2671_v48 }
 0x2f3   : > { %v10890_v25 = vpop.f32.mrf.mxu0  ;;  %v13236_v26 = vadd.f32 %v14370_v27, %v2990_v45  ;;  %v14371_v61 = vld [vmem:[#allocation102_spill] sm:$0xff]  ;;  %v14373_v37 = vld [vmem:[#allocation104_spill] sm:$0xff]  ;;  %v14374_v45 = vld [vmem:[#allocation105_spill] sm:$0xff] }
 0x2f4   : > { %v3643_v55 = vadd.f32 %v10890_v25, %v3310_v46  ;;  %v13244_v57 = vadd.f32 %v14371_v61, %v13015_v14  ;;  %v13247_v46 = vadd.f32 %v14372_v5, %v2992_v15  ;;  %v13252_v56 = vadd.f32 %v14374_v45, %v14373_v37  ;;  %v14375_v52 = vld [vmem:[#allocation106_spill] sm:$0xff]  ;;  %v14376_v62 = vld [vmem:[#allocation108_spill] sm:$0xff]  ;;  %v14377_v15 = vld [vmem:[#allocation109_spill] sm:$0xff]  ;;  %v10852_v48 = vpop.f32.mrf.mxu1 }
 0x2f5   : > { %v3463_v34 = vpop.f32.mrf.mxu0  ;;  %v13255_v60 = vadd.f32 %v14375_v52, %v2994_v39  ;;  %v13261_v21 = vadd.f32 %v14377_v15, %v14376_v62  ;;  %v14379_v39 = vld [vmem:[#allocation112_spill] sm:$0xff]  ;;  %v14380_v5 = vld [vmem:[#allocation113_spill] sm:$0xff]  ;;  %v14381_v16 = vld [vmem:[#allocation114_spill] sm:$0xff]  ;;  %v13290_v35 = vadd.f32 %v13129_v8, %v3002_v31 }
 0x2f6   : > { %v3684_v25 = vmul.f32 %v13219_v50, %v3643_v55  ;;  %v3642_v19 = vadd.f32 %v3463_v34, %v3309_v9  ;;  %v14378_v34 = vld [vmem:[#allocation110_spill] sm:$0xff]  ;;  %v13270_v12 = vadd.f32 %v14380_v5, %v14379_v39  ;;  %v13273_v42 = vadd.f32 %v14381_v16, %v2998_v33 }
 0x2f7   : > { %v10893_v14 = vpop.f32.mrf.mxu0  ;;  %v13266_v61 = vadd.f32 %v14378_v34, %v2996_v53  ;;  %v13283_v53 = vadd.f32 %v13071_v59, %v3000_v24  ;;  %v13301_v24 = vadd.f32 %v13180_v1, %v3004_v44  ;;  %v13311_v5 = vadd.f32 %v10849_v3, %v13135_v18 }
 0x2f8   : > { %v3725_v9 = vadd.f32 %v13240_v43, %v3684_v25  ;;  %v3683_v55 = vmul.f32 %v13219_v50, %v3642_v19  ;;  %v3645_v27 = vadd.f32 %v10893_v14, %v3312_v32  ;;  %v13280_v32 = vadd.f32 %v13059_v41, %v13057_v0  ;;  %v14382_v14 = vld [vmem:[#allocation37_spill] sm:$0xff]  ;;  %v14383_v41 = vld [vmem:[#allocation38_spill] sm:$0xff] }
 0x2f9   : > { %v3473_v37 = vpop.f32.mrf.mxu0  ;;  %v13287_v33 = vadd.f32 %v14382_v14, %v13080_v30  ;;  %v13298_v59 = vadd.f32 %v13151_v54, %v14383_v41  ;;  %v3006_v30 = vadd.f32 %v13141_v49, %v13167_v51  ;;  %v3290_v54 = vpop.f32.mrf.mxu1  ;;  %v13323_v18 = vadd.f32 %v10852_v48, %v13157_v11 }
 0x2fa   : > { %v3761_v45 = vmul.f32 0.1, %v3725_v9  ;;  %v3724_v52 = vadd.f32 %v13240_v43, %v3683_v55  ;;  %v3686_v25 = vmul.f32 %v13219_v50, %v3645_v27  ;;  %v3644_v19 = vadd.f32 %v3473_v37, %v3311_v6 }
 0x2fb   : > { %v10896_v62 = vpop.f32.mrf.mxu0  ;;  %v13320_v37 = vadd.f32 %v3280_v20, %v3006_v30 }
 0x2fc   : > { %v13292_v15 = vmax.f32 %v3725_v9, %v3761_v45  ;;  %v3760_v55 = vmul.f32 0.1, %v3724_v52  ;;  %v3727_v6 = vadd.f32 %v13240_v43, %v3686_v25  ;;  %v3685_v0 = vmul.f32 %v13219_v50, %v3644_v19 }
 0x2fd   : > { %v3647_v8 = vadd.f32 %v10896_v62, %v3314_v28  ;;  %v3483_v31 = vpop.f32.mrf.mxu0  ;;  %v3008_v9 = vadd.f32 %v13163_v17, %v13172_v7 }
 0x2fe   : > { %v13307_v27 = vmax.f32 %v3724_v52, %v3760_v55  ;;  %v3763_v34 = vmul.f32 0.1, %v3727_v6  ;;  %v3726_v39 = vadd.f32 %v13240_v43, %v3685_v0  ;;  %v3868_v1 = vrot.slane %v13292_v15, 1  ;;  %v10855_v55 = vpop.f32.mrf.mxu1 }
 0x2ff   : > { %v3688_v16 = vmul.f32 %v13219_v50, %v3647_v8  ;;  %v3646_v49 = vadd.f32 %v3483_v31, %v13197_v10  ;;  %v10899_v51 = vpop.f32.mrf.mxu0  ;;  %v13327_v25 = vadd.f32 %v3290_v54, %v3008_v9  ;;  %v13342_v8 = vadd.f32 %v13194_v63, %v13175_v58 }
 0x300   : > { %v3867_v28 = vrot.slane %v13307_v27, 1  ;;  %v13317_v44 = vmax.f32 %v3727_v6, %v3763_v34  ;;  %v3762_v17 = vmul.f32 0.1, %v3726_v39  ;;  %v3649_v7 = vadd.f32 %v10899_v51, %v13201_v29 }
 0x301   : > { %v3729_v3 = vadd.f32 %v13240_v43, %v3688_v16  ;;  %v3687_v45 = vmul.f32 %v13219_v50, %v3646_v49  ;;  %v3493_v52 = vpop.f32.mrf.mxu0 }
 0x302   : > { %v13330_v10 = vsel %vm3866_vm0, %v3867_v28, %v3868_v1  ;;  %v3798_v19 = vmax.f32 %v3726_v39, %v3762_v17  ;;  %v3690_v14 = vmul.f32 %v13219_v50, %v3649_v7  ;;  %v3648_v48 = vadd.f32 %v3493_v52, %v13204_v38 }
 0x303   : > { %v3968_v29 = vmax.f32 %v13307_v27, %v13330_v10  ;;  %v3765_v20 = vmul.f32 0.1, %v3729_v3  ;;  %v3728_v11 = vadd.f32 %v13240_v43, %v3687_v45  ;;  %v10902_v62 = vpop.f32.mrf.mxu0  ;;  %v3872_v6 = vrot.slane %v13317_v44, 1 }
 0x304   : > { %v3870_v0 = vrot.slane %v3798_v19, 1  ;;  %v3731_v41 = vadd.f32 %v13240_v43, %v3690_v14  ;;  %v3651_v30 = vadd.f32 %v10902_v62, %v13209_v4  ;;  %v3689_v34 = vmul.f32 %v13219_v50, %v3648_v48 }
 0x305   : > { %v13344_v31 = vmax.f32 %v3729_v3, %v3765_v20  ;;  %v3764_v9 = vmul.f32 0.1, %v3728_v11  ;;  %v3503_v38 = vpop.f32.mrf.mxu0  ;;  %v13351_v4 = vadd.f32 %v10855_v55, %v13186_v47 }
 0x306   : > { %v3871_v39 = vsel %vm3866_vm0, %v3868_v1, %v3870_v0  ;;  %v3873_v54 = vsel %vm3866_vm0, %v3870_v0, %v3872_v6  ;;  %v3767_v16 = vmul.f32 0.1, %v3731_v41  ;;  %v3692_v49 = vmul.f32 %v13219_v50, %v3651_v30 }
 0x307   : > { %v3969_v58 = vmax.f32 %v13292_v15, %v3871_v39  ;;  %v3970_v63 = vmax.f32 %v3798_v19, %v3873_v54  ;;  %v3800_v51 = vmax.f32 %v3728_v11, %v3764_v9  ;;  %v10905_v28 = vpop.f32.mrf.mxu0  ;;  %v3730_v7 = vadd.f32 %v13240_v43, %v3689_v34 }
 0x308   : > { %v13354_v17 = vmax.f32 %v3731_v41, %v3767_v16  ;;  %v3733_v3 = vadd.f32 %v13240_v43, %v3692_v49  ;;  %v3650_v1 = vadd.f32 %v3503_v38, %v13212_v13  ;;  %v3876_v52 = vrot.slane %v13344_v31, 1 }
 0x309   : > { %v4049_v45 = vrot.slane %v3970_v63, 2  ;;  %v3874_v14 = vrot.slane %v3800_v51, 1  ;;  %v3653_v47 = vadd.f32 %v10905_v28, %v13216_v23  ;;  %v3513_v20 = vpop.f32.mrf.mxu0  ;;  %v3766_v19 = vmul.f32 0.1, %v3730_v7 }
 0x30a   : > { %v3880_v15 = vrot.slane %v13354_v17, 1  ;;  %v3769_v11 = vmul.f32 0.1, %v3733_v3  ;;  %v3691_v48 = vmul.f32 %v13219_v50, %v3650_v1  ;;  %v3652_v13 = vadd.f32 %v3513_v20, %v13222_v40 }
 0x30b   : > { %v3875_v62 = vsel %vm3866_vm0, %v3872_v6, %v3874_v14  ;;  %v3877_v55 = vsel %vm3866_vm0, %v3874_v14, %v3876_v52  ;;  %v3694_v0 = vmul.f32 %v13219_v50, %v3653_v47  ;;  %v10908_v41 = vpop.f32.mrf.mxu0  ;;  %v3802_v23 = vmax.f32 %v3730_v7, %v3766_v19 }
 0x30c   : > { %v3971_v30 = vmax.f32 %v13317_v44, %v3875_v62  ;;  %v13368_v9 = vmax.f32 %v3800_v51, %v3877_v55  ;;  %v3805_v34 = vmax.f32 %v3733_v3, %v3769_v11  ;;  %v3732_v38 = vadd.f32 %v13240_v43, %v3691_v48 }
 0x30d   : > { %v3735_v39 = vadd.f32 %v13240_v43, %v3694_v0  ;;  %v3693_v54 = vmul.f32 %v13219_v50, %v3652_v13  ;;  %v3655_v6 = vadd.f32 %v10908_v41, %v13226_v22  ;;  %v3523_v16 = vpop.f32.mrf.mxu0  ;;  %v3878_v40 = vrot.slane %v3802_v23, 1 }
 0x30e   : > { %v4050_v49 = vrot.slane %v3971_v30, 2  ;;  %v4052_v63 = vrot.slane %v13368_v9, 2  ;;  %v3884_v28 = vrot.slane %v3805_v34, 1  ;;  %v3768_v1 = vmul.f32 0.1, %v3732_v38 }
 0x30f   : > { %v3771_v44 = vmul.f32 0.1, %v3735_v39  ;;  %v3734_v51 = vadd.f32 %v13240_v43, %v3693_v54  ;;  %v3696_v7 = vmul.f32 %v13219_v50, %v3655_v6  ;;  %v10911_v3 = vpop.f32.mrf.mxu0  ;;  %v3879_v20 = vsel %vm3866_vm0, %v3876_v52, %v3878_v40 }
 0x310   : > { %v4051_v14 = vsel %vm4048_vm1, %v4049_v45, %v4050_v49  ;;  %v4053_v47 = vsel %vm4048_vm1, %v4050_v49, %v4052_v63  ;;  %v3881_v22 = vsel %vm3866_vm0, %v3878_v40, %v3880_v15  ;;  %v3973_v48 = vmax.f32 %v13344_v31, %v3879_v20 }
 0x311   : > { %v4150_v19 = vmax.f32 %v3968_v29, %v4051_v14  ;;  %v4151_v11 = vmax.f32 %v3969_v58, %v4053_v47  ;;  %v13385_v62 = vmax.f32 %v3802_v23, %v3881_v22  ;;  %v3533_v55 = vpop.f32.mrf.mxu0  ;;  %v3804_v0 = vmax.f32 %v3732_v38, %v3768_v1 }
 0x312   : > { %v13387_v13 = vmax.f32 %v3735_v39, %v3771_v44  ;;  %v3770_v45 = vmul.f32 0.1, %v3734_v51  ;;  %v3737_v41 = vadd.f32 %v13240_v43, %v3696_v7  ;;  %v3654_v30 = vadd.f32 %v3523_v16, %v13229_v36 }
 0x313   : > { %4184 = vst [vmem:[#allocation6] sm:$0xff] %v4150_v19  ;;  %4185 = vst [vmem:[#allocation6 + $0x8] sm:$0xff] %v4151_v11  ;;  %v4056_v52 = vrot.slane %v13385_v62, 2  ;;  %v3657_v27 = vadd.f32 %v10911_v3, %v13233_v2  ;;  %v3656_v10 = vadd.f32 %v3533_v55, %v13236_v26  ;;  %v10914_v29 = vpop.f32.mrf.mxu0  ;;  %v3882_v31 = vrot.slane %v3804_v0, 1 }
 0x314   : > { %v3888_v58 = vrot.slane %v13387_v13, 1  ;;  %v3806_v23 = vmax.f32 %v3734_v51, %v3770_v45  ;;  %v3773_v38 = vmul.f32 0.1, %v3737_v41  ;;  %v3695_v39 = vmul.f32 %v13219_v50, %v3654_v30 }
 0x315   : > { %v3698_v54 = vmul.f32 %v13219_v50, %v3657_v27  ;;  %v3697_v6 = vmul.f32 %v13219_v50, %v3656_v10  ;;  %v3659_v49 = vadd.f32 %v10914_v29, %v13244_v57  ;;  %v3543_v63 = vpop.f32.mrf.mxu0  ;;  %v3883_v36 = vsel %vm3866_vm0, %v3880_v15, %v3882_v31 }
 0x316   : > { %v3885_v2 = vsel %vm3866_vm0, %v3882_v31, %v3884_v28  ;;  %v3886_v26 = vrot.slane %v3806_v23, 1  ;;  %v3809_v16 = vmax.f32 %v3737_v41, %v3773_v38  ;;  %v3975_v40 = vmax.f32 %v13354_v17, %v3883_v36 }
 0x317   : > { %v13402_v1 = vmax.f32 %v3804_v0, %v3885_v2  ;;  %v3736_v44 = vadd.f32 %v13240_v43, %v3695_v39  ;;  %v3739_v51 = vadd.f32 %v13240_v43, %v3698_v54  ;;  %v10917_v7 = vpop.f32.mrf.mxu0  ;;  %v3738_v15 = vadd.f32 %v13240_v43, %v3697_v6 }
 0x318   : > { %v3887_v3 = vsel %vm3866_vm0, %v3884_v28, %v3886_v26  ;;  %v3889_v57 = vsel %vm3866_vm0, %v3886_v26, %v3888_v58  ;;  %v3892_v14 = vrot.slane %v3809_v16, 1  ;;  %v4058_v47 = vrot.slane %v3975_v40, 2 }
 0x319   : > { %v4060_v20 = vrot.slane %v13402_v1, 2  ;;  %v13410_v22 = vmax.f32 %v3805_v34, %v3887_v3  ;;  %v13412_v17 = vmax.f32 %v3806_v23, %v3889_v57  ;;  %v3553_v19 = vpop.f32.mrf.mxu0  ;;  %v3772_v11 = vmul.f32 0.1, %v3736_v44 }
 0x31a   : > { %v3775_v55 = vmul.f32 0.1, %v3739_v51  ;;  %v3774_v0 = vmul.f32 0.1, %v3738_v15  ;;  %v3700_v45 = vmul.f32 %v13219_v50, %v3659_v49  ;;  %v4059_v28 = vsel %vm4048_vm1, %v4056_v52, %v4058_v47  ;;  %v4218_v29 = vld [vmem:[#allocation6] ss:$2 sm:$0xff] }
 0x31b   : > { %v4061_v41 = vsel %vm4048_vm1, %v4058_v47, %v4060_v20  ;;  %v4062_v30 = vrot.slane %v13410_v22, 2  ;;  %v4064_v27 = vrot.slane %v13412_v17, 2  ;;  %v10920_v10 = vpop.f32.mrf.mxu0  ;;  %v4154_v34 = vmax.f32 %v13368_v9, %v4059_v28  ;;  %4219 = vst [vmem:[#allocation3 + $0xb] sm:$0xff] %v4218_v29 }
 0x31c   : > { %v4155_v31 = vmax.f32 %v3973_v48, %v4061_v41  ;;  %v3808_v23 = vmax.f32 %v3736_v44, %v3772_v11  ;;  %v13420_v38 = vmax.f32 %v3739_v51, %v3775_v55  ;;  %v13423_v54 = vmax.f32 %v3738_v15, %v3774_v0  ;;  %v4265_v41 = vld [vmem:[#allocation13 + $0x70] sm:$0xff] }
 0x31d   : > { %v4063_v39 = vsel %vm4048_vm1, %v4060_v20, %v4062_v30  ;;  %v3741_v52 = vadd.f32 %v13240_v43, %v3700_v45  ;;  %v3658_v6 = vadd.f32 %v3543_v63, %v13247_v46  ;;  %v3563_v49 = vpop.f32.mrf.mxu0  ;;  %4188 = vst [vmem:[#allocation6 + $0x20] sm:$0xff] %v4154_v34  ;;  %v3661_v48 = vadd.f32 %v10917_v7, %v13252_v56 }
 0x31e   : > { %4189 = vst [vmem:[#allocation6 + $0x28] sm:$0xff] %v4155_v31  ;;  %v4156_v36 = vmax.f32 %v13385_v62, %v4063_v39  ;;  %v3890_v2 = vrot.slane %v3808_v23, 1  ;;  %v3896_v9 = vrot.slane %v13420_v38, 1  ;;  %v3894_v26 = vrot.slane %v13423_v54, 1 }
 0x31f   : > { %v3777_v40 = vmul.f32 0.1, %v3741_v52  ;;  %v3699_v44 = vmul.f32 %v13219_v50, %v3658_v6  ;;  %v3660_v51 = vadd.f32 %v3553_v19, %v13255_v60  ;;  %v10923_v3 = vpop.f32.mrf.mxu0  ;;  %v3702_v62 = vmul.f32 %v13219_v50, %v3661_v48  ;;  %v4264_v6 = vld [vmem:[#allocation13 + $0x68] sm:$0xff] }
 0x320   : > { %4190 = vst [vmem:[#allocation6 + $0x30] sm:$0xff] %v4156_v36  ;;  %v3891_v46 = vsel %vm3866_vm0, %v3888_v58, %v3890_v2  ;;  %v3893_v63 = vsel %vm3866_vm0, %v3890_v2, %v3892_v14  ;;  %v3663_v57 = vadd.f32 %v10920_v10, %v13261_v21  ;;  %v3895_v7 = vsel %vm3866_vm0, %v3892_v14, %v3894_v26 }
 0x321   : > { %v3979_v15 = vmax.f32 %v13387_v13, %v3891_v46  ;;  %v3980_v56 = vmax.f32 %v3808_v23, %v3893_v63  ;;  %v13442_v47 = vsel %vm3866_vm0, %v3894_v26, %v3896_v9  ;;  %v3573_v60 = vpop.f32.mrf.mxu0  ;;  %v13444_v20 = vmax.f32 %v3809_v16, %v3895_v7  ;;  %v4263_v46 = vld [vmem:[#allocation13 + $0x60] sm:$0xff] }
 0x322   : > { %v3982_v58 = vmax.f32 %v13423_v54, %v13442_v47  ;;  %v13448_v19 = vmax.f32 %v3741_v52, %v3777_v40  ;;  %v3740_v21 = vadd.f32 %v13240_v43, %v3699_v44  ;;  %v3743_v55 = vadd.f32 %v13240_v43, %v3702_v62  ;;  %v4268_v0 = vld [vmem:[#allocation3 + $0x9] sm:$0xff] }
 0x323   : > { %v4066_v11 = vrot.slane %v3979_v15, 2  ;;  %v4068_v13 = vrot.slane %v3980_v56, 2  ;;  %v3701_v14 = vmul.f32 %v13219_v50, %v3660_v51  ;;  %v4674_v45 = vld [vmem:[#allocation3 + $0xa] sm:$0xff]  ;;  %v10926_v28 = vpop.f32.mrf.mxu0  ;;  %v4070_v16 = vrot.slane %v13444_v20, 2  ;;  %10975 = vmatmul.mubr.f32.vlgmr.msra.gmra.mxu1 %v4268_v0 }
 0x324   : > { %v3900_v30 = vrot.slane %v13448_v19, 1  ;;  %v3776_v10 = vmul.f32 0.1, %v3740_v21  ;;  %11115 = vmatprep.mubr.f32.mxu0 %v4674_v45  ;;  %v3779_v31 = vmul.f32 0.1, %v3743_v55  ;;  %v14384_v52 = vld [vmem:[#allocation107_spill] sm:$0xff]  ;;  %v3704_v62 = vmul.f32 %v13219_v50, %v3663_v57 }
 0x325   : > { %v13456_v29 = vsel %vm4048_vm1, %v4064_v27, %v4066_v11  ;;  %v4069_v34 = vsel %vm4048_vm1, %v4066_v11, %v4068_v13  ;;  %v3742_v23 = vadd.f32 %v13240_v43, %v3701_v14  ;;  %v13460_v39 = vpop.f32.mrf.mxu0  ;;  %10990 = vmatpush3.msra.mxu1 %v14384_v52  ;;  %v4071_v2 = vsel %vm4048_vm1, %v4068_v13, %v4070_v16  ;;  %v4262_v13 = vld [vmem:[#allocation13 + $0x58] sm:$0xff] }
 0x326   : > { %v4159_v36 = vmax.f32 %v13410_v22, %v4069_v34  ;;  %v3812_v48 = vmax.f32 %v3740_v21, %v3776_v10  ;;  %10991 = vmatprep.subr.mxu1 %v4265_v41  ;;  %v4160_v26 = vmax.f32 %v13412_v17, %v4071_v2  ;;  %v13466_v27 = vmax.f32 %v3743_v55, %v3779_v31  ;;  %v4261_v55 = vld [vmem:[#allocation13 + $0x50] sm:$0xff] }
 0x327   : > { %v3778_v40 = vmul.f32 0.1, %v3742_v23  ;;  %v13468_v44 = vpop.f32.mrf.mxu0  ;;  %v13470_v51 = vld [vmem:[#allocation6 + $0x24] ss:$2 sm:$0xff]  ;;  %10992 = vmatpush3.msra.mxu1 %v4265_v41  ;;  %v3662_v22 = vadd.f32 %v3563_v49, %v13266_v61  ;;  %v3665_v15 = vadd.f32 %v10923_v3, %v13270_v12  ;;  %v3664_v7 = vadd.f32 %v3573_v60, %v13273_v42 }
 0x328   : > { %4193 = vst [vmem:[#allocation6 + $0x48] sm:$0xff] %v4159_v36  ;;  %v3898_v63 = vrot.slane %v3812_v48, 1  ;;  %4222 = vst [vmem:[#allocation3 + $0x15] sm:$0xff] %v13470_v51  ;;  %10993 = vmatprep.subr.mxu1 %v4264_v6  ;;  %v3904_v17 = vrot.slane %v13466_v27, 1  ;;  %v3667_v21 = vadd.f32 %v10926_v28, %v13280_v32  ;;  %v3745_v49 = vadd.f32 %v13240_v43, %v3704_v62 }
 0x329   : > { %4194 = vst [vmem:[#allocation6 + $0x50] sm:$0xff] %v4160_v26  ;;  %v3814_v56 = vmax.f32 %v3742_v23, %v3778_v40  ;;  %v13479_v11 = vpop.f32.mrf.mxu0  ;;  %10994 = vmatpush3.msra.mxu1 %v4264_v6  ;;  %v3703_v3 = vmul.f32 %v13219_v50, %v3662_v22  ;;  %v3706_v60 = vmul.f32 %v13219_v50, %v3665_v15  ;;  %v4260_v6 = vld [vmem:[#allocation13 + $0x48] sm:$0xff]  ;;  %v5000_v40 = vld [vmem:[#allocation13 + $0x2f0] sm:$0xff] }
 0x32a   : > { %v3899_v61 = vsel %vm3866_vm0, %v3896_v9, %v3898_v63  ;;  %v3901_v12 = vsel %vm3866_vm0, %v3898_v63, %v3900_v30  ;;  %10995 = vmatprep.subr.mxu1 %v4263_v46  ;;  %v3781_v14 = vmul.f32 0.1, %v3745_v49  ;;  %v3705_v9 = vmul.f32 %v13219_v50, %v3664_v7  ;;  %v4999_v15 = vld [vmem:[#allocation13 + $0x2e8] sm:$0xff] }
 0x32b   : > { %v13488_v57 = vmax.f32 %v13420_v38, %v3899_v61  ;;  %v3984_v42 = vmax.f32 %v3812_v48, %v3901_v12  ;;  %v3902_v32 = vrot.slane %v3814_v56, 1  ;;  %10996 = vmatpush3.msra.mxu1 %v4263_v46  ;;  %v3744_v0 = vadd.f32 %v13240_v43, %v3703_v3  ;;  %v13494_v28 = vpop.f32.mrf.mxu0  ;;  %v14385_v61 = vld [vmem:[#allocation111_spill] sm:$0xff] }
 0x32c   : > { %v3708_v45 = vmul.f32 %v13219_v50, %v3667_v21  ;;  %10997 = vmatprep.subr.mxu1 %v4262_v13  ;;  %v13504_v23 = vmax.f32 %v3745_v49, %v3781_v14  ;;  %v3747_v2 = vadd.f32 %v13240_v43, %v3706_v60 }
 0x32d   : > { %v4074_v41 = vrot.slane %v13488_v57, 2  ;;  %v4076_v38 = vrot.slane %v3984_v42, 2  ;;  %v3903_v16 = vsel %vm3866_vm0, %v3900_v30, %v3902_v32  ;;  %v3905_v10 = vsel %vm3866_vm0, %v3902_v32, %v3904_v17  ;;  %10998 = vmatpush3.msra.mxu1 %v4262_v13  ;;  %v13513_v62 = vpop.f32.mrf.mxu0 }
 0x32e   : > { %v3985_v34 = vmax.f32 %v13448_v19, %v3903_v16  ;;  %v13502_v31 = vmax.f32 %v3814_v56, %v3905_v10  ;;  %v3780_v52 = vmul.f32 0.1, %v3744_v0  ;;  %10999 = vmatprep.subr.mxu1 %v4261_v55  ;;  %v3746_v30 = vadd.f32 %v13240_v43, %v3705_v9  ;;  %v4258_v9 = vld [vmem:[#allocation13 + $0x38] sm:$0xff] }
 0x32f   : > { %v4077_v36 = vsel %vm4048_vm1, %v4074_v41, %v4076_v38  ;;  %v4269_v48 = vld [vmem:[#allocation3 + $0x11] sm:$0xff]  ;;  %11000 = vmatpush3.msra.mxu1 %v4261_v55  ;;  %v3908_v56 = vrot.slane %v13504_v23, 1  ;;  %v3783_v21 = vmul.f32 0.1, %v3747_v2  ;;  %v3749_v3 = vadd.f32 %v13240_v43, %v3708_v45  ;;  %v4997_v16 = vld [vmem:[#allocation13 + $0x2d8] sm:$0xff] }
 0x330   : > { %v13509_v26 = vld [vmem:[#allocation3 + $0x12] sm:$0xff]  ;;  %v4163_v19 = vmax.f32 %v13444_v20, %v4077_v36  ;;  %v4078_v46 = vrot.slane %v3985_v34, 2  ;;  %v4080_v63 = vrot.slane %v13502_v31, 2  ;;  %10977 = vmatprep.mubr.f32.mxu1 %v4269_v48  ;;  %v3816_v7 = vmax.f32 %v3744_v0, %v3780_v52  ;;  %11001 = vmatprep.subr.mxu1 %v4260_v6  ;;  %v4259_v20 = vld [vmem:[#allocation13 + $0x40] sm:$0xff] }
 0x331   : > { %11116 = vmatmul.mubr.f32.vlgmr.msra.gmra.mxu0 %v13509_v26  ;;  %v4224_v22 = vld [vmem:[#allocation6 + $0x48] ss:$2 sm:$0xff]  ;;  %v3782_v13 = vmul.f32 0.1, %v3746_v30  ;;  %v3666_v42 = vadd.f32 %v13460_v39, %v13283_v53  ;;  %v13527_v14 = vmax.f32 %v3747_v2, %v3783_v21  ;;  %11002 = vmatpush3.msra.mxu1 %v4260_v6  ;;  %v3669_v53 = vadd.f32 %v13468_v44, %v13287_v33  ;;  %v10935_v39 = vpop.f32.mrf.mxu0 }
 0x332   : > { %4225 = vst [vmem:[#allocation3 + $0x1f] sm:$0xff] %v4224_v22  ;;  %11178 = vmatpush3.msra.mxu0 %v14385_v61  ;;  %4197 = vst [vmem:[#allocation6 + $0x68] sm:$0xff] %v4163_v19  ;;  %v4079_v12 = vsel %vm4048_vm1, %v4076_v38, %v4078_v46  ;;  %v4081_v49 = vsel %vm4048_vm1, %v4078_v46, %v4080_v63  ;;  %v3906_v55 = vrot.slane %v3816_v7, 1  ;;  %v4998_v0 = vld [vmem:[#allocation13 + $0x2e0] sm:$0xff]  ;;  %v3785_v38 = vmul.f32 0.1, %v3749_v3 }
 0x333   : > { %11179 = vmatprep.subr.mxu0 %v5000_v40  ;;  %v4164_v32 = vmax.f32 %v3982_v58, %v4079_v12  ;;  %v4165_v60 = vmax.f32 %v13488_v57, %v4081_v49  ;;  %v3818_v41 = vmax.f32 %v3746_v30, %v3782_v13  ;;  %v3707_v45 = vmul.f32 %v13219_v50, %v3666_v42  ;;  %v3613_v30 = vpop.f32.mrf.mxu0  ;;  %v4996_v22 = vld [vmem:[#allocation13 + $0x2d0] sm:$0xff]  ;;  %v4995_v13 = vld [vmem:[#allocation13 + $0x2c8] sm:$0xff] }
 0x334   : > { %11180 = vmatpush3.msra.mxu0 %v5000_v40  ;;  %11003 = vmatprep.subr.mxu1 %v4259_v20  ;;  %v3907_v54 = vsel %vm3866_vm0, %v3904_v17, %v3906_v55  ;;  %v3909_v47 = vsel %vm3866_vm0, %v3906_v55, %v3908_v56  ;;  %v3912_v58 = vrot.slane %v13527_v14, 1  ;;  %v3668_v57 = vadd.f32 %v13479_v11, %v13290_v35  ;;  %v4257_v11 = vld [vmem:[#allocation13 + $0x30] sm:$0xff] }
 0x335   : > { %11181 = vmatprep.subr.mxu0 %v4999_v15  ;;  %4198 = vst [vmem:[#allocation6 + $0x70] sm:$0xff] %v4164_v32  ;;  %4199 = vst [vmem:[#allocation6 + $0x78] sm:$0xff] %v4165_v60  ;;  %11004 = vmatpush3.msra.mxu1 %v4259_v20  ;;  %v3987_v33 = vmax.f32 %v13466_v27, %v3907_v54  ;;  %v3988_v44 = vmax.f32 %v3816_v7, %v3909_v47  ;;  %v3910_v10 = vrot.slane %v3818_v41, 1  ;;  %v4255_v54 = vld [vmem:[#allocation13 + $0x20] sm:$0xff] }
 0x336   : > { %11182 = vmatpush3.msra.mxu0 %v4999_v15  ;;  %v13540_v34 = vmax.f32 %v3749_v3, %v3785_v38  ;;  %11005 = vmatprep.subr.mxu1 %v4258_v9  ;;  %v3748_v17 = vadd.f32 %v13240_v43, %v3707_v45  ;;  %v3710_v52 = vmul.f32 %v13219_v50, %v3669_v53  ;;  %v10938_v3 = vpop.f32.mrf.mxu0  ;;  %v4994_v53 = vld [vmem:[#allocation13 + $0x2c0] sm:$0xff] }
 0x337   : > { %11183 = vmatprep.subr.mxu0 %v4998_v0  ;;  %v3709_v6 = vmul.f32 %v13219_v50, %v3668_v57  ;;  %v3671_v35 = vadd.f32 %v13494_v28, %v13298_v59  ;;  %v4084_v36 = vrot.slane %v3988_v44, 2  ;;  %v3911_v27 = vsel %vm3866_vm0, %v3908_v56, %v3910_v10  ;;  %11006 = vmatpush3.msra.mxu1 %v4258_v9  ;;  %v4993_v44 = vld [vmem:[#allocation13 + $0x2b8] sm:$0xff] }
 0x338   : > { %11184 = vmatpush3.msra.mxu0 %v4998_v0  ;;  %v3913_v2 = vsel %vm3866_vm0, %v3910_v10, %v3912_v58  ;;  %v3989_v46 = vmax.f32 %v13504_v23, %v3911_v27  ;;  %v3916_v59 = vrot.slane %v13540_v34, 1  ;;  %v3784_v28 = vmul.f32 0.1, %v3748_v17  ;;  %11007 = vmatprep.subr.mxu1 %v4257_v11  ;;  %v4256_v23 = vld [vmem:[#allocation13 + $0x28] sm:$0xff]  ;;  %v4992_v27 = vld [vmem:[#allocation13 + $0x2b0] sm:$0xff] }
 0x339   : > { %v4270_v48 = vld [vmem:[#allocation3 + $0x19] sm:$0xff]  ;;  %v4271_v19 = vld [vmem:[#allocation3 + $0x21] sm:$0xff]  ;;  %11185 = vmatprep.subr.mxu0 %v4997_v16  ;;  %v13554_v63 = vmax.f32 %v3818_v41, %v3913_v2  ;;  %v3751_v15 = vadd.f32 %v13240_v43, %v3710_v52  ;;  %v3750_v56 = vadd.f32 %v13240_v43, %v3709_v6  ;;  %v3712_v49 = vmul.f32 %v13219_v50, %v3671_v35 }
 0x33a   : > { %v13551_v40 = vld [vmem:[#allocation3 + $0x1a] sm:$0xff]  ;;  %10978 = vmatmul.mubr.f32.gmra.mxu1 %v4270_v48  ;;  %v4086_v7 = vrot.slane %v3989_v46, 2  ;;  %11186 = vmatpush3.msra.mxu0 %v4997_v16  ;;  %v3820_v61 = vmax.f32 %v3748_v17, %v3784_v28  ;;  %v3670_v55 = vadd.f32 %v13513_v62, %v13301_v24  ;;  %v3673_v0 = vadd.f32 %v10935_v39, %v13311_v5  ;;  %v3300_v48 = vpop.f32.mrf.mxu1 }
 0x33b   : > { %11118 = vmatprep.mubr.f32.mxu0 %v13551_v40  ;;  %10980 = vmatprep.mubr.f32.mxu1 %v4271_v19  ;;  %v4088_v21 = vrot.slane %v13554_v63, 2  ;;  %v3787_v20 = vmul.f32 0.1, %v3751_v15  ;;  %v3786_v12 = vmul.f32 0.1, %v3750_v56  ;;  %v3753_v57 = vadd.f32 %v13240_v43, %v3712_v49  ;;  %v4254_v6 = vld [vmem:[#allocation13 + $0x18] sm:$0xff] }
 0x33c   : > { %v4227_v42 = vld [vmem:[#allocation6 + $0x6c] ss:$2 sm:$0xff]  ;;  %11187 = vmatprep.subr.mxu0 %v4996_v22  ;;  %11008 = vmatpush3.msra.mxu1 %v4257_v11  ;;  %v4087_v32 = vsel %vm4048_vm1, %v4084_v36, %v4086_v7  ;;  %v3914_v38 = vrot.slane %v3820_v61, 1  ;;  %v3711_v16 = vmul.f32 %v13219_v50, %v3670_v55  ;;  %v3714_v24 = vmul.f32 %v13219_v50, %v3673_v0 }
 0x33d   : > { %v4089_v60 = vsel %vm4048_vm1, %v4086_v7, %v4088_v21  ;;  %4228 = vst [vmem:[#allocation3 + $0x29] sm:$0xff] %v4227_v42  ;;  %v4168_v9 = vmax.f32 %v13502_v31, %v4087_v32  ;;  %v13568_v45 = vmax.f32 %v3751_v15, %v3787_v20  ;;  %11188 = vmatpush3.msra.mxu0 %v4996_v22 }
 0x33e   : > { %10981 = vmatmul.mubr.f32.gmra.mxu1 %v4227_v42  ;;  %v4169_v41 = vmax.f32 %v3987_v33, %v4089_v60  ;;  %11009 = vmatprep.subr.mxu1 %v4256_v23  ;;  %v3822_v47 = vmax.f32 %v3750_v56, %v3786_v12  ;;  %v13576_v5 = vsel %vm3866_vm0, %v3912_v58, %v3914_v38  ;;  %v3623_v33 = vpop.f32.mrf.mxu0  ;;  %v3789_v58 = vmul.f32 0.1, %v3753_v57 }
 0x33f   : > { %11189 = vmatprep.subr.mxu0 %v4995_v13  ;;  %4202 = vst [vmem:[#allocation6 + $0x90] sm:$0xff] %v4168_v9  ;;  %v3917_v31 = vsel %vm3866_vm0, %v3914_v38, %v3916_v59  ;;  %v3920_v62 = vrot.slane %v13568_v45, 1  ;;  %v3672_v39 = vadd.f32 %v3613_v30, %v13320_v37  ;;  %11010 = vmatpush3.msra.mxu1 %v4256_v23  ;;  %v4253_v23 = vld [vmem:[#allocation13 + $0x10] sm:$0xff] }
 0x340   : > { %4203 = vst [vmem:[#allocation6 + $0x98] sm:$0xff] %v4169_v41  ;;  %11190 = vmatpush3.msra.mxu0 %v4995_v13  ;;  %v3991_v10 = vmax.f32 %v13527_v14, %v13576_v5  ;;  %v13585_v17 = vmax.f32 %v3820_v61, %v3917_v31  ;;  %v3918_v52 = vrot.slane %v3822_v47, 1  ;;  %11011 = vmatprep.subr.mxu1 %v4255_v54  ;;  %v10941_v22 = vpop.f32.mrf.mxu0  ;;  %v4990_v61 = vld [vmem:[#allocation13 + $0x2a0] sm:$0xff] }
 0x341   : > { %11191 = vmatprep.subr.mxu0 %v4994_v53  ;;  %v3752_v35 = vadd.f32 %v13240_v43, %v3711_v16  ;;  %v3755_v11 = vadd.f32 %v13240_v43, %v3714_v24  ;;  %v3713_v37 = vmul.f32 %v13219_v50, %v3672_v39  ;;  %v3675_v36 = vadd.f32 %v10938_v3, %v13323_v18  ;;  %v4251_v5 = vld [vmem:[#allocation13] sm:$0xff] }
 0x342   : > { %11192 = vmatpush3.msra.mxu0 %v4994_v53  ;;  %v4092_v2 = vrot.slane %v13585_v17, 2  ;;  %v3919_v14 = vsel %vm3866_vm0, %v3916_v59, %v3918_v52  ;;  %v3921_v30 = vsel %vm3866_vm0, %v3918_v52, %v3920_v62  ;;  %11012 = vmatpush3.msra.mxu1 %v4255_v54  ;;  %v13599_v28 = vmax.f32 %v3753_v57, %v3789_v58  ;;  %v4991_v59 = vld [vmem:[#allocation13 + $0x2a8] sm:$0xff]  ;;  %v3633_v9 = vpop.f32.mrf.mxu0  ;;  %v13639_v52 = vld [vmem:[#allocation13 + $0x178] sm:$0xff] }
 0x343   : > { %11193 = vmatprep.subr.mxu0 %v4993_v44  ;;  %v3993_v19 = vmax.f32 %v13540_v34, %v3919_v14  ;;  %v3994_v46 = vmax.f32 %v3822_v47, %v3921_v30  ;;  %v3788_v18 = vmul.f32 0.1, %v3752_v35  ;;  %11013 = vmatprep.subr.mxu1 %v4254_v6  ;;  %v3791_v7 = vmul.f32 0.1, %v3755_v11  ;;  %v4989_v47 = vld [vmem:[#allocation13 + $0x298] sm:$0xff] }
 0x344   : > { %v13601_v15 = vld [vmem:[#allocation3 + $0x22] sm:$0xff]  ;;  %v13603_v56 = vld [vmem:[#allocation3 + $0x2a] sm:$0xff]  ;;  %11194 = vmatpush3.msra.mxu0 %v4993_v44  ;;  %v3754_v21 = vadd.f32 %v13240_v43, %v3713_v37  ;;  %v3343_v20 = vadd.f32 %v3300_v48, %v13342_v8  ;;  %11014 = vmatpush3.msra.mxu1 %v4254_v6  ;;  %v3716_v55 = vmul.f32 %v13219_v50, %v3675_v36  ;;  %v3924_v53 = vrot.slane %v13599_v28, 1  ;;  %v11544_v6 = vld [vmem:[#allocation12] ss:$0 sm:$0xff] }
 0x345   : > { %11119 = vmatmul.mubr.f32.gmra.mxu0 %v13601_v15  ;;  %11195 = vmatprep.subr.mxu0 %v4992_v27  ;;  %v4094_v13 = vrot.slane %v3993_v19, 2  ;;  %v13607_v34 = vrot.slane %v3994_v46, 2  ;;  %v13611_v12 = vmax.f32 %v3752_v35, %v3788_v18  ;;  %v13613_v49 = vmax.f32 %v3755_v11, %v3791_v7  ;;  %v4252_v8 = vld [vmem:[#allocation13 + $0x8] sm:$0xff]  ;;  %v4986_v7 = vld [vmem:[#allocation13 + $0x280] sm:$0xff] }
 0x346   : > { %11121 = vmatprep.mubr.f32.mxu0 %v13603_v56  ;;  %11196 = vmatpush3.msra.mxu0 %v4992_v27  ;;  %v3790_v3 = vmul.f32 0.1, %v3754_v21  ;;  %v3674_v0 = vadd.f32 %v3623_v33, %v13327_v25  ;;  %v3757_v16 = vadd.f32 %v13240_v43, %v3716_v55  ;;  %v3677_v24 = vadd.f32 %v10941_v22, %v13351_v4  ;;  %v4988_v43 = vld [vmem:[#allocation13 + $0x290] sm:$0xff]  ;;  %v4987_v27 = vld [vmem:[#allocation13 + $0x288] sm:$0xff] }
 0x347   : > { %v13615_v42 = vld [vmem:[#allocation6 + $0x90] ss:$2 sm:$0xff]  ;;  %11197 = vmatprep.subr.mxu0 %v4991_v59  ;;  %v4095_v32 = vsel %vm4048_vm1, %v4092_v2, %v4094_v13  ;;  %v4097_v60 = vsel %vm4048_vm1, %v4094_v13, %v13607_v34  ;;  %v3922_v54 = vrot.slane %v13611_v12, 1  ;;  %11015 = vmatprep.subr.mxu1 %v4253_v23  ;;  %v3928_v39 = vrot.slane %v13613_v49, 1 }
 0x348   : > { %4231 = vst [vmem:[#allocation3 + $0x33] sm:$0xff] %v13615_v42  ;;  %11198 = vmatpush3.msra.mxu0 %v4991_v59  ;;  %v4172_v41 = vmax.f32 %v13554_v63, %v4095_v32  ;;  %v4173_v38 = vmax.f32 %v3991_v10, %v4097_v60  ;;  %v3826_v57 = vmax.f32 %v3754_v21, %v3790_v3  ;;  %v3793_v10 = vmul.f32 0.1, %v3757_v16  ;;  %v13651_v3 = vld [vmem:[#allocation13 + $0x3f8] sm:$0xff] }
 0x349   : > { %11199 = vmatprep.subr.mxu0 %v4990_v61  ;;  %v3715_v25 = vmul.f32 %v13219_v50, %v3674_v0  ;;  %11016 = vmatpush3.msra.mxu1 %v4253_v23  ;;  %v3923_v63 = vsel %vm3866_vm0, %v3920_v62, %v3922_v54  ;;  %v13633_v31 = vsel %vm3866_vm0, %v3922_v54, %v3924_v53  ;;  %v11543_v62 = vld [vmem:[#allocation12 + $0x1] ss:$0 sm:$0xff] }
 0x34a   : > { %4206 = vst [vmem:[#allocation6 + $0xb0] sm:$0xff] %v4172_v41  ;;  %4207 = vst [vmem:[#allocation6 + $0xb8] sm:$0xff] %v4173_v38  ;;  %v3676_v33 = vadd.f32 %v3633_v9, %v3343_v20  ;;  %11200 = vmatpush3.msra.mxu0 %v4990_v61  ;;  %11017 = vmatprep.subr.mxu1 %v4252_v8  ;;  %v3995_v50 = vmax.f32 %v13568_v45, %v3923_v63  ;;  %v3926_v44 = vrot.slane %v3826_v57, 1 }
 0x34b   : > { %v3996_v4 = vmax.f32 %v13611_v12, %v13633_v31  ;;  %11201 = vmatprep.subr.mxu0 %v4989_v47  ;;  %11018 = vmatpush3.msra.mxu1 %v4252_v8  ;;  %v3756_v58 = vadd.f32 %v11543_v62, %v3715_v25  ;;  %v3718_v35 = vmul.f32 %v11544_v6, %v3677_v24 }
 0x34c   : > { %v3717_v11 = vmul.f32 %v11544_v6, %v3676_v33  ;;  %11202 = vmatpush3.msra.mxu0 %v4989_v47  ;;  %11019 = vmatprep.subr.mxu1 %v4251_v5  ;;  %v4098_v37 = vrot.slane %v3995_v50, 2  ;;  %v3927_v36 = vsel %vm3866_vm0, %v3924_v53, %v3926_v44  ;;  %v3929_v45 = vsel %vm3866_vm0, %v3926_v44, %v3928_v39 }
 0x34d   : > { %11203 = vmatprep.subr.mxu0 %v4988_v43  ;;  %11020 = vmatpush3.msra.mxu1 %v4251_v5  ;;  %v3997_v2 = vmax.f32 %v13599_v28, %v3927_v36  ;;  %v3998_v14 = vmax.f32 %v3826_v57, %v3929_v45  ;;  %v3829_v30 = vmax.f32 %v3757_v16, %v3793_v10  ;;  %v3792_v48 = vmul.f32 0.1, %v3756_v58  ;;  %v13677_v45 = vld [vmem:[#allocation2] sm:$0xff] }
 0x34e   : > { %11204 = vmatpush3.msra.mxu0 %v4988_v43  ;;  %11036 = vmatprep.subr.mxu1 %v13639_v52  ;;  %v4099_v18 = vsel %vm4048_vm1, %v13607_v34, %v4098_v37  ;;  %v3759_v22 = vadd.f32 %v11543_v62, %v3718_v35  ;;  %v3758_v59 = vadd.f32 %v11543_v62, %v3717_v11 }
 0x34f   : > { %v4273_v19 = vld [vmem:[#allocation3 + $0x31] sm:$0xff]  ;;  %v4174_v21 = vmax.f32 %v13585_v17, %v4099_v18  ;;  %v4102_v13 = vrot.slane %v3997_v2, 2  ;;  %v4104_v28 = vrot.slane %v3998_v14, 2  ;;  %11205 = vmatprep.subr.mxu0 %v4987_v27  ;;  %v3828_v23 = vmax.f32 %v3756_v58, %v3792_v48  ;;  %v4242_v14 = vld [vmem:[#allocation3 + $0x8] sm:$0xff] }
 0x350   : > { %v13644_v46 = vld [vmem:[#allocation3 + $0x32] sm:$0xff]  ;;  %10983 = vmatprep.mubr.f32.mxu1 %v4273_v19  ;;  %v3795_v61 = vmul.f32 0.1, %v3759_v22  ;;  %v3794_v20 = vmul.f32 0.1, %v3758_v59  ;;  %11206 = vmatpush3.msra.mxu0 %v4987_v27  ;;  %v4158_v32 = vmax.f32 %v13402_v1, %v13456_v29  ;;  %v3932_v17 = vrot.slane %v3829_v30, 1 }
 0x351   : > { %11122 = vmatmul.mubr.f32.gmra.mxu0 %v13644_v46  ;;  %4208 = vst [vmem:[#allocation6 + $0xc0] sm:$0xff] %v4174_v21  ;;  %v4105_v34 = vsel %vm4048_vm1, %v4102_v13, %v4104_v28  ;;  %11207 = vmatprep.subr.mxu0 %v4986_v7  ;;  %v3930_v55 = vrot.slane %v3828_v23, 1  ;;  %v4243_v48 = vld [vmem:[#allocation3 + $0x10] sm:$0xff]  ;;  %v4245_v21 = vld [vmem:[#allocation3 + $0x20] sm:$0xff] }
 0x352   : > { %v4177_v60 = vmax.f32 %v3995_v50, %v4105_v34  ;;  %11208 = vmatpush3.msra.mxu0 %v4986_v7  ;;  %v3831_v0 = vmax.f32 %v3759_v22, %v3795_v61  ;;  %v3830_v9 = vmax.f32 %v3758_v59, %v3794_v20  ;;  %4192 = vst [vmem:[#allocation6 + $0x40] sm:$0xff] %v4158_v32  ;;  %v4976_v19 = vld [vmem:[#allocation3 + $0xc] sm:$0xff]  ;;  %v4244_v22 = vld [vmem:[#allocation3 + $0x18] sm:$0xff]  ;;  %v4545_v7 = vld [vmem:[#allocation13 + $0x160] sm:$0xff] }
 0x353   : > { %11271 = vmatprep.subr.mxu0 %v13651_v3  ;;  %v3931_v8 = vsel %vm3866_vm0, %v3928_v39, %v3930_v55  ;;  %v3933_v41 = vsel %vm3866_vm0, %v3930_v55, %v3932_v17  ;;  %v4001_v16 = vmax.f32 %v3829_v30, %v3932_v17  ;;  %v4546_v18 = vld [vmem:[#allocation13 + $0x168] sm:$0xff]  ;;  %v13684_v59 = vld [vmem:[#allocation3 + $0x14] sm:$0xff]  ;;  %v5300_v32 = vld [vmem:[#allocation13 + $0x3e0] sm:$0xff] }
 0x354   : > { %4211 = vst [vmem:[#allocation6 + $0xd8] sm:$0xff] %v4177_v60  ;;  %v3999_v38 = vmax.f32 %v13613_v49, %v3931_v8  ;;  %v4000_v53 = vmax.f32 %v3828_v23, %v3933_v41  ;;  %v4006_v54 = vrot.slane %v3831_v0, 1  ;;  %v4004_v47 = vrot.slane %v3830_v9, 1  ;;  %v5302_v13 = vld [vmem:[#allocation13 + $0x3f0] sm:$0xff]  ;;  %v5301_v23 = vld [vmem:[#allocation13 + $0x3e8] sm:$0xff]  ;;  %v5299_v55 = vld [vmem:[#allocation13 + $0x3d8] sm:$0xff] }
 0x355   : > { %v4246_v61 = vld [vmem:[#allocation3 + $0x28] sm:$0xff]  ;;  %v4543_v34 = vld [vmem:[#allocation13 + $0x150] sm:$0xff] }
 0x356   : > { %v4106_v1 = vrot.slane %v3999_v38, 2  ;;  %v4013_v29 = vmax.f32 %v3831_v0, %v4006_v54  ;;  %v4005_v57 = vsel %vm3866_vm0, %v3932_v17, %v4004_v47  ;;  %v4007_v25 = vsel %vm3866_vm0, %v4004_v47, %v4006_v54  ;;  %v13691_v20 = vld [vmem:[#allocation3 + $0x24] sm:$0xff]  ;;  %v13694_v60 = vld [vmem:[#allocation3 + $0x2c] sm:$0xff]  ;;  %v4540_v54 = vld [vmem:[#allocation13 + $0x138] sm:$0xff] }
 0x357   : > { %v4011_v24 = vmax.f32 %v3829_v30, %v4005_v57  ;;  %v4012_v33 = vmax.f32 %v3830_v9, %v4007_v25  ;;  %v4547_v30 = vld [vmem:[#allocation13 + $0x170] sm:$0xff]  ;;  %v4542_v17 = vld [vmem:[#allocation13 + $0x148] sm:$0xff]  ;;  %v4541_v8 = vld [vmem:[#allocation13 + $0x140] sm:$0xff] }
 0x358   : > { %v13662_v5 = vld [vmem:[#allocation6 + $0xb4] ss:$2 sm:$0xff]  ;;  %v4107_v63 = vsel %vm4048_vm1, %v4104_v28, %v4106_v1  ;;  %v4114_v39 = vrot.slane %v4013_v29, 2  ;;  %v5297_v47 = vld [vmem:[#allocation13 + $0x3c8] sm:$0xff] }
 0x359   : > { %4234 = vst [vmem:[#allocation3 + $0x3d] sm:$0xff] %v13662_v5  ;;  %v4178_v49 = vmax.f32 %v3996_v4, %v4107_v63  ;;  %v4110_v43 = vrot.slane %v4011_v24, 2  ;;  %v4112_v44 = vrot.slane %v4012_v33, 2  ;;  %v4544_v28 = vld [vmem:[#allocation13 + $0x158] sm:$0xff]  ;;  %v4539_v29 = vld [vmem:[#allocation13 + $0x130] sm:$0xff]  ;;  %v4538_v24 = vld [vmem:[#allocation13 + $0x128] sm:$0xff] }
 0x35a   : > { %v4183_v50 = vmax.f32 %v4001_v16, %v4114_v39  ;;  %v13697_v9 = vld [vmem:[#allocation3 + $0x34] sm:$0xff]  ;;  %v5296_v16 = vld [vmem:[#allocation13 + $0x3c0] sm:$0xff] }
 0x35b   : > { %4212 = vst [vmem:[#allocation6 + $0xe0] sm:$0xff] %v4178_v49  ;;  %v4113_v10 = vsel %vm4048_vm1, %v4110_v43, %v4112_v44  ;;  %v4115_v62 = vsel %vm4048_vm1, %v4112_v44, %v4114_v39  ;;  %v5295_v63 = vld [vmem:[#allocation13 + $0x3b8] sm:$0xff]  ;;  %v4537_v39 = vld [vmem:[#allocation13 + $0x120] sm:$0xff]  ;;  %v5294_v49 = vld [vmem:[#allocation13 + $0x3b0] sm:$0xff] }
 0x35c   : > { %4217 = vst [vmem:[#allocation6 + $0x108] sm:$0x1f] %v4183_v50  ;;  %v4181_v58 = vmax.f32 %v3999_v38, %v4113_v10  ;;  %v4182_v6 = vmax.f32 %v4000_v53, %v4115_v62  ;;  %v5298_v38 = vld [vmem:[#allocation13 + $0x3d0] sm:$0xff]  ;;  %v4536_v43 = vld [vmem:[#allocation13 + $0x118] sm:$0xff]  ;;  %v5293_v50 = vld [vmem:[#allocation13 + $0x3a8] sm:$0xff] }
 0x35d   : > { %v4535_v44 = vld [vmem:[#allocation13 + $0x110] sm:$0xff]  ;;  %v5292_v10 = vld [vmem:[#allocation13 + $0x3a0] sm:$0xff]  ;;  %v4534_v62 = vld [vmem:[#allocation13 + $0x108] sm:$0xff] }
 0x35e   : > { %4215 = vst [vmem:[#allocation6 + $0xf8] sm:$0xff] %v4181_v58  ;;  %4216 = vst [vmem:[#allocation6 + $0x100] sm:$0xff] %v4182_v6  ;;  %v5291_v58 = vld [vmem:[#allocation13 + $0x398] sm:$0xff]  ;;  %v4533_v6 = vld [vmem:[#allocation13 + $0x100] sm:$0xff] }
 0x360   : > { %v4274_v35 = vld [vmem:[#allocation3 + $0x39] sm:$0xff] }
 0x361   : > { %v13671_v11 = vld [vmem:[#allocation3 + $0x3a] sm:$0xff]  ;;  %10984 = vmatmul.mubr.f32.gmra.mxu1 %v4274_v35  ;;  %v5290_v35 = vld [vmem:[#allocation13 + $0x390] sm:$0xff] }
 0x362   : > { %11124 = vmatprep.mubr.f32.mxu0 %v13671_v11  ;;  %v4236_v12 = vld [vmem:[#allocation6 + $0xd8] ss:$2 sm:$0xff] }
 0x363   : > { %4237 = vst [vmem:[#allocation3 + $0x47] sm:$0xff] %v4236_v12  ;;  %v4248_v0 = vld [vmem:[#allocation3 + $0x38] sm:$0xff]  ;;  %v4523_v12 = vld [vmem:[#allocation3 + $0x2] sm:$0xff] }
 0x364   : > { %v13700_v53 = vld [vmem:[#allocation3 + $0x3c] sm:$0xff] }
 0x365   : > { %v4239_v31 = vld [vmem:[#allocation6 + $0xfc] ss:$2 sm:$0xff] }
 0x366   : > { %4240 = vst [vmem:[#allocation3 + $0x51] sm:$0xff] %v4239_v31  ;;  %v5289_v31 = vld [vmem:[#allocation13 + $0x388] sm:$0xff] }
 0x36a   : > { %v4275_v4 = vld [vmem:[#allocation3 + $0x41] sm:$0xff]  ;;  %v4276_v36 = vld [vmem:[#allocation3 + $0x49] sm:$0xff] }
 0x36b   : > { %v13674_v37 = vld [vmem:[#allocation3 + $0x42] sm:$0xff]  ;;  %10986 = vmatprep.mubr.f32.mxu1 %v4275_v4  ;;  %v11546_v4 = vld [vmem:[#allocation3 + $0xa] sm:$0xff] }
 0x36c   : > { %11125 = vmatmul.mubr.f32.gmra.mxu0 %v13674_v37  ;;  %10987 = vmatmul.mubr.f32.gmra.mxu1 %v4276_v36  ;;  %v4249_v41 = vld [vmem:[#allocation3 + $0x40] sm:$0xff]  ;;  %v4250_v1 = vld [vmem:[#allocation3 + $0x48] sm:$0xff]  ;;  %v4849_v36 = vld [vmem:[#allocation13 + $0x270] sm:$0xff] }
 0x36d   : > { %11021 = vmatprep.mubr.f32.mxu1 %v13677_v45  ;;  %v13680_v27 = vld [vmem:[#allocation3 + $0x4a] sm:$0xff]  ;;  %v4683_v2 = vld [vmem:[#allocation3 + $0x52] sm:$0xff] }
 0x36e   : > { %11127 = vmatprep.mubr.f32.mxu0 %v13680_v27  ;;  %v13703_v57 = vld [vmem:[#allocation3 + $0x44] sm:$0xff]  ;;  %v13706_v25 = vld [vmem:[#allocation3 + $0x4c] sm:$0xff]  ;;  %v13709_v33 = vld [vmem:[#allocation3 + $0x54] sm:$0xff] }
 0x370   : > { %11022 = vmatmul.mubr.f32.vlgmr.msra.gmra.mxu1 %v4242_v14  ;;  %11128 = vmatmul.mubr.f32.gmra.mxu0 %v4683_v2  ;;  %v5288_v2 = vld [vmem:[#allocation13 + $0x380] sm:$0xff]  ;;  %v4848_v14 = vld [vmem:[#allocation13 + $0x268] sm:$0xff] }
 0x371   : > { %11037 = vmatpush3.msra.mxu1 %v13639_v52  ;;  %11024 = vmatprep.mubr.f32.mxu1 %v4243_v48  ;;  %v13688_v52 = vld [vmem:[#allocation3 + $0x1c] sm:$0xff] }
 0x372   : > { %11038 = vmatprep.subr.mxu1 %v4547_v30  ;;  %11209 = vmatprep.mubr.f32.mxu0 %v4976_v19  ;;  %v4847_v48 = vld [vmem:[#allocation13 + $0x260] sm:$0xff] }
 0x373   : > { %11039 = vmatpush3.msra.mxu1 %v4547_v30  ;;  %v5279_v30 = vld [vmem:[#allocation3 + $0x1d] sm:$0xff]  ;;  %v5280_v19 = vld [vmem:[#allocation3 + $0x25] sm:$0xff] }
 0x374   : > { %11040 = vmatprep.subr.mxu1 %v4546_v18  ;;  %11025 = vmatmul.mubr.f32.gmra.mxu1 %v4244_v22  ;;  %v4845_v22 = vld [vmem:[#allocation13 + $0x250] sm:$0xff] }
 0x375   : > { %11041 = vmatpush3.msra.mxu1 %v4546_v18  ;;  %11210 = vmatmul.mubr.f32.vlgmr.msra.gmra.mxu0 %v13684_v59  ;;  %v4846_v18 = vld [vmem:[#allocation13 + $0x258] sm:$0xff] }
 0x376   : > { %11272 = vmatpush3.msra.mxu0 %v13651_v3  ;;  %11027 = vmatprep.mubr.f32.mxu1 %v4245_v21  ;;  %v4247_v3 = vld [vmem:[#allocation3 + $0x30] sm:$0xff]  ;;  %v4842_v21 = vld [vmem:[#allocation13 + $0x238] sm:$0xff] }
 0x377   : > { %11042 = vmatprep.subr.mxu1 %v4545_v7  ;;  %11212 = vmatprep.mubr.f32.mxu0 %v13688_v52 }
 0x378   : > { %11273 = vmatprep.subr.mxu0 %v5302_v13  ;;  %11043 = vmatpush3.msra.mxu1 %v4545_v7  ;;  %v4844_v7 = vld [vmem:[#allocation13 + $0x248] sm:$0xff] }
 0x379   : > { %11274 = vmatpush3.msra.mxu0 %v5302_v13  ;;  %11044 = vmatprep.subr.mxu1 %v4544_v28  ;;  %v4841_v13 = vld [vmem:[#allocation13 + $0x230] sm:$0xff] }
 0x37a   : > { %11275 = vmatprep.subr.mxu0 %v5301_v23  ;;  %11028 = vmatmul.mubr.f32.gmra.mxu1 %v4246_v61  ;;  %v4838_v61 = vld [vmem:[#allocation13 + $0x218] sm:$0xff] }
 0x37b   : > { %11045 = vmatpush3.msra.mxu1 %v4544_v28  ;;  %11213 = vmatmul.mubr.f32.gmra.mxu0 %v13691_v20  ;;  %v5286_v28 = vld [vmem:[#allocation3 + $0x55] sm:$0xff] }
 0x37c   : > { %11276 = vmatpush3.msra.mxu0 %v5301_v23  ;;  %11030 = vmatprep.mubr.f32.mxu1 %v4247_v3  ;;  %v5287_v23 = vld [vmem:[#allocation3 + $0x5d] sm:$0xff] }
 0x37d   : > { %11046 = vmatprep.subr.mxu1 %v4543_v34  ;;  %11215 = vmatprep.mubr.f32.mxu0 %v13694_v60  ;;  %v4835_v3 = vld [vmem:[#allocation13 + $0x200] sm:$0xff] }
 0x37e   : > { %11277 = vmatprep.subr.mxu0 %v5300_v32  ;;  %11047 = vmatpush3.msra.mxu1 %v4543_v34  ;;  %v4836_v34 = vld [vmem:[#allocation13 + $0x208] sm:$0xff] }
 0x37f   : > { %11278 = vmatpush3.msra.mxu0 %v5300_v32  ;;  %11048 = vmatprep.subr.mxu1 %v4542_v17  ;;  %v5152_v32 = vld [vmem:[#allocation13 + $0x378] sm:$0xff] }
 0x380   : > { %11279 = vmatprep.subr.mxu0 %v5299_v55  ;;  %11031 = vmatmul.mubr.f32.gmra.mxu1 %v4248_v0  ;;  %v4827_v0 = vld [vmem:[#allocation3 + $0x1b] sm:$0xff] }
 0x381   : > { %11049 = vmatpush3.msra.mxu1 %v4542_v17  ;;  %11216 = vmatmul.mubr.f32.gmra.mxu0 %v13697_v9  ;;  %v4826_v17 = vld [vmem:[#allocation3 + $0x13] sm:$0xff] }
 0x382   : > { %11280 = vmatpush3.msra.mxu0 %v5299_v55  ;;  %11033 = vmatprep.mubr.f32.mxu1 %v4249_v41  ;;  %v5151_v55 = vld [vmem:[#allocation13 + $0x370] sm:$0xff]  ;;  %v4828_v41 = vld [vmem:[#allocation3 + $0x23] sm:$0xff] }
 0x383   : > { %11050 = vmatprep.subr.mxu1 %v4541_v8  ;;  %11218 = vmatprep.mubr.f32.mxu0 %v13700_v53 }
 0x384   : > { %11281 = vmatprep.subr.mxu0 %v5298_v38  ;;  %11051 = vmatpush3.msra.mxu1 %v4541_v8  ;;  %v5150_v8 = vld [vmem:[#allocation13 + $0x368] sm:$0xff] }
 0x385   : > { %11282 = vmatpush3.msra.mxu0 %v5298_v38  ;;  %11052 = vmatprep.subr.mxu1 %v4540_v54  ;;  %v5149_v38 = vld [vmem:[#allocation13 + $0x360] sm:$0xff] }
 0x386   : > { %11283 = vmatprep.subr.mxu0 %v5297_v47  ;;  %11034 = vmatmul.mubr.f32.gmra.mxu1 %v4250_v1  ;;  %v5147_v1 = vld [vmem:[#allocation13 + $0x350] sm:$0xff] }
 0x387   : > { %11053 = vmatpush3.msra.mxu1 %v4540_v54  ;;  %11219 = vmatmul.mubr.f32.gmra.mxu0 %v13703_v57  ;;  %v4829_v54 = vld [vmem:[#allocation3 + $0x2b] sm:$0xff] }
 0x388   : > { %11284 = vmatpush3.msra.mxu0 %v5297_v47  ;;  %11054 = vmatprep.subr.mxu1 %v4539_v29  ;;  %v5148_v47 = vld [vmem:[#allocation13 + $0x358] sm:$0xff] }
 0x389   : > { %11221 = vmatprep.mubr.f32.mxu0 %v13706_v25  ;;  %11285 = vmatprep.subr.mxu0 %v5296_v16 }
 0x38a   : > { %11055 = vmatpush3.msra.mxu1 %v4539_v29  ;;  %11286 = vmatpush3.msra.mxu0 %v5296_v16  ;;  %v4831_v29 = vld [vmem:[#allocation3 + $0x3b] sm:$0xff]  ;;  %v5146_v16 = vld [vmem:[#allocation13 + $0x348] sm:$0xff] }
 0x38b   : > { %11056 = vmatprep.subr.mxu1 %v4538_v24  ;;  %11287 = vmatprep.subr.mxu0 %v5295_v63 }
 0x38c   : > { %11057 = vmatpush3.msra.mxu1 %v4538_v24  ;;  %11222 = vmatmul.mubr.f32.gmra.mxu0 %v13709_v33  ;;  %v4832_v24 = vld [vmem:[#allocation3 + $0x43] sm:$0xff] }
 0x38d   : > { %11288 = vmatpush3.msra.mxu0 %v5295_v63  ;;  %11058 = vmatprep.subr.mxu1 %v4537_v39  ;;  %v5145_v63 = vld [vmem:[#allocation13 + $0x340] sm:$0xff] }
 0x38e   : > { %11289 = vmatprep.subr.mxu0 %v5294_v49  ;;  %11303 = vmatprep.mubr.f32.mxu0 %v13470_v51  ;;  %v4850_v51 = vld [vmem:[#allocation13 + $0x278] sm:$0xff] }
 0x38f   : > { %11059 = vmatpush3.msra.mxu1 %v4537_v39  ;;  %11290 = vmatpush3.msra.mxu0 %v5294_v49  ;;  %v4833_v39 = vld [vmem:[#allocation3 + $0x4b] sm:$0xff]  ;;  %v5144_v49 = vld [vmem:[#allocation13 + $0x338] sm:$0xff] }
 0x390   : > { %11060 = vmatprep.subr.mxu1 %v4536_v43  ;;  %11291 = vmatprep.subr.mxu0 %v5293_v50 }
 0x391   : > { %11061 = vmatpush3.msra.mxu1 %v4536_v43  ;;  %11292 = vmatpush3.msra.mxu0 %v5293_v50  ;;  %v4834_v43 = vld [vmem:[#allocation3 + $0x53] sm:$0xff] }
 0x392   : > { %11062 = vmatprep.subr.mxu1 %v4535_v44  ;;  %11293 = vmatprep.subr.mxu0 %v5292_v10  ;;  %v5143_v50 = vld [vmem:[#allocation13 + $0x330] sm:$0xff] }
 0x393   : > { %11063 = vmatpush3.msra.mxu1 %v4535_v44  ;;  %11294 = vmatpush3.msra.mxu0 %v5292_v10  ;;  %v5141_v44 = vld [vmem:[#allocation13 + $0x320] sm:$0xff]  ;;  %v5140_v10 = vld [vmem:[#allocation13 + $0x318] sm:$0xff] }
 0x394   : > { %11064 = vmatprep.subr.mxu1 %v4534_v62  ;;  %11295 = vmatprep.subr.mxu0 %v5291_v58 }
 0x395   : > { %11065 = vmatpush3.msra.mxu1 %v4534_v62  ;;  %11296 = vmatpush3.msra.mxu0 %v5291_v58  ;;  %v5139_v62 = vld [vmem:[#allocation13 + $0x310] sm:$0xff]  ;;  %v5138_v58 = vld [vmem:[#allocation13 + $0x308] sm:$0xff] }
 0x396   : > { %11066 = vmatprep.subr.mxu1 %v4533_v6  ;;  %11297 = vmatprep.subr.mxu0 %v5290_v35 }
 0x397   : > { %11067 = vmatpush3.msra.mxu1 %v4533_v6  ;;  %11068 = vmatprep.mubr.f32.mxu1 %v4523_v12  ;;  %v5137_v6 = vld [vmem:[#allocation13 + $0x300] sm:$0xff]  ;;  %v5452_v12 = vld [vmem:[#allocation13 + $0x468] sm:$0xff] }
 0x398   : > { %11298 = vmatpush3.msra.mxu0 %v5290_v35  ;;  %11069 = vmatmul.mubr.f32.vlgmr.msra.gmra.mxu1 %v11546_v4  ;;  %v5454_v35 = vld [vmem:[#allocation13 + $0x478] sm:$0xff]  ;;  %v5449_v4 = vld [vmem:[#allocation13 + $0x450] sm:$0xff] }
 0x399   : > { %11130 = vmatprep.subr.mxu1 %v4850_v51  ;;  %11299 = vmatprep.subr.mxu0 %v5289_v31 }
 0x39a   : > { %11071 = vmatprep.mubr.f32.mxu1 %v13509_v26  ;;  %11131 = vmatpush3.msra.mxu1 %v4850_v51  ;;  %v5281_v26 = vld [vmem:[#allocation3 + $0x2d] sm:$0xff]  ;;  %v5451_v51 = vld [vmem:[#allocation13 + $0x460] sm:$0xff] }
 0x39b   : > { %11300 = vmatpush3.msra.mxu0 %v5289_v31  ;;  %11132 = vmatprep.subr.mxu1 %v4849_v36  ;;  %v5450_v31 = vld [vmem:[#allocation13 + $0x458] sm:$0xff] }
 0x39c   : > { %11301 = vmatprep.subr.mxu0 %v5288_v2  ;;  %11133 = vmatpush3.msra.mxu1 %v4849_v36  ;;  %v5445_v36 = vld [vmem:[#allocation13 + $0x430] sm:$0xff] }
 0x39d   : > { %11302 = vmatpush3.msra.mxu0 %v5288_v2  ;;  %11072 = vmatmul.mubr.f32.gmra.mxu1 %v13551_v40  ;;  %v5282_v40 = vld [vmem:[#allocation3 + $0x35] sm:$0xff]  ;;  %v5443_v2 = vld [vmem:[#allocation13 + $0x420] sm:$0xff] }
 0x39e   : > { %11134 = vmatprep.subr.mxu1 %v4848_v14  ;;  %11304 = vmatmul.mubr.f32.vlgmr.msra.gmra.mxu0 %v5279_v30  ;;  %v5439_v30 = vld [vmem:[#allocation13 + $0x400] sm:$0xff] }
 0x39f   : > { %11074 = vmatprep.mubr.f32.mxu1 %v13601_v15  ;;  %11135 = vmatpush3.msra.mxu1 %v4848_v14  ;;  %v4843_v15 = vld [vmem:[#allocation13 + $0x240] sm:$0xff]  ;;  %v5440_v14 = vld [vmem:[#allocation13 + $0x408] sm:$0xff] }
 0x3a0   : > { %11306 = vmatprep.mubr.f32.mxu0 %v5280_v19  ;;  %11136 = vmatprep.subr.mxu1 %v4847_v48  ;;  %v5431_v19 = vld [vmem:[#allocation3 + $0x26] sm:$0xff] }
 0x3a1   : > { %11137 = vmatpush3.msra.mxu1 %v4847_v48  ;;  %v5430_v48 = vld [vmem:[#allocation3 + $0x1e] sm:$0xff] }
 0x3a2   : > { %11075 = vmatmul.mubr.f32.gmra.mxu1 %v13603_v56  ;;  %11138 = vmatprep.subr.mxu1 %v4846_v18  ;;  %v5284_v56 = vld [vmem:[#allocation3 + $0x45] sm:$0xff] }
 0x3a3   : > { %11307 = vmatmul.mubr.f32.gmra.mxu0 %v5281_v26  ;;  %11077 = vmatprep.mubr.f32.mxu1 %v13644_v46  ;;  %v5285_v46 = vld [vmem:[#allocation3 + $0x4d] sm:$0xff]  ;;  %v5433_v26 = vld [vmem:[#allocation3 + $0x36] sm:$0xff] }
 0x3a4   : > { %11139 = vmatpush3.msra.mxu1 %v4846_v18  ;;  %11309 = vmatprep.mubr.f32.mxu0 %v5282_v40  ;;  %v5432_v18 = vld [vmem:[#allocation3 + $0x2e] sm:$0xff]  ;;  %v5435_v40 = vld [vmem:[#allocation3 + $0x46] sm:$0xff] }
 0x3a5   : > { %11140 = vmatprep.subr.mxu1 %v4845_v22 }
 0x3a6   : > { %11141 = vmatpush3.msra.mxu1 %v4845_v22  ;;  %v5434_v22 = vld [vmem:[#allocation3 + $0x3e] sm:$0xff] }
 0x3a7   : > { %11078 = vmatmul.mubr.f32.gmra.mxu1 %v13671_v11  ;;  %11142 = vmatprep.subr.mxu1 %v4844_v7  ;;  %v4825_v11 = vld [vmem:[#allocation3 + $0xb] sm:$0xff] }
 0x3a8   : > { %11310 = vmatmul.mubr.f32.gmra.mxu0 %v13662_v5  ;;  %11080 = vmatprep.mubr.f32.mxu1 %v13674_v37  ;;  %v4840_v5 = vld [vmem:[#allocation13 + $0x228] sm:$0xff]  ;;  %v4839_v37 = vld [vmem:[#allocation13 + $0x220] sm:$0xff] }
 0x3a9   : > { %11143 = vmatpush3.msra.mxu1 %v4844_v7  ;;  %11312 = vmatprep.mubr.f32.mxu0 %v5284_v56  ;;  %v5436_v7 = vld [vmem:[#allocation3 + $0x4e] sm:$0xff]  ;;  %v5438_v56 = vld [vmem:[#allocation3 + $0x5e] sm:$0xff] }
 0x3aa   : > { %11144 = vmatprep.subr.mxu1 %v4843_v15 }
 0x3ab   : > { %11145 = vmatpush3.msra.mxu1 %v4843_v15  ;;  %v5437_v15 = vld [vmem:[#allocation3 + $0x56] sm:$0xff] }
 0x3ac   : > { %11081 = vmatmul.mubr.f32.gmra.mxu1 %v13680_v27  ;;  %11146 = vmatprep.subr.mxu1 %v4842_v21  ;;  %v4837_v27 = vld [vmem:[#allocation13 + $0x210] sm:$0xff] }
 0x3ad   : > { %11313 = vmatmul.mubr.f32.gmra.mxu0 %v5285_v46  ;;  %11147 = vmatpush3.msra.mxu1 %v4842_v21 }
 0x3ae   : > { %11162 = vmatprep.mubr.f32.mxu1 %v4825_v11  ;;  %11315 = vmatprep.mubr.f32.mxu0 %v5286_v28 }
 0x3af   : > { %11148 = vmatprep.subr.mxu1 %v4841_v13 }
 0x3b0   : > { %11149 = vmatpush3.msra.mxu1 %v4841_v13 }
 0x3b1   : > { %11150 = vmatprep.subr.mxu1 %v4840_v5  ;;  %11316 = vmatmul.mubr.f32.gmra.mxu0 %v5287_v23 }
 0x3b2   : > { %11151 = vmatpush3.msra.mxu1 %v4840_v5  ;;  %5879 = vmatprep.mubr.f32.mxu0 %v13677_v45 }
 0x3b3   : > { %11152 = vmatprep.subr.mxu1 %v4839_v37 }
 0x3b4   : > { %11153 = vmatpush3.msra.mxu1 %v4839_v37 }
 0x3b5   : > { %11154 = vmatprep.subr.mxu1 %v4838_v61 }
 0x3b6   : > { %11155 = vmatpush3.msra.mxu1 %v4838_v61 }
 0x3b7   : > { %11156 = vmatprep.subr.mxu1 %v4837_v27 }
 0x3b8   : > { %11157 = vmatpush3.msra.mxu1 %v4837_v27 }
 0x3b9   : > { %11158 = vmatprep.subr.mxu1 %v4836_v34 }
 0x3ba   : > { %11159 = vmatpush3.msra.mxu1 %v4836_v34 }
 0x3bb   : > { %11160 = vmatprep.subr.mxu1 %v4835_v3 }
 0x3bc   : > { %11161 = vmatpush3.msra.mxu1 %v4835_v3 }
 0x3bd   : > { %11163 = vmatmul.mubr.f32.vlgmr.msra.gmra.mxu1 %v4826_v17  ;;  %11224 = vmatprep.subr.mxu1 %v5152_v32 }
 0x3be   : > { %11165 = vmatprep.mubr.f32.mxu1 %v4827_v0  ;;  %11225 = vmatpush3.msra.mxu1 %v5152_v32 }
 0x3bf   : > { %11226 = vmatprep.subr.mxu1 %v5151_v55 }
 0x3c0   : > { %11227 = vmatpush3.msra.mxu1 %v5151_v55 }
 0x3c1   : > { %11166 = vmatmul.mubr.f32.gmra.mxu1 %v4828_v41  ;;  %11228 = vmatprep.subr.mxu1 %v5150_v8 }
 0x3c2   : > { %11168 = vmatprep.mubr.f32.mxu1 %v4829_v54  ;;  %11229 = vmatpush3.msra.mxu1 %v5150_v8 }
 0x3c3   : > { %11230 = vmatprep.subr.mxu1 %v5149_v38 }
 0x3c4   : > { %11231 = vmatpush3.msra.mxu1 %v5149_v38 }
 0x3c5   : > { %11169 = vmatmul.mubr.f32.gmra.mxu1 %v13615_v42  ;;  %11232 = vmatprep.subr.mxu1 %v5148_v47  ;;  %v5142_v42 = vld [vmem:[#allocation13 + $0x328] sm:$0xff] }
 0x3c6   : > { %11171 = vmatprep.mubr.f32.mxu1 %v4831_v29  ;;  %11233 = vmatpush3.msra.mxu1 %v5148_v47 }
 0x3c7   : > { %11234 = vmatprep.subr.mxu1 %v5147_v1 }
 0x3c8   : > { %11235 = vmatpush3.msra.mxu1 %v5147_v1 }
 0x3c9   : > { %11172 = vmatmul.mubr.f32.gmra.mxu1 %v4832_v24  ;;  %11236 = vmatprep.subr.mxu1 %v5146_v16  ;;  %v5814_v24 = vld [vmem:[#allocation16 + $0x1f8] sm:$0xff] }
 0x3ca   : > { %11174 = vmatprep.mubr.f32.mxu1 %v4833_v39  ;;  %11237 = vmatpush3.msra.mxu1 %v5146_v16 }
 0x3cb   : > { %11238 = vmatprep.subr.mxu1 %v5145_v63  ;;  %5815 = vmatprep.subr.mxu0 %v5814_v24 }
 0x3cc   : > { %11239 = vmatpush3.msra.mxu1 %v5145_v63  ;;  %v5779_v63 = vld [vmem:[#allocation16 + $0xf8] sm:$0xff] }
 0x3cd   : > { %11175 = vmatmul.mubr.f32.gmra.mxu1 %v4834_v43  ;;  %11240 = vmatprep.subr.mxu1 %v5144_v49  ;;  %v5778_v43 = vld [vmem:[#allocation16 + $0xf0] sm:$0xff] }
 0x3ce   : > { %11241 = vmatpush3.msra.mxu1 %v5144_v49  ;;  %11256 = vmatprep.mubr.f32.mxu1 %v13684_v59  ;;  %v5453_v59 = vld [vmem:[#allocation13 + $0x470] sm:$0xff] }
 0x3cf   : > { %11242 = vmatprep.subr.mxu1 %v5143_v50  ;;  %v5813_v49 = vld [vmem:[#allocation16 + $0x1f0] sm:$0xff] }
 0x3d0   : > { %11243 = vmatpush3.msra.mxu1 %v5143_v50  ;;  %5816 = vmatpush1.msra.mxu0 %v5813_v49  ;;  %v5792_v49 = vld [vmem:[#allocation16 + $0x148] sm:$0xff] }
 0x3d1   : > { %11244 = vmatprep.subr.mxu1 %v5142_v42 }
 0x3d2   : > { %11245 = vmatpush3.msra.mxu1 %v5142_v42  ;;  %v5812_v42 = vld [vmem:[#allocation16 + $0x1e8] sm:$0xff] }
 0x3d3   : > { %11246 = vmatprep.subr.mxu1 %v5141_v44  ;;  %5817 = vmatprep.subr.mxu0 %v5812_v42  ;;  %v5757_v42 = vld [vmem:[#allocation16 + $0x48] sm:$0xff] }
 0x3d4   : > { %11247 = vmatpush3.msra.mxu1 %v5141_v44  ;;  %v5777_v44 = vld [vmem:[#allocation16 + $0xe8] sm:$0xff] }
 0x3d5   : > { %11248 = vmatprep.subr.mxu1 %v5140_v10 }
 0x3d6   : > { %11249 = vmatpush3.msra.mxu1 %v5140_v10  ;;  %v5811_v10 = vld [vmem:[#allocation16 + $0x1e0] sm:$0xff] }
 0x3d7   : > { %11250 = vmatprep.subr.mxu1 %v5139_v62  ;;  %5818 = vmatpush1.msra.mxu0 %v5811_v10  ;;  %v5756_v10 = vld [vmem:[#allocation16 + $0x40] sm:$0xff] }
 0x3d8   : > { %11251 = vmatpush3.msra.mxu1 %v5139_v62  ;;  %v5776_v62 = vld [vmem:[#allocation16 + $0xe0] sm:$0xff] }
 0x3d9   : > { %11252 = vmatprep.subr.mxu1 %v5138_v58 }
 0x3da   : > { %11253 = vmatpush3.msra.mxu1 %v5138_v58  ;;  %v5810_v58 = vld [vmem:[#allocation16 + $0x1d8] sm:$0xff] }
 0x3db   : > { %11254 = vmatprep.subr.mxu1 %v5137_v6  ;;  %5819 = vmatprep.subr.mxu0 %v5810_v58  ;;  %v5755_v58 = vld [vmem:[#allocation16 + $0x38] sm:$0xff] }
 0x3dc   : > { %11255 = vmatpush3.msra.mxu1 %v5137_v6  ;;  %v5775_v6 = vld [vmem:[#allocation16 + $0xd8] sm:$0xff] }
 0x3dd   : > { %11257 = vmatmul.mubr.f32.vlgmr.msra.gmra.mxu1 %v13688_v52  ;;  %11318 = vmatprep.subr.mxu1 %v5454_v35  ;;  %v5448_v52 = vld [vmem:[#allocation13 + $0x448] sm:$0xff] }
 0x3de   : > { %11259 = vmatprep.mubr.f32.mxu1 %v13691_v20  ;;  %11319 = vmatpush3.msra.mxu1 %v5454_v35  ;;  %v5447_v20 = vld [vmem:[#allocation13 + $0x440] sm:$0xff]  ;;  %v5809_v35 = vld [vmem:[#allocation16 + $0x1d0] sm:$0xff] }
 0x3df   : > { %11320 = vmatprep.subr.mxu1 %v5453_v59  ;;  %5820 = vmatpush1.msra.mxu0 %v5809_v35  ;;  %v5789_v35 = vld [vmem:[#allocation16 + $0x130] sm:$0xff] }
 0x3e0   : > { %11321 = vmatpush3.msra.mxu1 %v5453_v59  ;;  %v5774_v59 = vld [vmem:[#allocation16 + $0xd0] sm:$0xff] }
 0x3e1   : > { %11260 = vmatmul.mubr.f32.gmra.mxu1 %v13694_v60  ;;  %11322 = vmatprep.subr.mxu1 %v5452_v12  ;;  %v5136_v60 = vld [vmem:[#allocation3 + $0x5c] sm:$0xff] }
 0x3e2   : > { %11262 = vmatprep.mubr.f32.mxu1 %v13697_v9  ;;  %11323 = vmatpush3.msra.mxu1 %v5452_v12  ;;  %v5446_v9 = vld [vmem:[#allocation13 + $0x438] sm:$0xff]  ;;  %v5808_v12 = vld [vmem:[#allocation16 + $0x1c8] sm:$0xff] }
 0x3e3   : > { %11324 = vmatprep.subr.mxu1 %v5451_v51  ;;  %v13734_v21 = vpop.f32.mrf.mxu1  ;;  %5821 = vmatprep.subr.mxu0 %v5808_v12 }
 0x3e4   : > { %11325 = vmatpush3.msra.mxu1 %v5451_v51  ;;  %v5773_v51 = vld [vmem:[#allocation16 + $0xc8] sm:$0xff] }
 0x3e5   : > { %11263 = vmatmul.mubr.f32.gmra.mxu1 %v13700_v53  ;;  %11326 = vmatprep.subr.mxu1 %v5450_v31  ;;  %v5429_v53 = vld [vmem:[#allocation3 + $0x16] sm:$0xff]  ;;  %v13736_v46 = vpop.f32.mrf.mxu1 }
 0x3e6   : > { %11265 = vmatprep.mubr.f32.mxu1 %v13703_v57  ;;  %11327 = vmatpush3.msra.mxu1 %v5450_v31  ;;  %v5444_v57 = vld [vmem:[#allocation13 + $0x428] sm:$0xff] }
 0x3e7   : > { %11328 = vmatprep.subr.mxu1 %v5449_v4  ;;  %v5807_v31 = vld [vmem:[#allocation16 + $0x1c0] sm:$0xff] }
 0x3e8   : > { %11329 = vmatpush3.msra.mxu1 %v5449_v4  ;;  %v5772_v4 = vld [vmem:[#allocation16 + $0xc0] sm:$0xff]  ;;  %5822 = vmatpush1.msra.mxu0 %v5807_v31  ;;  %v5753_v31 = vld [vmem:[#allocation16 + $0x28] sm:$0xff] }
 0x3e9   : > { %11266 = vmatmul.mubr.f32.gmra.mxu1 %v13706_v25  ;;  %11330 = vmatprep.subr.mxu1 %v5448_v52  ;;  %v5442_v25 = vld [vmem:[#allocation13 + $0x418] sm:$0xff] }
 0x3ea   : > { %11268 = vmatprep.mubr.f32.mxu1 %v13709_v33  ;;  %11331 = vmatpush3.msra.mxu1 %v5448_v52  ;;  %v5441_v33 = vld [vmem:[#allocation13 + $0x410] sm:$0xff] }
 0x3eb   : > { %11332 = vmatprep.subr.mxu1 %v5447_v20 }
 0x3ec   : > { %11333 = vmatpush3.msra.mxu1 %v5447_v20 }
 0x3ed   : > { %11269 = vmatmul.mubr.f32.gmra.mxu1 %v5136_v60  ;;  %11334 = vmatprep.subr.mxu1 %v5446_v9 }
 0x3ee   : > { %11335 = vmatpush3.msra.mxu1 %v5446_v9  ;;  %11350 = vmatprep.mubr.f32.mxu1 %v5429_v53  ;;  %v5806_v9 = vld [vmem:[#allocation16 + $0x1b8] sm:$0xff]  ;;  %v5805_v53 = vld [vmem:[#allocation16 + $0x1b0] sm:$0xff] }
 0x3ef   : > { %11336 = vmatprep.subr.mxu1 %v5445_v36  ;;  %5823 = vmatprep.subr.mxu0 %v5806_v9  ;;  %v5752_v9 = vld [vmem:[#allocation16 + $0x20] sm:$0xff] }
 0x3f0   : > { %11337 = vmatpush3.msra.mxu1 %v5445_v36  ;;  %v5771_v36 = vld [vmem:[#allocation16 + $0xb8] sm:$0xff]  ;;  %5824 = vmatpush1.msra.mxu0 %v5805_v53 }
 0x3f1   : > { %11338 = vmatprep.subr.mxu1 %v5444_v57  ;;  %v5751_v53 = vld [vmem:[#allocation16 + $0x18] sm:$0xff] }
 0x3f2   : > { %11339 = vmatpush3.msra.mxu1 %v5444_v57  ;;  %v5770_v57 = vld [vmem:[#allocation16 + $0xb0] sm:$0xff] }
 0x3f3   : > { %11340 = vmatprep.subr.mxu1 %v5443_v2 }
 0x3f4   : > { %11341 = vmatpush3.msra.mxu1 %v5443_v2  ;;  %v5804_v2 = vld [vmem:[#allocation16 + $0x1a8] sm:$0xff] }
 0x3f5   : > { %11342 = vmatprep.subr.mxu1 %v5442_v25  ;;  %5825 = vmatprep.subr.mxu0 %v5804_v2  ;;  %v5785_v2 = vld [vmem:[#allocation16 + $0x110] sm:$0xff] }
 0x3f6   : > { %11343 = vmatpush3.msra.mxu1 %v5442_v25  ;;  %v5769_v25 = vld [vmem:[#allocation16 + $0xa8] sm:$0xff] }
 0x3f7   : > { %11344 = vmatprep.subr.mxu1 %v5441_v33 }
 0x3f8   : > { %11345 = vmatpush3.msra.mxu1 %v5441_v33  ;;  %v13766_v33 = vpop.f32.mrf.mxu0 }
 0x3f9   : > { %11346 = vmatprep.subr.mxu1 %v5440_v14 }
 0x3fa   : > { %11347 = vmatpush3.msra.mxu1 %v5440_v14  ;;  %v10979_v13 = vpop.f32.mrf.mxu1  ;;  %v5803_v14 = vld [vmem:[#allocation16 + $0x1a0] sm:$0xff] }
 0x3fb   : > { %11348 = vmatprep.subr.mxu1 %v5439_v30  ;;  %5826 = vmatpush1.msra.mxu0 %v5803_v14 }
 0x3fc   : > { %11349 = vmatpush3.msra.mxu1 %v5439_v30  ;;  %v13738_v11 = vpop.f32.mrf.mxu1  ;;  %v5768_v30 = vld [vmem:[#allocation16 + $0xa0] sm:$0xff] }
 0x3fd   : > { %11351 = vmatmul.mubr.f32.vlgmr.msra.gmra.mxu1 %v5430_v48  ;;  %5898 = vmatprep.subr.mxu1 %v5779_v63  ;;  %v5793_v63 = vld [vmem:[#allocation16 + $0x150] sm:$0xff] }
 0x3fe   : > { %11353 = vmatprep.mubr.f32.mxu1 %v5431_v19  ;;  %v10982_v28 = vpop.f32.mrf.mxu1  ;;  %5899 = vmatpush1.msra.mxu1 %v5778_v43  ;;  %v5802_v19 = vld [vmem:[#allocation16 + $0x198] sm:$0xff] }
 0x3ff   : > { %5900 = vmatprep.subr.mxu1 %v5777_v44  ;;  %5827 = vmatprep.subr.mxu0 %v5802_v19  ;;  %v5791_v44 = vld [vmem:[#allocation16 + $0x140] sm:$0xff]  ;;  %v5749_v19 = vld [vmem:[#allocation16 + $0x8] sm:$0xff] }
 0x400   : > { %v4379_v5 = vpop.f32.mrf.mxu1  ;;  %5901 = vmatpush1.msra.mxu1 %v5776_v62  ;;  %v5790_v62 = vld [vmem:[#allocation16 + $0x138] sm:$0xff] }
 0x401   : > { %11354 = vmatmul.mubr.f32.gmra.mxu1 %v5432_v18  ;;  %5902 = vmatprep.subr.mxu1 %v5775_v6  ;;  %v5767_v18 = vld [vmem:[#allocation16 + $0x98] sm:$0xff] }
 0x402   : > { %11356 = vmatprep.mubr.f32.mxu1 %v5433_v26  ;;  %5903 = vmatpush1.msra.mxu1 %v5774_v59  ;;  %v5801_v26 = vld [vmem:[#allocation16 + $0x190] sm:$0xff] }
 0x403   : > { %5904 = vmatprep.subr.mxu1 %v5773_v51  ;;  %5828 = vmatpush1.msra.mxu0 %v5801_v26  ;;  %v5754_v59 = vld [vmem:[#allocation16 + $0x30] sm:$0xff]  ;;  %v5788_v51 = vld [vmem:[#allocation16 + $0x128] sm:$0xff]  ;;  %v5783_v26 = vld [vmem:[#allocation16 + $0x100] sm:$0xff] }
 0x404   : > { %5905 = vmatpush1.msra.mxu1 %v5772_v4  ;;  %v5787_v4 = vld [vmem:[#allocation16 + $0x120] sm:$0xff] }
 0x405   : > { %11357 = vmatmul.mubr.f32.gmra.mxu1 %v5434_v22  ;;  %5906 = vmatprep.subr.mxu1 %v5771_v36  ;;  %v5766_v22 = vld [vmem:[#allocation16 + $0x90] sm:$0xff]  ;;  %v5786_v36 = vld [vmem:[#allocation16 + $0x118] sm:$0xff] }
 0x406   : > { %11359 = vmatprep.mubr.f32.mxu1 %v5435_v40  ;;  %5907 = vmatpush1.msra.mxu1 %v5770_v57  ;;  %v5800_v40 = vld [vmem:[#allocation16 + $0x188] sm:$0xff] }
 0x407   : > { %5908 = vmatprep.subr.mxu1 %v5769_v25  ;;  %5829 = vmatprep.subr.mxu0 %v5800_v40  ;;  %v5750_v25 = vld [vmem:[#allocation16 + $0x10] sm:$0xff]  ;;  %v6015_v40 = vld [vmem:[#allocation16 + $0x2f8] sm:$0xff] }
 0x408   : > { %5909 = vmatpush1.msra.mxu1 %v5768_v30  ;;  %v5784_v30 = vld [vmem:[#allocation16 + $0x108] sm:$0xff] }
 0x409   : > { %11360 = vmatmul.mubr.f32.gmra.mxu1 %v5436_v7  ;;  %5910 = vmatprep.subr.mxu1 %v5767_v18  ;;  %v5765_v7 = vld [vmem:[#allocation16 + $0x88] sm:$0xff] }
 0x40a   : > { %11362 = vmatprep.mubr.f32.mxu1 %v5437_v15  ;;  %5911 = vmatpush1.msra.mxu1 %v5766_v22  ;;  %v13770_v15 = vpop.f32.mrf.mxu0  ;;  %v5748_v22 = vld [vmem:[#allocation16] sm:$0xff] }
 0x40b   : > { %5912 = vmatprep.subr.mxu1 %v5765_v7  ;;  %v6139_v7 = vld [vmem:[#allocation16 + $0x3f8] sm:$0xff] }
 0x40d   : > { %11363 = vmatmul.mubr.f32.gmra.mxu1 %v5438_v56  ;;  %v5799_v56 = vld [vmem:[#allocation16 + $0x180] sm:$0xff] }
 0x40e   : > { %5962 = vmatprep.mubr.f32.mxu1 %v13677_v45  ;;  %5830 = vmatpush1.msra.mxu0 %v5799_v56 }
 0x421   : > { %v10985_v23 = vpop.f32.mrf.mxu1 }
 0x423   : > { %v4389_v37 = vpop.f32.mrf.mxu1 }
 0x42c   : > { %v10988_v61 = vpop.f32.mrf.mxu1 }
 0x42e   : > { %v4399_v27 = vpop.f32.mrf.mxu1 }
 0x430   : > { %v13740_v34 = vpop.f32.mrf.mxu1 }
 0x432   : > { %v13742_v3 = vpop.f32.mrf.mxu1 }
 0x434   : > { %v11026_v32 = vpop.f32.mrf.mxu1 }
 0x435   : > { %v13744_v17 = vadd.f32 %v11026_v32, %v10979_v13  ;;  %v5764_v13 = vld [vmem:[#allocation16 + $0x80] sm:$0xff]  ;;  %v5796_v32 = vld [vmem:[#allocation16 + $0x168] sm:$0xff] }
 0x436   : > { %v13746_v45 = vpop.f32.mrf.mxu1  ;;  %5913 = vmatpush1.msra.mxu1 %v5764_v13 }
 0x43a   : > { %v11029_v55 = vpop.f32.mrf.mxu1 }
 0x43b   : > { %v13748_v0 = vadd.f32 %v11029_v55, %v10982_v28  ;;  %v5761_v55 = vld [vmem:[#allocation16 + $0x68] sm:$0xff] }
 0x43c   : > { %v4494_v8 = vpop.f32.mrf.mxu1 }
 0x43d   : > { %v13750_v41 = vadd.f32 %v4494_v8, %v4379_v5  ;;  %v5798_v5 = vld [vmem:[#allocation16 + $0x178] sm:$0xff]  ;;  %v5795_v8 = vld [vmem:[#allocation16 + $0x160] sm:$0xff] }
 0x43e   : > { %5831 = vmatprep.subr.mxu0 %v5798_v5 }
 0x440   : > { %v11032_v38 = vpop.f32.mrf.mxu1 }
 0x441   : > { %v13752_v54 = vadd.f32 %v11032_v38, %v10985_v23  ;;  %v5763_v23 = vld [vmem:[#allocation16 + $0x78] sm:$0xff]  ;;  %v5760_v38 = vld [vmem:[#allocation16 + $0x60] sm:$0xff] }
 0x442   : > { %v4504_v47 = vpop.f32.mrf.mxu1  ;;  %5914 = vmatprep.subr.mxu1 %v5763_v23 }
 0x443   : > { %v13754_v1 = vadd.f32 %v4504_v47, %v4389_v37  ;;  %v13774_v37 = vpop.f32.mrf.mxu0  ;;  %v5794_v47 = vld [vmem:[#allocation16 + $0x158] sm:$0xff] }
 0x445   : > { %v13778_v43 = vpop.f32.mrf.mxu0 }
 0x446   : > { %v11035_v29 = vpop.f32.mrf.mxu1 }
 0x447   : > { %v13756_v16 = vadd.f32 %v11035_v29, %v10988_v61  ;;  %v5797_v61 = vld [vmem:[#allocation16 + $0x170] sm:$0xff]  ;;  %v5759_v29 = vld [vmem:[#allocation16 + $0x58] sm:$0xff]  ;;  %v13780_v6 = vpop.f32.mrf.mxu0 }
 0x448   : > { %v4514_v39 = vpop.f32.mrf.mxu1  ;;  %5832 = vmatpush1.msra.mxu0 %v5797_v61 }
 0x449   : > { %v13758_v50 = vadd.f32 %v4514_v39, %v4399_v27  ;;  %v5762_v27 = vld [vmem:[#allocation16 + $0x70] sm:$0xff]  ;;  %5833 = vmatprep.subr.mxu0 %v5796_v32  ;;  %v13784_v57 = vpop.f32.mrf.mxu0 }
 0x44a   : > { %5915 = vmatpush1.msra.mxu1 %v5762_v27  ;;  %5834 = vmatpush1.msra.mxu0 %v5795_v8  ;;  %v5758_v39 = vld [vmem:[#allocation16 + $0x50] sm:$0xff] }
 0x44b   : > { %5916 = vmatprep.subr.mxu1 %v5761_v55  ;;  %5835 = vmatprep.subr.mxu0 %v5794_v47  ;;  %v13788_v18 = vpop.f32.mrf.mxu0 }
 0x44c   : > { %5917 = vmatpush1.msra.mxu1 %v5760_v38  ;;  %5836 = vmatpush1.msra.mxu0 %v5793_v63 }
 0x44d   : > { %5918 = vmatprep.subr.mxu1 %v5759_v29  ;;  %5837 = vmatprep.subr.mxu0 %v5792_v49  ;;  %v13792_v13 = vpop.f32.mrf.mxu0 }
 0x44e   : > { %5919 = vmatpush1.msra.mxu1 %v5758_v39  ;;  %5838 = vmatpush1.msra.mxu0 %v5791_v44 }
 0x44f   : > { %5920 = vmatprep.subr.mxu1 %v5757_v42  ;;  %5839 = vmatprep.subr.mxu0 %v5790_v62  ;;  %v13796_v23 = vpop.f32.mrf.mxu0 }
 0x450   : > { %5921 = vmatpush1.msra.mxu1 %v5756_v10  ;;  %5840 = vmatpush1.msra.mxu0 %v5789_v35 }
 0x451   : > { %5922 = vmatprep.subr.mxu1 %v5755_v58  ;;  %5841 = vmatprep.subr.mxu0 %v5788_v51  ;;  %v13798_v32 = vpop.f32.mrf.mxu0 }
 0x452   : > { %5923 = vmatpush1.msra.mxu1 %v5754_v59  ;;  %5842 = vmatpush1.msra.mxu0 %v5787_v4  ;;  %14386 = vst [vmem:[#allocation39_spill] sm:$0xff] %v13798_v32 }
 0x453   : > { %5924 = vmatprep.subr.mxu1 %v5753_v31  ;;  %5843 = vmatprep.subr.mxu0 %v5786_v36  ;;  %v11211_v38 = vpop.f32.mrf.mxu0 }
 0x454   : > { %5925 = vmatpush1.msra.mxu1 %v5752_v9  ;;  %5844 = vmatpush1.msra.mxu0 %v5785_v2 }
 0x455   : > { %5926 = vmatprep.subr.mxu1 %v5751_v53  ;;  %5845 = vmatprep.subr.mxu0 %v5784_v30  ;;  %v5068_v29 = vpop.f32.mrf.mxu0  ;;  %v4480_v30 = vadd.f32 %v13740_v34, %v13734_v21 }
 0x456   : > { %5927 = vmatpush1.msra.mxu1 %v5750_v25  ;;  %5846 = vmatpush1.msra.mxu0 %v5783_v26 }
 0x457   : > { %5928 = vmatprep.subr.mxu1 %v5749_v19  ;;  %6016 = vmatprep.subr.mxu0 %v6015_v40  ;;  %v11214_v39 = vpop.f32.mrf.mxu0 }
 0x458   : > { %v13760_v52 = vpop.f32.mrf.mxu1  ;;  %5929 = vmatpush1.msra.mxu1 %v5748_v22  ;;  %v4475_v22 = vadd.f32 %v13742_v3, %v13736_v46 }
 0x459   : > { %6140 = vmatprep.subr.mxu1 %v6139_v7  ;;  %v5078_v42 = vpop.f32.mrf.mxu0  ;;  %v4665_v40 = vadd.f32 %v13760_v52, %v4480_v30 }
 0x45a   : > { %v13762_v20 = vpop.f32.mrf.mxu1 }
 0x45b   : > { %v13802_v10 = vpop.f32.mrf.mxu0  ;;  %v4664_v7 = vadd.f32 %v13762_v20, %v4475_v22  ;;  %v4816_v21 = vadd.f32 %v13766_v33, %v4665_v40 }
 0x45d   : > { %v13764_v60 = vpop.f32.mrf.mxu1  ;;  %v13806_v58 = vpop.f32.mrf.mxu0  ;;  %v4815_v46 = vadd.f32 %v13770_v15, %v4664_v7 }
 0x45f   : > { %v13768_v48 = vpop.f32.mrf.mxu1  ;;  %v13810_v59 = vpop.f32.mrf.mxu0 }
 0x461   : > { %v13812_v4 = vpop.f32.mrf.mxu0 }
 0x462   : > { %v13772_v28 = vpop.f32.mrf.mxu1  ;;  %14388 = vst [vmem:[#allocation41_spill] sm:$0xff] %v13812_v4 }
 0x463   : > { %v13814_v53 = vpop.f32.mrf.mxu0  ;;  %v4669_v30 = vadd.f32 %v13772_v28, %v13748_v0 }
 0x464   : > { %v13776_v24 = vpop.f32.mrf.mxu1  ;;  %14389 = vst [vmem:[#allocation51_spill] sm:$0xff] %v13814_v53  ;;  %v4485_v53 = vadd.f32 %v13746_v45, %v13738_v11 }
 0x465   : > { %v13818_v25 = vpop.f32.mrf.mxu0  ;;  %v4668_v11 = vadd.f32 %v13776_v24, %v13750_v41 }
 0x466   : > { %14390 = vst [vmem:[#allocation42_spill] sm:$0xff] %v13818_v25  ;;  %v4667_v25 = vadd.f32 %v13764_v60, %v13744_v17  ;;  %v4666_v34 = vadd.f32 %v13768_v48, %v4485_v53 }
 0x467   : > { %v13782_v12 = vpop.f32.mrf.mxu1  ;;  %v11305_v19 = vpop.f32.mrf.mxu0  ;;  %v4819_v0 = vadd.f32 %v13784_v57, %v4668_v11  ;;  %v13858_v57 = vld [vmem:[#allocation15] ss:$0 sm:$0xff] }
 0x468   : > { %v4818_v20 = vadd.f32 %v13774_v37, %v4667_v25  ;;  %v4817_v60 = vadd.f32 %v13778_v43, %v4666_v34  ;;  %v4671_v48 = vadd.f32 %v13782_v12, %v13752_v54  ;;  %v4820_v37 = vadd.f32 %v13780_v6, %v4669_v30 }
 0x469   : > { %v13786_v14 = vpop.f32.mrf.mxu1  ;;  %v5370_v4 = vpop.f32.mrf.mxu0 }
 0x46a   : > { %v4670_v24 = vadd.f32 %v13786_v14, %v13754_v1  ;;  %v4822_v54 = vadd.f32 %v13788_v18, %v4671_v48 }
 0x46c   : > { %v13790_v56 = vpop.f32.mrf.mxu1  ;;  %v4821_v14 = vadd.f32 %v13792_v13, %v4670_v24 }
 0x46d   : > { %v4673_v43 = vadd.f32 %v13790_v56, %v13756_v16 }
 0x46e   : > { %v13794_v5 = vpop.f32.mrf.mxu1 }
 0x46f   : > { %v4672_v16 = vadd.f32 %v13794_v5, %v13758_v50  ;;  %v4824_v18 = vadd.f32 %v13796_v23, %v4673_v43 }
 0x47d   : > { %v11164_v61 = vpop.f32.mrf.mxu1 }
 0x47e   : > { %v4967_v32 = vadd.f32 %v11164_v61, %v4816_v21  ;;  %v14392_v21 = vld [vmem:[#allocation39_spill] sm:$0xff] }
 0x47f   : > { %v4917_v27 = vpop.f32.mrf.mxu1  ;;  %v4823_v34 = vadd.f32 %v14392_v21, %v4672_v16 }
 0x480   : > { %v4966_v52 = vadd.f32 %v4917_v27, %v4815_v46  ;;  %v5118_v33 = vadd.f32 %v11211_v38, %v4967_v32 }
 0x481   : > { %v11167_v55 = vpop.f32.mrf.mxu1 }
 0x482   : > { %v4969_v45 = vadd.f32 %v11167_v55, %v4818_v20  ;;  %v5117_v53 = vadd.f32 %v5068_v29, %v4966_v52 }
 0x483   : > { %v4927_v8 = vpop.f32.mrf.mxu1 }
 0x484   : > { %v4968_v61 = vadd.f32 %v4927_v8, %v4817_v60  ;;  %v5120_v41 = vadd.f32 %v11214_v39, %v4969_v45  ;;  %v14395_v45 = vld [vmem:[#allocation41_spill] sm:$0xff] }
 0x485   : > { %v11170_v47 = vpop.f32.mrf.mxu1 }
 0x486   : > { %v4971_v32 = vadd.f32 %v11170_v47, %v4820_v37  ;;  %v5119_v38 = vadd.f32 %v5078_v42, %v4968_v61  ;;  %v13865_v47 = vld [vmem:[#allocation15 + $0x1] ss:$0 sm:$0xff] }
 0x487   : > { %v4937_v63 = vpop.f32.mrf.mxu1 }
 0x488   : > { %v4970_v55 = vadd.f32 %v4937_v63, %v4819_v0  ;;  %v5122_v56 = vadd.f32 %v13802_v10, %v4971_v32 }
 0x489   : > { %v11173_v49 = vpop.f32.mrf.mxu1 }
 0x48a   : > { %v4973_v29 = vadd.f32 %v11173_v49, %v4822_v54  ;;  %v5121_v49 = vadd.f32 %v13806_v58, %v4970_v55 }
 0x48b   : > { %v13800_v44 = vpop.f32.mrf.mxu1 }
 0x48c   : > { %v5124_v13 = vadd.f32 %v13810_v59, %v4973_v29 }
 0x48d   : > { %v13804_v62 = vpop.f32.mrf.mxu1 }
 0x48f   : > { %v13808_v35 = vpop.f32.mrf.mxu1 }
 0x490   : > { %14387 = vst [vmem:[#allocation40_spill] sm:$0xff] %v13808_v35 }
 0x497   : > { %v14394_v30 = vld [vmem:[#allocation40_spill] sm:$0xff] }
 0x498   : > { %v4974_v11 = vadd.f32 %v14394_v30, %v4823_v34 }
 0x49d   : > { %v11258_v51 = vpop.f32.mrf.mxu1 }
 0x49e   : > { %v5269_v27 = vadd.f32 %v11258_v51, %v5118_v33  ;;  %v14396_v33 = vld [vmem:[#allocation51_spill] sm:$0xff] }
 0x49f   : > { %v5219_v31 = vpop.f32.mrf.mxu1 }
 0x4a0   : > { %v5268_v28 = vadd.f32 %v5219_v31, %v5117_v53  ;;  %v5420_v6 = vadd.f32 %v11305_v19, %v5269_v27  ;;  %v4975_v19 = vadd.f32 %v13804_v62, %v4824_v18 }
 0x4a1   : > { %v11261_v9 = vpop.f32.mrf.mxu1 }
 0x4a2   : > { %v5271_v8 = vadd.f32 %v11261_v9, %v5120_v41  ;;  %v5419_v1 = vadd.f32 %v5370_v4, %v5268_v28  ;;  %v4972_v4 = vadd.f32 %v13800_v44, %v4821_v14  ;;  %v5126_v48 = vadd.f32 %v14396_v33, %v4975_v19 }
 0x4a3   : > { %v5229_v36 = vpop.f32.mrf.mxu1 }
 0x4a4   : > { %v5270_v31 = vadd.f32 %v5229_v36, %v5119_v38  ;;  %v5123_v60 = vadd.f32 %v14395_v45, %v4972_v4 }
 0x4a5   : > { %v13816_v2 = vpop.f32.mrf.mxu1 }
 0x4a6   : > { %v5273_v50 = vadd.f32 %v13816_v2, %v5122_v56 }
 0x4a7   : > { %v13822_v26 = vpop.f32.mrf.mxu1 }
 0x4a8   : > { %14391 = vst [vmem:[#allocation43_spill] sm:$0xff] %v13822_v26  ;;  %v11308_v26 = vpop.f32.mrf.mxu0 }
 0x4a9   : > { %v13828_v35 = vpop.f32.mrf.mxu1  ;;  %v5422_v36 = vadd.f32 %v11308_v26, %v5271_v8 }
 0x4aa   : > { %v5380_v17 = vpop.f32.mrf.mxu0  ;;  %v5275_v44 = vadd.f32 %v13828_v35, %v5124_v13 }
 0x4ab   : > { %v13837_v3 = vpop.f32.mrf.mxu1  ;;  %v5421_v58 = vadd.f32 %v5380_v17, %v5270_v31 }
 0x4ac   : > { %v11311_v25 = vpop.f32.mrf.mxu0  ;;  %v5274_v28 = vadd.f32 %v13837_v3, %v5123_v60 }
 0x4ad   : > { %v13847_v15 = vpop.f32.mrf.mxu1  ;;  %v5424_v17 = vadd.f32 %v11311_v25, %v5273_v50 }
 0x4ae   : > { %v5390_v39 = vpop.f32.mrf.mxu0  ;;  %v5277_v54 = vadd.f32 %v13847_v15, %v5126_v48 }
 0x4af   : > { %v13856_v12 = vpop.f32.mrf.mxu1  ;;  %v14393_v46 = vld [vmem:[#allocation43_spill] sm:$0xff] }
 0x4b0   : > { %v11314_v23 = vpop.f32.mrf.mxu0  ;;  %v5272_v26 = vadd.f32 %v14393_v46, %v5121_v49 }
 0x4b1   : > { %v5426_v32 = vadd.f32 %v11314_v23, %v5275_v44 }
 0x4b2   : > { %v5400_v27 = vpop.f32.mrf.mxu0  ;;  %v5423_v24 = vadd.f32 %v5390_v39, %v5272_v26 }
 0x4b4   : > { %v11317_v55 = vpop.f32.mrf.mxu0 }
 0x4bd   : > { %v11352_v51 = vpop.f32.mrf.mxu1 }
 0x4be   : > { %v5571_v22 = vadd.f32 %v11352_v51, %v5420_v6  ;;  %v14397_v6 = vld [vmem:[#allocation42_spill] sm:$0xff] }
 0x4bf   : > { %v5521_v63 = vpop.f32.mrf.mxu1  ;;  %v5125_v29 = vadd.f32 %v14397_v6, %v4974_v11 }
 0x4c0   : > { %v5586_v42 = vmul.f32 %v13858_v57, %v5571_v22  ;;  %v5570_v9 = vadd.f32 %v5521_v63, %v5419_v1  ;;  %v5425_v63 = vadd.f32 %v5400_v27, %v5274_v28 }
 0x4c1   : > { %v11355_v5 = vpop.f32.mrf.mxu1  ;;  %v5276_v18 = vadd.f32 %v13856_v12, %v5125_v29 }
 0x4c2   : > { %v5601_v10 = vadd.f32 %v13865_v47, %v5586_v42  ;;  %v5585_v40 = vmul.f32 %v13858_v57, %v5570_v9  ;;  %v5573_v7 = vadd.f32 %v11355_v5, %v5422_v36  ;;  %v5428_v42 = vadd.f32 %v11317_v55, %v5277_v54  ;;  %v5410_v9 = vpop.f32.mrf.mxu0 }
 0x4c3   : > { %v5531_v52 = vpop.f32.mrf.mxu1  ;;  %v5427_v21 = vadd.f32 %v5410_v9, %v5276_v18 }
 0x4c4   : > { %v5611_v62 = vmul.f32 0.1, %v5601_v10  ;;  %v5600_v2 = vadd.f32 %v13865_v47, %v5585_v40  ;;  %v5588_v59 = vmul.f32 %v13858_v57, %v5573_v7  ;;  %v5572_v20 = vadd.f32 %v5531_v52, %v5421_v58 }
 0x4c5   : > { %v11358_v61 = vpop.f32.mrf.mxu1 }
 0x4c6   : > { %v5621_v53 = vmax.f32 %v5601_v10, %v5611_v62  ;;  %v5610_v37 = vmul.f32 0.1, %v5600_v2  ;;  %v5603_v35 = vadd.f32 %v13865_v47, %v5588_v59  ;;  %v5587_v0 = vmul.f32 %v13858_v57, %v5572_v20 }
 0x4c7   : > { %v5575_v41 = vadd.f32 %v11358_v61, %v5424_v17  ;;  %v5541_v43 = vpop.f32.mrf.mxu1 }
 0x4c8   : > { %v5620_v8 = vmax.f32 %v5600_v2, %v5610_v37  ;;  %v5613_v38 = vmul.f32 0.1, %v5603_v35  ;;  %v5602_v25 = vadd.f32 %v13865_v47, %v5587_v0  ;;  %v5640_v51 = vrot.slane %v5621_v53, 1 }
 0x4c9   : > { %v5590_v31 = vmul.f32 %v13858_v57, %v5575_v41  ;;  %v5574_v22 = vadd.f32 %v5541_v43, %v5423_v24  ;;  %v11361_v1 = vpop.f32.mrf.mxu1 }
 0x4ca   : > { %v5639_v16 = vrot.slane %v5620_v8, 1  ;;  %v5623_v3 = vmax.f32 %v5603_v35, %v5613_v38  ;;  %v5612_v14 = vmul.f32 0.1, %v5602_v25  ;;  %v5577_v39 = vadd.f32 %v11361_v1, %v5426_v32 }
 0x4cb   : > { %v5605_v15 = vadd.f32 %v13865_v47, %v5590_v31  ;;  %v5589_v56 = vmul.f32 %v13858_v57, %v5574_v22  ;;  %v5551_v49 = vpop.f32.mrf.mxu1 }
 0x4cc   : > { %v5641_v36 = vsel %vm3866_vm0, %v5639_v16, %v5640_v51  ;;  %v5622_v4 = vmax.f32 %v5602_v25, %v5612_v14  ;;  %v5592_v19 = vmul.f32 %v13858_v57, %v5577_v39  ;;  %v5576_v23 = vadd.f32 %v5551_v49, %v5425_v63 }
 0x4cd   : > { %v5665_v50 = vmax.f32 %v5620_v8, %v5641_v36  ;;  %v5615_v13 = vmul.f32 0.1, %v5605_v15  ;;  %v5604_v5 = vadd.f32 %v13865_v47, %v5589_v56  ;;  %v11364_v10 = vpop.f32.mrf.mxu1  ;;  %v5644_v12 = vrot.slane %v5623_v3, 1 }
 0x4ce   : > { %v5642_v40 = vrot.slane %v5622_v4, 1  ;;  %v5607_v7 = vadd.f32 %v13865_v47, %v5592_v19  ;;  %v5579_v58 = vadd.f32 %v11364_v10, %v5428_v42  ;;  %v5591_v26 = vmul.f32 %v13858_v57, %v5576_v23 }
 0x4cf   : > { %v5625_v34 = vmax.f32 %v5605_v15, %v5615_v13  ;;  %v5614_v46 = vmul.f32 0.1, %v5604_v5  ;;  %v5561_v44 = vpop.f32.mrf.mxu1 }
 0x4d0   : > { %v5643_v52 = vsel %vm3866_vm0, %v5640_v51, %v5642_v40  ;;  %v5645_v62 = vsel %vm3866_vm0, %v5642_v40, %v5644_v12  ;;  %v5617_v2 = vmul.f32 0.1, %v5607_v7  ;;  %v5594_v59 = vmul.f32 %v13858_v57, %v5579_v58 }
 0x4d1   : > { %v5666_v20 = vmax.f32 %v5621_v53, %v5643_v52  ;;  %v5667_v30 = vmax.f32 %v5622_v4, %v5645_v62  ;;  %v5624_v11 = vmax.f32 %v5604_v5, %v5614_v46  ;;  %v5606_v45 = vadd.f32 %v13865_v47, %v5591_v26  ;;  %v6014_v52 = vld [vmem:[#allocation16 + $0x2f0] sm:$0xff] }
 0x4d2   : > { %v5609_v60 = vadd.f32 %v13865_v47, %v5594_v59  ;;  %v5578_v33 = vadd.f32 %v5561_v44, %v5427_v21  ;;  %v5648_v61 = vrot.slane %v5625_v34, 1  ;;  %v5627_v37 = vmax.f32 %v5607_v7, %v5617_v2  ;;  %v6138_v62 = vld [vmem:[#allocation16 + $0x3f0] sm:$0xff]  ;;  %v6013_v2 = vld [vmem:[#allocation16 + $0x2e8] sm:$0xff] }
 0x4d3   : > { %v5690_v48 = vrot.slane %v5666_v20, 2  ;;  %v5691_v17 = vrot.slane %v5667_v30, 2  ;;  %v5646_v27 = vrot.slane %v5624_v11, 1  ;;  %v5616_v35 = vmul.f32 0.1, %v5606_v45 }
 0x4d4   : > { %v5619_v0 = vmul.f32 0.1, %v5609_v60  ;;  %v5593_v28 = vmul.f32 %v13858_v57, %v5578_v33  ;;  %v5652_v29 = vrot.slane %v5627_v37, 1  ;;  %v6136_v33 = vld [vmem:[#allocation16 + $0x3e0] sm:$0xff] }
 0x4d5   : > { %v5692_v41 = vsel %vm4048_vm1, %v5690_v48, %v5691_v17  ;;  %v5647_v53 = vsel %vm3866_vm0, %v5644_v12, %v5646_v27  ;;  %v5649_v24 = vsel %vm3866_vm0, %v5646_v27, %v5648_v61  ;;  %v5626_v55 = vmax.f32 %v5606_v45, %v5616_v35  ;;  %v6137_v45 = vld [vmem:[#allocation16 + $0x3e8] sm:$0xff]  ;;  %v6011_v48 = vld [vmem:[#allocation16 + $0x2d8] sm:$0xff]  ;;  %v6010_v27 = vld [vmem:[#allocation16 + $0x2d0] sm:$0xff] }
 0x4d6   : > { %v5716_v43 = vmax.f32 %v5665_v50, %v5692_v41  ;;  %v5668_v32 = vmax.f32 %v5623_v3, %v5647_v53  ;;  %v5669_v54 = vmax.f32 %v5624_v11, %v5649_v24  ;;  %v5629_v8 = vmax.f32 %v5609_v60, %v5619_v0  ;;  %v6012_v60 = vld [vmem:[#allocation16 + $0x2e0] sm:$0xff]  ;;  %v6009_v35 = vld [vmem:[#allocation16 + $0x2c8] sm:$0xff]  ;;  %v6007_v53 = vld [vmem:[#allocation16 + $0x2b8] sm:$0xff] }
 0x4d7   : > { %v5608_v38 = vadd.f32 %v13865_v47, %v5593_v28  ;;  %v5650_v51 = vrot.slane %v5626_v55, 1  ;;  %v6133_v0 = vld [vmem:[#allocation16 + $0x3c8] sm:$0xff]  ;;  %v6008_v28 = vld [vmem:[#allocation16 + $0x2c0] sm:$0xff]  ;;  %v6131_v24 = vld [vmem:[#allocation16 + $0x3b8] sm:$0xff] }
 0x4d8   : > { %5725 = vst [vmem:[#allocation6] sm:$0xff] %v5716_v43  ;;  %v5693_v25 = vrot.slane %v5668_v32, 2  ;;  %v5695_v6 = vrot.slane %v5669_v54, 2  ;;  %v5675_v31 = vrot.slane %v5629_v8, 1  ;;  %v6132_v41 = vld [vmem:[#allocation16 + $0x3c0] sm:$0xff]  ;;  %v6006_v43 = vld [vmem:[#allocation16 + $0x2b0] sm:$0xff] }
 0x4d9   : > { %v5618_v57 = vmul.f32 0.1, %v5608_v38  ;;  %v5651_v16 = vsel %vm3866_vm0, %v5648_v61, %v5650_v51  ;;  %v5653_v3 = vsel %vm3866_vm0, %v5650_v51, %v5652_v29  ;;  %v6004_v51 = vld [vmem:[#allocation16 + $0x2a0] sm:$0xff] }
 0x4da   : > { %v5694_v22 = vsel %vm4048_vm1, %v5691_v17, %v5693_v25  ;;  %v5696_v1 = vsel %vm4048_vm1, %v5693_v25, %v5695_v6  ;;  %v5670_v18 = vmax.f32 %v5625_v34, %v5651_v16  ;;  %v5671_v15 = vmax.f32 %v5626_v55, %v5653_v3  ;;  %v6135_v17 = vld [vmem:[#allocation16 + $0x3d8] sm:$0xff]  ;;  %v6130_v55 = vld [vmem:[#allocation16 + $0x3b0] sm:$0xff]  ;;  %v6001_v3 = vld [vmem:[#allocation16 + $0x288] sm:$0xff] }
 0x4db   : > { %v5717_v14 = vmax.f32 %v5666_v20, %v5694_v22  ;;  %v5718_v39 = vmax.f32 %v5667_v30, %v5696_v1  ;;  %v5680_v47 = vmax.f32 %v5629_v8, %v5675_v31  ;;  %v5628_v56 = vmax.f32 %v5608_v38, %v5618_v57  ;;  %v6005_v8 = vld [vmem:[#allocation16 + $0x2a8] sm:$0xff]  ;;  %v6003_v57 = vld [vmem:[#allocation16 + $0x298] sm:$0xff]  ;;  %v6002_v1 = vld [vmem:[#allocation16 + $0x290] sm:$0xff] }
 0x4dc   : > { %v5697_v63 = vrot.slane %v5670_v18, 2  ;;  %v5699_v49 = vrot.slane %v5671_v15, 2  ;;  %v6127_v22 = vld [vmem:[#allocation16 + $0x398] sm:$0xff]  ;;  %v6126_v16 = vld [vmem:[#allocation16 + $0x390] sm:$0xff] }
 0x4dd   : > { %5726 = vst [vmem:[#allocation6 + $0x8] sm:$0xff] %v5717_v14  ;;  %5727 = vst [vmem:[#allocation6 + $0x10] sm:$0xff] %v5718_v39  ;;  %v5705_v42 = vrot.slane %v5680_v47, 2  ;;  %v5654_v9 = vrot.slane %v5628_v56, 1  ;;  %v6124_v47 = vld [vmem:[#allocation16 + $0x380] sm:$0xff] }
 0x4de   : > { %v5698_v36 = vsel %vm4048_vm1, %v5695_v6, %v5697_v63  ;;  %v5700_v4 = vsel %vm4048_vm1, %v5697_v63, %v5699_v49  ;;  %v6123_v63 = vld [vmem:[#allocation16 + $0x378] sm:$0xff] }
 0x4df   : > { %v5734_v19 = vld [vmem:[#allocation6] ss:$2 sm:$0xf]  ;;  %v5719_v50 = vmax.f32 %v5668_v32, %v5698_v36  ;;  %v5720_v13 = vmax.f32 %v5669_v54, %v5700_v4  ;;  %v5655_v5 = vsel %vm3866_vm0, %v5652_v29, %v5654_v9  ;;  %v5673_v23 = vmax.f32 %v5628_v56, %v5654_v9  ;;  %v13919_v54 = vld [vmem:[#allocation2] sm:$0xff]  ;;  %v6129_v29 = vld [vmem:[#allocation16 + $0x3a8] sm:$0xff] }
 0x4e0   : > { %5735 = vst [vmem:[#allocation4 + $0x7] sm:$0xf] %v5734_v19  ;;  %v5672_v10 = vmax.f32 %v5627_v37, %v5655_v5  ;;  %v5676_v12 = vsel %vm3866_vm0, %v5654_v9, %v5675_v31  ;;  %v6134_v37 = vld [vmem:[#allocation16 + $0x3d0] sm:$0xff]  ;;  %v6128_v31 = vld [vmem:[#allocation16 + $0x3a0] sm:$0xff]  ;;  %v5997_v9 = vld [vmem:[#allocation16 + $0x268] sm:$0xff] }
 0x4e1   : > { %5728 = vst [vmem:[#allocation6 + $0x18] sm:$0xff] %v5719_v50  ;;  %5729 = vst [vmem:[#allocation6 + $0x20] sm:$0xff] %v5720_v13  ;;  %v5679_v40 = vmax.f32 %v5628_v56, %v5676_v12  ;;  %v5724_v7 = vmax.f32 %v5673_v23, %v5705_v42  ;;  %v5999_v56 = vld [vmem:[#allocation16 + $0x278] sm:$0xff]  ;;  %v6121_v36 = vld [vmem:[#allocation16 + $0x368] sm:$0xff] }
 0x4e2   : > { %v5701_v58 = vrot.slane %v5672_v10, 2  ;;  %v5996_v4 = vld [vmem:[#allocation16 + $0x260] sm:$0xff]  ;;  %v5995_v50 = vld [vmem:[#allocation16 + $0x258] sm:$0xff]  ;;  %v5994_v5 = vld [vmem:[#allocation16 + $0x250] sm:$0xff] }
 0x4e3   : > { %v5703_v21 = vrot.slane %v5679_v40, 2  ;;  %5733 = vst [vmem:[#allocation6 + $0x40] sm:$0x1f] %v5724_v7  ;;  %v6120_v19 = vld [vmem:[#allocation16 + $0x360] sm:$0xff]  ;;  %v6119_v13 = vld [vmem:[#allocation16 + $0x358] sm:$0xff]  ;;  %v6118_v23 = vld [vmem:[#allocation16 + $0x350] sm:$0xff] }
 0x4e4   : > { %v5702_v34 = vsel %vm4048_vm1, %v5699_v49, %v5701_v58  ;;  %v5998_v49 = vld [vmem:[#allocation16 + $0x270] sm:$0xff]  ;;  %v6117_v12 = vld [vmem:[#allocation16 + $0x348] sm:$0xff]  ;;  %v5992_v40 = vld [vmem:[#allocation16 + $0x240] sm:$0xff] }
 0x4e5   : > { %v5704_v46 = vsel %vm4048_vm1, %v5701_v58, %v5703_v21  ;;  %v5706_v26 = vsel %vm4048_vm1, %v5703_v21, %v5705_v42  ;;  %v5721_v44 = vmax.f32 %v5670_v18, %v5702_v34  ;;  %v6125_v18 = vld [vmem:[#allocation16 + $0x388] sm:$0xff]  ;;  %v6122_v42 = vld [vmem:[#allocation16 + $0x370] sm:$0xff]  ;;  %v6116_v7 = vld [vmem:[#allocation16 + $0x340] sm:$0xff] }
 0x4e6   : > { %v5722_v59 = vmax.f32 %v5671_v15, %v5704_v46  ;;  %v5723_v20 = vmax.f32 %v5672_v10, %v5706_v26  ;;  %v6000_v15 = vld [vmem:[#allocation16 + $0x280] sm:$0xff]  ;;  %v5993_v10 = vld [vmem:[#allocation16 + $0x248] sm:$0xff]  ;;  %v5991_v58 = vld [vmem:[#allocation16 + $0x238] sm:$0xff] }
 0x4e7   : > { %v5780_v30 = vld [vmem:[#allocation4 + $0x1] sm:$0xff]  ;;  %5730 = vst [vmem:[#allocation6 + $0x28] sm:$0xff] %v5721_v44  ;;  %v6115_v21 = vld [vmem:[#allocation16 + $0x338] sm:$0xff]  ;;  %v5990_v34 = vld [vmem:[#allocation16 + $0x230] sm:$0xff] }
 0x4e8   : > { %v5745_v11 = vld [vmem:[#allocation4] sm:$0xff]  ;;  %5880 = vmatmul.mubr.f32.vlgmr.msra.gmra.mxu0 %v5780_v30  ;;  %5731 = vst [vmem:[#allocation6 + $0x30] sm:$0xff] %v5722_v59  ;;  %5732 = vst [vmem:[#allocation6 + $0x38] sm:$0xff] %v5723_v20  ;;  %v5737_v61 = vld [vmem:[#allocation6 + $0x14] ss:$2 sm:$0xf] }
 0x4e9   : > { %5963 = vmatmul.mubr.f32.vlgmr.msra.gmra.mxu1 %v5745_v11  ;;  %6017 = vmatpush1.msra.mxu0 %v6014_v52  ;;  %5738 = vst [vmem:[#allocation4 + $0xd] sm:$0xf] %v5737_v61  ;;  %v6114_v46 = vld [vmem:[#allocation16 + $0x330] sm:$0xff]  ;;  %v5989_v26 = vld [vmem:[#allocation16 + $0x228] sm:$0xff]  ;;  %v5988_v52 = vld [vmem:[#allocation16 + $0x220] sm:$0xff] }
 0x4ea   : > { %6141 = vmatpush1.msra.mxu1 %v6138_v62  ;;  %6018 = vmatprep.subr.mxu0 %v6013_v2  ;;  %v6113_v44 = vld [vmem:[#allocation16 + $0x328] sm:$0xff]  ;;  %v6112_v62 = vld [vmem:[#allocation16 + $0x320] sm:$0xff]  ;;  %v5987_v2 = vld [vmem:[#allocation16 + $0x218] sm:$0xff] }
 0x4eb   : > { %6142 = vmatprep.subr.mxu1 %v6137_v45  ;;  %6019 = vmatpush1.msra.mxu0 %v6012_v60  ;;  %v6111_v59 = vld [vmem:[#allocation16 + $0x318] sm:$0xff]  ;;  %v5986_v20 = vld [vmem:[#allocation16 + $0x210] sm:$0xff]  ;;  %v5985_v11 = vld [vmem:[#allocation16 + $0x208] sm:$0xff] }
 0x4ec   : > { %6143 = vmatpush1.msra.mxu1 %v6136_v33  ;;  %6020 = vmatprep.subr.mxu0 %v6011_v48  ;;  %v6110_v30 = vld [vmem:[#allocation16 + $0x310] sm:$0xff]  ;;  %v6109_v45 = vld [vmem:[#allocation16 + $0x308] sm:$0xff]  ;;  %v5984_v60 = vld [vmem:[#allocation16 + $0x200] sm:$0xff] }
 0x4ed   : > { %6144 = vmatprep.subr.mxu1 %v6135_v17  ;;  %6021 = vmatpush1.msra.mxu0 %v6010_v27  ;;  %v6108_v33 = vld [vmem:[#allocation16 + $0x300] sm:$0xff]  ;;  %v6263_v48 = vld [vmem:[#allocation16 + $0x4f8] sm:$0xff]  ;;  %v6262_v61 = vld [vmem:[#allocation16 + $0x4f0] sm:$0xff] }
 0x4ee   : > { %6145 = vmatpush1.msra.mxu1 %v6134_v37  ;;  %6022 = vmatprep.subr.mxu0 %v6009_v35  ;;  %v5740_v32 = vld [vmem:[#allocation6 + $0x28] ss:$2 sm:$0xf]  ;;  %v6387_v17 = vld [vmem:[#allocation16 + $0x5f8] sm:$0xff]  ;;  %v6386_v35 = vld [vmem:[#allocation16 + $0x5f0] sm:$0xff] }
 0x4ef   : > { %6146 = vmatprep.subr.mxu1 %v6133_v0  ;;  %6023 = vmatpush1.msra.mxu0 %v6008_v28  ;;  %5741 = vst [vmem:[#allocation4 + $0x13] sm:$0xf] %v5740_v32  ;;  %v5743_v38 = vld [vmem:[#allocation6 + $0x3c] ss:$2 sm:$0xf]  ;;  %v5981_v27 = vld [vmem:[#allocation4 + $0x2] sm:$0xff] }
 0x4f0   : > { %6147 = vmatpush1.msra.mxu1 %v6132_v41  ;;  %5885 = vmatprep.mubr.f32.mxu0 %v13919_v54  ;;  %v5781_v25 = vld [vmem:[#allocation4 + $0x9] sm:$0xff]  ;;  %5744 = vst [vmem:[#allocation4 + $0x19] sm:$0xf] %v5743_v38  ;;  %v6260_v41 = vld [vmem:[#allocation16 + $0x4e0] sm:$0xff] }
 0x4f1   : > { %5968 = vmatprep.mubr.f32.mxu1 %v13919_v54  ;;  %6024 = vmatprep.subr.mxu0 %v6007_v53  ;;  %v13923_v6 = vld [vmem:[#allocation4 + $0x8] sm:$0xff]  ;;  %v6384_v53 = vld [vmem:[#allocation16 + $0x5e0] sm:$0xff] }
 0x4f2   : > { %6148 = vmatprep.subr.mxu1 %v6131_v24  ;;  %5886 = vmatmul.mubr.f32.gmra.mxu0 %v5781_v25  ;;  %v6105_v37 = vld [vmem:[#allocation4 + $0x6] sm:$0xff]  ;;  %v6259_v24 = vld [vmem:[#allocation16 + $0x4d8] sm:$0xff] }
 0x4f3   : > { %5969 = vmatmul.mubr.f32.gmra.mxu1 %v13923_v6  ;;  %6025 = vmatpush1.msra.mxu0 %v6006_v43  ;;  %v6261_v0 = vld [vmem:[#allocation16 + $0x4e8] sm:$0xff]  ;;  %v6383_v43 = vld [vmem:[#allocation16 + $0x5d8] sm:$0xff]  ;;  %v6258_v32 = vld [vmem:[#allocation16 + $0x4d0] sm:$0xff] }
 0x4f4   : > { %6149 = vmatpush1.msra.mxu1 %v6130_v55  ;;  %6026 = vmatprep.subr.mxu0 %v6005_v8  ;;  %v6385_v28 = vld [vmem:[#allocation16 + $0x5e8] sm:$0xff]  ;;  %v6382_v38 = vld [vmem:[#allocation16 + $0x5d0] sm:$0xff] }
 0x4f5   : > { %6150 = vmatprep.subr.mxu1 %v6129_v29  ;;  %6027 = vmatpush1.msra.mxu0 %v6004_v51  ;;  %v5982_v55 = vld [vmem:[#allocation4 + $0xa] sm:$0xff]  ;;  %v6256_v51 = vld [vmem:[#allocation16 + $0x4c0] sm:$0xff] }
 0x4f6   : > { %6151 = vmatpush1.msra.mxu1 %v6128_v31  ;;  %5891 = vmatprep.mubr.f32.mxu0 %v13919_v54  ;;  %v5782_v14 = vld [vmem:[#allocation4 + $0x11] sm:$0xff]  ;;  %v6257_v25 = vld [vmem:[#allocation16 + $0x4c8] sm:$0xff]  ;;  %v6380_v31 = vld [vmem:[#allocation16 + $0x5c0] sm:$0xff] }
 0x4f7   : > { %5974 = vmatprep.mubr.f32.mxu1 %v13919_v54  ;;  %6028 = vmatprep.subr.mxu0 %v6003_v57  ;;  %v13928_v39 = vld [vmem:[#allocation4 + $0x10] sm:$0xff]  ;;  %v6381_v29 = vld [vmem:[#allocation16 + $0x5c8] sm:$0xff] }
 0x4f8   : > { %6152 = vmatprep.subr.mxu1 %v6127_v22  ;;  %5892 = vmatmul.mubr.f32.gmra.mxu0 %v5782_v14  ;;  %v13935_v8 = vld [vmem:[#allocation4 + $0xe] sm:$0xff] }
 0x4f9   : > { %5975 = vmatmul.mubr.f32.gmra.mxu1 %v13928_v39  ;;  %6029 = vmatpush1.msra.mxu0 %v6002_v1  ;;  %v6255_v57 = vld [vmem:[#allocation16 + $0x4b8] sm:$0xff]  ;;  %v6254_v1 = vld [vmem:[#allocation16 + $0x4b0] sm:$0xff] }
 0x4fa   : > { %6153 = vmatpush1.msra.mxu1 %v6126_v16  ;;  %6030 = vmatprep.subr.mxu0 %v6001_v3  ;;  %v6379_v22 = vld [vmem:[#allocation16 + $0x5b8] sm:$0xff]  ;;  %v6378_v14 = vld [vmem:[#allocation16 + $0x5b0] sm:$0xff] }
 0x4fb   : > { %6154 = vmatprep.subr.mxu1 %v6125_v18  ;;  %6031 = vmatpush1.msra.mxu0 %v6000_v15  ;;  %v5983_v16 = vld [vmem:[#allocation4 + $0x12] sm:$0xff]  ;;  %v6253_v18 = vld [vmem:[#allocation16 + $0x4a8] sm:$0xff] }
 0x4fc   : > { %6155 = vmatpush1.msra.mxu1 %v6124_v47  ;;  %6032 = vmatprep.subr.mxu0 %v5999_v56  ;;  %v13940_v3 = vld [vmem:[#allocation4 + $0x16] sm:$0xff]  ;;  %v6377_v15 = vld [vmem:[#allocation16 + $0x5a8] sm:$0xff] }
 0x4fd   : > { %6156 = vmatprep.subr.mxu1 %v6123_v63  ;;  %6033 = vmatpush1.msra.mxu0 %v5998_v49  ;;  %v6252_v47 = vld [vmem:[#allocation16 + $0x4a0] sm:$0xff]  ;;  %v6251_v63 = vld [vmem:[#allocation16 + $0x498] sm:$0xff] }
 0x4fe   : > { %6157 = vmatpush1.msra.mxu1 %v6122_v42  ;;  %6034 = vmatprep.subr.mxu0 %v5997_v9  ;;  %v6376_v56 = vld [vmem:[#allocation16 + $0x5a0] sm:$0xff]  ;;  %v6375_v49 = vld [vmem:[#allocation16 + $0x598] sm:$0xff]  ;;  %v6250_v42 = vld [vmem:[#allocation16 + $0x490] sm:$0xff] }
 0x4ff   : > { %6158 = vmatprep.subr.mxu1 %v6121_v36  ;;  %6035 = vmatpush1.msra.mxu0 %v5996_v4  ;;  %v6374_v9 = vld [vmem:[#allocation16 + $0x590] sm:$0xff]  ;;  %v6249_v36 = vld [vmem:[#allocation16 + $0x488] sm:$0xff] }
 0x500   : > { %6159 = vmatpush1.msra.mxu1 %v6120_v19  ;;  %6036 = vmatprep.subr.mxu0 %v5995_v50  ;;  %v6373_v4 = vld [vmem:[#allocation16 + $0x588] sm:$0xff]  ;;  %v6248_v19 = vld [vmem:[#allocation16 + $0x480] sm:$0xff] }
 0x501   : > { %6160 = vmatprep.subr.mxu1 %v6119_v13  ;;  %6037 = vmatpush1.msra.mxu0 %v5994_v5  ;;  %v6372_v50 = vld [vmem:[#allocation16 + $0x580] sm:$0xff]  ;;  %v6247_v13 = vld [vmem:[#allocation16 + $0x478] sm:$0xff] }
 0x502   : > { %6161 = vmatpush1.msra.mxu1 %v6118_v23  ;;  %6038 = vmatprep.subr.mxu0 %v5993_v10  ;;  %v6371_v5 = vld [vmem:[#allocation16 + $0x578] sm:$0xff]  ;;  %v6246_v23 = vld [vmem:[#allocation16 + $0x470] sm:$0xff] }
 0x503   : > { %6162 = vmatprep.subr.mxu1 %v6117_v12  ;;  %6039 = vmatpush1.msra.mxu0 %v5992_v40  ;;  %v6370_v10 = vld [vmem:[#allocation16 + $0x570] sm:$0xff]  ;;  %v6245_v12 = vld [vmem:[#allocation16 + $0x468] sm:$0xff] }
 0x504   : > { %6163 = vmatpush1.msra.mxu1 %v6116_v7  ;;  %6040 = vmatprep.subr.mxu0 %v5991_v58  ;;  %v6369_v40 = vld [vmem:[#allocation16 + $0x568] sm:$0xff]  ;;  %v6244_v7 = vld [vmem:[#allocation16 + $0x460] sm:$0xff] }
 0x505   : > { %6164 = vmatprep.subr.mxu1 %v6115_v21  ;;  %6041 = vmatpush1.msra.mxu0 %v5990_v34  ;;  %v6368_v58 = vld [vmem:[#allocation16 + $0x560] sm:$0xff]  ;;  %v6243_v21 = vld [vmem:[#allocation16 + $0x458] sm:$0xff] }
 0x506   : > { %6165 = vmatpush1.msra.mxu1 %v6114_v46  ;;  %6042 = vmatprep.subr.mxu0 %v5989_v26  ;;  %v6367_v34 = vld [vmem:[#allocation16 + $0x558] sm:$0xff]  ;;  %v6242_v46 = vld [vmem:[#allocation16 + $0x450] sm:$0xff] }
 0x507   : > { %6166 = vmatprep.subr.mxu1 %v6113_v44  ;;  %6043 = vmatpush1.msra.mxu0 %v5988_v52  ;;  %v6366_v26 = vld [vmem:[#allocation16 + $0x550] sm:$0xff]  ;;  %v6241_v44 = vld [vmem:[#allocation16 + $0x448] sm:$0xff] }
 0x508   : > { %6167 = vmatpush1.msra.mxu1 %v6112_v62  ;;  %6044 = vmatprep.subr.mxu0 %v5987_v2  ;;  %v6365_v52 = vld [vmem:[#allocation16 + $0x548] sm:$0xff]  ;;  %v6240_v62 = vld [vmem:[#allocation16 + $0x440] sm:$0xff] }
 0x509   : > { %6168 = vmatprep.subr.mxu1 %v6111_v59  ;;  %6045 = vmatpush1.msra.mxu0 %v5986_v20  ;;  %v6364_v2 = vld [vmem:[#allocation16 + $0x540] sm:$0xff]  ;;  %v6239_v59 = vld [vmem:[#allocation16 + $0x438] sm:$0xff] }
 0x50a   : > { %6169 = vmatpush1.msra.mxu1 %v6110_v30  ;;  %6046 = vmatprep.subr.mxu0 %v5985_v11  ;;  %v6363_v20 = vld [vmem:[#allocation16 + $0x538] sm:$0xff]  ;;  %v6238_v30 = vld [vmem:[#allocation16 + $0x430] sm:$0xff] }
 0x50b   : > { %6170 = vmatprep.subr.mxu1 %v6109_v45  ;;  %6047 = vmatpush1.msra.mxu0 %v5984_v60  ;;  %v6362_v11 = vld [vmem:[#allocation16 + $0x530] sm:$0xff]  ;;  %v6237_v45 = vld [vmem:[#allocation16 + $0x428] sm:$0xff] }
 0x50c   : > { %6080 = vmatprep.mubr.f32.mxu0 %v13919_v54  ;;  %6171 = vmatpush1.msra.mxu1 %v6108_v33  ;;  %v6361_v60 = vld [vmem:[#allocation16 + $0x528] sm:$0xff]  ;;  %v6236_v33 = vld [vmem:[#allocation16 + $0x420] sm:$0xff] }
 0x50d   : > { %6204 = vmatprep.mubr.f32.mxu1 %v13919_v54  ;;  %6081 = vmatmul.mubr.f32.vlgmr.msra.gmra.mxu0 %v5981_v27  ;;  %v6234_v27 = vld [vmem:[#allocation16 + $0x410] sm:$0xff] }
 0x50e   : > { %6205 = vmatmul.mubr.f32.vlgmr.msra.gmra.mxu1 %v6105_v37  ;;  %6264 = vmatprep.subr.mxu0 %v6263_v48  ;;  %v6360_v48 = vld [vmem:[#allocation16 + $0x520] sm:$0xff]  ;;  %v6358_v37 = vld [vmem:[#allocation16 + $0x510] sm:$0xff] }
 0x50f   : > { %6388 = vmatprep.subr.mxu1 %v6387_v17  ;;  %6265 = vmatpush1.msra.mxu0 %v6262_v61  ;;  %v6235_v17 = vld [vmem:[#allocation16 + $0x418] sm:$0xff] }
 0x510   : > { %6389 = vmatpush1.msra.mxu1 %v6386_v35  ;;  %6266 = vmatprep.subr.mxu0 %v6261_v0  ;;  %v6359_v61 = vld [vmem:[#allocation16 + $0x518] sm:$0xff]  ;;  %v6233_v35 = vld [vmem:[#allocation16 + $0x408] sm:$0xff] }
 0x511   : > { %6390 = vmatprep.subr.mxu1 %v6385_v28  ;;  %6086 = vmatprep.mubr.f32.mxu0 %v13919_v54  ;;  %v6357_v0 = vld [vmem:[#allocation16 + $0x508] sm:$0xff]  ;;  %v6232_v28 = vld [vmem:[#allocation16 + $0x400] sm:$0xff] }
 0x512   : > { %6210 = vmatprep.mubr.f32.mxu1 %v13919_v54  ;;  %6267 = vmatpush1.msra.mxu0 %v6260_v41  ;;  %v6356_v41 = vld [vmem:[#allocation16 + $0x500] sm:$0xff] }
 0x513   : > { %6391 = vmatpush1.msra.mxu1 %v6384_v53  ;;  %6087 = vmatmul.mubr.f32.gmra.mxu0 %v5982_v55  ;;  %v6511_v53 = vld [vmem:[#allocation16 + $0x6f8] sm:$0xff]  ;;  %v6634_v55 = vld [vmem:[#allocation16 + $0x7f0] sm:$0xff] }
 0x514   : > { %6211 = vmatmul.mubr.f32.gmra.mxu1 %v13935_v8  ;;  %6268 = vmatprep.subr.mxu0 %v6259_v24  ;;  %v6635_v24 = vld [vmem:[#allocation16 + $0x7f8] sm:$0xff] }
 0x515   : > { %6392 = vmatprep.subr.mxu1 %v6383_v43  ;;  %6269 = vmatpush1.msra.mxu0 %v6258_v32  ;;  %v6229_v43 = vld [vmem:[#allocation4 + $0x7] sm:$0xff] }
 0x516   : > { %6393 = vmatpush1.msra.mxu1 %v6382_v38  ;;  %6270 = vmatprep.subr.mxu0 %v6257_v25  ;;  %v6510_v32 = vld [vmem:[#allocation16 + $0x6f0] sm:$0xff]  ;;  %v6509_v38 = vld [vmem:[#allocation16 + $0x6e8] sm:$0xff] }
 0x517   : > { %6394 = vmatprep.subr.mxu1 %v6381_v29  ;;  %6092 = vmatprep.mubr.f32.mxu0 %v13919_v54  ;;  %v6633_v25 = vld [vmem:[#allocation16 + $0x7e8] sm:$0xff]  ;;  %v6508_v29 = vld [vmem:[#allocation16 + $0x6e0] sm:$0xff] }
 0x518   : > { %6216 = vmatprep.mubr.f32.mxu1 %v13919_v54  ;;  %6271 = vmatpush1.msra.mxu0 %v6256_v51  ;;  %v6632_v51 = vld [vmem:[#allocation16 + $0x7e0] sm:$0xff] }
 0x519   : > { %6395 = vmatpush1.msra.mxu1 %v6380_v31  ;;  %6093 = vmatmul.mubr.f32.gmra.mxu0 %v5983_v16  ;;  %v6507_v31 = vld [vmem:[#allocation16 + $0x6d8] sm:$0xff]  ;;  %v6505_v16 = vld [vmem:[#allocation16 + $0x6c8] sm:$0xff] }
 0x51a   : > { %6217 = vmatmul.mubr.f32.gmra.mxu1 %v13940_v3  ;;  %6272 = vmatprep.subr.mxu0 %v6255_v57  ;;  %v6631_v57 = vld [vmem:[#allocation16 + $0x7d8] sm:$0xff] }
 0x51b   : > { %6396 = vmatprep.subr.mxu1 %v6379_v22  ;;  %6273 = vmatpush1.msra.mxu0 %v6254_v1  ;;  %v6230_v22 = vld [vmem:[#allocation4 + $0xf] sm:$0xff] }
 0x51c   : > { %6397 = vmatpush1.msra.mxu1 %v6378_v14  ;;  %6274 = vmatprep.subr.mxu0 %v6253_v18  ;;  %v6630_v1 = vld [vmem:[#allocation16 + $0x7d0] sm:$0xff]  ;;  %v6629_v14 = vld [vmem:[#allocation16 + $0x7c8] sm:$0xff]  ;;  %v6504_v18 = vld [vmem:[#allocation16 + $0x6c0] sm:$0xff] }
 0x51d   : > { %6398 = vmatprep.subr.mxu1 %v6377_v15  ;;  %6275 = vmatpush1.msra.mxu0 %v6252_v47  ;;  %v6628_v15 = vld [vmem:[#allocation16 + $0x7c0] sm:$0xff]  ;;  %v6503_v47 = vld [vmem:[#allocation16 + $0x6b8] sm:$0xff] }
 0x51e   : > { %6399 = vmatpush1.msra.mxu1 %v6376_v56  ;;  %6276 = vmatprep.subr.mxu0 %v6251_v63  ;;  %v6627_v56 = vld [vmem:[#allocation16 + $0x7b8] sm:$0xff]  ;;  %v6502_v63 = vld [vmem:[#allocation16 + $0x6b0] sm:$0xff] }
 0x51f   : > { %6400 = vmatprep.subr.mxu1 %v6375_v49  ;;  %6277 = vmatpush1.msra.mxu0 %v6250_v42  ;;  %v6355_v49 = vld [vmem:[#allocation4 + $0x18] sm:$0xff]  ;;  %v6626_v42 = vld [vmem:[#allocation16 + $0x7b0] sm:$0xff] }
 0x520   : > { %6401 = vmatpush1.msra.mxu1 %v6374_v9  ;;  %6278 = vmatprep.subr.mxu0 %v6249_v36  ;;  %v6501_v9 = vld [vmem:[#allocation16 + $0x6a8] sm:$0xff] }
 0x521   : > { %6402 = vmatprep.subr.mxu1 %v6373_v4  ;;  %6279 = vmatpush1.msra.mxu0 %v6248_v19  ;;  %v6625_v36 = vld [vmem:[#allocation16 + $0x7a8] sm:$0xff]  ;;  %v6500_v4 = vld [vmem:[#allocation16 + $0x6a0] sm:$0xff] }
 0x522   : > { %6403 = vmatpush1.msra.mxu1 %v6372_v50  ;;  %6280 = vmatprep.subr.mxu0 %v6247_v13  ;;  %v6624_v19 = vld [vmem:[#allocation16 + $0x7a0] sm:$0xff]  ;;  %v6499_v50 = vld [vmem:[#allocation16 + $0x698] sm:$0xff] }
 0x523   : > { %6404 = vmatprep.subr.mxu1 %v6371_v5  ;;  %6281 = vmatpush1.msra.mxu0 %v6246_v23  ;;  %v6623_v13 = vld [vmem:[#allocation16 + $0x798] sm:$0xff]  ;;  %v6498_v5 = vld [vmem:[#allocation16 + $0x690] sm:$0xff] }
 0x524   : > { %6405 = vmatpush1.msra.mxu1 %v6370_v10  ;;  %6282 = vmatprep.subr.mxu0 %v6245_v12  ;;  %v6622_v23 = vld [vmem:[#allocation16 + $0x790] sm:$0xff]  ;;  %v6497_v10 = vld [vmem:[#allocation16 + $0x688] sm:$0xff] }
 0x525   : > { %6406 = vmatprep.subr.mxu1 %v6369_v40  ;;  %6283 = vmatpush1.msra.mxu0 %v6244_v7  ;;  %v6621_v12 = vld [vmem:[#allocation16 + $0x788] sm:$0xff]  ;;  %v6496_v40 = vld [vmem:[#allocation16 + $0x680] sm:$0xff] }
 0x526   : > { %6407 = vmatpush1.msra.mxu1 %v6368_v58  ;;  %6284 = vmatprep.subr.mxu0 %v6243_v21  ;;  %v6620_v7 = vld [vmem:[#allocation16 + $0x780] sm:$0xff]  ;;  %v6495_v58 = vld [vmem:[#allocation16 + $0x678] sm:$0xff] }
 0x527   : > { %6408 = vmatprep.subr.mxu1 %v6367_v34  ;;  %6285 = vmatpush1.msra.mxu0 %v6242_v46  ;;  %v6619_v21 = vld [vmem:[#allocation16 + $0x778] sm:$0xff]  ;;  %v6494_v34 = vld [vmem:[#allocation16 + $0x670] sm:$0xff] }
 0x528   : > { %6409 = vmatpush1.msra.mxu1 %v6366_v26  ;;  %6286 = vmatprep.subr.mxu0 %v6241_v44  ;;  %v6618_v46 = vld [vmem:[#allocation16 + $0x770] sm:$0xff]  ;;  %v6493_v26 = vld [vmem:[#allocation16 + $0x668] sm:$0xff] }
 0x529   : > { %6410 = vmatprep.subr.mxu1 %v6365_v52  ;;  %6287 = vmatpush1.msra.mxu0 %v6240_v62  ;;  %v6617_v44 = vld [vmem:[#allocation16 + $0x768] sm:$0xff]  ;;  %v6492_v52 = vld [vmem:[#allocation16 + $0x660] sm:$0xff] }
 0x52a   : > { %6411 = vmatpush1.msra.mxu1 %v6364_v2  ;;  %6288 = vmatprep.subr.mxu0 %v6239_v59  ;;  %v6616_v62 = vld [vmem:[#allocation16 + $0x760] sm:$0xff]  ;;  %v6491_v2 = vld [vmem:[#allocation16 + $0x658] sm:$0xff] }
 0x52b   : > { %6412 = vmatprep.subr.mxu1 %v6363_v20  ;;  %6289 = vmatpush1.msra.mxu0 %v6238_v30  ;;  %v6615_v59 = vld [vmem:[#allocation16 + $0x758] sm:$0xff]  ;;  %v6490_v20 = vld [vmem:[#allocation16 + $0x650] sm:$0xff] }
 0x52c   : > { %6413 = vmatpush1.msra.mxu1 %v6362_v11  ;;  %6290 = vmatprep.subr.mxu0 %v6237_v45  ;;  %v6614_v30 = vld [vmem:[#allocation16 + $0x750] sm:$0xff]  ;;  %v6489_v11 = vld [vmem:[#allocation16 + $0x648] sm:$0xff] }
 0x52d   : > { %6414 = vmatprep.subr.mxu1 %v6361_v60  ;;  %6291 = vmatpush1.msra.mxu0 %v6236_v33  ;;  %v6613_v45 = vld [vmem:[#allocation16 + $0x748] sm:$0xff]  ;;  %v6488_v60 = vld [vmem:[#allocation16 + $0x640] sm:$0xff] }
 0x52e   : > { %6415 = vmatpush1.msra.mxu1 %v6360_v48  ;;  %6292 = vmatprep.subr.mxu0 %v6235_v17  ;;  %v6612_v33 = vld [vmem:[#allocation16 + $0x740] sm:$0xff]  ;;  %v6487_v48 = vld [vmem:[#allocation16 + $0x638] sm:$0xff] }
 0x52f   : > { %6416 = vmatprep.subr.mxu1 %v6359_v61  ;;  %6293 = vmatpush1.msra.mxu0 %v6234_v27  ;;  %v6611_v17 = vld [vmem:[#allocation16 + $0x738] sm:$0xff]  ;;  %v6486_v61 = vld [vmem:[#allocation16 + $0x630] sm:$0xff] }
 0x530   : > { %6417 = vmatpush1.msra.mxu1 %v6358_v37  ;;  %6294 = vmatprep.subr.mxu0 %v6233_v35  ;;  %v6610_v27 = vld [vmem:[#allocation16 + $0x730] sm:$0xff]  ;;  %v6485_v37 = vld [vmem:[#allocation16 + $0x628] sm:$0xff] }
 0x531   : > { %6418 = vmatprep.subr.mxu1 %v6357_v0  ;;  %6295 = vmatpush1.msra.mxu0 %v6232_v28  ;;  %v6609_v35 = vld [vmem:[#allocation16 + $0x728] sm:$0xff]  ;;  %v6484_v0 = vld [vmem:[#allocation16 + $0x620] sm:$0xff] }
 0x532   : > { %6328 = vmatprep.mubr.f32.mxu0 %v13919_v54  ;;  %6419 = vmatpush1.msra.mxu1 %v6356_v41  ;;  %v6608_v28 = vld [vmem:[#allocation16 + $0x720] sm:$0xff]  ;;  %v6483_v41 = vld [vmem:[#allocation16 + $0x618] sm:$0xff] }
 0x533   : > { %6452 = vmatprep.mubr.f32.mxu1 %v13919_v54  ;;  %6329 = vmatmul.mubr.f32.vlgmr.msra.gmra.mxu0 %v6229_v43  ;;  %v6606_v43 = vld [vmem:[#allocation16 + $0x710] sm:$0xff] }
 0x534   : > { %6453 = vmatmul.mubr.f32.vlgmr.msra.gmra.mxu1 %v13923_v6  ;;  %6512 = vmatprep.subr.mxu0 %v6511_v53  ;;  %v6506_v6 = vld [vmem:[#allocation16 + $0x6d0] sm:$0xff]  ;;  %v6607_v53 = vld [vmem:[#allocation16 + $0x718] sm:$0xff] }
 0x535   : > { %6636 = vmatprep.subr.mxu1 %v6635_v24  ;;  %6513 = vmatpush1.msra.mxu0 %v6510_v32  ;;  %v6482_v24 = vld [vmem:[#allocation16 + $0x610] sm:$0xff]  ;;  %v6481_v32 = vld [vmem:[#allocation16 + $0x608] sm:$0xff] }
 0x536   : > { %6637 = vmatpush1.msra.mxu1 %v6634_v55  ;;  %6514 = vmatprep.subr.mxu0 %v6509_v38  ;;  %v6605_v55 = vld [vmem:[#allocation16 + $0x708] sm:$0xff]  ;;  %v6480_v38 = vld [vmem:[#allocation16 + $0x600] sm:$0xff] }
 0x537   : > { %6638 = vmatprep.subr.mxu1 %v6633_v25  ;;  %6334 = vmatprep.mubr.f32.mxu0 %v13919_v54  ;;  %v6604_v25 = vld [vmem:[#allocation16 + $0x700] sm:$0xff] }
 0x538   : > { %6458 = vmatprep.mubr.f32.mxu1 %v13919_v54  ;;  %6515 = vmatpush1.msra.mxu0 %v6508_v29  ;;  %v6759_v29 = vld [vmem:[#allocation16 + $0x8f8] sm:$0xff] }
 0x539   : > { %6639 = vmatpush1.msra.mxu1 %v6632_v51  ;;  %6335 = vmatmul.mubr.f32.gmra.mxu0 %v6230_v22  ;;  %v6477_v51 = vld [vmem:[#allocation4 + $0xc] sm:$0xff]  ;;  %v6757_v22 = vld [vmem:[#allocation16 + $0x8e8] sm:$0xff] }
 0x53a   : > { %6459 = vmatmul.mubr.f32.gmra.mxu1 %v13928_v39  ;;  %6516 = vmatprep.subr.mxu0 %v6507_v31  ;;  %v6231_v39 = vld [vmem:[#allocation4 + $0x17] sm:$0xff]  ;;  %v6601_v31 = vld [vmem:[#allocation4 + $0xd] sm:$0xff] }
 0x53b   : > { %6640 = vmatprep.subr.mxu1 %v6631_v57  ;;  %6517 = vmatpush1.msra.mxu0 %v6506_v6  ;;  %v6758_v57 = vld [vmem:[#allocation16 + $0x8f0] sm:$0xff]  ;;  %v6756_v6 = vld [vmem:[#allocation16 + $0x8e0] sm:$0xff] }
 0x53c   : > { %6641 = vmatpush1.msra.mxu1 %v6630_v1  ;;  %6518 = vmatprep.subr.mxu0 %v6505_v16  ;;  %v6755_v1 = vld [vmem:[#allocation16 + $0x8d8] sm:$0xff] }
 0x53d   : > { %6642 = vmatprep.subr.mxu1 %v6629_v14  ;;  %6340 = vmatprep.mubr.f32.mxu0 %v13919_v54  ;;  %v6602_v16 = vld [vmem:[#allocation4 + $0x15] sm:$0xff]  ;;  %v6754_v14 = vld [vmem:[#allocation16 + $0x8d0] sm:$0xff] }
 0x53e   : > { %6464 = vmatprep.mubr.f32.mxu1 %v13919_v54  ;;  %6519 = vmatpush1.msra.mxu0 %v6504_v18  ;;  %v6478_v18 = vld [vmem:[#allocation4 + $0x14] sm:$0xff] }
 0x53f   : > { %6643 = vmatpush1.msra.mxu1 %v6628_v15  ;;  %6341 = vmatmul.mubr.f32.gmra.mxu0 %v6231_v39  ;;  %v6753_v15 = vld [vmem:[#allocation16 + $0x8c8] sm:$0xff]  ;;  %v6750_v39 = vld [vmem:[#allocation16 + $0x8b0] sm:$0xff] }
 0x540   : > { %6465 = vmatmul.mubr.f32.gmra.mxu1 %v6355_v49  ;;  %6520 = vmatprep.subr.mxu0 %v6503_v47  ;;  %v6752_v47 = vld [vmem:[#allocation16 + $0x8c0] sm:$0xff] }
 0x541   : > { %6644 = vmatprep.subr.mxu1 %v6627_v56  ;;  %6521 = vmatpush1.msra.mxu0 %v6502_v63  ;;  %v6603_v56 = vld [vmem:[#allocation4 + $0x1d] sm:$0xff]  ;;  %v6751_v63 = vld [vmem:[#allocation16 + $0x8b8] sm:$0xff] }
 0x542   : > { %6645 = vmatpush1.msra.mxu1 %v6626_v42  ;;  %6522 = vmatprep.subr.mxu0 %v6501_v9  ;;  %v6479_v49 = vld [vmem:[#allocation4 + $0x1c] sm:$0xff]  ;;  %v6749_v42 = vld [vmem:[#allocation16 + $0x8a8] sm:$0xff] }
 0x543   : > { %6646 = vmatprep.subr.mxu1 %v6625_v36  ;;  %6523 = vmatpush1.msra.mxu0 %v6500_v4  ;;  %v6748_v9 = vld [vmem:[#allocation16 + $0x8a0] sm:$0xff]  ;;  %v6747_v36 = vld [vmem:[#allocation16 + $0x898] sm:$0xff]  ;;  %v6746_v4 = vld [vmem:[#allocation16 + $0x890] sm:$0xff] }
 0x544   : > { %6647 = vmatpush1.msra.mxu1 %v6624_v19  ;;  %6524 = vmatprep.subr.mxu0 %v6499_v50  ;;  %v6745_v19 = vld [vmem:[#allocation16 + $0x888] sm:$0xff]  ;;  %v6744_v50 = vld [vmem:[#allocation16 + $0x880] sm:$0xff] }
 0x545   : > { %6648 = vmatprep.subr.mxu1 %v6623_v13  ;;  %6525 = vmatpush1.msra.mxu0 %v6498_v5  ;;  %v6743_v13 = vld [vmem:[#allocation16 + $0x878] sm:$0xff]  ;;  %v6742_v5 = vld [vmem:[#allocation16 + $0x870] sm:$0xff] }
 0x546   : > { %6649 = vmatpush1.msra.mxu1 %v6622_v23  ;;  %6526 = vmatprep.subr.mxu0 %v6497_v10  ;;  %v6741_v23 = vld [vmem:[#allocation16 + $0x868] sm:$0xff]  ;;  %v6740_v10 = vld [vmem:[#allocation16 + $0x860] sm:$0xff] }
 0x547   : > { %6650 = vmatprep.subr.mxu1 %v6621_v12  ;;  %6527 = vmatpush1.msra.mxu0 %v6496_v40  ;;  %v6739_v12 = vld [vmem:[#allocation16 + $0x858] sm:$0xff]  ;;  %v6738_v40 = vld [vmem:[#allocation16 + $0x850] sm:$0xff] }
 0x548   : > { %6651 = vmatpush1.msra.mxu1 %v6620_v7  ;;  %6528 = vmatprep.subr.mxu0 %v6495_v58  ;;  %v6737_v7 = vld [vmem:[#allocation16 + $0x848] sm:$0xff]  ;;  %v6736_v58 = vld [vmem:[#allocation16 + $0x840] sm:$0xff] }
 0x549   : > { %6652 = vmatprep.subr.mxu1 %v6619_v21  ;;  %6529 = vmatpush1.msra.mxu0 %v6494_v34  ;;  %v6735_v21 = vld [vmem:[#allocation16 + $0x838] sm:$0xff]  ;;  %v6734_v34 = vld [vmem:[#allocation16 + $0x830] sm:$0xff] }
 0x54a   : > { %6653 = vmatpush1.msra.mxu1 %v6618_v46  ;;  %6530 = vmatprep.subr.mxu0 %v6493_v26  ;;  %v6733_v46 = vld [vmem:[#allocation16 + $0x828] sm:$0xff]  ;;  %v6732_v26 = vld [vmem:[#allocation16 + $0x820] sm:$0xff] }
 0x54b   : > { %6654 = vmatprep.subr.mxu1 %v6617_v44  ;;  %6531 = vmatpush1.msra.mxu0 %v6492_v52  ;;  %v6731_v44 = vld [vmem:[#allocation16 + $0x818] sm:$0xff]  ;;  %v6730_v52 = vld [vmem:[#allocation16 + $0x810] sm:$0xff] }
 0x54c   : > { %6655 = vmatpush1.msra.mxu1 %v6616_v62  ;;  %6532 = vmatprep.subr.mxu0 %v6491_v2  ;;  %v6729_v62 = vld [vmem:[#allocation16 + $0x808] sm:$0xff]  ;;  %v6728_v2 = vld [vmem:[#allocation16 + $0x800] sm:$0xff] }
 0x54d   : > { %6656 = vmatprep.subr.mxu1 %v6615_v59  ;;  %6533 = vmatpush1.msra.mxu0 %v6490_v20  ;;  %v6727_v59 = vld [vmem:[#allocation4 + $0x1e] sm:$0xff] }
 0x54e   : > { %6657 = vmatpush1.msra.mxu1 %v6614_v30  ;;  %6534 = vmatprep.subr.mxu0 %v6489_v11  ;;  %v6969_v20 = vld [vmem:[#allocation19 + $0xf8] sm:$0xff]  ;;  %v6968_v30 = vld [vmem:[#allocation19 + $0xf0] sm:$0xff]  ;;  %v6967_v11 = vld [vmem:[#allocation19 + $0xe8] sm:$0xff] }
 0x54f   : > { %6658 = vmatprep.subr.mxu1 %v6613_v45  ;;  %6535 = vmatpush1.msra.mxu0 %v6488_v60  ;;  %v6966_v45 = vld [vmem:[#allocation19 + $0xe0] sm:$0xff]  ;;  %v6965_v60 = vld [vmem:[#allocation19 + $0xd8] sm:$0xff] }
 0x550   : > { %6659 = vmatpush1.msra.mxu1 %v6612_v33  ;;  %6536 = vmatprep.subr.mxu0 %v6487_v48  ;;  %v7037_v33 = vld [vmem:[#allocation19 + $0x2f8] sm:$0xff]  ;;  %v6964_v48 = vld [vmem:[#allocation19 + $0xd0] sm:$0xff] }
 0x551   : > { %6660 = vmatprep.subr.mxu1 %v6611_v17  ;;  %6537 = vmatpush1.msra.mxu0 %v6486_v61  ;;  %v6962_v17 = vld [vmem:[#allocation19 + $0xc0] sm:$0xff]  ;;  %v6960_v61 = vld [vmem:[#allocation19 + $0xb0] sm:$0xff] }
 0x552   : > { %6661 = vmatpush1.msra.mxu1 %v6610_v27  ;;  %6538 = vmatprep.subr.mxu0 %v6485_v37  ;;  %v7035_v27 = vld [vmem:[#allocation19 + $0x2e8] sm:$0xff] }
 0x553   : > { %6662 = vmatprep.subr.mxu1 %v6609_v35  ;;  %6539 = vmatpush1.msra.mxu0 %v6484_v0  ;;  %v6959_v37 = vld [vmem:[#allocation19 + $0xa8] sm:$0xff]  ;;  %v7034_v35 = vld [vmem:[#allocation19 + $0x2e0] sm:$0xff] }
 0x554   : > { %6663 = vmatpush1.msra.mxu1 %v6608_v28  ;;  %6540 = vmatprep.subr.mxu0 %v6483_v41  ;;  %v6958_v0 = vld [vmem:[#allocation19 + $0xa0] sm:$0xff]  ;;  %v7033_v28 = vld [vmem:[#allocation19 + $0x2d8] sm:$0xff] }
 0x555   : > { %6664 = vmatprep.subr.mxu1 %v6607_v53  ;;  %6541 = vmatpush1.msra.mxu0 %v6482_v24  ;;  %v6957_v41 = vld [vmem:[#allocation19 + $0x98] sm:$0xff]  ;;  %v7032_v53 = vld [vmem:[#allocation19 + $0x2d0] sm:$0xff] }
 0x556   : > { %6665 = vmatpush1.msra.mxu1 %v6606_v43  ;;  %6542 = vmatprep.subr.mxu0 %v6481_v32  ;;  %v6956_v24 = vld [vmem:[#allocation19 + $0x90] sm:$0xff]  ;;  %v7031_v43 = vld [vmem:[#allocation19 + $0x2c8] sm:$0xff] }
 0x557   : > { %6666 = vmatprep.subr.mxu1 %v6605_v55  ;;  %6543 = vmatpush1.msra.mxu0 %v6480_v38  ;;  %v6955_v32 = vld [vmem:[#allocation19 + $0x88] sm:$0xff]  ;;  %v7030_v55 = vld [vmem:[#allocation19 + $0x2c0] sm:$0xff] }
 0x558   : > { %6576 = vmatprep.mubr.f32.mxu0 %v13919_v54  ;;  %6667 = vmatpush1.msra.mxu1 %v6604_v25  ;;  %v6954_v38 = vld [vmem:[#allocation19 + $0x80] sm:$0xff]  ;;  %v7029_v25 = vld [vmem:[#allocation19 + $0x2b8] sm:$0xff] }
 0x559   : > { %6700 = vmatprep.mubr.f32.mxu1 %v13919_v54  ;;  %6577 = vmatmul.mubr.f32.vlgmr.msra.gmra.mxu0 %v6477_v51  ;;  %v7028_v51 = vld [vmem:[#allocation19 + $0x2b0] sm:$0xff] }
 0x55a   : > { %6701 = vmatmul.mubr.f32.vlgmr.msra.gmra.mxu1 %v6601_v31  ;;  %6760 = vmatprep.subr.mxu0 %v6759_v29  ;;  %v6953_v29 = vld [vmem:[#allocation19 + $0x78] sm:$0xff]  ;;  %v6952_v31 = vld [vmem:[#allocation19 + $0x70] sm:$0xff] }
 0x55b   : > { %6582 = vmatprep.mubr.f32.mxu0 %v13919_v54  ;;  %6761 = vmatpush1.msra.mxu0 %v6758_v57  ;;  %v7027_v57 = vld [vmem:[#allocation19 + $0x2a8] sm:$0xff] }
 0x55c   : > { %6706 = vmatprep.mubr.f32.mxu1 %v13919_v54  ;;  %6762 = vmatprep.subr.mxu0 %v6757_v22  ;;  %v6951_v22 = vld [vmem:[#allocation19 + $0x68] sm:$0xff] }
 0x55d   : > { %6763 = vmatpush1.msra.mxu0 %v6756_v6  ;;  %7098 = vmatprep.subr.mxu1 %v7037_v33  ;;  %v7026_v6 = vld [vmem:[#allocation19 + $0x2a0] sm:$0xff]  ;;  %v6995_v33 = vld [vmem:[#allocation19 + $0x1c8] sm:$0xff] }
 0x55e   : > { %6707 = vmatmul.mubr.f32.gmra.mxu1 %v6602_v16  ;;  %6583 = vmatmul.mubr.f32.gmra.mxu0 %v6478_v18  ;;  %v7025_v16 = vld [vmem:[#allocation19 + $0x298] sm:$0xff]  ;;  %v7024_v18 = vld [vmem:[#allocation19 + $0x290] sm:$0xff] }
 0x55f   : > { %6764 = vmatprep.subr.mxu0 %v6755_v1  ;;  %6588 = vmatprep.mubr.f32.mxu0 %v13919_v54  ;;  %v6950_v1 = vld [vmem:[#allocation19 + $0x60] sm:$0xff] }
 0x560   : > { %6765 = vmatpush1.msra.mxu0 %v6754_v14  ;;  %6712 = vmatprep.mubr.f32.mxu1 %v13919_v54  ;;  %v6949_v14 = vld [vmem:[#allocation19 + $0x58] sm:$0xff] }
 0x561   : > { %6766 = vmatprep.subr.mxu0 %v6753_v15  ;;  %v6948_v15 = vld [vmem:[#allocation19 + $0x50] sm:$0xff] }
 0x562   : > { %6767 = vmatpush1.msra.mxu0 %v6752_v47  ;;  %6713 = vmatmul.mubr.f32.gmra.mxu1 %v6603_v56  ;;  %v7023_v47 = vld [vmem:[#allocation19 + $0x288] sm:$0xff] }
 0x563   : > { %6589 = vmatmul.mubr.f32.gmra.mxu0 %v6479_v49  ;;  %6768 = vmatprep.subr.mxu0 %v6751_v63  ;;  %v6947_v56 = vld [vmem:[#allocation19 + $0x48] sm:$0xff]  ;;  %v7022_v63 = vld [vmem:[#allocation19 + $0x280] sm:$0xff]  ;;  %v7021_v49 = vld [vmem:[#allocation19 + $0x278] sm:$0xff] }
 0x564   : > { %6769 = vmatpush1.msra.mxu0 %v6750_v39  ;;  %6824 = vmatprep.mubr.f32.mxu0 %v13919_v54  ;;  %v6946_v39 = vld [vmem:[#allocation19 + $0x40] sm:$0xff] }
 0x565   : > { %6770 = vmatprep.subr.mxu0 %v6749_v42  ;;  %v6945_v42 = vld [vmem:[#allocation19 + $0x38] sm:$0xff] }
 0x566   : > { %6771 = vmatpush1.msra.mxu0 %v6748_v9  ;;  %v7020_v9 = vld [vmem:[#allocation19 + $0x270] sm:$0xff] }
 0x567   : > { %6772 = vmatprep.subr.mxu0 %v6747_v36  ;;  %v6944_v36 = vld [vmem:[#allocation19 + $0x30] sm:$0xff] }
 0x568   : > { %6773 = vmatpush1.msra.mxu0 %v6746_v4  ;;  %v7019_v4 = vld [vmem:[#allocation19 + $0x268] sm:$0xff] }
 0x569   : > { %6774 = vmatprep.subr.mxu0 %v6745_v19  ;;  %v6943_v19 = vld [vmem:[#allocation19 + $0x28] sm:$0xff] }
 0x56a   : > { %6775 = vmatpush1.msra.mxu0 %v6744_v50  ;;  %v7018_v50 = vld [vmem:[#allocation19 + $0x260] sm:$0xff] }
 0x56b   : > { %6776 = vmatprep.subr.mxu0 %v6743_v13  ;;  %v6942_v13 = vld [vmem:[#allocation19 + $0x20] sm:$0xff] }
 0x56c   : > { %6777 = vmatpush1.msra.mxu0 %v6742_v5  ;;  %v7017_v5 = vld [vmem:[#allocation19 + $0x258] sm:$0xff] }
 0x56d   : > { %6778 = vmatprep.subr.mxu0 %v6741_v23  ;;  %v6941_v23 = vld [vmem:[#allocation19 + $0x18] sm:$0xff] }
 0x56e   : > { %6779 = vmatpush1.msra.mxu0 %v6740_v10  ;;  %v7016_v10 = vld [vmem:[#allocation19 + $0x250] sm:$0xff] }
 0x56f   : > { %6780 = vmatprep.subr.mxu0 %v6739_v12  ;;  %v6940_v12 = vld [vmem:[#allocation19 + $0x10] sm:$0xff] }
 0x570   : > { %6781 = vmatpush1.msra.mxu0 %v6738_v40  ;;  %v7015_v40 = vld [vmem:[#allocation19 + $0x248] sm:$0xff] }
 0x571   : > { %6782 = vmatprep.subr.mxu0 %v6737_v7  ;;  %v6939_v7 = vld [vmem:[#allocation19 + $0x8] sm:$0xff] }
 0x572   : > { %6783 = vmatpush1.msra.mxu0 %v6736_v58  ;;  %v7014_v58 = vld [vmem:[#allocation19 + $0x240] sm:$0xff] }
 0x573   : > { %6784 = vmatprep.subr.mxu0 %v6735_v21  ;;  %v6938_v21 = vld [vmem:[#allocation19] sm:$0xff] }
 0x574   : > { %6785 = vmatpush1.msra.mxu0 %v6734_v34  ;;  %v7013_v34 = vld [vmem:[#allocation19 + $0x238] sm:$0xff] }
 0x575   : > { %6786 = vmatprep.subr.mxu0 %v6733_v46  ;;  %v7001_v46 = vld [vmem:[#allocation19 + $0x1f8] sm:$0xff] }
 0x576   : > { %6787 = vmatpush1.msra.mxu0 %v6732_v26  ;;  %v7012_v26 = vld [vmem:[#allocation19 + $0x230] sm:$0xff] }
 0x577   : > { %6788 = vmatprep.subr.mxu0 %v6731_v44  ;;  %v7000_v44 = vld [vmem:[#allocation19 + $0x1f0] sm:$0xff] }
 0x578   : > { %6789 = vmatpush1.msra.mxu0 %v6730_v52  ;;  %v7011_v52 = vld [vmem:[#allocation19 + $0x228] sm:$0xff] }
 0x579   : > { %6790 = vmatprep.subr.mxu0 %v6729_v62  ;;  %v6999_v62 = vld [vmem:[#allocation19 + $0x1e8] sm:$0xff] }
 0x57a   : > { %6791 = vmatpush1.msra.mxu0 %v6728_v2  ;;  %v7010_v2 = vld [vmem:[#allocation19 + $0x220] sm:$0xff] }
 0x57b   : > { %6825 = vmatmul.mubr.f32.vlgmr.msra.gmra.mxu0 %v13935_v8  ;;  %7181 = vmatprep.subr.mxu0 %v6969_v20  ;;  %v6963_v8 = vld [vmem:[#allocation19 + $0xc8] sm:$0xff]  ;;  %v7009_v20 = vld [vmem:[#allocation19 + $0x218] sm:$0xff] }
 0x57c   : > { %6830 = vmatprep.mubr.f32.mxu0 %v13919_v54  ;;  %7182 = vmatpush1.msra.mxu0 %v6968_v30  ;;  %v6997_v30 = vld [vmem:[#allocation19 + $0x1d8] sm:$0xff] }
 0x57d   : > { %7183 = vmatprep.subr.mxu0 %v6967_v11  ;;  %v7008_v11 = vld [vmem:[#allocation19 + $0x210] sm:$0xff] }
 0x57e   : > { %7184 = vmatpush1.msra.mxu0 %v6966_v45  ;;  %v6996_v45 = vld [vmem:[#allocation19 + $0x1d0] sm:$0xff] }
 0x57f   : > { %6831 = vmatmul.mubr.f32.gmra.mxu0 %v13940_v3  ;;  %7185 = vmatprep.subr.mxu0 %v6965_v60  ;;  %v6961_v3 = vld [vmem:[#allocation19 + $0xb8] sm:$0xff]  ;;  %v7007_v60 = vld [vmem:[#allocation19 + $0x208] sm:$0xff] }
 0x580   : > { %6836 = vmatprep.mubr.f32.mxu0 %v13919_v54  ;;  %7186 = vmatpush1.msra.mxu0 %v6964_v48  ;;  %v7036_v54 = vld [vmem:[#allocation19 + $0x2f0] sm:$0xff]  ;;  %v7006_v48 = vld [vmem:[#allocation19 + $0x200] sm:$0xff] }
 0x581   : > { %7187 = vmatprep.subr.mxu0 %v6963_v8  ;;  %7099 = vmatpush1.msra.mxu1 %v7036_v54  ;;  %v6994_v8 = vld [vmem:[#allocation19 + $0x1c0] sm:$0xff]  ;;  %v7068_v54 = vld [vmem:[#allocation19 + $0x3f0] sm:$0xff] }
 0x582   : > { %7188 = vmatpush1.msra.mxu0 %v6962_v17  ;;  %7100 = vmatprep.subr.mxu1 %v7035_v27  ;;  %v7069_v17 = vld [vmem:[#allocation19 + $0x3f8] sm:$0xff]  ;;  %v7067_v27 = vld [vmem:[#allocation19 + $0x3e8] sm:$0xff] }
 0x583   : > { %6837 = vmatmul.mubr.f32.gmra.mxu0 %v6727_v59  ;;  %7189 = vmatprep.subr.mxu0 %v6961_v3  ;;  %v6998_v59 = vld [vmem:[#allocation19 + $0x1e0] sm:$0xff]  ;;  %v6993_v3 = vld [vmem:[#allocation19 + $0x1b8] sm:$0xff] }
 0x584   : > { %7190 = vmatpush1.msra.mxu0 %v6960_v61  ;;  %7101 = vmatpush1.msra.mxu1 %v7034_v35  ;;  %v6992_v61 = vld [vmem:[#allocation19 + $0x1b0] sm:$0xff]  ;;  %v7066_v35 = vld [vmem:[#allocation19 + $0x3e0] sm:$0xff] }
 0x585   : > { %7191 = vmatprep.subr.mxu0 %v6959_v37  ;;  %7102 = vmatprep.subr.mxu1 %v7033_v28  ;;  %v6991_v37 = vld [vmem:[#allocation19 + $0x1a8] sm:$0xff]  ;;  %v7065_v28 = vld [vmem:[#allocation19 + $0x3d8] sm:$0xff] }
 0x586   : > { %7192 = vmatpush1.msra.mxu0 %v6958_v0  ;;  %7103 = vmatpush1.msra.mxu1 %v7032_v53  ;;  %v6990_v0 = vld [vmem:[#allocation19 + $0x1a0] sm:$0xff]  ;;  %v7064_v53 = vld [vmem:[#allocation19 + $0x3d0] sm:$0xff] }
 0x587   : > { %7193 = vmatprep.subr.mxu0 %v6957_v41  ;;  %7104 = vmatprep.subr.mxu1 %v7031_v43  ;;  %v6989_v41 = vld [vmem:[#allocation19 + $0x198] sm:$0xff]  ;;  %v7063_v43 = vld [vmem:[#allocation19 + $0x3c8] sm:$0xff] }
 0x588   : > { %7194 = vmatpush1.msra.mxu0 %v6956_v24  ;;  %7105 = vmatpush1.msra.mxu1 %v7030_v55  ;;  %v6988_v24 = vld [vmem:[#allocation19 + $0x190] sm:$0xff]  ;;  %v7062_v55 = vld [vmem:[#allocation19 + $0x3c0] sm:$0xff] }
 0x589   : > { %7195 = vmatprep.subr.mxu0 %v6955_v32  ;;  %7106 = vmatprep.subr.mxu1 %v7029_v25  ;;  %v6987_v32 = vld [vmem:[#allocation19 + $0x188] sm:$0xff]  ;;  %v7061_v25 = vld [vmem:[#allocation19 + $0x3b8] sm:$0xff] }
 0x58a   : > { %7196 = vmatpush1.msra.mxu0 %v6954_v38  ;;  %7107 = vmatpush1.msra.mxu1 %v7028_v51  ;;  %v6986_v38 = vld [vmem:[#allocation19 + $0x180] sm:$0xff]  ;;  %v7060_v51 = vld [vmem:[#allocation19 + $0x3b0] sm:$0xff] }
 0x58b   : > { %7197 = vmatprep.subr.mxu0 %v6953_v29  ;;  %7108 = vmatprep.subr.mxu1 %v7027_v57  ;;  %v6985_v29 = vld [vmem:[#allocation19 + $0x178] sm:$0xff]  ;;  %v7059_v57 = vld [vmem:[#allocation19 + $0x3a8] sm:$0xff] }
 0x58c   : > { %7198 = vmatpush1.msra.mxu0 %v6952_v31  ;;  %7109 = vmatpush1.msra.mxu1 %v7026_v6  ;;  %v6984_v31 = vld [vmem:[#allocation19 + $0x170] sm:$0xff]  ;;  %v7058_v6 = vld [vmem:[#allocation19 + $0x3a0] sm:$0xff] }
 0x58d   : > { %7199 = vmatprep.subr.mxu0 %v6951_v22  ;;  %7110 = vmatprep.subr.mxu1 %v7025_v16  ;;  %v6983_v22 = vld [vmem:[#allocation19 + $0x168] sm:$0xff]  ;;  %v7057_v16 = vld [vmem:[#allocation19 + $0x398] sm:$0xff] }
 0x58e   : > { %7200 = vmatpush1.msra.mxu0 %v6950_v1  ;;  %7111 = vmatpush1.msra.mxu1 %v7024_v18  ;;  %v6982_v1 = vld [vmem:[#allocation19 + $0x160] sm:$0xff]  ;;  %v7056_v18 = vld [vmem:[#allocation19 + $0x390] sm:$0xff] }
 0x58f   : > { %7201 = vmatprep.subr.mxu0 %v6949_v14  ;;  %7112 = vmatprep.subr.mxu1 %v7023_v47  ;;  %v6981_v14 = vld [vmem:[#allocation19 + $0x158] sm:$0xff]  ;;  %v7055_v47 = vld [vmem:[#allocation19 + $0x388] sm:$0xff] }
 0x590   : > { %7202 = vmatpush1.msra.mxu0 %v6948_v15  ;;  %7113 = vmatpush1.msra.mxu1 %v7022_v63  ;;  %v6980_v15 = vld [vmem:[#allocation19 + $0x150] sm:$0xff]  ;;  %v7054_v63 = vld [vmem:[#allocation19 + $0x380] sm:$0xff] }
 0x591   : > { %7203 = vmatprep.subr.mxu0 %v6947_v56  ;;  %7114 = vmatprep.subr.mxu1 %v7021_v49  ;;  %v6979_v56 = vld [vmem:[#allocation19 + $0x148] sm:$0xff]  ;;  %v7053_v49 = vld [vmem:[#allocation19 + $0x378] sm:$0xff] }
 0x592   : > { %7204 = vmatpush1.msra.mxu0 %v6946_v39  ;;  %7115 = vmatpush1.msra.mxu1 %v7020_v9  ;;  %v6978_v39 = vld [vmem:[#allocation19 + $0x140] sm:$0xff]  ;;  %v7052_v9 = vld [vmem:[#allocation19 + $0x370] sm:$0xff] }
 0x593   : > { %7205 = vmatprep.subr.mxu0 %v6945_v42  ;;  %7116 = vmatprep.subr.mxu1 %v7019_v4  ;;  %v6977_v42 = vld [vmem:[#allocation19 + $0x138] sm:$0xff]  ;;  %v7051_v4 = vld [vmem:[#allocation19 + $0x368] sm:$0xff] }
 0x594   : > { %7206 = vmatpush1.msra.mxu0 %v6944_v36  ;;  %7117 = vmatpush1.msra.mxu1 %v7018_v50  ;;  %v6976_v36 = vld [vmem:[#allocation19 + $0x130] sm:$0xff]  ;;  %v7050_v50 = vld [vmem:[#allocation19 + $0x360] sm:$0xff] }
 0x595   : > { %7207 = vmatprep.subr.mxu0 %v6943_v19  ;;  %7118 = vmatprep.subr.mxu1 %v7017_v5  ;;  %v6975_v19 = vld [vmem:[#allocation19 + $0x128] sm:$0xff]  ;;  %v7049_v5 = vld [vmem:[#allocation19 + $0x358] sm:$0xff] }
 0x596   : > { %7208 = vmatpush1.msra.mxu0 %v6942_v13  ;;  %7119 = vmatpush1.msra.mxu1 %v7016_v10  ;;  %v6974_v13 = vld [vmem:[#allocation19 + $0x120] sm:$0xff]  ;;  %v7048_v10 = vld [vmem:[#allocation19 + $0x350] sm:$0xff] }
 0x597   : > { %7209 = vmatprep.subr.mxu0 %v6941_v23  ;;  %7120 = vmatprep.subr.mxu1 %v7015_v40  ;;  %v6973_v23 = vld [vmem:[#allocation19 + $0x118] sm:$0xff]  ;;  %v7047_v40 = vld [vmem:[#allocation19 + $0x348] sm:$0xff] }
 0x598   : > { %7210 = vmatpush1.msra.mxu0 %v6940_v12  ;;  %7121 = vmatpush1.msra.mxu1 %v7014_v58  ;;  %v6972_v12 = vld [vmem:[#allocation19 + $0x110] sm:$0xff]  ;;  %v7046_v58 = vld [vmem:[#allocation19 + $0x340] sm:$0xff] }
 0x599   : > { %7211 = vmatprep.subr.mxu0 %v6939_v7  ;;  %7122 = vmatprep.subr.mxu1 %v7013_v34  ;;  %v6971_v7 = vld [vmem:[#allocation19 + $0x108] sm:$0xff]  ;;  %v7045_v34 = vld [vmem:[#allocation19 + $0x338] sm:$0xff] }
 0x59a   : > { %7212 = vmatpush1.msra.mxu0 %v6938_v21  ;;  %7123 = vmatpush1.msra.mxu1 %v7012_v26  ;;  %v6970_v21 = vld [vmem:[#allocation19 + $0x100] sm:$0xff]  ;;  %v7044_v26 = vld [vmem:[#allocation19 + $0x330] sm:$0xff] }
 0x59b   : > { %7213 = vmatprep.subr.mxu0 %v7001_v46  ;;  %7124 = vmatprep.subr.mxu1 %v7011_v52  ;;  %v7480_v46 = vld [vmem:[#allocation19 + $0x6f8] sm:$0xff]  ;;  %v7042_v52 = vld [vmem:[#allocation19 + $0x320] sm:$0xff] }
 0x59c   : > { %7214 = vmatpush2.msra.mxu0 %v7000_v44  ;;  %7125 = vmatpush1.msra.mxu1 %v7010_v2  ;;  %v7043_v44 = vld [vmem:[#allocation19 + $0x328] sm:$0xff]  ;;  %v7040_v2 = vld [vmem:[#allocation19 + $0x310] sm:$0xff] }
 0x59d   : > { %7215 = vmatprep.subr.mxu0 %v6999_v62  ;;  %7126 = vmatprep.subr.mxu1 %v7009_v20  ;;  %v7041_v62 = vld [vmem:[#allocation19 + $0x318] sm:$0xff]  ;;  %v7038_v20 = vld [vmem:[#allocation19 + $0x300] sm:$0xff] }
 0x59e   : > { %7216 = vmatpush2.msra.mxu0 %v6998_v59  ;;  %7127 = vmatpush1.msra.mxu1 %v7008_v11  ;;  %v7039_v59 = vld [vmem:[#allocation19 + $0x308] sm:$0xff] }
 0x59f   : > { %7217 = vmatprep.subr.mxu0 %v6997_v30  ;;  %7128 = vmatprep.subr.mxu1 %v7007_v60  ;;  %v7299_v30 = vld [vmem:[#allocation19 + $0x4f8] sm:$0xff] }
 0x5a0   : > { %7218 = vmatpush2.msra.mxu0 %v6996_v45  ;;  %7129 = vmatpush1.msra.mxu1 %v7006_v48 }
 0x5a1   : > { %7219 = vmatprep.subr.mxu0 %v6995_v33  ;;  %7130 = vmatprep.subr.mxu1 %v7069_v17 }
 0x5a2   : > { %7220 = vmatpush2.msra.mxu0 %v6994_v8  ;;  %7131 = vmatpush2.msra.mxu1 %v7068_v54 }
 0x5a3   : > { %7221 = vmatprep.subr.mxu0 %v6993_v3  ;;  %7132 = vmatprep.subr.mxu1 %v7067_v27 }
 0x5a4   : > { %7222 = vmatpush2.msra.mxu0 %v6992_v61  ;;  %7133 = vmatpush2.msra.mxu1 %v7066_v35 }
 0x5a5   : > { %7223 = vmatprep.subr.mxu0 %v6991_v37  ;;  %7134 = vmatprep.subr.mxu1 %v7065_v28 }
 0x5a6   : > { %7224 = vmatpush2.msra.mxu0 %v6990_v0  ;;  %7135 = vmatpush2.msra.mxu1 %v7064_v53 }
 0x5a7   : > { %7225 = vmatprep.subr.mxu0 %v6989_v41  ;;  %7136 = vmatprep.subr.mxu1 %v7063_v43 }
 0x5a8   : > { %7226 = vmatpush2.msra.mxu0 %v6988_v24  ;;  %7137 = vmatpush2.msra.mxu1 %v7062_v55  ;;  %v5881_v11 = vpop.f32.mrf.mxu0 }
 0x5a9   : > { %7227 = vmatprep.subr.mxu0 %v6987_v32  ;;  %7138 = vmatprep.subr.mxu1 %v7061_v25  ;;  %v5964_v48 = vpop.f32.mrf.mxu1 }
 0x5aa   : > { %7228 = vmatpush2.msra.mxu0 %v6986_v38  ;;  %7139 = vmatpush2.msra.mxu1 %v7060_v51  ;;  %v5883_v45 = vpop.f32.mrf.mxu0 }
 0x5ab   : > { %7229 = vmatprep.subr.mxu0 %v6985_v29  ;;  %7140 = vmatprep.subr.mxu1 %v7059_v57  ;;  %v5966_v17 = vpop.f32.mrf.mxu1 }
 0x5ac   : > { %7230 = vmatpush2.msra.mxu0 %v6984_v31  ;;  %7141 = vmatpush2.msra.mxu1 %v7058_v6 }
 0x5ad   : > { %7231 = vmatprep.subr.mxu0 %v6983_v22  ;;  %7142 = vmatprep.subr.mxu1 %v7057_v16 }
 0x5ae   : > { %7232 = vmatpush2.msra.mxu0 %v6982_v1  ;;  %7143 = vmatpush2.msra.mxu1 %v7056_v18 }
 0x5af   : > { %7233 = vmatprep.subr.mxu0 %v6981_v14  ;;  %7144 = vmatprep.subr.mxu1 %v7055_v47 }
 0x5b0   : > { %7234 = vmatpush2.msra.mxu0 %v6980_v15  ;;  %7145 = vmatpush2.msra.mxu1 %v7054_v63 }
 0x5b1   : > { %7235 = vmatprep.subr.mxu0 %v6979_v56  ;;  %7146 = vmatprep.subr.mxu1 %v7053_v49  ;;  %v5965_v56 = vadd.f32 %v5964_v48, %v5881_v11 }
 0x5b2   : > { %7236 = vmatpush2.msra.mxu0 %v6978_v39  ;;  %7147 = vmatpush2.msra.mxu1 %v7052_v9  ;;  %v5887_v60 = vpop.f32.mrf.mxu0  ;;  %v5967_v39 = vadd.f32 %v5966_v17, %v5883_v45  ;;  %v6849_v17 = vld [vmem:[#allocation18] ss:$2 sm:$0x3] }
 0x5b3   : > { %7237 = vmatprep.subr.mxu0 %v6977_v42  ;;  %7148 = vmatprep.subr.mxu1 %v7051_v4  ;;  %v5970_v3 = vpop.f32.mrf.mxu1 }
 0x5b4   : > { %7238 = vmatpush2.msra.mxu0 %v6976_v36  ;;  %7149 = vmatpush2.msra.mxu1 %v7050_v50  ;;  %v5889_v33 = vpop.f32.mrf.mxu0  ;;  %v5971_v9 = vadd.f32 %v5970_v3, %v5887_v60 }
 0x5b5   : > { %7239 = vmatprep.subr.mxu0 %v6975_v19  ;;  %7150 = vmatprep.subr.mxu1 %v7049_v5  ;;  %v5972_v27 = vpop.f32.mrf.mxu1 }
 0x5b6   : > { %7240 = vmatpush2.msra.mxu0 %v6974_v13  ;;  %7151 = vmatpush2.msra.mxu1 %v7048_v10  ;;  %v5973_v19 = vadd.f32 %v5972_v27, %v5889_v33 }
 0x5b7   : > { %7241 = vmatprep.subr.mxu0 %v6973_v23  ;;  %7152 = vmatprep.subr.mxu1 %v7047_v40  ;;  %v6851_v23 = vlaneseq }
 0x5b8   : > { %7242 = vmatpush2.msra.mxu0 %v6972_v12  ;;  %7153 = vmatpush2.msra.mxu1 %v7046_v58  ;;  %v5893_v8 = vpop.f32.mrf.mxu0 }
 0x5b9   : > { %7243 = vmatprep.subr.mxu0 %v6971_v7  ;;  %7154 = vmatprep.subr.mxu1 %v7045_v34  ;;  %v5976_v35 = vpop.f32.mrf.mxu1 }
 0x5ba   : > { %7244 = vmatpush2.msra.mxu0 %v6970_v21  ;;  %7155 = vmatpush2.msra.mxu1 %v7044_v26  ;;  %v5895_v54 = vpop.f32.mrf.mxu0  ;;  %v5977_v58 = vadd.f32 %v5976_v35, %v5893_v8  ;;  %v13962_v26 = vshrl.u32 %v6851_v23, 7 }
 0x5bb   : > { %7538 = vmatprep.subr.mxu0 %v7480_v46  ;;  %7156 = vmatprep.subr.mxu1 %v7043_v44  ;;  %v5978_v28 = vpop.f32.mrf.mxu1 }
 0x5bc   : > { %7157 = vmatpush2.msra.mxu1 %v7042_v52  ;;  %v5979_v44 = vadd.f32 %v5978_v28, %v5895_v54  ;;  %v13965_v48 = vsub.s32 0, %v13962_v26  ;;  %v13968_v54 = vsub.s32 1, %v13962_v26 }
 0x5bd   : > { %7158 = vmatprep.subr.mxu1 %v7041_v62 }
 0x5be   : > { %7159 = vmatpush2.msra.mxu1 %v7040_v2 }
 0x5bf   : > { %7160 = vmatprep.subr.mxu1 %v7039_v59 }
 0x5c0   : > { %7161 = vmatpush2.msra.mxu1 %v7038_v20 }
 0x5c1   : > { %7356 = vmatprep.subr.mxu1 %v7299_v30 }
 0x5cd   : > { %v6082_v61 = vpop.f32.mrf.mxu0 }
 0x5ce   : > { %v6206_v41 = vpop.f32.mrf.mxu1  ;;  %v6099_v49 = vadd.f32 %v6082_v61, %v5965_v56 }
 0x5cf   : > { %v6084_v37 = vpop.f32.mrf.mxu0 }
 0x5d0   : > { %v6208_v24 = vpop.f32.mrf.mxu1  ;;  %v6100_v36 = vadd.f32 %v6084_v37, %v5967_v39  ;;  %v6223_v50 = vadd.f32 %v6206_v41, %v6099_v49  ;;  %v6868_v37 = vld [vmem:[#allocation18 + $0x1] ss:$2 sm:$0x3] }
 0x5d2   : > { %v6224_v10 = vadd.f32 %v6208_v24, %v6100_v36 }
 0x5d3   : > { %v6088_v0 = vpop.f32.mrf.mxu0 }
 0x5d4   : > { %v6212_v32 = vpop.f32.mrf.mxu1  ;;  %v6101_v13 = vadd.f32 %v6088_v0, %v5971_v9 }
 0x5d5   : > { %v6090_v53 = vpop.f32.mrf.mxu0 }
 0x5d6   : > { %v6214_v25 = vpop.f32.mrf.mxu1  ;;  %v6102_v12 = vadd.f32 %v6090_v53, %v5973_v19  ;;  %v6225_v34 = vadd.f32 %v6212_v32, %v6101_v13 }
 0x5d8   : > { %v6226_v62 = vadd.f32 %v6214_v25, %v6102_v12 }
 0x5d9   : > { %v6094_v43 = vpop.f32.mrf.mxu0 }
 0x5da   : > { %v6218_v51 = vpop.f32.mrf.mxu1  ;;  %v6103_v52 = vadd.f32 %v6094_v43, %v5977_v58  ;;  %v6854_v43 = vrot.slane %v6849_v17, %v13965_v48 }
 0x5db   : > { %v6096_v55 = vpop.f32.mrf.mxu0 }
 0x5dc   : > { %v6220_v57 = vpop.f32.mrf.mxu1  ;;  %v6104_v30 = vadd.f32 %v6096_v55, %v5979_v44  ;;  %v6227_v8 = vadd.f32 %v6218_v51, %v6103_v52 }
 0x5de   : > { %v6228_v35 = vadd.f32 %v6220_v57, %v6104_v30 }
 0x5f3   : > { %v6330_v38 = vpop.f32.mrf.mxu0 }
 0x5f4   : > { %v6454_v22 = vpop.f32.mrf.mxu1  ;;  %v6347_v40 = vadd.f32 %v6330_v38, %v6223_v50  ;;  %v6873_v38 = vrot.slane %v6868_v37, %v13965_v48 }
 0x5f5   : > { %v6332_v29 = vpop.f32.mrf.mxu0 }
 0x5f6   : > { %v6456_v1 = vpop.f32.mrf.mxu1  ;;  %v6348_v46 = vadd.f32 %v6332_v29, %v6224_v10  ;;  %v6471_v2 = vadd.f32 %v6454_v22, %v6347_v40  ;;  %v6858_v22 = vrot.slane %v6849_v17, %v13968_v54 }
 0x5f8   : > { %v6472_v45 = vadd.f32 %v6456_v1, %v6348_v46 }
 0x5f9   : > { %v6336_v31 = vpop.f32.mrf.mxu0 }
 0x5fa   : > { %v6460_v14 = vpop.f32.mrf.mxu1  ;;  %v6349_v59 = vadd.f32 %v6336_v31, %v6225_v34 }
 0x5fb   : > { %v6338_v6 = vpop.f32.mrf.mxu0 }
 0x5fc   : > { %v6462_v47 = vpop.f32.mrf.mxu1  ;;  %v6350_v60 = vadd.f32 %v6338_v6, %v6226_v62  ;;  %v6473_v3 = vadd.f32 %v6460_v14, %v6349_v59 }
 0x5fe   : > { %v6474_v41 = vadd.f32 %v6462_v47, %v6350_v60  ;;  %v6877_v47 = vrot.slane %v6868_v37, %v13968_v54 }
 0x5ff   : > { %v6342_v16 = vpop.f32.mrf.mxu0 }
 0x600   : > { %v6466_v42 = vpop.f32.mrf.mxu1  ;;  %v6351_v0 = vadd.f32 %v6342_v16, %v6227_v8 }
 0x601   : > { %v6344_v18 = vpop.f32.mrf.mxu0 }
 0x602   : > { %v6468_v5 = vpop.f32.mrf.mxu1  ;;  %v6352_v32 = vadd.f32 %v6344_v18, %v6228_v35  ;;  %v6475_v6 = vadd.f32 %v6466_v42, %v6351_v0 }
 0x604   : > { %v6476_v56 = vadd.f32 %v6468_v5, %v6352_v32 }
 0x619   : > { %v6578_v15 = vpop.f32.mrf.mxu0 }
 0x61a   : > { %v6702_v7 = vpop.f32.mrf.mxu1  ;;  %v6595_v33 = vadd.f32 %v6578_v15, %v6471_v2 }
 0x61b   : > { %v6580_v63 = vpop.f32.mrf.mxu0 }
 0x61c   : > { %v6704_v20 = vpop.f32.mrf.mxu1  ;;  %v6596_v61 = vadd.f32 %v6580_v63, %v6472_v45  ;;  %v6719_v53 = vadd.f32 %v6702_v7, %v6595_v33 }
 0x61e   : > { %v6584_v4 = vpop.f32.mrf.mxu0  ;;  %v6708_v27 = vpop.f32.mrf.mxu1  ;;  %v6720_v25 = vadd.f32 %v6704_v20, %v6596_v61 }
 0x61f   : > { %v6597_v24 = vadd.f32 %v6584_v4, %v6473_v3 }
 0x620   : > { %v6586_v21 = vpop.f32.mrf.mxu0  ;;  %v6710_v51 = vpop.f32.mrf.mxu1 }
 0x621   : > { %v6598_v29 = vadd.f32 %v6586_v21, %v6474_v41  ;;  %v6721_v57 = vadd.f32 %v6708_v27, %v6597_v24 }
 0x622   : > { %v6714_v16 = vpop.f32.mrf.mxu1 }
 0x623   : > { %v6590_v11 = vpop.f32.mrf.mxu0  ;;  %v6722_v39 = vadd.f32 %v6710_v51, %v6598_v29  ;;  %v7477_v29 = vld [vmem:[#allocation19 + $0x6e0] sm:$0xff]  ;;  %v7476_v51 = vld [vmem:[#allocation19 + $0x6d8] sm:$0xff] }
 0x624   : > { %v6599_v63 = vadd.f32 %v6590_v11, %v6475_v6  ;;  %v6716_v50 = vpop.f32.mrf.mxu1  ;;  %v7475_v6 = vld [vmem:[#allocation19 + $0x6d0] sm:$0xff] }
 0x625   : > { %v6592_v28 = vpop.f32.mrf.mxu0 }
 0x626   : > { %v6600_v4 = vadd.f32 %v6592_v28, %v6476_v56  ;;  %v6723_v12 = vadd.f32 %v6714_v16, %v6599_v63  ;;  %v7474_v16 = vld [vmem:[#allocation19 + $0x6c8] sm:$0xff] }
 0x628   : > { %v6724_v5 = vadd.f32 %v6716_v50, %v6600_v4  ;;  %v7298_v4 = vld [vmem:[#allocation19 + $0x4f0] sm:$0xff] }
 0x63b   : > { %v6826_v55 = vpop.f32.mrf.mxu0 }
 0x63c   : > { %v6843_v31 = vadd.f32 %v6826_v55, %v6719_v53  ;;  %v7479_v55 = vld [vmem:[#allocation19 + $0x6f0] sm:$0xff] }
 0x63d   : > { %v6828_v1 = vpop.f32.mrf.mxu0 }
 0x63e   : > { %v6861_v14 = vmul.f32 %v6854_v43, %v6843_v31  ;;  %v6844_v15 = vadd.f32 %v6828_v1, %v6720_v25  ;;  %v7478_v25 = vld [vmem:[#allocation19 + $0x6e8] sm:$0xff] }
 0x63f   : > { %v6832_v18 = vpop.f32.mrf.mxu0 }
 0x640   : > { %v6880_v49 = vadd.f32 %v6873_v38, %v6861_v14  ;;  %v6862_v9 = vmul.f32 %v6858_v22, %v6844_v15  ;;  %v6845_v36 = vadd.f32 %v6832_v18, %v6721_v57  ;;  %v7473_v15 = vld [vmem:[#allocation19 + $0x6c0] sm:$0xff]  ;;  %v7472_v18 = vld [vmem:[#allocation19 + $0x6b8] sm:$0xff] }
 0x641   : > { %v6834_v19 = vpop.f32.mrf.mxu0 }
 0x642   : > { %v6886_v13 = vmul.f32 0.1, %v6880_v49  ;;  %v6881_v23 = vadd.f32 %v6877_v47, %v6862_v9  ;;  %v6863_v42 = vmul.f32 %v6854_v43, %v6845_v36  ;;  %v6846_v10 = vadd.f32 %v6834_v19, %v6722_v39  ;;  %v7471_v36 = vld [vmem:[#allocation19 + $0x6b0] sm:$0xff] }
 0x643   : > { %v6838_v40 = vpop.f32.mrf.mxu0 }
 0x644   : > { %v6892_v7 = vmax.f32 %v6880_v49, %v6886_v13  ;;  %v6887_v58 = vmul.f32 0.1, %v6881_v23  ;;  %v6882_v21 = vadd.f32 %v6873_v38, %v6863_v42  ;;  %v6864_v34 = vmul.f32 %v6858_v22, %v6846_v10  ;;  %v7005_v10 = vld [vmem:[#allocation5 + $0x20] sm:$0x1] }
 0x645   : > { %v6847_v46 = vadd.f32 %v6838_v40, %v6723_v12  ;;  %v6840_v44 = vpop.f32.mrf.mxu0  ;;  %v7470_v40 = vld [vmem:[#allocation19 + $0x6a8] sm:$0xff] }
 0x646   : > { %v6900_v52 = vrot.slane %v6892_v7, 1  ;;  %v6893_v62 = vmax.f32 %v6881_v23, %v6887_v58  ;;  %v6888_v2 = vmul.f32 0.1, %v6882_v21  ;;  %v6883_v59 = vadd.f32 %v6877_v47, %v6864_v34  ;;  %v7297_v23 = vld [vmem:[#allocation19 + $0x4e8] sm:$0xff]  ;;  %v7296_v7 = vld [vmem:[#allocation19 + $0x4e0] sm:$0xff] }
 0x647   : > { %v6865_v20 = vmul.f32 %v6854_v43, %v6847_v46  ;;  %v6848_v30 = vadd.f32 %v6840_v44, %v6724_v5  ;;  %v7469_v58 = vld [vmem:[#allocation19 + $0x6a0] sm:$0xff]  ;;  %v7295_v5 = vld [vmem:[#allocation19 + $0x4d8] sm:$0xff]  ;;  %v7090_v44 = vrot.slane %v7005_v10, 1 }
 0x648   : > { %6904 = vst [vmem:[#allocation5 + $0x18] ss:$28 sps:$4 sm:$0x87] %v6900_v52   ;;  %v6901_v11 = vrot.slane %v6893_v62, 1  ;;  %v6894_v45 = vmax.f32 %v6882_v21, %v6888_v2  ;;  %v6889_v60 = vmul.f32 0.1, %v6883_v59 }
 0x649   : > { %v6884_v33 = vadd.f32 %v6873_v38, %v6865_v20  ;;  %v6866_v8 = vmul.f32 %v6858_v22, %v6848_v30  ;;  %v7468_v46 = vld [vmem:[#allocation19 + $0x698] sm:$0xff]  ;;  %v7467_v62 = vld [vmem:[#allocation19 + $0x690] sm:$0xff]  ;;  %v7293_v30 = vld [vmem:[#allocation19 + $0x4c8] sm:$0xff] }
 0x64a   : > { %6905 = vst [vmem:[#allocation5 + $0x10] ss:$-12 sps:$4 sm:$0x87] %v6901_v11   ;;  %v6910_v17 = vrot.slane %v6894_v45, 1  ;;  %v6895_v3 = vmax.f32 %v6883_v59, %v6889_v60  ;;  %v7004_v2 = vld [vmem:[#allocation5 + $0x8] sm:$0x1] }
 0x64b   : > { %v6890_v61 = vmul.f32 0.1, %v6884_v33  ;;  %v6885_v27 = vadd.f32 %v6877_v47, %v6866_v8  ;;  %v7294_v59 = vld [vmem:[#allocation19 + $0x4d0] sm:$0xff]  ;;  %v7292_v60 = vld [vmem:[#allocation19 + $0x4c0] sm:$0xff]  ;;  %v7088_v8 = vrot.slane %v7004_v2, 1 }
 0x64c   : > { %v6911_v37 = vsel %vm3866_vm0, %v6900_v52, %v6910_v17  ;;  %6920 = vst [vmem:[#allocation5 + $0x48] sm:$0x79] %v6910_v17   ;;  %v6912_v35 = vrot.slane %v6895_v3, 1  ;;  %v7291_v3 = vld [vmem:[#allocation19 + $0x4b8] sm:$0xff]  ;;  %v7276_v10 = vld [vmem:[#allocation19 + $0x440] sm:$0xff]  ;;  %v7270_v2 = vld [vmem:[#allocation19 + $0x410] sm:$0xff] }
 0x64d   : > { %6918 = vst [vmem:[#allocation5 + $0x18] sm:$0xe0] %v6911_v37  ;;  %v6896_v0 = vmax.f32 %v6884_v33, %v6890_v61  ;;  %v6891_v28 = vmul.f32 0.1, %v6885_v27  ;;  %v7465_v33 = vld [vmem:[#allocation19 + $0x680] sm:$0xff]  ;;  %v7464_v61 = vld [vmem:[#allocation19 + $0x678] sm:$0xff] }
 0x64e   : > { %v6913_v41 = vsel %vm3866_vm0, %v6901_v11, %v6912_v35  ;;  %6921 = vst [vmem:[#allocation5 + $0x28] sm:$0x79] %v6912_v35   ;;  %v7466_v11 = vld [vmem:[#allocation19 + $0x688] sm:$0xff]  ;;  %v7463_v37 = vld [vmem:[#allocation19 + $0x670] sm:$0xff] }
 0x64f   : > { %6919 = vst [vmem:[#allocation5 + $0x10] sm:$0xe0] %v6913_v41  ;;  %v6926_v53 = vrot.slane %v6896_v0, 1  ;;  %v6897_v24 = vmax.f32 %v6885_v27, %v6891_v28  ;;  %v6932_v38 = vld [vmem:[#allocation5 + $0x30] sm:$0xff]  ;;  %v7290_v35 = vld [vmem:[#allocation19 + $0x4b0] sm:$0xff]  ;;  %v7289_v41 = vld [vmem:[#allocation19 + $0x4a8] sm:$0xff] }
 0x650   : > { %v7002_v14 = vld [vmem:[#allocation5 + $0x30] sm:$0xfe] }
 0x651   : > { %6930 = vst [vmem:[#allocation5 + $0x8] sm:$0x1e] %v6926_v53  ;;  %v6927_v43 = vrot.slane %v6897_v24, 1  ;;  %v6933_v32 = vld [vmem:[#allocation5] sm:$0xff]  ;;  %v7078_v9 = vrot.slane %v7002_v14, 1  ;;  %v7283_v14 = vld [vmem:[#allocation19 + $0x478] sm:$0xff] }
 0x652   : > { %7245 = vmatprep.mubr.f32.mxu0 %v6933_v32  ;;  %v7003_v22 = vld [vmem:[#allocation5] sm:$0xfe]  ;;  %v7461_v32 = vld [vmem:[#allocation19 + $0x660] sm:$0xff] }
 0x653   : > { %6931 = vst [vmem:[#allocation5 + $0x20] sm:$0x1e] %v6927_v43  ;;  %7246 = vmatmul.mubr.f32.vlgmr.msra.gmra.mxu0 %v6932_v38  ;;  %v7081_v47 = vrot.slane %v7003_v22, 1  ;;  %v13989_v19 = vld [vmem:[#allocation5 + $0x48] sm:$0xff]  ;;  %v7446_v50 = vld [vmem:[#allocation5] sm:$0xc0] }
 0x654   : > { %7539 = vmatpush1.msra.mxu0 %v7479_v55  ;;  %v13976_v31 = vld [vmem:[#allocation5 + $0x18] sm:$0xff]  ;;  %v7521_v21 = vrot.slane %v7446_v50, 6  ;;  %v7084_v34 = vrot.slane %v13989_v19, 1  ;;  %v7265_v17 = vld [vmem:[#allocation5] sm:$0xfc]  ;;  %v7287_v55 = vld [vmem:[#allocation19 + $0x498] sm:$0xff] }
 0x655   : > { %7540 = vmatprep.subr.mxu0 %v7478_v25  ;;  %v13978_v1 = vld [vmem:[#allocation5 + $0x28] sm:$0xff]  ;;  %v7079_v63 = vrot.slane %v13976_v31, 1  ;;  %v7339_v0 = vrot.slane %v7265_v17, 2  ;;  %v7462_v53 = vld [vmem:[#allocation19 + $0x668] sm:$0xff]  ;;  %v7288_v43 = vld [vmem:[#allocation19 + $0x4a0] sm:$0xff] }
 0x656   : > { %7541 = vmatpush1.msra.mxu0 %v7477_v29  ;;  %v13980_v57 = vld [vmem:[#allocation5 + $0x10] sm:$0xff]  ;;  %v7086_v39 = vrot.slane %v13978_v1, 1  ;;  %v7089_v28 = vsel %vm3866_vm0, %v7084_v34, %v7088_v8  ;;  %v7286_v25 = vld [vmem:[#allocation19 + $0x490] sm:$0xff]  ;;  %v7458_v22 = vld [vmem:[#allocation19 + $0x648] sm:$0xff] }
 0x657   : > { %7542 = vmatprep.subr.mxu0 %v7476_v51  ;;  %7251 = vmatprep.mubr.f32.mxu0 %v13980_v57  ;;  %v7082_v56 = vrot.slane %v13980_v57, 1  ;;  %v7080_v13 = vsel %vm3866_vm0, %v7078_v9, %v7079_v63  ;;  %v7522_v42 = vrot.slane %v13980_v57, 6  ;;  %v7085_v20 = vsel %vm3866_vm0, %v7079_v63, %v7084_v34  ;;  %v7460_v38 = vld [vmem:[#allocation19 + $0x658] sm:$0xff]  ;;  %v7459_v29 = vld [vmem:[#allocation19 + $0x650] sm:$0xff]  ;;  %v7285_v51 = vld [vmem:[#allocation19 + $0x488] sm:$0xff] }
 0x658   : > { %7543 = vmatpush1.msra.mxu0 %v7475_v6  ;;  %v7091_v45 = vsel %vm3866_vm0, %v7086_v39, %v7090_v44  ;;  %v7340_v27 = vrot.slane %v13980_v57, 2  ;;  %v7284_v6 = vld [vmem:[#allocation19 + $0x480] sm:$0xff]  ;;  %v7281_v63 = vld [vmem:[#allocation19 + $0x468] sm:$0xff]  ;;  %v7279_v9 = vld [vmem:[#allocation19 + $0x458] sm:$0xff] }
 0x659   : > { %7252 = vmatmul.mubr.f32.gmra.mxu0 %v13976_v31  ;;  %7544 = vmatprep.subr.mxu0 %v7474_v16  ;;  %v7083_v49 = vsel %vm3866_vm0, %v7081_v47, %v7082_v56  ;;  %v7087_v12 = vsel %vm3866_vm0, %v7082_v56, %v7086_v39  ;;  %v7523_v52 = vsel %vm7517_vm2, %v7521_v21, %v7522_v42  ;;  %v7457_v16 = vld [vmem:[#allocation19 + $0x640] sm:$0xff]  ;;  %v7282_v47 = vld [vmem:[#allocation19 + $0x470] sm:$0xff]  ;;  %v7273_v34 = vld [vmem:[#allocation19 + $0x428] sm:$0xff] }
 0x65a   : > { %7257 = vmatprep.mubr.f32.mxu0 %v13978_v1  ;;  %7545 = vmatpush1.msra.mxu0 %v7473_v15  ;;  %v7341_v24 = vsel %vm4048_vm1, %v7339_v0, %v7340_v27  ;;  %v7456_v15 = vld [vmem:[#allocation19 + $0x638] sm:$0xff]  ;;  %v7455_v56 = vld [vmem:[#allocation19 + $0x630] sm:$0xff]  ;;  %v7280_v39 = vld [vmem:[#allocation19 + $0x460] sm:$0xff] }
 0x65b   : > { %7162 = vmatprep.mubr.f32.mxu1 %v7083_v49  ;;  %7546 = vmatprep.subr.mxu0 %v7472_v18  ;;  %v7454_v18 = vld [vmem:[#allocation19 + $0x628] sm:$0xff]  ;;  %v7453_v49 = vld [vmem:[#allocation19 + $0x620] sm:$0xff]  ;;  %v7451_v50 = vld [vmem:[#allocation19 + $0x610] sm:$0xff] }
 0x65c   : > { %7163 = vmatmul.mubr.f32.vlgmr.msra.gmra.mxu1 %v7080_v13  ;;  %7547 = vmatpush1.msra.mxu0 %v7471_v36  ;;  %v7452_v36 = vld [vmem:[#allocation19 + $0x618] sm:$0xff]  ;;  %v7277_v13 = vld [vmem:[#allocation19 + $0x448] sm:$0xff]  ;;  %v7511_v21 = vld [vmem:[#allocation19 + $0x7f0] sm:$0xff] }
 0x65d   : > { %7357 = vmatpush1.msra.mxu1 %v7298_v4  ;;  %7168 = vmatprep.mubr.f32.mxu1 %v7087_v12  ;;  %v7278_v4 = vld [vmem:[#allocation19 + $0x450] sm:$0xff]  ;;  %v7449_v12 = vld [vmem:[#allocation19 + $0x600] sm:$0xff]  ;;  %v7327_v0 = vld [vmem:[#allocation19 + $0x5d8] sm:$0xff] }
 0x65e   : > { %7258 = vmatmul.mubr.f32.gmra.mxu0 %v13989_v19  ;;  %7358 = vmatprep.subr.mxu1 %v7297_v23  ;;  %v7450_v23 = vld [vmem:[#allocation19 + $0x608] sm:$0xff]  ;;  %v7509_v44 = vld [vmem:[#allocation19 + $0x7e0] sm:$0xff]  ;;  %v7330_v8 = vld [vmem:[#allocation19 + $0x5f0] sm:$0xff] }
 0x65f   : > { %7548 = vmatprep.subr.mxu0 %v7470_v40  ;;  %7359 = vmatpush1.msra.mxu1 %v7296_v7  ;;  %v7275_v40 = vld [vmem:[#allocation19 + $0x438] sm:$0xff]  ;;  %v7503_v17 = vld [vmem:[#allocation19 + $0x7b0] sm:$0xff] }
 0x660   : > { %7549 = vmatpush1.msra.mxu0 %v7469_v58  ;;  %7602 = vmatprep.mubr.f32.mxu0 %v7523_v52  ;;  %v7512_v7 = vld [vmem:[#allocation19 + $0x7f8] sm:$0xff]  ;;  %v7274_v58 = vld [vmem:[#allocation19 + $0x430] sm:$0xff] }
 0x661   : > { %7360 = vmatprep.subr.mxu1 %v7295_v5  ;;  %7550 = vmatprep.subr.mxu0 %v7468_v46  ;;  %v7510_v5 = vld [vmem:[#allocation19 + $0x7e8] sm:$0xff]  ;;  %v7272_v46 = vld [vmem:[#allocation19 + $0x420] sm:$0xff]  ;;  %v7271_v52 = vld [vmem:[#allocation19 + $0x418] sm:$0xff] }
 0x662   : > { %7169 = vmatmul.mubr.f32.gmra.mxu1 %v7085_v20  ;;  %7551 = vmatpush1.msra.mxu0 %v7467_v62  ;;  %v7508_v62 = vld [vmem:[#allocation19 + $0x7d8] sm:$0xff]  ;;  %v7269_v20 = vld [vmem:[#allocation19 + $0x408] sm:$0xff] }
 0x663   : > { %7361 = vmatpush1.msra.mxu1 %v7294_v59  ;;  %7174 = vmatprep.mubr.f32.mxu1 %v7091_v45  ;;  %v7507_v59 = vld [vmem:[#allocation19 + $0x7d0] sm:$0xff]  ;;  %v7505_v45 = vld [vmem:[#allocation19 + $0x7c0] sm:$0xff] }
 0x664   : > { %7362 = vmatprep.subr.mxu1 %v7293_v30  ;;  %7552 = vmatprep.subr.mxu0 %v7466_v11  ;;  %v7506_v30 = vld [vmem:[#allocation19 + $0x7c8] sm:$0xff]  ;;  %v7268_v11 = vld [vmem:[#allocation19 + $0x400] sm:$0xff] }
 0x665   : > { %7363 = vmatpush1.msra.mxu1 %v7292_v60  ;;  %7553 = vmatpush1.msra.mxu0 %v7465_v33  ;;  %v7331_v60 = vld [vmem:[#allocation19 + $0x5f8] sm:$0xff] }
 0x666   : > { %7364 = vmatprep.subr.mxu1 %v7291_v3  ;;  %7554 = vmatprep.subr.mxu0 %v7464_v61  ;;  %v7504_v33 = vld [vmem:[#allocation19 + $0x7b8] sm:$0xff]  ;;  %v7329_v3 = vld [vmem:[#allocation19 + $0x5e8] sm:$0xff] }
 0x667   : > { %7175 = vmatmul.mubr.f32.gmra.mxu1 %v7089_v28  ;;  %7555 = vmatpush1.msra.mxu0 %v7463_v37  ;;  %v7502_v61 = vld [vmem:[#allocation19 + $0x7a8] sm:$0xff]  ;;  %v7328_v37 = vld [vmem:[#allocation19 + $0x5e0] sm:$0xff]  ;;  %v7500_v28 = vld [vmem:[#allocation19 + $0x798] sm:$0xff] }
 0x668   : > { %7365 = vmatpush1.msra.mxu1 %v7290_v35  ;;  %7420 = vmatprep.mubr.f32.mxu1 %v7341_v24  ;;  %v7501_v35 = vld [vmem:[#allocation19 + $0x7a0] sm:$0xff]  ;;  %v7325_v24 = vld [vmem:[#allocation19 + $0x5c8] sm:$0xff] }
 0x669   : > { %7366 = vmatprep.subr.mxu1 %v7289_v41  ;;  %7556 = vmatprep.subr.mxu0 %v7462_v53  ;;  %v7326_v41 = vld [vmem:[#allocation19 + $0x5d0] sm:$0xff] }
 0x66a   : > { %7367 = vmatpush1.msra.mxu1 %v7288_v43  ;;  %7557 = vmatpush1.msra.mxu0 %v7461_v32  ;;  %v7499_v53 = vld [vmem:[#allocation19 + $0x790] sm:$0xff]  ;;  %v7498_v43 = vld [vmem:[#allocation19 + $0x788] sm:$0xff]  ;;  %v7324_v32 = vld [vmem:[#allocation19 + $0x5c0] sm:$0xff] }
 0x66b   : > { %7368 = vmatprep.subr.mxu1 %v7287_v55  ;;  %7558 = vmatprep.subr.mxu0 %v7460_v38  ;;  %v7497_v55 = vld [vmem:[#allocation19 + $0x780] sm:$0xff]  ;;  %v7323_v38 = vld [vmem:[#allocation19 + $0x5b8] sm:$0xff] }
 0x66c   : > { %7369 = vmatpush1.msra.mxu1 %v7286_v25  ;;  %7559 = vmatpush1.msra.mxu0 %v7459_v29  ;;  %v7496_v25 = vld [vmem:[#allocation19 + $0x778] sm:$0xff]  ;;  %v7322_v29 = vld [vmem:[#allocation19 + $0x5b0] sm:$0xff] }
 0x66d   : > { %7370 = vmatprep.subr.mxu1 %v7285_v51  ;;  %7560 = vmatprep.subr.mxu0 %v7458_v22  ;;  %v7495_v51 = vld [vmem:[#allocation19 + $0x770] sm:$0xff]  ;;  %v7321_v22 = vld [vmem:[#allocation19 + $0x5a8] sm:$0xff] }
 0x66e   : > { %7371 = vmatpush1.msra.mxu1 %v7284_v6  ;;  %7561 = vmatpush1.msra.mxu0 %v7457_v16  ;;  %v7494_v6 = vld [vmem:[#allocation19 + $0x768] sm:$0xff]  ;;  %v7320_v16 = vld [vmem:[#allocation19 + $0x5a0] sm:$0xff] }
 0x66f   : > { %7372 = vmatprep.subr.mxu1 %v7283_v14  ;;  %7562 = vmatprep.subr.mxu0 %v7456_v15  ;;  %v7493_v14 = vld [vmem:[#allocation19 + $0x760] sm:$0xff]  ;;  %v7319_v15 = vld [vmem:[#allocation19 + $0x598] sm:$0xff] }
 0x670   : > { %7373 = vmatpush1.msra.mxu1 %v7282_v47  ;;  %7563 = vmatpush1.msra.mxu0 %v7455_v56  ;;  %v7492_v47 = vld [vmem:[#allocation19 + $0x758] sm:$0xff]  ;;  %v7318_v56 = vld [vmem:[#allocation19 + $0x590] sm:$0xff] }
 0x671   : > { %7374 = vmatprep.subr.mxu1 %v7281_v63  ;;  %7564 = vmatprep.subr.mxu0 %v7454_v18  ;;  %v7491_v63 = vld [vmem:[#allocation19 + $0x750] sm:$0xff]  ;;  %v7317_v18 = vld [vmem:[#allocation19 + $0x588] sm:$0xff] }
 0x672   : > { %7375 = vmatpush1.msra.mxu1 %v7280_v39  ;;  %7565 = vmatpush1.msra.mxu0 %v7453_v49  ;;  %v7490_v39 = vld [vmem:[#allocation19 + $0x748] sm:$0xff]  ;;  %v7316_v49 = vld [vmem:[#allocation19 + $0x580] sm:$0xff] }
 0x673   : > { %7376 = vmatprep.subr.mxu1 %v7279_v9  ;;  %7566 = vmatprep.subr.mxu0 %v7452_v36  ;;  %v7489_v9 = vld [vmem:[#allocation19 + $0x740] sm:$0xff]  ;;  %v7315_v36 = vld [vmem:[#allocation19 + $0x578] sm:$0xff] }
 0x674   : > { %7377 = vmatpush1.msra.mxu1 %v7278_v4  ;;  %7567 = vmatpush1.msra.mxu0 %v7451_v50  ;;  %v7488_v4 = vld [vmem:[#allocation19 + $0x738] sm:$0xff]  ;;  %v7314_v50 = vld [vmem:[#allocation19 + $0x570] sm:$0xff] }
 0x675   : > { %7378 = vmatprep.subr.mxu1 %v7277_v13  ;;  %7568 = vmatprep.subr.mxu0 %v7450_v23  ;;  %v7487_v13 = vld [vmem:[#allocation19 + $0x730] sm:$0xff]  ;;  %v7313_v23 = vld [vmem:[#allocation19 + $0x568] sm:$0xff] }
 0x676   : > { %7379 = vmatpush1.msra.mxu1 %v7276_v10  ;;  %7569 = vmatpush1.msra.mxu0 %v7449_v12  ;;  %v7486_v10 = vld [vmem:[#allocation19 + $0x728] sm:$0xff]  ;;  %v7312_v12 = vld [vmem:[#allocation19 + $0x560] sm:$0xff] }
 0x677   : > { %7380 = vmatprep.subr.mxu1 %v7275_v40  ;;  %7570 = vmatprep.subr.mxu0 %v7512_v7  ;;  %v7485_v40 = vld [vmem:[#allocation19 + $0x720] sm:$0xff]  ;;  %v7311_v7 = vld [vmem:[#allocation19 + $0x558] sm:$0xff] }
 0x678   : > { %7381 = vmatpush1.msra.mxu1 %v7274_v58  ;;  %7571 = vmatpush2.msra.mxu0 %v7511_v21  ;;  %v7484_v58 = vld [vmem:[#allocation19 + $0x718] sm:$0xff]  ;;  %v7310_v21 = vld [vmem:[#allocation19 + $0x550] sm:$0xff] }
 0x679   : > { %7382 = vmatprep.subr.mxu1 %v7273_v34  ;;  %7572 = vmatprep.subr.mxu0 %v7510_v5  ;;  %v7483_v34 = vld [vmem:[#allocation19 + $0x710] sm:$0xff]  ;;  %v7445_v5 = vld [vmem:[#allocation5 + $0x30] sm:$0xc0] }
 0x67a   : > { %7383 = vmatpush1.msra.mxu1 %v7272_v46  ;;  %7573 = vmatpush2.msra.mxu0 %v7509_v44  ;;  %v7309_v46 = vld [vmem:[#allocation19 + $0x548] sm:$0xff] }
 0x67b   : > { %7384 = vmatprep.subr.mxu1 %v7271_v52  ;;  %7574 = vmatprep.subr.mxu0 %v7508_v62  ;;  %v7482_v44 = vld [vmem:[#allocation19 + $0x708] sm:$0xff]  ;;  %v7519_v52 = vrot.slane %v13976_v31, 6  ;;  %v7308_v62 = vld [vmem:[#allocation19 + $0x540] sm:$0xff] }
 0x67c   : > { %7385 = vmatpush1.msra.mxu1 %v7270_v2  ;;  %7575 = vmatpush2.msra.mxu0 %v7507_v59  ;;  %v7481_v2 = vld [vmem:[#allocation19 + $0x700] sm:$0xff]  ;;  %v7307_v59 = vld [vmem:[#allocation19 + $0x538] sm:$0xff] }
 0x67d   : > { %7386 = vmatprep.subr.mxu1 %v7269_v20  ;;  %7576 = vmatprep.subr.mxu0 %v7506_v30  ;;  %v7518_v20 = vrot.slane %v7445_v5, 6  ;;  %v7526_v30 = vrot.slane %v13978_v1, 6 }
 0x67e   : > { %7387 = vmatpush1.msra.mxu1 %v7268_v11  ;;  %7577 = vmatpush2.msra.mxu0 %v7505_v45  ;;  %v7842_v11 = vld [vmem:[#allocation19 + $0xaf8] sm:$0xff]  ;;  %v7306_v45 = vld [vmem:[#allocation19 + $0x530] sm:$0xff] }
 0x67f   : > { %7388 = vmatprep.subr.mxu1 %v7331_v60  ;;  %7578 = vmatprep.subr.mxu0 %v7504_v33  ;;  %v7520_v60 = vsel %vm7517_vm2, %v7518_v20, %v7519_v52  ;;  %v7841_v33 = vld [vmem:[#allocation19 + $0xaf0] sm:$0xff] }
 0x680   : > { %7389 = vmatpush2.msra.mxu1 %v7330_v8  ;;  %7579 = vmatpush2.msra.mxu0 %v7503_v17  ;;  %v7448_v8 = vld [vmem:[#allocation5 + $0x20] sm:$0x3f]  ;;  %v7653_v20 = vld [vmem:[#allocation19 + $0x8b0] sm:$0xff] }
 0x681   : > { %7390 = vmatprep.subr.mxu1 %v7329_v3  ;;  %7580 = vmatprep.subr.mxu0 %v7502_v61  ;;  %v7305_v17 = vld [vmem:[#allocation19 + $0x528] sm:$0xff]  ;;  %v7524_v61 = vrot.slane %v13989_v19, 6 }
 0x682   : > { %7391 = vmatpush2.msra.mxu1 %v7328_v37  ;;  %7581 = vmatpush2.msra.mxu0 %v7501_v35  ;;  %v7840_v3 = vld [vmem:[#allocation19 + $0xae8] sm:$0xff]  ;;  %v7527_v37 = vsel %vm7517_vm2, %v7522_v42, %v7526_v30  ;;  %v7304_v35 = vld [vmem:[#allocation19 + $0x520] sm:$0xff] }
 0x683   : > { %7392 = vmatprep.subr.mxu1 %v7327_v0  ;;  %7582 = vmatprep.subr.mxu0 %v7500_v28  ;;  %v7839_v0 = vld [vmem:[#allocation19 + $0xae0] sm:$0xff]  ;;  %v7303_v28 = vld [vmem:[#allocation19 + $0x518] sm:$0xff]  ;;  %v7301_v42 = vld [vmem:[#allocation19 + $0x508] sm:$0xff] }
 0x684   : > { %7393 = vmatpush2.msra.mxu1 %v7326_v41  ;;  %7583 = vmatpush2.msra.mxu0 %v7499_v53  ;;  %v7530_v41 = vrot.slane %v7448_v8, 6  ;;  %v7447_v53 = vld [vmem:[#allocation5 + $0x8] sm:$0x3f] }
 0x685   : > { %7394 = vmatprep.subr.mxu1 %v7325_v24  ;;  %7584 = vmatprep.subr.mxu0 %v7498_v43  ;;  %v7838_v24 = vld [vmem:[#allocation19 + $0xad8] sm:$0xff]  ;;  %v7302_v43 = vld [vmem:[#allocation19 + $0x510] sm:$0xff] }
 0x686   : > { %7395 = vmatpush2.msra.mxu1 %v7324_v32  ;;  %7585 = vmatpush2.msra.mxu0 %v7497_v55  ;;  %v7525_v32 = vsel %vm7517_vm2, %v7519_v52, %v7524_v61  ;;  %v7837_v55 = vld [vmem:[#allocation19 + $0xad0] sm:$0xff]  ;;  %v7628_v52 = vld [vmem:[#allocation5] sm:$0x80] }
 0x687   : > { %7396 = vmatprep.subr.mxu1 %v7323_v38  ;;  %7586 = vmatprep.subr.mxu0 %v7496_v25  ;;  %v7264_v38 = vld [vmem:[#allocation5 + $0x30] sm:$0xfc]  ;;  %v7836_v25 = vld [vmem:[#allocation19 + $0xac8] sm:$0xff] }
 0x688   : > { %7397 = vmatpush2.msra.mxu1 %v7322_v29  ;;  %7587 = vmatpush2.msra.mxu0 %v7495_v51  ;;  %v7337_v29 = vrot.slane %v13976_v31, 2  ;;  %v7528_v51 = vrot.slane %v7447_v53, 6  ;;  %v7647_v53 = vld [vmem:[#allocation19 + $0x880] sm:$0xff] }
 0x689   : > { %7398 = vmatprep.subr.mxu1 %v7321_v22  ;;  %7588 = vmatprep.subr.mxu0 %v7494_v6  ;;  %v7531_v22 = vsel %vm7517_vm2, %v7526_v30, %v7530_v41  ;;  %v7300_v6 = vld [vmem:[#allocation19 + $0x500] sm:$0xff]  ;;  %v7820_v41 = vld [vmem:[#allocation19 + $0xa48] sm:$0xff] }
 0x68a   : > { %7399 = vmatpush2.msra.mxu1 %v7320_v16  ;;  %7589 = vmatpush2.msra.mxu0 %v7493_v14  ;;  %v7835_v16 = vld [vmem:[#allocation19 + $0xac0] sm:$0xff]  ;;  %v7336_v14 = vrot.slane %v7264_v38, 2  ;;  %v7817_v38 = vld [vmem:[#allocation19 + $0xa30] sm:$0xff] }
 0x68b   : > { %7400 = vmatprep.subr.mxu1 %v7319_v15  ;;  %7590 = vmatprep.subr.mxu0 %v7492_v47  ;;  %v7344_v15 = vrot.slane %v13978_v1, 2  ;;  %v7662_v47 = vld [vmem:[#allocation19 + $0x8f8] sm:$0xff] }
 0x68c   : > { %7401 = vmatpush2.msra.mxu1 %v7318_v56  ;;  %7591 = vmatpush2.msra.mxu0 %v7491_v63  ;;  %v7834_v56 = vld [vmem:[#allocation19 + $0xab8] sm:$0xff]  ;;  %v7338_v31 = vsel %vm4048_vm1, %v7336_v14, %v7337_v29  ;;  %v7529_v63 = vsel %vm7517_vm2, %v7524_v61, %v7528_v51  ;;  %v7815_v51 = vld [vmem:[#allocation19 + $0xa20] sm:$0xff]  ;;  %v7813_v14 = vld [vmem:[#allocation19 + $0xa10] sm:$0xff] }
 0x68d   : > { %7402 = vmatprep.subr.mxu1 %v7317_v18  ;;  %7592 = vmatprep.subr.mxu0 %v7490_v39  ;;  %v7661_v18 = vld [vmem:[#allocation19 + $0x8f0] sm:$0xff]  ;;  %v7267_v39 = vld [vmem:[#allocation5 + $0x20] sm:$0x3]  ;;  %v7345_v1 = vsel %vm4048_vm1, %v7340_v27, %v7344_v15  ;;  %v7650_v61 = vld [vmem:[#allocation19 + $0x898] sm:$0xff] }
 0x68e   : > { %7403 = vmatpush2.msra.mxu1 %v7316_v49  ;;  %7593 = vmatpush2.msra.mxu0 %v7489_v9  ;;  %v7833_v49 = vld [vmem:[#allocation19 + $0xab0] sm:$0xff]  ;;  %v7660_v9 = vld [vmem:[#allocation19 + $0x8e8] sm:$0xff] }
 0x68f   : > { %7404 = vmatprep.subr.mxu1 %v7315_v36  ;;  %7594 = vmatprep.subr.mxu0 %v7488_v4  ;;  %v7832_v36 = vld [vmem:[#allocation19 + $0xaa8] sm:$0xff]  ;;  %v7342_v4 = vrot.slane %v13989_v19, 2 }
 0x690   : > { %7405 = vmatpush2.msra.mxu1 %v7314_v50  ;;  %7595 = vmatpush2.msra.mxu0 %v7487_v13  ;;  %v7659_v50 = vld [vmem:[#allocation19 + $0x8e0] sm:$0xff] }
 0x691   : > { %7406 = vmatprep.subr.mxu1 %v7313_v23  ;;  %7596 = vmatprep.subr.mxu0 %v7486_v10  ;;  %v7831_v13 = vld [vmem:[#allocation19 + $0xaa0] sm:$0xff]  ;;  %v7348_v23 = vrot.slane %v7267_v39, 2  ;;  %v7658_v10 = vld [vmem:[#allocation19 + $0x8d8] sm:$0xff]  ;;  %v7343_v27 = vsel %vm4048_vm1, %v7337_v29, %v7342_v4  ;;  %v7637_v39 = vld [vmem:[#allocation19 + $0x830] sm:$0xff] }
 0x692   : > { %7407 = vmatpush2.msra.mxu1 %v7312_v12  ;;  %7597 = vmatpush2.msra.mxu0 %v7485_v40  ;;  %v7266_v12 = vld [vmem:[#allocation5 + $0x8] sm:$0x3]  ;;  %v7830_v40 = vld [vmem:[#allocation19 + $0xa98] sm:$0xff]  ;;  %v7643_v29 = vld [vmem:[#allocation19 + $0x860] sm:$0xff] }
 0x693   : > { %7408 = vmatprep.subr.mxu1 %v7311_v7  ;;  %7598 = vmatprep.subr.mxu0 %v7484_v58  ;;  %v7657_v7 = vld [vmem:[#allocation19 + $0x8d0] sm:$0xff]  ;;  %v7349_v19 = vsel %vm4048_vm1, %v7344_v15, %v7348_v23  ;;  %v7346_v5 = vrot.slane %v7266_v12, 2  ;;  %v7640_v15 = vld [vmem:[#allocation19 + $0x848] sm:$0xff] }
 0x694   : > { %7409 = vmatpush2.msra.mxu1 %v7310_v21  ;;  %7599 = vmatpush2.msra.mxu0 %v7483_v34  ;;  %v7829_v58 = vld [vmem:[#allocation19 + $0xa90] sm:$0xff]  ;;  %v7656_v21 = vld [vmem:[#allocation19 + $0x8c8] sm:$0xff] }
 0x695   : > { %7410 = vmatprep.subr.mxu1 %v7309_v46  ;;  %7600 = vmatprep.subr.mxu0 %v7482_v44  ;;  %v7828_v34 = vld [vmem:[#allocation19 + $0xa88] sm:$0xff]  ;;  %v7655_v46 = vld [vmem:[#allocation19 + $0x8c0] sm:$0xff]  ;;  %v7347_v30 = vsel %vm4048_vm1, %v7342_v4, %v7346_v5  ;;  %v7633_v23 = vld [vmem:[#allocation19 + $0x810] sm:$0xff] }
 0x696   : > { %7411 = vmatpush2.msra.mxu1 %v7308_v62  ;;  %7601 = vmatpush2.msra.mxu0 %v7481_v2  ;;  %v7827_v44 = vld [vmem:[#allocation19 + $0xa80] sm:$0xff]  ;;  %v7654_v62 = vld [vmem:[#allocation19 + $0x8b8] sm:$0xff]  ;;  %v7704_v2 = vrot.slane %v13980_v57, 7  ;;  %v7632_v12 = vld [vmem:[#allocation19 + $0x808] sm:$0xff] }
 0x697   : > { %7412 = vmatprep.subr.mxu1 %v7307_v59  ;;  %7603 = vmatmul.mubr.f32.vlgmr.msra.gmra.mxu0 %v7520_v60  ;;  %v7826_v59 = vld [vmem:[#allocation19 + $0xa78] sm:$0xff]  ;;  %v7652_v60 = vld [vmem:[#allocation19 + $0x8a8] sm:$0xff]  ;;  %v7871_v4 = vld [vmem:[#allocation19 + $0xbe0] sm:$0xff] }
 0x698   : > { %7875 = vmatprep.subr.mxu0 %v7842_v11  ;;  %7413 = vmatpush2.msra.mxu1 %v7306_v45  ;;  %v7703_v11 = vrot.slane %v7628_v52, 7  ;;  %v7825_v45 = vld [vmem:[#allocation19 + $0xa70] sm:$0xff]  ;;  %v7692_v5 = vld [vmem:[#allocation19 + $0x9e8] sm:$0xff]  ;;  %v7863_v52 = vld [vmem:[#allocation19 + $0xba0] sm:$0xff] }
 0x699   : > { %7608 = vmatprep.mubr.f32.mxu0 %v7527_v37  ;;  %7876 = vmatpush1.msra.mxu0 %v7841_v33  ;;  %v7824_v33 = vld [vmem:[#allocation19 + $0xa68] sm:$0xff]  ;;  %v7822_v37 = vld [vmem:[#allocation19 + $0xa58] sm:$0xff] }
 0x69a   : > { %7414 = vmatprep.subr.mxu1 %v7305_v17  ;;  %7877 = vmatprep.subr.mxu0 %v7840_v3  ;;  %v7705_v8 = vsel %vm7699_vm3, %v7703_v11, %v7704_v2  ;;  %v7651_v17 = vld [vmem:[#allocation19 + $0x8a0] sm:$0xff]  ;;  %v7688_v11 = vld [vmem:[#allocation19 + $0x9c8] sm:$0xff] }
 0x69b   : > { %7415 = vmatpush2.msra.mxu1 %v7304_v35  ;;  %7878 = vmatpush1.msra.mxu0 %v7839_v0  ;;  %v7823_v3 = vld [vmem:[#allocation19 + $0xa60] sm:$0xff]  ;;  %v7649_v35 = vld [vmem:[#allocation19 + $0x890] sm:$0xff] }
 0x69c   : > { %7416 = vmatprep.subr.mxu1 %v7303_v28  ;;  %7609 = vmatmul.mubr.f32.gmra.mxu0 %v7525_v32  ;;  %v7821_v0 = vld [vmem:[#allocation19 + $0xa50] sm:$0xff]  ;;  %v7648_v28 = vld [vmem:[#allocation19 + $0x888] sm:$0xff]  ;;  %v7818_v32 = vld [vmem:[#allocation19 + $0xa38] sm:$0xff] }
 0x69d   : > { %7879 = vmatprep.subr.mxu0 %v7838_v24  ;;  %7417 = vmatpush2.msra.mxu1 %v7302_v43  ;;  %v7819_v24 = vld [vmem:[#allocation19 + $0xa40] sm:$0xff]  ;;  %v7646_v43 = vld [vmem:[#allocation19 + $0x878] sm:$0xff] }
 0x69e   : > { %7614 = vmatprep.mubr.f32.mxu0 %v7531_v22  ;;  %7880 = vmatpush1.msra.mxu0 %v7837_v55  ;;  %v7645_v55 = vld [vmem:[#allocation19 + $0x870] sm:$0xff]  ;;  %v7642_v22 = vld [vmem:[#allocation19 + $0x858] sm:$0xff] }
 0x69f   : > { %7418 = vmatprep.subr.mxu1 %v7301_v42  ;;  %7881 = vmatprep.subr.mxu0 %v7836_v25  ;;  %v7644_v42 = vld [vmem:[#allocation19 + $0x868] sm:$0xff] }
 0x6a0   : > { %7419 = vmatpush2.msra.mxu1 %v7300_v6  ;;  %7882 = vmatpush1.msra.mxu0 %v7835_v16  ;;  %v7816_v25 = vld [vmem:[#allocation19 + $0xa28] sm:$0xff]  ;;  %v7814_v6 = vld [vmem:[#allocation19 + $0xa18] sm:$0xff]  ;;  %v7641_v16 = vld [vmem:[#allocation19 + $0x850] sm:$0xff] }
 0x6a1   : > { %7421 = vmatmul.mubr.f32.vlgmr.msra.gmra.mxu1 %v7338_v31  ;;  %7615 = vmatmul.mubr.f32.gmra.mxu0 %v7529_v63  ;;  %v7811_v31 = vld [vmem:[#allocation19 + $0xa00] sm:$0xff]  ;;  %v7638_v63 = vld [vmem:[#allocation19 + $0x838] sm:$0xff] }
 0x6a2   : > { %7720 = vmatprep.subr.mxu1 %v7662_v47  ;;  %7883 = vmatprep.subr.mxu0 %v7834_v56  ;;  %v7812_v47 = vld [vmem:[#allocation19 + $0xa08] sm:$0xff]  ;;  %v7639_v56 = vld [vmem:[#allocation19 + $0x840] sm:$0xff] }
 0x6a3   : > { %7426 = vmatprep.mubr.f32.mxu1 %v7345_v1  ;;  %7721 = vmatpush1.msra.mxu1 %v7661_v18  ;;  %v7874_v18 = vld [vmem:[#allocation19 + $0xbf8] sm:$0xff]  ;;  %v7636_v1 = vld [vmem:[#allocation19 + $0x828] sm:$0xff] }
 0x6a4   : > { %7884 = vmatpush1.msra.mxu0 %v7833_v49  ;;  %7939 = vmatprep.mubr.f32.mxu0 %v13980_v57  ;;  %v7873_v49 = vld [vmem:[#allocation19 + $0xbf0] sm:$0xff] }
 0x6a5   : > { %7722 = vmatprep.subr.mxu1 %v7660_v9  ;;  %7885 = vmatprep.subr.mxu0 %v7832_v36  ;;  %v7872_v9 = vld [vmem:[#allocation19 + $0xbe8] sm:$0xff]  ;;  %v7635_v36 = vld [vmem:[#allocation19 + $0x820] sm:$0xff]  ;;  %v7629_v57 = vld [vmem:[#allocation5 + $0x8] sm:$0x7f] }
 0x6a6   : > { %7723 = vmatpush1.msra.mxu1 %v7659_v50  ;;  %7886 = vmatpush1.msra.mxu0 %v7831_v13  ;;  %v7634_v50 = vld [vmem:[#allocation19 + $0x818] sm:$0xff] }
 0x6a7   : > { %7427 = vmatmul.mubr.f32.gmra.mxu1 %v7343_v27  ;;  %7724 = vmatprep.subr.mxu1 %v7658_v10  ;;  %v7870_v13 = vld [vmem:[#allocation19 + $0xbd8] sm:$0xff]  ;;  %v7869_v10 = vld [vmem:[#allocation19 + $0xbd0] sm:$0xff]  ;;  %v7631_v27 = vld [vmem:[#allocation19 + $0x800] sm:$0xff] }
 0x6a8   : > { %7887 = vmatprep.subr.mxu0 %v7830_v40  ;;  %7432 = vmatprep.mubr.f32.mxu1 %v7349_v19  ;;  %v7868_v40 = vld [vmem:[#allocation19 + $0xbc8] sm:$0xff]  ;;  %v7866_v19 = vld [vmem:[#allocation19 + $0xbb8] sm:$0xff] }
 0x6a9   : > { %7725 = vmatpush1.msra.mxu1 %v7657_v7  ;;  %7888 = vmatpush1.msra.mxu0 %v7829_v58  ;;  %v7867_v7 = vld [vmem:[#allocation19 + $0xbc0] sm:$0xff]  ;;  %v7694_v58 = vld [vmem:[#allocation19 + $0x9f8] sm:$0xff] }
 0x6aa   : > { %7726 = vmatprep.subr.mxu1 %v7656_v21  ;;  %7889 = vmatprep.subr.mxu0 %v7828_v34  ;;  %v7693_v21 = vld [vmem:[#allocation19 + $0x9f0] sm:$0xff] }
 0x6ab   : > { %7727 = vmatpush1.msra.mxu1 %v7655_v46  ;;  %7890 = vmatpush1.msra.mxu0 %v7827_v44  ;;  %v7865_v34 = vld [vmem:[#allocation19 + $0xbb0] sm:$0xff]  ;;  %v7864_v46 = vld [vmem:[#allocation19 + $0xba8] sm:$0xff]  ;;  %v7691_v44 = vld [vmem:[#allocation19 + $0x9e0] sm:$0xff] }
 0x6ac   : > { %7433 = vmatmul.mubr.f32.gmra.mxu1 %v7347_v30  ;;  %7728 = vmatprep.subr.mxu1 %v7654_v62  ;;  %v7690_v62 = vld [vmem:[#allocation19 + $0x9d8] sm:$0xff]  ;;  %v7861_v30 = vld [vmem:[#allocation19 + $0xb90] sm:$0xff] }
 0x6ad   : > { %7891 = vmatprep.subr.mxu0 %v7826_v59  ;;  %7729 = vmatpush1.msra.mxu1 %v7653_v20  ;;  %v7862_v59 = vld [vmem:[#allocation19 + $0xb98] sm:$0xff]  ;;  %v7689_v20 = vld [vmem:[#allocation19 + $0x9d0] sm:$0xff] }
 0x6ae   : > { %7784 = vmatprep.mubr.f32.mxu1 %v7705_v8  ;;  %7892 = vmatpush1.msra.mxu0 %v7825_v45  ;;  %v7860_v45 = vld [vmem:[#allocation19 + $0xb88] sm:$0xff]  ;;  %v7686_v8 = vld [vmem:[#allocation19 + $0x9b8] sm:$0xff] }
 0x6af   : > { %7730 = vmatprep.subr.mxu1 %v7652_v60  ;;  %7893 = vmatprep.subr.mxu0 %v7824_v33  ;;  %v7687_v60 = vld [vmem:[#allocation19 + $0x9c0] sm:$0xff] }
 0x6b0   : > { %7731 = vmatpush1.msra.mxu1 %v7651_v17  ;;  %7894 = vmatpush1.msra.mxu0 %v7823_v3  ;;  %v7859_v33 = vld [vmem:[#allocation19 + $0xb80] sm:$0xff]  ;;  %v7858_v17 = vld [vmem:[#allocation19 + $0xb78] sm:$0xff]  ;;  %v7685_v3 = vld [vmem:[#allocation19 + $0x9b0] sm:$0xff] }
 0x6b1   : > { %7732 = vmatprep.subr.mxu1 %v7650_v61  ;;  %7895 = vmatprep.subr.mxu0 %v7822_v37  ;;  %v7857_v61 = vld [vmem:[#allocation19 + $0xb70] sm:$0xff]  ;;  %v7684_v37 = vld [vmem:[#allocation19 + $0x9a8] sm:$0xff] }
 0x6b2   : > { %7733 = vmatpush1.msra.mxu1 %v7649_v35  ;;  %7896 = vmatpush1.msra.mxu0 %v7821_v0  ;;  %v7856_v35 = vld [vmem:[#allocation19 + $0xb68] sm:$0xff]  ;;  %v7683_v0 = vld [vmem:[#allocation19 + $0x9a0] sm:$0xff] }
 0x6b3   : > { %7734 = vmatprep.subr.mxu1 %v7648_v28  ;;  %7897 = vmatprep.subr.mxu0 %v7820_v41  ;;  %v7855_v28 = vld [vmem:[#allocation19 + $0xb60] sm:$0xff]  ;;  %v7682_v41 = vld [vmem:[#allocation19 + $0x998] sm:$0xff] }
 0x6b4   : > { %7735 = vmatpush1.msra.mxu1 %v7647_v53  ;;  %7898 = vmatpush1.msra.mxu0 %v7819_v24  ;;  %v7854_v53 = vld [vmem:[#allocation19 + $0xb58] sm:$0xff]  ;;  %v7681_v24 = vld [vmem:[#allocation19 + $0x990] sm:$0xff] }
 0x6b5   : > { %7736 = vmatprep.subr.mxu1 %v7646_v43  ;;  %7899 = vmatprep.subr.mxu0 %v7818_v32  ;;  %v7853_v43 = vld [vmem:[#allocation19 + $0xb50] sm:$0xff]  ;;  %v7680_v32 = vld [vmem:[#allocation19 + $0x988] sm:$0xff] }
 0x6b6   : > { %7737 = vmatpush1.msra.mxu1 %v7645_v55  ;;  %7900 = vmatpush1.msra.mxu0 %v7817_v38  ;;  %v7852_v55 = vld [vmem:[#allocation19 + $0xb48] sm:$0xff]  ;;  %v7679_v38 = vld [vmem:[#allocation19 + $0x980] sm:$0xff] }
 0x6b7   : > { %7738 = vmatprep.subr.mxu1 %v7644_v42  ;;  %7901 = vmatprep.subr.mxu0 %v7816_v25  ;;  %v7851_v42 = vld [vmem:[#allocation19 + $0xb40] sm:$0xff]  ;;  %v7678_v25 = vld [vmem:[#allocation19 + $0x978] sm:$0xff] }
 0x6b8   : > { %7739 = vmatpush1.msra.mxu1 %v7643_v29  ;;  %7902 = vmatpush1.msra.mxu0 %v7815_v51  ;;  %v7850_v29 = vld [vmem:[#allocation19 + $0xb38] sm:$0xff]  ;;  %v7677_v51 = vld [vmem:[#allocation19 + $0x970] sm:$0xff] }
 0x6b9   : > { %7740 = vmatprep.subr.mxu1 %v7642_v22  ;;  %7903 = vmatprep.subr.mxu0 %v7814_v6  ;;  %v7849_v22 = vld [vmem:[#allocation19 + $0xb30] sm:$0xff]  ;;  %v7676_v6 = vld [vmem:[#allocation19 + $0x968] sm:$0xff] }
 0x6ba   : > { %7741 = vmatpush1.msra.mxu1 %v7641_v16  ;;  %7904 = vmatpush1.msra.mxu0 %v7813_v14  ;;  %v7848_v16 = vld [vmem:[#allocation19 + $0xb28] sm:$0xff]  ;;  %v7675_v14 = vld [vmem:[#allocation19 + $0x960] sm:$0xff] }
 0x6bb   : > { %7742 = vmatprep.subr.mxu1 %v7640_v15  ;;  %7905 = vmatprep.subr.mxu0 %v7812_v47  ;;  %v7847_v15 = vld [vmem:[#allocation19 + $0xb20] sm:$0xff]  ;;  %v7674_v47 = vld [vmem:[#allocation19 + $0x958] sm:$0xff] }
 0x6bc   : > { %7743 = vmatpush1.msra.mxu1 %v7639_v56  ;;  %7906 = vmatpush1.msra.mxu0 %v7811_v31  ;;  %v7846_v56 = vld [vmem:[#allocation19 + $0xb18] sm:$0xff]  ;;  %v7673_v31 = vld [vmem:[#allocation19 + $0x950] sm:$0xff] }
 0x6bd   : > { %7744 = vmatprep.subr.mxu1 %v7638_v63  ;;  %7907 = vmatprep.subr.mxu0 %v7874_v18  ;;  %v7845_v63 = vld [vmem:[#allocation19 + $0xb10] sm:$0xff]  ;;  %v7672_v18 = vld [vmem:[#allocation19 + $0x948] sm:$0xff] }
 0x6be   : > { %7745 = vmatpush1.msra.mxu1 %v7637_v39  ;;  %7908 = vmatpush2.msra.mxu0 %v7873_v49  ;;  %v7844_v39 = vld [vmem:[#allocation19 + $0xb08] sm:$0xff]  ;;  %v7671_v49 = vld [vmem:[#allocation19 + $0x940] sm:$0xff] }
 0x6bf   : > { %7746 = vmatprep.subr.mxu1 %v7636_v1  ;;  %7909 = vmatprep.subr.mxu0 %v7872_v9  ;;  %v7843_v1 = vld [vmem:[#allocation19 + $0xb00] sm:$0xff]  ;;  %v7670_v9 = vld [vmem:[#allocation19 + $0x938] sm:$0xff] }
 0x6c0   : > { %7747 = vmatpush1.msra.mxu1 %v7635_v36  ;;  %7910 = vmatpush2.msra.mxu0 %v7871_v4  ;;  %v8189_v36 = vld [vmem:[#allocation19 + $0xef8] sm:$0xff]  ;;  %v7669_v4 = vld [vmem:[#allocation19 + $0x930] sm:$0xff] }
 0x6c1   : > { %7748 = vmatprep.subr.mxu1 %v7634_v50  ;;  %7911 = vmatprep.subr.mxu0 %v7870_v13  ;;  %v8188_v50 = vld [vmem:[#allocation19 + $0xef0] sm:$0xff]  ;;  %v14031_v13 = vld [vmem:[#allocation5 + $0x18] sm:$0xff] }
 0x6c2   : > { %7749 = vmatpush1.msra.mxu1 %v7633_v23  ;;  %7912 = vmatpush2.msra.mxu0 %v7869_v10  ;;  %v7668_v23 = vld [vmem:[#allocation19 + $0x928] sm:$0xff] }
 0x6c3   : > { %7750 = vmatprep.subr.mxu1 %v7632_v12  ;;  %7913 = vmatprep.subr.mxu0 %v7868_v40  ;;  %v8187_v10 = vld [vmem:[#allocation19 + $0xee8] sm:$0xff]  ;;  %v7667_v12 = vld [vmem:[#allocation19 + $0x920] sm:$0xff] }
 0x6c4   : > { %7751 = vmatpush1.msra.mxu1 %v7631_v27  ;;  %7914 = vmatpush2.msra.mxu0 %v7867_v7  ;;  %v8186_v40 = vld [vmem:[#allocation19 + $0xee0] sm:$0xff]  ;;  %v14034_v27 = vld [vmem:[#allocation5 + $0x28] sm:$0xff]  ;;  %v7666_v7 = vld [vmem:[#allocation19 + $0x918] sm:$0xff] }
 0x6c5   : > { %7752 = vmatprep.subr.mxu1 %v7694_v58  ;;  %7915 = vmatprep.subr.mxu0 %v7866_v19  ;;  %v8185_v58 = vld [vmem:[#allocation19 + $0xed8] sm:$0xff]  ;;  %v7665_v19 = vld [vmem:[#allocation19 + $0x910] sm:$0xff] }
 0x6c6   : > { %7753 = vmatpush2.msra.mxu1 %v7693_v21  ;;  %7916 = vmatpush2.msra.mxu0 %v7865_v34  ;;  %v8184_v21 = vld [vmem:[#allocation19 + $0xed0] sm:$0xff]  ;;  %v7627_v34 = vld [vmem:[#allocation5 + $0x30] sm:$0x80] }
 0x6c7   : > { %7754 = vmatprep.subr.mxu1 %v7692_v5  ;;  %7917 = vmatprep.subr.mxu0 %v7864_v46  ;;  %v14037_v5 = vld [vmem:[#allocation5 + $0x28] sm:$0xff] }
 0x6c8   : > { %7755 = vmatpush2.msra.mxu1 %v7691_v44  ;;  %7918 = vmatpush2.msra.mxu0 %v7863_v52  ;;  %v14039_v46 = vld [vmem:[#allocation5 + $0x48] sm:$0xff]  ;;  %v7664_v44 = vld [vmem:[#allocation19 + $0x908] sm:$0xff] }
 0x6c9   : > { %7756 = vmatprep.subr.mxu1 %v7690_v62  ;;  %7919 = vmatprep.subr.mxu0 %v7862_v59  ;;  %v8183_v52 = vld [vmem:[#allocation19 + $0xec8] sm:$0xff]  ;;  %v7701_v62 = vrot.slane %v14031_v13, 7  ;;  %v8155_v59 = vld [vmem:[#allocation5 + $0x10] sm:$0xe0] }
 0x6ca   : > { %7757 = vmatpush2.msra.mxu1 %v7689_v20  ;;  %7920 = vmatpush2.msra.mxu0 %v7861_v30  ;;  %v14043_v20 = vld [vmem:[#allocation5 + $0x20] sm:$0xff]  ;;  %v7663_v30 = vld [vmem:[#allocation19 + $0x900] sm:$0xff] }
 0x6cb   : > { %7758 = vmatprep.subr.mxu1 %v7688_v11  ;;  %7921 = vmatprep.subr.mxu0 %v7860_v45  ;;  %v8182_v11 = vld [vmem:[#allocation19 + $0xec0] sm:$0xff]  ;;  %v7700_v45 = vrot.slane %v7627_v34, 7 }
 0x6cc   : > { %7759 = vmatpush2.msra.mxu1 %v7687_v60  ;;  %7922 = vmatpush2.msra.mxu0 %v7859_v33  ;;  %v7708_v60 = vrot.slane %v14034_v27, 7  ;;  %v8003_v33 = vld [vmem:[#allocation19 + $0xcf8] sm:$0xff]  ;;  %v8166_v34 = vld [vmem:[#allocation19 + $0xe40] sm:$0xff] }
 0x6cd   : > { %7760 = vmatprep.subr.mxu1 %v7686_v8  ;;  %7923 = vmatprep.subr.mxu0 %v7858_v17  ;;  %v8181_v8 = vld [vmem:[#allocation19 + $0xeb8] sm:$0xff]  ;;  %v8230_v17 = vrot.slane %v8155_v59, 5  ;;  %v7985_v59 = vld [vmem:[#allocation19 + $0xc68] sm:$0xff] }
 0x6ce   : > { %7761 = vmatpush2.msra.mxu1 %v7685_v3  ;;  %7924 = vmatpush2.msra.mxu0 %v7857_v61  ;;  %v8231_v3 = vrot.slane %v14037_v5, 5  ;;  %v7702_v61 = vsel %vm7699_vm3, %v7700_v45, %v7701_v62  ;;  %v8162_v45 = vld [vmem:[#allocation19 + $0xe20] sm:$0xff] }
 0x6cf   : > { %7762 = vmatprep.subr.mxu1 %v7684_v37  ;;  %7925 = vmatprep.subr.mxu0 %v7856_v35  ;;  %v14049_v37 = vld [vmem:[#allocation5 + $0x8] sm:$0xff] }
 0x6d0   : > { %7763 = vmatpush2.msra.mxu1 %v7683_v0  ;;  %7926 = vmatpush2.msra.mxu0 %v7855_v28  ;;  %v8002_v35 = vld [vmem:[#allocation19 + $0xcf0] sm:$0xff]  ;;  %v7630_v0 = vld [vmem:[#allocation5 + $0x20] sm:$0x7f] }
 0x6d1   : > { %7764 = vmatprep.subr.mxu1 %v7682_v41  ;;  %7927 = vmatprep.subr.mxu0 %v7854_v53  ;;  %v8180_v28 = vld [vmem:[#allocation19 + $0xeb0] sm:$0xff]  ;;  %v7709_v41 = vsel %vm7699_vm3, %v7704_v2, %v7708_v60  ;;  %v8001_v53 = vld [vmem:[#allocation19 + $0xce8] sm:$0xff]  ;;  %v8177_v2 = vld [vmem:[#allocation19 + $0xe98] sm:$0xff] }
 0x6d2   : > { %7765 = vmatpush2.msra.mxu1 %v7681_v24  ;;  %7928 = vmatpush2.msra.mxu0 %v7853_v43  ;;  %v8179_v24 = vld [vmem:[#allocation19 + $0xea8] sm:$0xff]  ;;  %v7706_v43 = vrot.slane %v14039_v46, 7 }
 0x6d3   : > { %7766 = vmatprep.subr.mxu1 %v7680_v32  ;;  %7929 = vmatprep.subr.mxu0 %v7852_v55  ;;  %v8232_v32 = vsel %vm8226_vm4, %v8230_v17, %v8231_v3  ;;  %v8000_v55 = vld [vmem:[#allocation19 + $0xce0] sm:$0xff]  ;;  %v8160_v17 = vld [vmem:[#allocation19 + $0xe10] sm:$0xff] }
 0x6d4   : > { %7767 = vmatpush2.msra.mxu1 %v7679_v38  ;;  %7930 = vmatpush2.msra.mxu0 %v7851_v42  ;;  %v8178_v38 = vld [vmem:[#allocation19 + $0xea0] sm:$0xff]  ;;  %v7712_v42 = vrot.slane %v7630_v0, 7 }
 0x6d5   : > { %7768 = vmatprep.subr.mxu1 %v7678_v25  ;;  %7931 = vmatprep.subr.mxu0 %v7850_v29  ;;  %v7999_v25 = vld [vmem:[#allocation19 + $0xcd8] sm:$0xff]  ;;  %v7707_v29 = vsel %vm7699_vm3, %v7701_v62, %v7706_v43  ;;  %v8164_v62 = vld [vmem:[#allocation19 + $0xe30] sm:$0xff]  ;;  %v7980_v0 = vld [vmem:[#allocation19 + $0xc40] sm:$0xff] }
 0x6d6   : > { %7769 = vmatpush2.msra.mxu1 %v7677_v51  ;;  %7932 = vmatpush2.msra.mxu0 %v7849_v22  ;;  %v7998_v51 = vld [vmem:[#allocation19 + $0xcd0] sm:$0xff] }
 0x6d7   : > { %7770 = vmatprep.subr.mxu1 %v7676_v6  ;;  %7933 = vmatprep.subr.mxu0 %v7848_v16  ;;  %v8176_v22 = vld [vmem:[#allocation19 + $0xe90] sm:$0xff]  ;;  %v7965_v6 = vld [vmem:[#allocation5 + $0x10] sm:$0xf0]  ;;  %v7713_v16 = vsel %vm7699_vm3, %v7708_v60, %v7712_v42  ;;  %v8218_v42 = vld [vmem:[#allocation19 + $0xfe0] sm:$0xff] }
 0x6d8   : > { %7771 = vmatpush2.msra.mxu1 %v7675_v14  ;;  %7934 = vmatpush2.msra.mxu0 %v7847_v15  ;;  %v7997_v14 = vld [vmem:[#allocation19 + $0xcc8] sm:$0xff]  ;;  %v7983_v60 = vld [vmem:[#allocation19 + $0xc58] sm:$0xff] }
 0x6d9   : > { %7772 = vmatprep.subr.mxu1 %v7674_v47  ;;  %7935 = vmatprep.subr.mxu0 %v7846_v56  ;;  %v8175_v15 = vld [vmem:[#allocation19 + $0xe88] sm:$0xff]  ;;  %v7710_v47 = vrot.slane %v7629_v57, 7  ;;  %v7996_v56 = vld [vmem:[#allocation19 + $0xcc0] sm:$0xff]  ;;  %v8217_v57 = vld [vmem:[#allocation19 + $0xfd8] sm:$0xff] }
 0x6da   : > { %7773 = vmatpush2.msra.mxu1 %v7673_v31  ;;  %7936 = vmatpush2.msra.mxu0 %v7845_v63  ;;  %v8174_v31 = vld [vmem:[#allocation19 + $0xe80] sm:$0xff]  ;;  %v7995_v63 = vld [vmem:[#allocation19 + $0xcb8] sm:$0xff] }
 0x6db   : > { %7774 = vmatprep.subr.mxu1 %v7672_v18  ;;  %7937 = vmatprep.subr.mxu0 %v7844_v39  ;;  %v8048_v18 = vrot.slane %v7965_v6, 4  ;;  %v8049_v39 = vrot.slane %v14037_v5, 4  ;;  %v7972_v6 = vld [vmem:[#allocation19 + $0xc00] sm:$0xff] }
 0x6dc   : > { %7775 = vmatpush2.msra.mxu1 %v7671_v49  ;;  %7938 = vmatpush2.msra.mxu0 %v7843_v1  ;;  %v8173_v49 = vld [vmem:[#allocation19 + $0xe78] sm:$0xff]  ;;  %v7994_v1 = vld [vmem:[#allocation19 + $0xcb0] sm:$0xff] }
 0x6dd   : > { %7776 = vmatprep.subr.mxu1 %v7670_v9  ;;  %7940 = vmatmul.mubr.f32.vlgmr.msra.gmra.mxu0 %v14031_v13  ;;  %v7711_v9 = vsel %vm7699_vm3, %v7706_v43, %v7710_v47  ;;  %v8050_v13 = vsel %vm8044_vm5, %v8048_v18, %v8049_v39  ;;  %v8220_v43 = vld [vmem:[#allocation19 + $0xff0] sm:$0xff]  ;;  %v8032_v18 = vld [vmem:[#allocation19 + $0xde0] sm:$0xff] }
 0x6de   : > { %8247 = vmatprep.subr.mxu0 %v8189_v36  ;;  %7777 = vmatpush2.msra.mxu1 %v7669_v4  ;;  %v8172_v36 = vld [vmem:[#allocation19 + $0xe70] sm:$0xff]  ;;  %v7993_v4 = vld [vmem:[#allocation19 + $0xca8] sm:$0xff] }
 0x6df   : > { %7945 = vmatprep.mubr.f32.mxu0 %v14034_v27  ;;  %8248 = vmatpush1.msra.mxu0 %v8188_v50  ;;  %v8171_v50 = vld [vmem:[#allocation19 + $0xe68] sm:$0xff]  ;;  %v7990_v27 = vld [vmem:[#allocation19 + $0xc90] sm:$0xff] }
 0x6e0   : > { %7778 = vmatprep.subr.mxu1 %v7668_v23  ;;  %8249 = vmatprep.subr.mxu0 %v8187_v10  ;;  %v7992_v23 = vld [vmem:[#allocation19 + $0xca0] sm:$0xff]  ;;  %v8034_v47 = vld [vmem:[#allocation19 + $0xdf0] sm:$0xff] }
 0x6e1   : > { %7779 = vmatpush2.msra.mxu1 %v7667_v12  ;;  %8250 = vmatpush1.msra.mxu0 %v8186_v40  ;;  %v8170_v10 = vld [vmem:[#allocation19 + $0xe60] sm:$0xff]  ;;  %v7991_v12 = vld [vmem:[#allocation19 + $0xc98] sm:$0xff] }
 0x6e2   : > { %7780 = vmatprep.subr.mxu1 %v7666_v7  ;;  %7946 = vmatmul.mubr.f32.gmra.mxu0 %v14039_v46  ;;  %v8169_v40 = vld [vmem:[#allocation19 + $0xe58] sm:$0xff]  ;;  %v8168_v7 = vld [vmem:[#allocation19 + $0xe50] sm:$0xff] }
 0x6e3   : > { %8251 = vmatprep.subr.mxu0 %v8185_v58  ;;  %7781 = vmatpush2.msra.mxu1 %v7665_v19  ;;  %v7989_v58 = vld [vmem:[#allocation19 + $0xc88] sm:$0xff]  ;;  %v7987_v46 = vld [vmem:[#allocation19 + $0xc78] sm:$0xff] }
 0x6e4   : > { %7951 = vmatprep.mubr.f32.mxu0 %v14043_v20  ;;  %8252 = vmatpush1.msra.mxu0 %v8184_v21  ;;  %v8167_v19 = vld [vmem:[#allocation19 + $0xe48] sm:$0xff]  ;;  %v7988_v21 = vld [vmem:[#allocation19 + $0xc80] sm:$0xff] }
 0x6e5   : > { %7782 = vmatprep.subr.mxu1 %v7664_v44  ;;  %8253 = vmatprep.subr.mxu0 %v8183_v52  ;;  %v8165_v44 = vld [vmem:[#allocation19 + $0xe38] sm:$0xff]  ;;  %v7986_v52 = vld [vmem:[#allocation19 + $0xc70] sm:$0xff] }
 0x6e6   : > { %7783 = vmatpush2.msra.mxu1 %v7663_v30  ;;  %8254 = vmatpush1.msra.mxu0 %v8182_v11  ;;  %v8163_v30 = vld [vmem:[#allocation19 + $0xe28] sm:$0xff]  ;;  %v7984_v11 = vld [vmem:[#allocation19 + $0xc60] sm:$0xff] }
 0x6e7   : > { %7785 = vmatmul.mubr.f32.vlgmr.msra.gmra.mxu1 %v7702_v61  ;;  %7952 = vmatmul.mubr.f32.gmra.mxu0 %v14049_v37  ;;  %v7981_v61 = vld [vmem:[#allocation19 + $0xc48] sm:$0xff] }
 0x6e8   : > { %8065 = vmatprep.subr.mxu1 %v8003_v33  ;;  %8255 = vmatprep.subr.mxu0 %v8181_v8  ;;  %v8161_v33 = vld [vmem:[#allocation19 + $0xe18] sm:$0xff]  ;;  %v7982_v8 = vld [vmem:[#allocation19 + $0xc50] sm:$0xff] }
 0x6e9   : > { %7790 = vmatprep.mubr.f32.mxu1 %v7709_v41  ;;  %8066 = vmatpush1.msra.mxu1 %v8002_v35  ;;  %v8159_v35 = vld [vmem:[#allocation19 + $0xe08] sm:$0xff]  ;;  %v7979_v41 = vld [vmem:[#allocation19 + $0xc38] sm:$0xff] }
 0x6ea   : > { %8256 = vmatpush1.msra.mxu0 %v8180_v28  ;;  %8311 = vmatprep.mubr.f32.mxu0 %v8232_v32  ;;  %v8158_v28 = vld [vmem:[#allocation19 + $0xe00] sm:$0xff]  ;;  %v7977_v32 = vld [vmem:[#allocation19 + $0xc28] sm:$0xff] }
 0x6eb   : > { %8067 = vmatprep.subr.mxu1 %v8001_v53  ;;  %8257 = vmatprep.subr.mxu0 %v8179_v24  ;;  %v8221_v53 = vld [vmem:[#allocation19 + $0xff8] sm:$0xff]  ;;  %v7978_v24 = vld [vmem:[#allocation19 + $0xc30] sm:$0xff] }
 0x6ec   : > { %8068 = vmatpush1.msra.mxu1 %v8000_v55  ;;  %8258 = vmatpush1.msra.mxu0 %v8178_v38  ;;  %v8219_v55 = vld [vmem:[#allocation19 + $0xfe8] sm:$0xff]  ;;  %v7976_v38 = vld [vmem:[#allocation19 + $0xc20] sm:$0xff] }
 0x6ed   : > { %7791 = vmatmul.mubr.f32.gmra.mxu1 %v7707_v29  ;;  %8069 = vmatprep.subr.mxu1 %v7999_v25  ;;  %v7975_v25 = vld [vmem:[#allocation19 + $0xc18] sm:$0xff]  ;;  %v8216_v29 = vld [vmem:[#allocation19 + $0xfd0] sm:$0xff] }
 0x6ee   : > { %8259 = vmatprep.subr.mxu0 %v8177_v2  ;;  %7796 = vmatprep.mubr.f32.mxu1 %v7713_v16  ;;  %v7974_v2 = vld [vmem:[#allocation19 + $0xc10] sm:$0xff]  ;;  %v8214_v16 = vld [vmem:[#allocation19 + $0xfc0] sm:$0xff] }
 0x6ef   : > { %8070 = vmatpush1.msra.mxu1 %v7998_v51  ;;  %8260 = vmatpush1.msra.mxu0 %v8176_v22  ;;  %v7973_v51 = vld [vmem:[#allocation19 + $0xc08] sm:$0xff] }
 0x6f0   : > { %8071 = vmatprep.subr.mxu1 %v7997_v14  ;;  %8261 = vmatprep.subr.mxu0 %v8175_v15  ;;  %v8215_v22 = vld [vmem:[#allocation19 + $0xfc8] sm:$0xff]  ;;  %v8035_v14 = vld [vmem:[#allocation19 + $0xdf8] sm:$0xff] }
 0x6f1   : > { %8072 = vmatpush1.msra.mxu1 %v7996_v56  ;;  %8262 = vmatpush1.msra.mxu0 %v8174_v31  ;;  %v8213_v15 = vld [vmem:[#allocation19 + $0xfb8] sm:$0xff]  ;;  %v8212_v56 = vld [vmem:[#allocation19 + $0xfb0] sm:$0xff]  ;;  %v8033_v31 = vld [vmem:[#allocation19 + $0xde8] sm:$0xff] }
 0x6f2   : > { %7797 = vmatmul.mubr.f32.gmra.mxu1 %v7711_v9  ;;  %8073 = vmatprep.subr.mxu1 %v7995_v63  ;;  %v8211_v63 = vld [vmem:[#allocation19 + $0xfa8] sm:$0xff]  ;;  %v8209_v9 = vld [vmem:[#allocation19 + $0xf98] sm:$0xff] }
 0x6f3   : > { %8263 = vmatprep.subr.mxu0 %v8173_v49  ;;  %8074 = vmatpush1.msra.mxu1 %v7994_v1  ;;  %v8210_v49 = vld [vmem:[#allocation19 + $0xfa0] sm:$0xff]  ;;  %v8031_v1 = vld [vmem:[#allocation19 + $0xdd8] sm:$0xff] }
 0x6f4   : > { %8129 = vmatprep.mubr.f32.mxu1 %v8050_v13  ;;  %8264 = vmatpush1.msra.mxu0 %v8172_v36  ;;  %v8030_v36 = vld [vmem:[#allocation19 + $0xdd0] sm:$0xff]  ;;  %v8207_v13 = vld [vmem:[#allocation19 + $0xf88] sm:$0xff] }
 0x6f5   : > { %8075 = vmatprep.subr.mxu1 %v7993_v4  ;;  %8265 = vmatprep.subr.mxu0 %v8171_v50  ;;  %v8208_v4 = vld [vmem:[#allocation19 + $0xf90] sm:$0xff]  ;;  %v8029_v50 = vld [vmem:[#allocation19 + $0xdc8] sm:$0xff] }
 0x6f6   : > { %8076 = vmatpush1.msra.mxu1 %v7992_v23  ;;  %8266 = vmatpush1.msra.mxu0 %v8170_v10  ;;  %v8028_v23 = vld [vmem:[#allocation19 + $0xdc0] sm:$0xff] }
 0x6f7   : > { %8077 = vmatprep.subr.mxu1 %v7991_v12  ;;  %8267 = vmatprep.subr.mxu0 %v8169_v40  ;;  %v8206_v10 = vld [vmem:[#allocation19 + $0xf80] sm:$0xff]  ;;  %v8027_v12 = vld [vmem:[#allocation19 + $0xdb8] sm:$0xff] }
 0x6f8   : > { %8078 = vmatpush1.msra.mxu1 %v7990_v27  ;;  %8268 = vmatpush1.msra.mxu0 %v8168_v7  ;;  %v8205_v40 = vld [vmem:[#allocation19 + $0xf78] sm:$0xff]  ;;  %v8026_v27 = vld [vmem:[#allocation19 + $0xdb0] sm:$0xff] }
 0x6f9   : > { %8079 = vmatprep.subr.mxu1 %v7989_v58  ;;  %8269 = vmatprep.subr.mxu0 %v8167_v19  ;;  %v8204_v7 = vld [vmem:[#allocation19 + $0xf70] sm:$0xff]  ;;  %v8025_v58 = vld [vmem:[#allocation19 + $0xda8] sm:$0xff] }
 0x6fa   : > { %8080 = vmatpush1.msra.mxu1 %v7988_v21  ;;  %8270 = vmatpush1.msra.mxu0 %v8166_v34  ;;  %v8203_v19 = vld [vmem:[#allocation19 + $0xf68] sm:$0xff]  ;;  %v8024_v21 = vld [vmem:[#allocation19 + $0xda0] sm:$0xff] }
 0x6fb   : > { %8081 = vmatprep.subr.mxu1 %v7987_v46  ;;  %8271 = vmatprep.subr.mxu0 %v8165_v44  ;;  %v8202_v34 = vld [vmem:[#allocation19 + $0xf60] sm:$0xff]  ;;  %v8023_v46 = vld [vmem:[#allocation19 + $0xd98] sm:$0xff] }
 0x6fc   : > { %8082 = vmatpush1.msra.mxu1 %v7986_v52  ;;  %8272 = vmatpush1.msra.mxu0 %v8164_v62  ;;  %v8201_v44 = vld [vmem:[#allocation19 + $0xf58] sm:$0xff]  ;;  %v8022_v52 = vld [vmem:[#allocation19 + $0xd90] sm:$0xff] }
 0x6fd   : > { %8083 = vmatprep.subr.mxu1 %v7985_v59  ;;  %8273 = vmatprep.subr.mxu0 %v8163_v30  ;;  %v8200_v62 = vld [vmem:[#allocation19 + $0xf50] sm:$0xff]  ;;  %v8021_v59 = vld [vmem:[#allocation19 + $0xd88] sm:$0xff] }
 0x6fe   : > { %8084 = vmatpush1.msra.mxu1 %v7984_v11  ;;  %8274 = vmatpush1.msra.mxu0 %v8162_v45  ;;  %v8199_v30 = vld [vmem:[#allocation19 + $0xf48] sm:$0xff]  ;;  %v8020_v11 = vld [vmem:[#allocation19 + $0xd80] sm:$0xff] }
 0x6ff   : > { %8085 = vmatprep.subr.mxu1 %v7983_v60  ;;  %8275 = vmatprep.subr.mxu0 %v8161_v33  ;;  %v8198_v45 = vld [vmem:[#allocation19 + $0xf40] sm:$0xff]  ;;  %v8019_v60 = vld [vmem:[#allocation19 + $0xd78] sm:$0xff] }
 0x700   : > { %8086 = vmatpush1.msra.mxu1 %v7982_v8  ;;  %8276 = vmatpush1.msra.mxu0 %v8160_v17  ;;  %v8197_v33 = vld [vmem:[#allocation19 + $0xf38] sm:$0xff]  ;;  %v8018_v8 = vld [vmem:[#allocation19 + $0xd70] sm:$0xff] }
 0x701   : > { %8087 = vmatprep.subr.mxu1 %v7981_v61  ;;  %8277 = vmatprep.subr.mxu0 %v8159_v35  ;;  %v8196_v17 = vld [vmem:[#allocation19 + $0xf30] sm:$0xff]  ;;  %v8017_v61 = vld [vmem:[#allocation19 + $0xd68] sm:$0xff] }
 0x702   : > { %8088 = vmatpush1.msra.mxu1 %v7980_v0  ;;  %8278 = vmatpush1.msra.mxu0 %v8158_v28  ;;  %v8195_v35 = vld [vmem:[#allocation19 + $0xf28] sm:$0xff]  ;;  %v14066_v0 = vld [vmem:[#allocation5 + $0x48] sm:$0xff]  ;;  %v8016_v28 = vld [vmem:[#allocation19 + $0xd60] sm:$0xff] }
 0x703   : > { %8089 = vmatprep.subr.mxu1 %v7979_v41  ;;  %8279 = vmatprep.subr.mxu0 %v8221_v53  ;;  %v8194_v41 = vld [vmem:[#allocation19 + $0xf20] sm:$0xff] }
 0x704   : > { %8090 = vmatpush1.msra.mxu1 %v7978_v24  ;;  %8280 = vmatpush2.msra.mxu0 %v8220_v43  ;;  %v8154_v53 = vld [vmem:[#allocation5 + $0x18] sm:$0xe0]  ;;  %v8015_v24 = vld [vmem:[#allocation19 + $0xd58] sm:$0xff] }
 0x705   : > { %8091 = vmatprep.subr.mxu1 %v7977_v32  ;;  %8281 = vmatprep.subr.mxu0 %v8219_v55  ;;  %v8193_v43 = vld [vmem:[#allocation19 + $0xf18] sm:$0xff]  ;;  %v8014_v32 = vld [vmem:[#allocation19 + $0xd50] sm:$0xff] }
 0x706   : > { %8092 = vmatpush1.msra.mxu1 %v7976_v38  ;;  %8282 = vmatpush2.msra.mxu0 %v8218_v42  ;;  %v8192_v55 = vld [vmem:[#allocation19 + $0xf10] sm:$0xff]  ;;  %v8013_v38 = vld [vmem:[#allocation19 + $0xd48] sm:$0xff] }
 0x707   : > { %8093 = vmatprep.subr.mxu1 %v7975_v25  ;;  %8283 = vmatprep.subr.mxu0 %v8217_v57  ;;  %v8191_v42 = vld [vmem:[#allocation19 + $0xf08] sm:$0xff]  ;;  %v8227_v25 = vrot.slane %v8154_v53, 5  ;;  %v8228_v57 = vrot.slane %v14066_v0, 5 }
 0x708   : > { %8094 = vmatpush1.msra.mxu1 %v7974_v2  ;;  %8284 = vmatpush2.msra.mxu0 %v8216_v29  ;;  %v8012_v2 = vld [vmem:[#allocation19 + $0xd40] sm:$0xff]  ;;  %v8361_v53 = vld [vmem:[#allocation19 + $0x10a8] sm:$0xff] }
 0x709   : > { %8095 = vmatprep.subr.mxu1 %v7973_v51  ;;  %8285 = vmatprep.subr.mxu0 %v8215_v22  ;;  %v8190_v29 = vld [vmem:[#allocation19 + $0xf00] sm:$0xff]  ;;  %v8235_v51 = vrot.slane %v14043_v20, 5  ;;  %v8011_v22 = vld [vmem:[#allocation19 + $0xd38] sm:$0xff] }
 0x70a   : > { %8096 = vmatpush1.msra.mxu1 %v7972_v6  ;;  %8286 = vmatpush2.msra.mxu0 %v8214_v16  ;;  %v8157_v6 = vld [vmem:[#allocation5 + $0x38] sm:$0x1f]  ;;  %v8010_v16 = vld [vmem:[#allocation19 + $0xd30] sm:$0xff] }
 0x70b   : > { %8097 = vmatprep.subr.mxu1 %v8035_v14  ;;  %8287 = vmatprep.subr.mxu0 %v8213_v15  ;;  %v8229_v14 = vsel %vm8226_vm4, %v8227_v25, %v8228_v57  ;;  %v8009_v15 = vld [vmem:[#allocation19 + $0xd28] sm:$0xff]  ;;  %v8355_v25 = vld [vmem:[#allocation19 + $0x1078] sm:$0xff] }
 0x70c   : > { %8098 = vmatpush2.msra.mxu1 %v8034_v47  ;;  %8288 = vmatpush2.msra.mxu0 %v8212_v56  ;;  %v8233_v47 = vrot.slane %v14049_v37, 5  ;;  %v8236_v56 = vsel %vm8226_vm4, %v8231_v3, %v8235_v51 }
 0x70d   : > { %8099 = vmatprep.subr.mxu1 %v8033_v31  ;;  %8289 = vmatprep.subr.mxu0 %v8211_v63  ;;  %v8008_v31 = vld [vmem:[#allocation19 + $0xd20] sm:$0xff]  ;;  %v8239_v63 = vrot.slane %v8157_v6, 5  ;;  %v8349_v6 = vld [vmem:[#allocation19 + $0x1048] sm:$0xff] }
 0x70e   : > { %8100 = vmatpush2.msra.mxu1 %v8032_v18  ;;  %8290 = vmatpush2.msra.mxu0 %v8210_v49  ;;  %v7964_v18 = vld [vmem:[#allocation5 + $0x18] sm:$0xf0]  ;;  %v8156_v49 = vld [vmem:[#allocation5 + $0x40] sm:$0x1f] }
 0x70f   : > { %8101 = vmatprep.subr.mxu1 %v8031_v1  ;;  %8291 = vmatprep.subr.mxu0 %v8209_v9  ;;  %v8007_v1 = vld [vmem:[#allocation19 + $0xd18] sm:$0xff]  ;;  %v8006_v9 = vld [vmem:[#allocation19 + $0xd10] sm:$0xff]  ;;  %v8240_v3 = vsel %vm8226_vm4, %v8235_v51, %v8239_v63 }
 0x710   : > { %8102 = vmatpush2.msra.mxu1 %v8030_v36  ;;  %8292 = vmatpush2.msra.mxu0 %v8208_v4  ;;  %v8234_v36 = vsel %vm8226_vm4, %v8228_v57, %v8233_v47  ;;  %v8005_v4 = vld [vmem:[#allocation19 + $0xd08] sm:$0xff]  ;;  %v8354_v57 = vld [vmem:[#allocation19 + $0x1070] sm:$0xff]  ;;  %v8351_v51 = vld [vmem:[#allocation19 + $0x1058] sm:$0xff] }
 0x711   : > { %8103 = vmatprep.subr.mxu1 %v8029_v50  ;;  %8293 = vmatprep.subr.mxu0 %v8207_v13  ;;  %v8045_v50 = vrot.slane %v7964_v18, 4  ;;  %v8046_v13 = vrot.slane %v14066_v0, 4  ;;  %v8342_v63 = vld [vmem:[#allocation19 + $0x1010] sm:$0xff]  ;;  %v8341_v18 = vld [vmem:[#allocation19 + $0x1008] sm:$0xff] }
 0x712   : > { %8104 = vmatpush2.msra.mxu1 %v8028_v23  ;;  %8294 = vmatpush2.msra.mxu0 %v8206_v10  ;;  %v8237_v23 = vrot.slane %v8156_v49, 5  ;;  %v8004_v10 = vld [vmem:[#allocation19 + $0xd00] sm:$0xff] }
 0x713   : > { %8105 = vmatprep.subr.mxu1 %v8027_v12  ;;  %8295 = vmatprep.subr.mxu0 %v8205_v40  ;;  %v8053_v12 = vrot.slane %v14043_v20, 4  ;;  %v8371_v40 = vld [vmem:[#allocation19 + $0x10f8] sm:$0xff]  ;;  %v8340_v49 = vld [vmem:[#allocation19 + $0x1000] sm:$0xff] }
 0x714   : > { %8106 = vmatpush2.msra.mxu1 %v8026_v27  ;;  %8296 = vmatpush2.msra.mxu0 %v8204_v7  ;;  %v7971_v27 = vld [vmem:[#allocation5 + $0x38] sm:$0xf]  ;;  %v8047_v7 = vsel %vm8044_vm5, %v8045_v50, %v8046_v13  ;;  %v8399_v50 = vld [vmem:[#allocation19 + $0x11d8] sm:$0xff] }
 0x715   : > { %8107 = vmatprep.subr.mxu1 %v8025_v58  ;;  %8297 = vmatprep.subr.mxu0 %v8203_v19  ;;  %v8238_v58 = vsel %vm8226_vm4, %v8233_v47, %v8237_v23  ;;  %v8370_v19 = vld [vmem:[#allocation19 + $0x10f0] sm:$0xff]  ;;  %v8345_v47 = vld [vmem:[#allocation19 + $0x1028] sm:$0xff] }
 0x716   : > { %8108 = vmatpush2.msra.mxu1 %v8024_v21  ;;  %8298 = vmatpush2.msra.mxu0 %v8202_v34  ;;  %v8054_v21 = vsel %vm8044_vm5, %v8049_v39, %v8053_v12  ;;  %v8369_v34 = vld [vmem:[#allocation19 + $0x10e8] sm:$0xff] }
 0x717   : > { %8109 = vmatprep.subr.mxu1 %v8023_v46  ;;  %8299 = vmatprep.subr.mxu0 %v8201_v44  ;;  %v8051_v46 = vrot.slane %v14049_v37, 4  ;;  %v8368_v44 = vld [vmem:[#allocation19 + $0x10e0] sm:$0xff]  ;;  %v8397_v23 = vld [vmem:[#allocation19 + $0x11c8] sm:$0xff] }
 0x718   : > { %8110 = vmatpush2.msra.mxu1 %v8022_v52  ;;  %8300 = vmatpush2.msra.mxu0 %v8200_v62  ;;  %v8057_v52 = vrot.slane %v7971_v27, 4  ;;  %v7970_v62 = vld [vmem:[#allocation5 + $0x40] sm:$0xf]  ;;  %v8392_v27 = vld [vmem:[#allocation19 + $0x11a0] sm:$0xff] }
 0x719   : > { %8111 = vmatprep.subr.mxu1 %v8021_v59  ;;  %8301 = vmatprep.subr.mxu0 %v8199_v30  ;;  %v8367_v59 = vld [vmem:[#allocation19 + $0x10d8] sm:$0xff] }
 0x71a   : > { %8112 = vmatpush2.msra.mxu1 %v8020_v11  ;;  %8302 = vmatpush2.msra.mxu0 %v8198_v45  ;;  %v8337_v30 = vld [vmem:[#allocation5 + $0x10] sm:$0xc0]  ;;  %v8366_v11 = vld [vmem:[#allocation19 + $0x10d0] sm:$0xff]  ;;  %v8052_v45 = vsel %vm8044_vm5, %v8046_v13, %v8051_v46  ;;  %v8058_v39 = vsel %vm8044_vm5, %v8053_v12, %v8057_v52  ;;  %v8384_v52 = vld [vmem:[#allocation19 + $0x1160] sm:$0xff] }
 0x71b   : > { %8113 = vmatprep.subr.mxu1 %v8019_v60  ;;  %8303 = vmatprep.subr.mxu0 %v8197_v33  ;;  %v8365_v60 = vld [vmem:[#allocation19 + $0x10c8] sm:$0xff]  ;;  %v8055_v33 = vrot.slane %v7970_v62, 4  ;;  %v8398_v13 = vld [vmem:[#allocation19 + $0x11d0] sm:$0xff]  ;;  %v8383_v62 = vld [vmem:[#allocation19 + $0x1158] sm:$0xff] }
 0x71c   : > { %8114 = vmatpush2.msra.mxu1 %v8018_v8  ;;  %8304 = vmatpush2.msra.mxu0 %v8196_v17  ;;  %v8364_v8 = vld [vmem:[#allocation19 + $0x10c0] sm:$0xff]  ;;  %v8411_v17 = vrot.slane %v8337_v30, 6  ;;  %v8394_v12 = vld [vmem:[#allocation19 + $0x11b0] sm:$0xff]  ;;  %v8381_v30 = vld [vmem:[#allocation19 + $0x1148] sm:$0xff] }
 0x71d   : > { %8115 = vmatprep.subr.mxu1 %v8017_v61  ;;  %8305 = vmatprep.subr.mxu0 %v8195_v35  ;;  %v8412_v61 = vrot.slane %v14037_v5, 6  ;;  %v8363_v35 = vld [vmem:[#allocation19 + $0x10b8] sm:$0xff] }
 0x71e   : > { %8116 = vmatpush2.msra.mxu1 %v8016_v28  ;;  %8306 = vmatpush2.msra.mxu0 %v8194_v41  ;;  %v8362_v28 = vld [vmem:[#allocation19 + $0x10b0] sm:$0xff]  ;;  %v8056_v41 = vsel %vm8044_vm5, %v8051_v46, %v8055_v33  ;;  %v8377_v33 = vld [vmem:[#allocation19 + $0x1128] sm:$0xff] }
 0x71f   : > { %8117 = vmatprep.subr.mxu1 %v8015_v24  ;;  %8307 = vmatprep.subr.mxu0 %v8193_v43  ;;  %v8413_v24 = vsel %vm7517_vm2, %v8411_v17, %v8412_v61  ;;  %v8360_v43 = vld [vmem:[#allocation19 + $0x10a0] sm:$0xff]  ;;  %v8386_v46 = vld [vmem:[#allocation19 + $0x1170] sm:$0xff]  ;;  %v8375_v17 = vld [vmem:[#allocation19 + $0x1118] sm:$0xff] }
 0x720   : > { %8118 = vmatpush2.msra.mxu1 %v8014_v32  ;;  %8308 = vmatpush2.msra.mxu0 %v8192_v55  ;;  %v8359_v32 = vld [vmem:[#allocation19 + $0x1098] sm:$0xff]  ;;  %v8358_v55 = vld [vmem:[#allocation19 + $0x1090] sm:$0xff] }
 0x721   : > { %8119 = vmatprep.subr.mxu1 %v8013_v38  ;;  %8309 = vmatprep.subr.mxu0 %v8191_v42  ;;  %v8357_v38 = vld [vmem:[#allocation19 + $0x1088] sm:$0xff]  ;;  %v8356_v42 = vld [vmem:[#allocation19 + $0x1080] sm:$0xff]  ;;  %v8712_v5 = vld [vmem:[#allocation22 + $0x1f0] sm:$0xff] }
 0x722   : > { %8120 = vmatpush2.msra.mxu1 %v8012_v2  ;;  %8310 = vmatpush2.msra.mxu0 %v8190_v29  ;;  %v8353_v2 = vld [vmem:[#allocation19 + $0x1068] sm:$0xff]  ;;  %v8352_v29 = vld [vmem:[#allocation19 + $0x1060] sm:$0xff] }
 0x723   : > { %8121 = vmatprep.subr.mxu1 %v8011_v22  ;;  %8312 = vmatmul.mubr.f32.vlgmr.msra.gmra.mxu0 %v8229_v14  ;;  %v8350_v22 = vld [vmem:[#allocation19 + $0x1050] sm:$0xff]  ;;  %v8347_v14 = vld [vmem:[#allocation19 + $0x1038] sm:$0xff] }
 0x724   : > { %8122 = vmatpush2.msra.mxu1 %v8010_v16  ;;  %8317 = vmatprep.mubr.f32.mxu0 %v8236_v56  ;;  %v8348_v16 = vld [vmem:[#allocation19 + $0x1040] sm:$0xff] }
 0x725   : > { %8123 = vmatprep.subr.mxu1 %v8009_v15  ;;  %v8346_v15 = vld [vmem:[#allocation19 + $0x1030] sm:$0xff]  ;;  %v8344_v56 = vld [vmem:[#allocation19 + $0x1020] sm:$0xff] }
 0x726   : > { %8124 = vmatpush2.msra.mxu1 %v8008_v31  ;;  %v8343_v31 = vld [vmem:[#allocation19 + $0x1018] sm:$0xff] }
 0x727   : > { %8125 = vmatprep.subr.mxu1 %v8007_v1  ;;  %8318 = vmatmul.mubr.f32.gmra.mxu0 %v8234_v36  ;;  %v8403_v1 = vld [vmem:[#allocation19 + $0x11f8] sm:$0xff]  ;;  %v8401_v36 = vld [vmem:[#allocation19 + $0x11e8] sm:$0xff] }
 0x728   : > { %8126 = vmatpush2.msra.mxu1 %v8006_v9  ;;  %8323 = vmatprep.mubr.f32.mxu0 %v8240_v3  ;;  %v8402_v9 = vld [vmem:[#allocation19 + $0x11f0] sm:$0xff]  ;;  %v8396_v3 = vld [vmem:[#allocation19 + $0x11c0] sm:$0xff] }
 0x729   : > { %8127 = vmatprep.subr.mxu1 %v8005_v4  ;;  %v8400_v4 = vld [vmem:[#allocation19 + $0x11e0] sm:$0xff] }
 0x72a   : > { %8128 = vmatpush2.msra.mxu1 %v8004_v10  ;;  %v8395_v10 = vld [vmem:[#allocation19 + $0x11b8] sm:$0xff] }
 0x72b   : > { %8130 = vmatmul.mubr.f32.vlgmr.msra.gmra.mxu1 %v8047_v7  ;;  %8324 = vmatmul.mubr.f32.gmra.mxu0 %v8238_v58  ;;  %v8391_v7 = vld [vmem:[#allocation19 + $0x1198] sm:$0xff]  ;;  %v8390_v58 = vld [vmem:[#allocation19 + $0x1190] sm:$0xff] }
 0x72c   : > { %8428 = vmatprep.subr.mxu1 %v8371_v40  ;;  %8135 = vmatprep.mubr.f32.mxu1 %v8054_v21  ;;  %v8393_v40 = vld [vmem:[#allocation19 + $0x11a8] sm:$0xff]  ;;  %v8388_v21 = vld [vmem:[#allocation19 + $0x1180] sm:$0xff] }
 0x72d   : > { %8429 = vmatpush1.msra.mxu1 %v8370_v19  ;;  %v8389_v19 = vld [vmem:[#allocation19 + $0x1188] sm:$0xff] }
 0x72e   : > { %8430 = vmatprep.subr.mxu1 %v8369_v34  ;;  %v8387_v34 = vld [vmem:[#allocation19 + $0x1178] sm:$0xff] }
 0x72f   : > { %8431 = vmatpush1.msra.mxu1 %v8368_v44  ;;  %v8385_v44 = vld [vmem:[#allocation19 + $0x1168] sm:$0xff] }
 0x730   : > { %8136 = vmatmul.mubr.f32.gmra.mxu1 %v8052_v45  ;;  %8432 = vmatprep.subr.mxu1 %v8367_v59  ;;  %v8382_v59 = vld [vmem:[#allocation19 + $0x1150] sm:$0xff]  ;;  %v8379_v45 = vld [vmem:[#allocation19 + $0x1138] sm:$0xff] }
 0x731   : > { %8141 = vmatprep.mubr.f32.mxu1 %v8058_v39  ;;  %8433 = vmatpush1.msra.mxu1 %v8366_v11  ;;  %v8380_v11 = vld [vmem:[#allocation19 + $0x1140] sm:$0xff] }
 0x732   : > { %8434 = vmatprep.subr.mxu1 %v8365_v60  ;;  %v8378_v60 = vld [vmem:[#allocation19 + $0x1130] sm:$0xff]  ;;  %v8376_v39 = vld [vmem:[#allocation19 + $0x1120] sm:$0xff] }
 0x733   : > { %8435 = vmatpush1.msra.mxu1 %v8364_v8  ;;  %v8336_v8 = vld [vmem:[#allocation5 + $0x18] sm:$0xc0] }
 0x734   : > { %8142 = vmatmul.mubr.f32.gmra.mxu1 %v8056_v41  ;;  %8436 = vmatprep.subr.mxu1 %v8363_v35  ;;  %v8374_v35 = vld [vmem:[#allocation19 + $0x1110] sm:$0xff]  ;;  %v8408_v41 = vrot.slane %v8336_v8, 6 }
 0x735   : > { %8437 = vmatpush1.msra.mxu1 %v8362_v28  ;;  %8492 = vmatprep.mubr.f32.mxu1 %v8413_v24  ;;  %v8373_v28 = vld [vmem:[#allocation19 + $0x1108] sm:$0xff]  ;;  %v8372_v24 = vld [vmem:[#allocation19 + $0x1100] sm:$0xff]  ;;  %v8672_v8 = vld [vmem:[#allocation22 + $0xb0] sm:$0xff] }
 0x736   : > { %8438 = vmatprep.subr.mxu1 %v8361_v53  ;;  %v8409_v53 = vrot.slane %v14066_v0, 6 }
 0x737   : > { %8439 = vmatpush1.msra.mxu1 %v8360_v43  ;;  %v8416_v43 = vrot.slane %v14043_v20, 6 }
 0x738   : > { %8440 = vmatprep.subr.mxu1 %v8359_v32  ;;  %v8339_v32 = vld [vmem:[#allocation5 + $0x38] sm:$0x3f] }
 0x739   : > { %8441 = vmatpush1.msra.mxu1 %v8358_v55  ;;  %v8410_v55 = vsel %vm7517_vm2, %v8408_v41, %v8409_v53  ;;  %v8668_v41 = vld [vmem:[#allocation22 + $0x90] sm:$0xff] }
 0x73a   : > { %8442 = vmatprep.subr.mxu1 %v8357_v38  ;;  %v8414_v38 = vrot.slane %v14049_v37, 6  ;;  %v8713_v37 = vld [vmem:[#allocation22 + $0x1f8] sm:$0xff] }
 0x73b   : > { %8443 = vmatpush1.msra.mxu1 %v8356_v42  ;;  %v8417_v42 = vsel %vm7517_vm2, %v8412_v61, %v8416_v43  ;;  %v8707_v61 = vld [vmem:[#allocation22 + $0x1c8] sm:$0xff] }
 0x73c   : > { %8444 = vmatprep.subr.mxu1 %v8355_v25  ;;  %v8420_v25 = vrot.slane %v8339_v32, 6  ;;  %v8415_v0 = vsel %vm7517_vm2, %v8409_v53, %v8414_v38  ;;  %v8663_v53 = vld [vmem:[#allocation22 + $0x68] sm:$0xff]  ;;  %v8664_v32 = vld [vmem:[#allocation22 + $0x70] sm:$0xff] }
 0x73d   : > { %8445 = vmatpush1.msra.mxu1 %v8354_v57  ;;  %v8338_v57 = vld [vmem:[#allocation5 + $0x40] sm:$0x3f] }
 0x73e   : > { %8446 = vmatprep.subr.mxu1 %v8353_v2  ;;  %v8418_v2 = vrot.slane %v8338_v57, 6  ;;  %v8421_v20 = vsel %vm7517_vm2, %v8416_v43, %v8420_v25  ;;  %v8662_v43 = vld [vmem:[#allocation22 + $0x60] sm:$0xff]  ;;  %v8660_v25 = vld [vmem:[#allocation22 + $0x50] sm:$0xff]  ;;  %v8655_v57 = vld [vmem:[#allocation22 + $0x28] sm:$0xff] }
 0x73f   : > { %8447 = vmatpush1.msra.mxu1 %v8352_v29 }
 0x740   : > { %8448 = vmatprep.subr.mxu1 %v8351_v51  ;;  %v8419_v29 = vsel %vm7517_vm2, %v8414_v38, %v8418_v2  ;;  %v8711_v51 = vld [vmem:[#allocation22 + $0x1e8] sm:$0xff]  ;;  %v8661_v38 = vld [vmem:[#allocation22 + $0x58] sm:$0xff]  ;;  %v8654_v2 = vld [vmem:[#allocation22 + $0x20] sm:$0xff] }
 0x741   : > { %8449 = vmatpush1.msra.mxu1 %v8350_v22  ;;  %v8710_v22 = vld [vmem:[#allocation22 + $0x1e0] sm:$0xff]  ;;  %8800 = vmatprep.subr.mxu0 %v8711_v51  ;;  %v8653_v51 = vld [vmem:[#allocation22 + $0x18] sm:$0xff] }
 0x742   : > { %8450 = vmatprep.subr.mxu1 %v8349_v6  ;;  %v8709_v6 = vld [vmem:[#allocation22 + $0x1d8] sm:$0xff]  ;;  %8801 = vmatpush1.msra.mxu0 %v8710_v22  ;;  %v8652_v22 = vld [vmem:[#allocation22 + $0x10] sm:$0xff] }
 0x743   : > { %8451 = vmatpush1.msra.mxu1 %v8348_v16  ;;  %v8706_v16 = vld [vmem:[#allocation22 + $0x1c0] sm:$0xff]  ;;  %8802 = vmatprep.subr.mxu0 %v8707_v61  ;;  %v8777_v61 = vld [vmem:[#allocation22 + $0x3f8] sm:$0xff] }
 0x744   : > { %8452 = vmatprep.subr.mxu1 %v8347_v14  ;;  %v8708_v14 = vld [vmem:[#allocation22 + $0x1d0] sm:$0xff]  ;;  %8803 = vmatpush1.msra.mxu0 %v8706_v16 }
 0x745   : > { %8453 = vmatpush1.msra.mxu1 %v8346_v15  ;;  %v8703_v15 = vld [vmem:[#allocation22 + $0x1a8] sm:$0xff]  ;;  %v8776_v16 = vld [vmem:[#allocation22 + $0x3f0] sm:$0xff] }
 0x746   : > { %8454 = vmatprep.subr.mxu1 %v8345_v47  ;;  %v8705_v47 = vld [vmem:[#allocation22 + $0x1b8] sm:$0xff]  ;;  %8804 = vmatprep.subr.mxu0 %v8703_v15 }
 0x747   : > { %8455 = vmatpush1.msra.mxu1 %v8344_v56  ;;  %v8702_v56 = vld [vmem:[#allocation22 + $0x1a0] sm:$0xff]  ;;  %v8773_v15 = vld [vmem:[#allocation22 + $0x3d8] sm:$0xff] }
 0x748   : > { %8456 = vmatprep.subr.mxu1 %v8343_v31  ;;  %v8704_v31 = vld [vmem:[#allocation22 + $0x1b0] sm:$0xff]  ;;  %8805 = vmatpush1.msra.mxu0 %v8702_v56 }
 0x749   : > { %8457 = vmatpush1.msra.mxu1 %v8342_v63  ;;  %v8699_v63 = vld [vmem:[#allocation22 + $0x188] sm:$0xff]  ;;  %v8772_v56 = vld [vmem:[#allocation22 + $0x3d0] sm:$0xff] }
 0x74a   : > { %8458 = vmatprep.subr.mxu1 %v8341_v18  ;;  %v8701_v18 = vld [vmem:[#allocation22 + $0x198] sm:$0xff]  ;;  %8806 = vmatprep.subr.mxu0 %v8699_v63 }
 0x74b   : > { %8459 = vmatpush1.msra.mxu1 %v8340_v49  ;;  %v8698_v49 = vld [vmem:[#allocation22 + $0x180] sm:$0xff]  ;;  %v8769_v63 = vld [vmem:[#allocation22 + $0x3b8] sm:$0xff] }
 0x74c   : > { %8460 = vmatprep.subr.mxu1 %v8403_v1  ;;  %v8700_v1 = vld [vmem:[#allocation22 + $0x190] sm:$0xff]  ;;  %8807 = vmatpush1.msra.mxu0 %v8698_v49 }
 0x74d   : > { %8461 = vmatpush2.msra.mxu1 %v8402_v9  ;;  %v8695_v9 = vld [vmem:[#allocation22 + $0x168] sm:$0xff]  ;;  %v8768_v49 = vld [vmem:[#allocation22 + $0x3b0] sm:$0xff] }
 0x74e   : > { %8462 = vmatprep.subr.mxu1 %v8401_v36  ;;  %v8697_v36 = vld [vmem:[#allocation22 + $0x178] sm:$0xff]  ;;  %8808 = vmatprep.subr.mxu0 %v8695_v9 }
 0x74f   : > { %8463 = vmatpush2.msra.mxu1 %v8400_v4  ;;  %v8694_v4 = vld [vmem:[#allocation22 + $0x160] sm:$0xff]  ;;  %v8765_v9 = vld [vmem:[#allocation22 + $0x398] sm:$0xff] }
 0x750   : > { %8464 = vmatprep.subr.mxu1 %v8399_v50  ;;  %v8696_v50 = vld [vmem:[#allocation22 + $0x170] sm:$0xff]  ;;  %8809 = vmatpush1.msra.mxu0 %v8694_v4 }
 0x751   : > { %8465 = vmatpush2.msra.mxu1 %v8398_v13  ;;  %v8691_v13 = vld [vmem:[#allocation22 + $0x148] sm:$0xff]  ;;  %v8764_v4 = vld [vmem:[#allocation22 + $0x390] sm:$0xff] }
 0x752   : > { %8466 = vmatprep.subr.mxu1 %v8397_v23  ;;  %v8693_v23 = vld [vmem:[#allocation22 + $0x158] sm:$0xff]  ;;  %8810 = vmatprep.subr.mxu0 %v8691_v13 }
 0x753   : > { %8467 = vmatpush2.msra.mxu1 %v8396_v3  ;;  %v8690_v3 = vld [vmem:[#allocation22 + $0x140] sm:$0xff]  ;;  %v8761_v13 = vld [vmem:[#allocation22 + $0x378] sm:$0xff] }
 0x754   : > { %8468 = vmatprep.subr.mxu1 %v8395_v10  ;;  %v8692_v10 = vld [vmem:[#allocation22 + $0x150] sm:$0xff]  ;;  %8811 = vmatpush1.msra.mxu0 %v8690_v3 }
 0x755   : > { %8469 = vmatpush2.msra.mxu1 %v8394_v12  ;;  %v8687_v12 = vld [vmem:[#allocation22 + $0x128] sm:$0xff]  ;;  %v8760_v3 = vld [vmem:[#allocation22 + $0x370] sm:$0xff] }
 0x756   : > { %8470 = vmatprep.subr.mxu1 %v8393_v40  ;;  %v8689_v40 = vld [vmem:[#allocation22 + $0x138] sm:$0xff]  ;;  %8812 = vmatprep.subr.mxu0 %v8687_v12 }
 0x757   : > { %8471 = vmatpush2.msra.mxu1 %v8392_v27  ;;  %v8686_v27 = vld [vmem:[#allocation22 + $0x120] sm:$0xff]  ;;  %v8757_v12 = vld [vmem:[#allocation22 + $0x358] sm:$0xff] }
 0x758   : > { %8472 = vmatprep.subr.mxu1 %v8391_v7  ;;  %v8688_v7 = vld [vmem:[#allocation22 + $0x130] sm:$0xff]  ;;  %8813 = vmatpush1.msra.mxu0 %v8686_v27 }
 0x759   : > { %8473 = vmatpush2.msra.mxu1 %v8390_v58  ;;  %v8683_v58 = vld [vmem:[#allocation22 + $0x108] sm:$0xff]  ;;  %v8756_v27 = vld [vmem:[#allocation22 + $0x350] sm:$0xff] }
 0x75a   : > { %8474 = vmatprep.subr.mxu1 %v8389_v19  ;;  %v8685_v19 = vld [vmem:[#allocation22 + $0x118] sm:$0xff]  ;;  %8814 = vmatprep.subr.mxu0 %v8683_v58 }
 0x75b   : > { %8475 = vmatpush2.msra.mxu1 %v8388_v21  ;;  %v8682_v21 = vld [vmem:[#allocation22 + $0x100] sm:$0xff]  ;;  %v8753_v58 = vld [vmem:[#allocation22 + $0x338] sm:$0xff] }
 0x75c   : > { %8476 = vmatprep.subr.mxu1 %v8387_v34  ;;  %v8684_v34 = vld [vmem:[#allocation22 + $0x110] sm:$0xff]  ;;  %8815 = vmatpush1.msra.mxu0 %v8682_v21 }
 0x75d   : > { %8477 = vmatpush2.msra.mxu1 %v8386_v46  ;;  %v8679_v46 = vld [vmem:[#allocation22 + $0xe8] sm:$0xff]  ;;  %v8752_v21 = vld [vmem:[#allocation22 + $0x330] sm:$0xff] }
 0x75e   : > { %8478 = vmatprep.subr.mxu1 %v8385_v44  ;;  %v8681_v44 = vld [vmem:[#allocation22 + $0xf8] sm:$0xff]  ;;  %8816 = vmatprep.subr.mxu0 %v8679_v46 }
 0x75f   : > { %8479 = vmatpush2.msra.mxu1 %v8384_v52  ;;  %v8678_v52 = vld [vmem:[#allocation22 + $0xe0] sm:$0xff]  ;;  %v8749_v46 = vld [vmem:[#allocation22 + $0x318] sm:$0xff] }
 0x760   : > { %8480 = vmatprep.subr.mxu1 %v8383_v62  ;;  %v8680_v62 = vld [vmem:[#allocation22 + $0xf0] sm:$0xff]  ;;  %8817 = vmatpush1.msra.mxu0 %v8678_v52 }
 0x761   : > { %8481 = vmatpush2.msra.mxu1 %v8382_v59  ;;  %v8675_v59 = vld [vmem:[#allocation22 + $0xc8] sm:$0xff]  ;;  %v8748_v52 = vld [vmem:[#allocation22 + $0x310] sm:$0xff] }
 0x762   : > { %8482 = vmatprep.subr.mxu1 %v8381_v30  ;;  %v8677_v30 = vld [vmem:[#allocation22 + $0xd8] sm:$0xff]  ;;  %8818 = vmatprep.subr.mxu0 %v8675_v59 }
 0x763   : > { %8483 = vmatpush2.msra.mxu1 %v8380_v11  ;;  %v8674_v11 = vld [vmem:[#allocation22 + $0xc0] sm:$0xff]  ;;  %v8745_v59 = vld [vmem:[#allocation22 + $0x2f8] sm:$0xff] }
 0x764   : > { %8484 = vmatprep.subr.mxu1 %v8379_v45  ;;  %v8676_v45 = vld [vmem:[#allocation22 + $0xd0] sm:$0xff]  ;;  %8819 = vmatpush1.msra.mxu0 %v8674_v11 }
 0x765   : > { %8485 = vmatpush2.msra.mxu1 %v8378_v60  ;;  %v8671_v60 = vld [vmem:[#allocation22 + $0xa8] sm:$0xff]  ;;  %v8744_v11 = vld [vmem:[#allocation22 + $0x2f0] sm:$0xff] }
 0x766   : > { %8486 = vmatprep.subr.mxu1 %v8377_v33  ;;  %v8673_v33 = vld [vmem:[#allocation22 + $0xb8] sm:$0xff]  ;;  %8820 = vmatprep.subr.mxu0 %v8671_v60 }
 0x767   : > { %8487 = vmatpush2.msra.mxu1 %v8376_v39  ;;  %v8670_v39 = vld [vmem:[#allocation22 + $0xa0] sm:$0xff]  ;;  %v8741_v60 = vld [vmem:[#allocation22 + $0x2d8] sm:$0xff] }
 0x768   : > { %8488 = vmatprep.subr.mxu1 %v8375_v17  ;;  %8821 = vmatpush1.msra.mxu0 %v8670_v39  ;;  %v8667_v17 = vld [vmem:[#allocation22 + $0x88] sm:$0xff]  ;;  %v8740_v39 = vld [vmem:[#allocation22 + $0x2d0] sm:$0xff] }
 0x769   : > { %8489 = vmatpush2.msra.mxu1 %v8374_v35  ;;  %v8669_v35 = vld [vmem:[#allocation22 + $0x98] sm:$0xff]  ;;  %8822 = vmatprep.subr.mxu0 %v8667_v17 }
 0x76a   : > { %8490 = vmatprep.subr.mxu1 %v8373_v28  ;;  %v8666_v28 = vld [vmem:[#allocation22 + $0x80] sm:$0xff]  ;;  %v8737_v17 = vld [vmem:[#allocation22 + $0x2b8] sm:$0xff] }
 0x76b   : > { %8491 = vmatpush2.msra.mxu1 %v8372_v24  ;;  %8823 = vmatpush1.msra.mxu0 %v8666_v28  ;;  %v8665_v24 = vld [vmem:[#allocation22 + $0x78] sm:$0xff]  ;;  %v8736_v28 = vld [vmem:[#allocation22 + $0x2b0] sm:$0xff] }
 0x76c   : > { %8493 = vmatmul.mubr.f32.vlgmr.msra.gmra.mxu1 %v8410_v55  ;;  %8871 = vmatprep.subr.mxu1 %v8713_v37  ;;  %v8659_v55 = vld [vmem:[#allocation22 + $0x48] sm:$0xff]  ;;  %v8650_v37 = vld [vmem:[#allocation22] sm:$0xff] }
 0x76d   : > { %8498 = vmatprep.mubr.f32.mxu1 %v8417_v42  ;;  %8872 = vmatpush1.msra.mxu1 %v8712_v5  ;;  %v8658_v42 = vld [vmem:[#allocation22 + $0x40] sm:$0xff]  ;;  %v8775_v5 = vld [vmem:[#allocation22 + $0x3e8] sm:$0xff] }
 0x76e   : > { %8873 = vmatprep.subr.mxu1 %v8709_v6  ;;  %8824 = vmatprep.subr.mxu0 %v8663_v53  ;;  %v8774_v6 = vld [vmem:[#allocation22 + $0x3e0] sm:$0xff]  ;;  %v8733_v53 = vld [vmem:[#allocation22 + $0x298] sm:$0xff] }
 0x76f   : > { %8874 = vmatpush1.msra.mxu1 %v8708_v14  ;;  %8825 = vmatpush1.msra.mxu0 %v8662_v43  ;;  %v8771_v14 = vld [vmem:[#allocation22 + $0x3c8] sm:$0xff]  ;;  %v8732_v43 = vld [vmem:[#allocation22 + $0x290] sm:$0xff] }
 0x770   : > { %8499 = vmatmul.mubr.f32.gmra.mxu1 %v8415_v0  ;;  %8875 = vmatprep.subr.mxu1 %v8705_v47  ;;  %v8657_v0 = vld [vmem:[#allocation22 + $0x38] sm:$0xff]  ;;  %v8770_v47 = vld [vmem:[#allocation22 + $0x3c0] sm:$0xff] }
 0x771   : > { %8504 = vmatprep.mubr.f32.mxu1 %v8421_v20  ;;  %8876 = vmatpush1.msra.mxu1 %v8704_v31  ;;  %v8656_v20 = vld [vmem:[#allocation22 + $0x30] sm:$0xff]  ;;  %v8767_v31 = vld [vmem:[#allocation22 + $0x3a8] sm:$0xff] }
 0x772   : > { %8877 = vmatprep.subr.mxu1 %v8701_v18  ;;  %8826 = vmatprep.subr.mxu0 %v8659_v55  ;;  %v8766_v18 = vld [vmem:[#allocation22 + $0x3a0] sm:$0xff]  ;;  %v8729_v55 = vld [vmem:[#allocation22 + $0x278] sm:$0xff] }
 0x773   : > { %8878 = vmatpush1.msra.mxu1 %v8700_v1  ;;  %8827 = vmatpush1.msra.mxu0 %v8658_v42  ;;  %v8763_v1 = vld [vmem:[#allocation22 + $0x388] sm:$0xff]  ;;  %v8726_v42 = vld [vmem:[#allocation22 + $0x260] sm:$0xff] }
 0x774   : > { %8505 = vmatmul.mubr.f32.gmra.mxu1 %v8419_v29  ;;  %8879 = vmatprep.subr.mxu1 %v8697_v36  ;;  %v8651_v29 = vld [vmem:[#allocation22 + $0x8] sm:$0xff]  ;;  %v8762_v36 = vld [vmem:[#allocation22 + $0x380] sm:$0xff] }
 0x775   : > { %8880 = vmatpush1.msra.mxu1 %v8696_v50  ;;  %8828 = vmatprep.subr.mxu0 %v8655_v57  ;;  %v8759_v50 = vld [vmem:[#allocation22 + $0x368] sm:$0xff] }
 0x776   : > { %8881 = vmatprep.subr.mxu1 %v8693_v23  ;;  %8829 = vmatpush1.msra.mxu0 %v8654_v2  ;;  %v8758_v23 = vld [vmem:[#allocation22 + $0x360] sm:$0xff]  ;;  %v8723_v57 = vld [vmem:[#allocation22 + $0x248] sm:$0xff] }
 0x777   : > { %8882 = vmatpush1.msra.mxu1 %v8692_v10  ;;  %8830 = vmatprep.subr.mxu0 %v8651_v29  ;;  %v8755_v10 = vld [vmem:[#allocation22 + $0x348] sm:$0xff]  ;;  %v8722_v2 = vld [vmem:[#allocation22 + $0x240] sm:$0xff] }
 0x778   : > { %8883 = vmatprep.subr.mxu1 %v8689_v40  ;;  %8831 = vmatpush1.msra.mxu0 %v8650_v37  ;;  %v8754_v40 = vld [vmem:[#allocation22 + $0x340] sm:$0xff]  ;;  %v8719_v29 = vld [vmem:[#allocation22 + $0x228] sm:$0xff] }
 0x779   : > { %8884 = vmatpush1.msra.mxu1 %v8688_v7  ;;  %8832 = vmatprep.subr.mxu0 %v8775_v5  ;;  %v8751_v7 = vld [vmem:[#allocation22 + $0x328] sm:$0xff]  ;;  %v8718_v37 = vld [vmem:[#allocation22 + $0x220] sm:$0xff] }
 0x77a   : > { %8885 = vmatprep.subr.mxu1 %v8685_v19  ;;  %8833 = vmatpush2.msra.mxu0 %v8774_v6  ;;  %v8750_v19 = vld [vmem:[#allocation22 + $0x320] sm:$0xff]  ;;  %v8717_v6 = vld [vmem:[#allocation22 + $0x218] sm:$0xff] }
 0x77b   : > { %8886 = vmatpush1.msra.mxu1 %v8684_v34  ;;  %8834 = vmatprep.subr.mxu0 %v8771_v14  ;;  %v8747_v34 = vld [vmem:[#allocation22 + $0x308] sm:$0xff]  ;;  %v8716_v14 = vld [vmem:[#allocation22 + $0x210] sm:$0xff] }
 0x77c   : > { %8887 = vmatprep.subr.mxu1 %v8681_v44  ;;  %8835 = vmatpush2.msra.mxu0 %v8770_v47  ;;  %v8746_v44 = vld [vmem:[#allocation22 + $0x300] sm:$0xff] }
 0x77d   : > { %8888 = vmatpush1.msra.mxu1 %v8680_v62  ;;  %8836 = vmatprep.subr.mxu0 %v8767_v31  ;;  %v8743_v62 = vld [vmem:[#allocation22 + $0x2e8] sm:$0xff] }
 0x77e   : > { %8889 = vmatprep.subr.mxu1 %v8677_v30  ;;  %8837 = vmatpush2.msra.mxu0 %v8766_v18  ;;  %v8742_v30 = vld [vmem:[#allocation22 + $0x2e0] sm:$0xff] }
 0x77f   : > { %8890 = vmatpush1.msra.mxu1 %v8676_v45  ;;  %8838 = vmatprep.subr.mxu0 %v8763_v1  ;;  %v8739_v45 = vld [vmem:[#allocation22 + $0x2c8] sm:$0xff] }
 0x780   : > { %8891 = vmatprep.subr.mxu1 %v8673_v33  ;;  %8839 = vmatpush2.msra.mxu0 %v8762_v36  ;;  %v8738_v33 = vld [vmem:[#allocation22 + $0x2c0] sm:$0xff] }
 0x781   : > { %8892 = vmatpush1.msra.mxu1 %v8672_v8  ;;  %8840 = vmatprep.subr.mxu0 %v8759_v50  ;;  %v8735_v8 = vld [vmem:[#allocation22 + $0x2a8] sm:$0xff] }
 0x782   : > { %8893 = vmatprep.subr.mxu1 %v8669_v35  ;;  %8841 = vmatpush2.msra.mxu0 %v8758_v23  ;;  %v8734_v35 = vld [vmem:[#allocation22 + $0x2a0] sm:$0xff] }
 0x783   : > { %8894 = vmatpush1.msra.mxu1 %v8668_v41  ;;  %8842 = vmatprep.subr.mxu0 %v8755_v10  ;;  %v8731_v41 = vld [vmem:[#allocation22 + $0x288] sm:$0xff] }
 0x784   : > { %8895 = vmatprep.subr.mxu1 %v8665_v24  ;;  %8843 = vmatpush2.msra.mxu0 %v8754_v40  ;;  %v8730_v24 = vld [vmem:[#allocation22 + $0x280] sm:$0xff] }
 0x785   : > { %8896 = vmatpush1.msra.mxu1 %v8664_v32  ;;  %8844 = vmatprep.subr.mxu0 %v8751_v7  ;;  %v8727_v32 = vld [vmem:[#allocation22 + $0x268] sm:$0xff] }
 0x786   : > { %8897 = vmatprep.subr.mxu1 %v8661_v38  ;;  %8845 = vmatpush2.msra.mxu0 %v8750_v19  ;;  %v14102_v38 = vpop.f32.mrf.mxu1 }
 0x787   : > { %8898 = vmatpush1.msra.mxu1 %v8660_v25  ;;  %8846 = vmatprep.subr.mxu0 %v8747_v34  ;;  %v8728_v25 = vld [vmem:[#allocation22 + $0x270] sm:$0xff] }
 0x788   : > { %8899 = vmatprep.subr.mxu1 %v8657_v0  ;;  %8847 = vmatpush2.msra.mxu0 %v8746_v44  ;;  %v8725_v0 = vld [vmem:[#allocation22 + $0x258] sm:$0xff]  ;;  %v7166_v5 = vpop.f32.mrf.mxu1 }
 0x789   : > { %8900 = vmatpush1.msra.mxu1 %v8656_v20  ;;  %8848 = vmatprep.subr.mxu0 %v8743_v62  ;;  %v8724_v20 = vld [vmem:[#allocation22 + $0x250] sm:$0xff] }
 0x78a   : > { %8901 = vmatprep.subr.mxu1 %v8653_v51  ;;  %8849 = vmatpush2.msra.mxu0 %v8742_v30  ;;  %v8721_v51 = vld [vmem:[#allocation22 + $0x238] sm:$0xff]  ;;  %v7170_v47 = vpop.f32.mrf.mxu1 }
 0x78b   : > { %8902 = vmatpush1.msra.mxu1 %v8652_v22  ;;  %8850 = vmatprep.subr.mxu0 %v8739_v45  ;;  %v8720_v22 = vld [vmem:[#allocation22 + $0x230] sm:$0xff] }
 0x78c   : > { %8903 = vmatprep.subr.mxu1 %v8777_v61  ;;  %8851 = vmatpush2.msra.mxu0 %v8738_v33  ;;  %v8715_v61 = vld [vmem:[#allocation22 + $0x208] sm:$0xff]  ;;  %v7172_v31 = vpop.f32.mrf.mxu1 }
 0x78d   : > { %8904 = vmatpush2.msra.mxu1 %v8776_v16  ;;  %8852 = vmatprep.subr.mxu0 %v8735_v8  ;;  %v8714_v16 = vld [vmem:[#allocation22 + $0x200] sm:$0xff] }
 0x78e   : > { %8905 = vmatprep.subr.mxu1 %v8773_v15  ;;  %8853 = vmatpush2.msra.mxu0 %v8734_v35  ;;  %v8981_v15 = vld [vmem:[#allocation25 + $0xf8] sm:$0xff]  ;;  %v7176_v18 = vpop.f32.mrf.mxu1 }
 0x78f   : > { %8906 = vmatpush2.msra.mxu1 %v8772_v56  ;;  %8854 = vmatprep.subr.mxu0 %v8731_v41  ;;  %v7247_v56 = vpop.f32.mrf.mxu0 }
 0x790   : > { %8907 = vmatprep.subr.mxu1 %v8769_v63  ;;  %8855 = vmatpush2.msra.mxu0 %v8730_v24  ;;  %v7178_v1 = vpop.f32.mrf.mxu1 }
 0x791   : > { %8908 = vmatpush2.msra.mxu1 %v8768_v49  ;;  %8856 = vmatprep.subr.mxu0 %v8727_v32  ;;  %v7249_v63 = vpop.f32.mrf.mxu0 }
 0x792   : > { %8909 = vmatprep.subr.mxu1 %v8765_v9  ;;  %8857 = vmatpush2.msra.mxu0 %v8726_v42  ;;  %v7422_v9 = vpop.f32.mrf.mxu1 }
 0x793   : > { %8910 = vmatpush2.msra.mxu1 %v8764_v4  ;;  %8858 = vmatprep.subr.mxu0 %v8723_v57  ;;  %v7253_v49 = vpop.f32.mrf.mxu0 }
 0x794   : > { %8911 = vmatprep.subr.mxu1 %v8761_v13  ;;  %8859 = vmatpush2.msra.mxu0 %v8722_v2  ;;  %v7424_v4 = vpop.f32.mrf.mxu1  ;;  %v7254_v41 = vadd.f32 %v7253_v49, %v7170_v47  ;;  %v8517_v49 = vld [vmem:[#allocation21] ss:$2 sm:$0x3] }
 0x795   : > { %8912 = vmatpush2.msra.mxu1 %v8760_v3  ;;  %8860 = vmatprep.subr.mxu0 %v8719_v29  ;;  %v7255_v36 = vpop.f32.mrf.mxu0 }
 0x796   : > { %8913 = vmatprep.subr.mxu1 %v8757_v12  ;;  %8861 = vmatpush2.msra.mxu0 %v8718_v37  ;;  %v7428_v13 = vpop.f32.mrf.mxu1 }
 0x797   : > { %8914 = vmatpush2.msra.mxu1 %v8756_v27  ;;  %8862 = vmatprep.subr.mxu0 %v8715_v61  ;;  %v7259_v50 = vpop.f32.mrf.mxu0  ;;  %v7441_v32 = vadd.f32 %v7428_v13, %v7254_v41 }
 0x798   : > { %8915 = vmatprep.subr.mxu1 %v8753_v58  ;;  %8863 = vmatpush2.msra.mxu0 %v8714_v16  ;;  %v7430_v10 = vpop.f32.mrf.mxu1 }
 0x799   : > { %8916 = vmatpush2.msra.mxu1 %v8752_v21  ;;  %10098 = vmatprep.subr.mxu0 %v8981_v15  ;;  %v7261_v23 = vpop.f32.mrf.mxu0 }
 0x79a   : > { %8917 = vmatprep.subr.mxu1 %v8749_v46  ;;  %v7434_v40 = vpop.f32.mrf.mxu1 }
 0x79b   : > { %8918 = vmatpush2.msra.mxu1 %v8748_v52  ;;  %v7604_v3 = vpop.f32.mrf.mxu0 }
 0x79c   : > { %8919 = vmatprep.subr.mxu1 %v8745_v59  ;;  %v7436_v7 = vpop.f32.mrf.mxu1 }
 0x79d   : > { %8920 = vmatpush2.msra.mxu1 %v8744_v11  ;;  %v7606_v12 = vpop.f32.mrf.mxu0 }
 0x79e   : > { %8921 = vmatprep.subr.mxu1 %v8741_v60 }
 0x79f   : > { %8922 = vmatpush2.msra.mxu1 %v8740_v39  ;;  %v7610_v27 = vpop.f32.mrf.mxu0  ;;  %v7248_v39 = vadd.f32 %v7247_v56, %v14102_v38  ;;  %v7262_v38 = vadd.f32 %v7261_v23, %v7178_v1 }
 0x7a0   : > { %8923 = vmatprep.subr.mxu1 %v8737_v17  ;;  %v7250_v17 = vadd.f32 %v7249_v63, %v7166_v5  ;;  %v7623_v37 = vadd.f32 %v7610_v27, %v7441_v32 }
 0x7a1   : > { %8924 = vmatpush2.msra.mxu1 %v8736_v28  ;;  %v7612_v19 = vpop.f32.mrf.mxu0  ;;  %v7439_v35 = vadd.f32 %v7422_v9, %v7248_v39 }
 0x7a2   : > { %8925 = vmatprep.subr.mxu1 %v8733_v53  ;;  %v7440_v53 = vadd.f32 %v7424_v4, %v7250_v17 }
 0x7a3   : > { %8926 = vmatpush2.msra.mxu1 %v8732_v43  ;;  %v7616_v34 = vpop.f32.mrf.mxu0  ;;  %v7256_v43 = vadd.f32 %v7255_v36, %v7172_v31 }
 0x7a4   : > { %8927 = vmatprep.subr.mxu1 %v8729_v55  ;;  %v7621_v55 = vadd.f32 %v7604_v3, %v7439_v35 }
 0x7a5   : > { %8928 = vmatpush2.msra.mxu1 %v8728_v25  ;;  %v7618_v44 = vpop.f32.mrf.mxu0  ;;  %v7442_v25 = vadd.f32 %v7430_v10, %v7256_v43 }
 0x7a6   : > { %8929 = vmatprep.subr.mxu1 %v8725_v0  ;;  %v7622_v0 = vadd.f32 %v7606_v12, %v7440_v53  ;;  %v8522_v12 = vrot.slane %v8517_v49, %v13965_v48 }
 0x7a7   : > { %8930 = vmatpush2.msra.mxu1 %v8724_v20  ;;  %v7786_v58 = vpop.f32.mrf.mxu1  ;;  %v7941_v52 = vpop.f32.mrf.mxu0  ;;  %v7260_v20 = vadd.f32 %v7259_v50, %v7176_v18  ;;  %v7624_v61 = vadd.f32 %v7612_v19, %v7442_v25  ;;  %v8536_v18 = vld [vmem:[#allocation21 + $0x1] ss:$2 sm:$0x3] }
 0x7a8   : > { %8931 = vmatprep.subr.mxu1 %v8721_v51  ;;  %v7803_v57 = vadd.f32 %v7786_v58, %v7621_v55 }
 0x7a9   : > { %8932 = vmatpush2.msra.mxu1 %v8720_v22  ;;  %v7788_v21 = vpop.f32.mrf.mxu1  ;;  %v7943_v59 = vpop.f32.mrf.mxu0  ;;  %v7443_v22 = vadd.f32 %v7434_v40, %v7260_v20 }
 0x7aa   : > { %8933 = vmatprep.subr.mxu1 %v8717_v6  ;;  %v7804_v51 = vadd.f32 %v7788_v21, %v7622_v0  ;;  %v7958_v16 = vadd.f32 %v7941_v52, %v7803_v57 }
 0x7ab   : > { %8934 = vmatpush2.msra.mxu1 %v8716_v14  ;;  %v7947_v11 = vpop.f32.mrf.mxu0  ;;  %v7444_v14 = vadd.f32 %v7436_v7, %v7262_v38  ;;  %v7625_v63 = vadd.f32 %v7616_v34, %v7443_v22  ;;  %v8541_v7 = vrot.slane %v8536_v18, %v13965_v48 }
 0x7ac   : > { %v7959_v31 = vadd.f32 %v7943_v59, %v7804_v51 }
 0x7ad   : > { %v7792_v46 = vpop.f32.mrf.mxu1  ;;  %v7949_v33 = vpop.f32.mrf.mxu0  ;;  %v7626_v13 = vadd.f32 %v7618_v44, %v7444_v14 }
 0x7ae   : > { %v7805_v5 = vadd.f32 %v7792_v46, %v7623_v37  ;;  %v8526_v46 = vrot.slane %v8517_v49, %v13968_v54 }
 0x7af   : > { %v7794_v62 = vpop.f32.mrf.mxu1  ;;  %v7953_v28 = vpop.f32.mrf.mxu0 }
 0x7b0   : > { %v7806_v47 = vadd.f32 %v7794_v62, %v7624_v61  ;;  %v7960_v4 = vadd.f32 %v7947_v11, %v7805_v5 }
 0x7b1   : > { %v7955_v42 = vpop.f32.mrf.mxu0 }
 0x7b2   : > { %v7798_v30 = vpop.f32.mrf.mxu1  ;;  %v7961_v23 = vadd.f32 %v7949_v33, %v7806_v47 }
 0x7b3   : > { %v7807_v50 = vadd.f32 %v7798_v30, %v7625_v63  ;;  %v8545_v30 = vrot.slane %v8536_v18, %v13968_v54 }
 0x7b4   : > { %v7800_v45 = vpop.f32.mrf.mxu1 }
 0x7b5   : > { %v7808_v40 = vadd.f32 %v7800_v45, %v7626_v13  ;;  %v7962_v52 = vadd.f32 %v7953_v28, %v7807_v50 }
 0x7b7   : > { %v7963_v33 = vadd.f32 %v7955_v42, %v7808_v40 }
 0x7e3   : > { %v8313_v2 = vpop.f32.mrf.mxu0 }
 0x7e5   : > { %v8315_v6 = vpop.f32.mrf.mxu0 }
 0x7e7   : > { %v8319_v9 = vpop.f32.mrf.mxu0 }
 0x7e9   : > { %v8321_v58 = vpop.f32.mrf.mxu0 }
 0x7eb   : > { %v8131_v60 = vpop.f32.mrf.mxu1  ;;  %v8325_v45 = vpop.f32.mrf.mxu0 }
 0x7ec   : > { %v8148_v56 = vadd.f32 %v8131_v60, %v7958_v16 }
 0x7ed   : > { %v8133_v8 = vpop.f32.mrf.mxu1  ;;  %v8327_v0 = vpop.f32.mrf.mxu0 }
 0x7ee   : > { %v8149_v36 = vadd.f32 %v8133_v8, %v7959_v31  ;;  %v8330_v10 = vadd.f32 %v8313_v2, %v8148_v56 }
 0x7f0   : > { %v8137_v24 = vpop.f32.mrf.mxu1  ;;  %v8331_v34 = vadd.f32 %v8315_v6, %v8149_v36 }
 0x7f1   : > { %v8150_v1 = vadd.f32 %v8137_v24, %v7960_v4 }
 0x7f2   : > { %v8139_v29 = vpop.f32.mrf.mxu1 }
 0x7f3   : > { %v8151_v19 = vadd.f32 %v8139_v29, %v7961_v23  ;;  %v8332_v11 = vadd.f32 %v8319_v9, %v8150_v1 }
 0x7f4   : > { %v8143_v15 = vpop.f32.mrf.mxu1 }
 0x7f5   : > { %v8152_v60 = vadd.f32 %v8143_v15, %v7962_v52  ;;  %v8333_v41 = vadd.f32 %v8321_v58, %v8151_v19 }
 0x7f6   : > { %v8145_v3 = vpop.f32.mrf.mxu1 }
 0x7f7   : > { %v8153_v53 = vadd.f32 %v8145_v3, %v7963_v33  ;;  %v8334_v25 = vadd.f32 %v8325_v45, %v8152_v60 }
 0x7f9   : > { %v8335_v42 = vadd.f32 %v8327_v0, %v8153_v53 }
 0x82c   : > { %v8494_v27 = vpop.f32.mrf.mxu1 }
 0x82d   : > { %v8511_v21 = vadd.f32 %v8494_v27, %v8330_v10 }
 0x82e   : > { %v8496_v62 = vpop.f32.mrf.mxu1 }
 0x82f   : > { %v8529_v59 = vmul.f32 %v8522_v12, %v8511_v21  ;;  %v8512_v44 = vadd.f32 %v8496_v62, %v8331_v34 }
 0x830   : > { %v8500_v39 = vpop.f32.mrf.mxu1 }
 0x831   : > { %v8548_v8 = vadd.f32 %v8541_v7, %v8529_v59  ;;  %v8530_v17 = vmul.f32 %v8526_v46, %v8512_v44  ;;  %v8513_v35 = vadd.f32 %v8500_v39, %v8332_v11 }
 0x832   : > { %v8502_v24 = vpop.f32.mrf.mxu1 }
 0x833   : > { %v8549_v43 = vadd.f32 %v8545_v30, %v8530_v17  ;;  %v8531_v32 = vmul.f32 %v8522_v12, %v8513_v35  ;;  %v8514_v55 = vadd.f32 %v8502_v24, %v8333_v41  ;;  %v8554_v28 = vmul.f32 0.1, %v8548_v8 }
 0x834   : > { %v8506_v57 = vpop.f32.mrf.mxu1 }
 0x835   : > { %v8550_v2 = vadd.f32 %v8541_v7, %v8531_v32  ;;  %v8532_v20 = vmul.f32 %v8526_v46, %v8514_v55  ;;  %v8555_v29 = vmul.f32 0.1, %v8549_v43  ;;  %v8515_v51 = vadd.f32 %v8506_v57, %v8334_v25 }
 0x836   : > { %v8508_v37 = vpop.f32.mrf.mxu1  ;;  %v8560_v5 = vmax.f32 %v8548_v8, %v8554_v28 }
 0x837   : > { %v8556_v38 = vmul.f32 0.1, %v8550_v2  ;;  %v8551_v22 = vadd.f32 %v8545_v30, %v8532_v20  ;;  %v8533_v61 = vmul.f32 %v8522_v12, %v8515_v51  ;;  %v8516_v6 = vadd.f32 %v8508_v37, %v8335_v42 }
 0x838   : > { %v8561_v15 = vmax.f32 %v8549_v43, %v8555_v29  ;;  %v8572_v49 = vrot.slane %v8560_v5, 1 }
 0x839   : > { %v8562_v16 = vmax.f32 %v8550_v2, %v8556_v38  ;;  %v8557_v14 = vmul.f32 0.1, %v8551_v22  ;;  %v8552_v47 = vadd.f32 %v8541_v7, %v8533_v61  ;;  %v8534_v56 = vmul.f32 %v8526_v46, %v8516_v6  ;;  %v8964_v61 = vld [vmem:[#allocation25 + $0x70] sm:$0xff]  ;;  %v8979_v6 = vld [vmem:[#allocation25 + $0xe8] sm:$0xff] }
 0x83a   : > { %v8575_v18 = vrot.slane %v8561_v15, 1 }
 0x83b   : > { %v8573_v31 = vrot.slane %v8562_v16, 1  ;;  %v8563_v63 = vmax.f32 %v8551_v22, %v8557_v14  ;;  %v8558_v9 = vmul.f32 0.1, %v8552_v47  ;;  %v8553_v36 = vadd.f32 %v8545_v30, %v8534_v56  ;;  %v8965_v22 = vld [vmem:[#allocation25 + $0x78] sm:$0xff]  ;;  %v8978_v14 = vld [vmem:[#allocation25 + $0xe0] sm:$0xff] }
 0x83c   : > { %v8961_v56 = vld [vmem:[#allocation25 + $0x58] sm:$0xff] }
 0x83d   : > { %v8576_v4 = vrot.slane %v8563_v63, 1  ;;  %v8574_v50 = vsel %vm3866_vm0, %v8572_v49, %v8573_v31  ;;  %v8564_v13 = vmax.f32 %v8552_v47, %v8558_v9  ;;  %v8559_v3 = vmul.f32 0.1, %v8553_v36  ;;  %v8977_v47 = vld [vmem:[#allocation25 + $0xd8] sm:$0xff]  ;;  %v8975_v49 = vld [vmem:[#allocation25 + $0xc8] sm:$0xff] }
 0x83e   : > { %v8586_v12 = vmax.f32 %v8560_v5, %v8574_v50  ;;  %v8980_v5 = vld [vmem:[#allocation25 + $0xf0] sm:$0xff]  ;;  %v8959_v9 = vld [vmem:[#allocation25 + $0x48] sm:$0xff]  ;;  %v8957_v50 = vld [vmem:[#allocation25 + $0x38] sm:$0xff] }
 0x83f   : > { %v8577_v1 = vsel %vm3866_vm0, %v8575_v18, %v8576_v4  ;;  %v8578_v23 = vrot.slane %v8564_v13, 1  ;;  %v8565_v10 = vmax.f32 %v8553_v36, %v8559_v3  ;;  %v8974_v36 = vld [vmem:[#allocation25 + $0xc0] sm:$0xff]  ;;  %v8973_v18 = vld [vmem:[#allocation25 + $0xb8] sm:$0xff]  ;;  %v8956_v3 = vld [vmem:[#allocation25 + $0x30] sm:$0xff] }
 0x840   : > { %v8587_v58 = vmax.f32 %v8561_v15, %v8577_v1  ;;  %v8600_v52 = vrot.slane %v8586_v12, 6  ;;  %v8962_v15 = vld [vmem:[#allocation25 + $0x60] sm:$0xff]  ;;  %v8971_v1 = vld [vmem:[#allocation25 + $0xa8] sm:$0xff] }
 0x841   : > { %v8579_v40 = vsel %vm3866_vm0, %v8573_v31, %v8578_v23  ;;  %v8592_v27 = vmax.f32 %v8564_v13, %v8578_v23  ;;  %v8580_v7 = vrot.slane %v8565_v10, 1  ;;  %v8976_v31 = vld [vmem:[#allocation25 + $0xd0] sm:$0xff]  ;;  %v8955_v23 = vld [vmem:[#allocation25 + $0x28] sm:$0xff] }
 0x842   : > { %v8588_v19 = vmax.f32 %v8562_v16, %v8579_v40  ;;  %v8603_v30 = vrot.slane %v8587_v58, 6  ;;  %v8963_v16 = vld [vmem:[#allocation25 + $0x68] sm:$0xff]  ;;  %v8972_v13 = vld [vmem:[#allocation25 + $0xb0] sm:$0xff]  ;;  %v8969_v40 = vld [vmem:[#allocation25 + $0x98] sm:$0xff] }
 0x843   : > { %v8606_v21 = vrot.slane %v8592_v27, 6  ;;  %v8581_v34 = vsel %vm3866_vm0, %v8576_v4, %v8580_v7  ;;  %v8593_v46 = vmax.f32 %v8565_v10, %v8580_v7  ;;  %v8958_v4 = vld [vmem:[#allocation25 + $0x40] sm:$0xff]  ;;  %v8953_v27 = vld [vmem:[#allocation25 + $0x18] sm:$0xff]  ;;  %v8968_v7 = vld [vmem:[#allocation25 + $0x90] sm:$0xff] }
 0x844   : > { %v8601_v62 = vrot.slane %v8588_v19, 6  ;;  %v8589_v59 = vmax.f32 %v8563_v63, %v8581_v34  ;;  %v8960_v63 = vld [vmem:[#allocation25 + $0x50] sm:$0xff]  ;;  %v8970_v10 = vld [vmem:[#allocation25 + $0xa0] sm:$0xff] }
 0x845   : > { %v8608_v44 = vrot.slane %v8593_v46, 6  ;;  %v8966_v34 = vld [vmem:[#allocation25 + $0x80] sm:$0xff] }
 0x846   : > { %v8602_v11 = vsel %vm7517_vm2, %v8600_v52, %v8601_v62  ;;  %v8607_v60 = vsel %vm7517_vm2, %v8601_v62, %v8606_v21  ;;  %v8604_v33 = vrot.slane %v8589_v59, 6  ;;  %v8951_v21 = vld [vmem:[#allocation25 + $0x8] sm:$0xff]  ;;  %v8950_v46 = vld [vmem:[#allocation25] sm:$0xff]  ;;  %v9013_v52 = vld [vmem:[#allocation25 + $0x1f8] sm:$0xff] }
 0x847   : > { %v8614_v39 = vmax.f32 %v8586_v12, %v8602_v11  ;;  %v8616_v45 = vmax.f32 %v8588_v19, %v8607_v60  ;;  %v8954_v12 = vld [vmem:[#allocation25 + $0x20] sm:$0xff]  ;;  %v8967_v19 = vld [vmem:[#allocation25 + $0x88] sm:$0xff]  ;;  %v8778_v62 = vld [vmem:[#allocation24] sm:$0xf] }
 0x848   : > { %v8605_v8 = vsel %vm7517_vm2, %v8603_v30, %v8604_v33  ;;  %v8609_v17 = vsel %vm7517_vm2, %v8604_v33, %v8608_v44  ;;  %v8783_v44 = vrot.slane %v8778_v62, %v13965_v48  ;;  %v8787_v30 = vrot.slane %v8778_v62, %v13968_v54  ;;  %v9011_v54 = vld [vmem:[#allocation25 + $0x1e8] sm:$0xff] }
 0x849   : > { %v8620_v35 = vrot.slane %v8614_v39, 2  ;;  %v8615_v41 = vmax.f32 %v8587_v58, %v8605_v8  ;;  %v8617_v53 = vmax.f32 %v8589_v59, %v8609_v17  ;;  %v8628_v43 = vrot.slane %v8616_v45, 4  ;;  %v8952_v58 = vld [vmem:[#allocation25 + $0x10] sm:$0xff] }
 0x84a   : > { %v8634_v28 = vrot.slane %v8616_v45, 6  ;;  %v8794_v59 = vsub.s32 3, %v13962_v26 }
 0x84b   : > { %v8624_v24 = vadd.f32 %v8620_v35, %v8614_v39  ;;  %v8621_v32 = vrot.slane %v8615_v41, 2  ;;  %v8629_v57 = vrot.slane %v8617_v53, 4  ;;  %v8635_v20 = vrot.slane %v8617_v53, 6 }
 0x84c   : > { %v8795_v11 = vrot.slane %v8778_v62, %v8794_v59 }
 0x84d   : > { %v8632_v55 = vadd.f32 %v8628_v43, %v8624_v24  ;;  %v8625_v25 = vadd.f32 %v8621_v32, %v8615_v41 }
 0x84f   : > { %v8638_v0 = vadd.f32 %v8634_v28, %v8632_v55  ;;  %v8633_v2 = vadd.f32 %v8629_v57, %v8625_v25  ;;  %v8997_v55 = vld [vmem:[#allocation25 + $0x178] sm:$0xff]  ;;  %v9012_v25 = vld [vmem:[#allocation25 + $0x1f0] sm:$0xff]  ;;  %v8995_v57 = vld [vmem:[#allocation25 + $0x168] sm:$0xff] }
 0x851   : > { %v8639_v29 = vadd.f32 %v8635_v20, %v8633_v2  ;;  %v8640_v51 = vmul.f32 0.25, %v8638_v0  ;;  %v9010_v0 = vld [vmem:[#allocation25 + $0x1e0] sm:$0xff]  ;;  %v9009_v20 = vld [vmem:[#allocation25 + $0x1d8] sm:$0xff] }
 0x852   : > { %v8994_v2 = vld [vmem:[#allocation25 + $0x160] sm:$0xff] }
 0x853   : > { %v8641_v42 = vmul.f32 0.25, %v8639_v29  ;;  %v8645_v38 = vrot.slane %v8640_v51, %v13965_v48  ;;  %v8993_v29 = vld [vmem:[#allocation25 + $0x158] sm:$0xff]  ;;  %v9008_v51 = vld [vmem:[#allocation25 + $0x1d0] sm:$0xff] }
 0x855   : > { %v8649_v37 = vrot.slane %v8641_v42, %v13965_v48  ;;  %v8996_v48 = vld [vmem:[#allocation25 + $0x170] sm:$0xff] }
 0x856   : > { %v8992_v42 = vld [vmem:[#allocation25 + $0x150] sm:$0xff] }
 0x857   : > { %8864 = vmatprep.mubr.f32.mxu0 %v8649_v37  ;;  %8935 = vmatprep.mubr.f32.mxu1 %v8649_v37  ;;  %v9007_v37 = vld [vmem:[#allocation25 + $0x1c8] sm:$0xff] }
 0x858   : > { %8865 = vmatmul.mubr.f32.vlgmr.msra.gmra.mxu0 %v8645_v38  ;;  %8936 = vmatmul.mubr.f32.vlgmr.msra.gmra.mxu1 %v8645_v38  ;;  %v8991_v38 = vld [vmem:[#allocation25 + $0x148] sm:$0xff] }
 0x859   : > { %10099 = vmatpush3.msra.mxu0 %v8965_v22  ;;  %v9006_v22 = vld [vmem:[#allocation25 + $0x1c0] sm:$0xff] }
 0x85a   : > { %10100 = vmatprep.subr.mxu0 %v8980_v5  ;;  %v8990_v5 = vld [vmem:[#allocation25 + $0x140] sm:$0xff] }
 0x85b   : > { %10101 = vmatpush3.msra.mxu0 %v8964_v61  ;;  %v9005_v61 = vld [vmem:[#allocation25 + $0x1b8] sm:$0xff] }
 0x85c   : > { %10102 = vmatprep.subr.mxu0 %v8979_v6  ;;  %v8790_v6 = vsub.s32 2, %v13962_v26  ;;  %v8985_v26 = vld [vmem:[#allocation25 + $0x118] sm:$0xff] }
 0x85d   : > { %10103 = vmatpush3.msra.mxu0 %v8963_v16  ;;  %v8989_v16 = vld [vmem:[#allocation25 + $0x138] sm:$0xff] }
 0x85e   : > { %10104 = vmatprep.subr.mxu0 %v8978_v14  ;;  %v9004_v14 = vld [vmem:[#allocation25 + $0x1b0] sm:$0xff] }
 0x85f   : > { %10105 = vmatpush3.msra.mxu0 %v8962_v15  ;;  %v8988_v15 = vld [vmem:[#allocation25 + $0x130] sm:$0xff] }
 0x860   : > { %10106 = vmatprep.subr.mxu0 %v8977_v47  ;;  %v9003_v47 = vld [vmem:[#allocation25 + $0x1a8] sm:$0xff] }
 0x861   : > { %10107 = vmatpush3.msra.mxu0 %v8961_v56  ;;  %v8791_v56 = vrot.slane %v8778_v62, %v8790_v6 }
 0x862   : > { %10108 = vmatprep.subr.mxu0 %v8976_v31  ;;  %v8987_v31 = vld [vmem:[#allocation25 + $0x128] sm:$0xff] }
 0x863   : > { %10109 = vmatpush3.msra.mxu0 %v8960_v63  ;;  %v9002_v63 = vld [vmem:[#allocation25 + $0x1a0] sm:$0xff] }
 0x864   : > { %10110 = vmatprep.subr.mxu0 %v8975_v49  ;;  %v8986_v49 = vld [vmem:[#allocation25 + $0x120] sm:$0xff] }
 0x865   : > { %10111 = vmatpush3.msra.mxu0 %v8959_v9  ;;  %v9001_v9 = vld [vmem:[#allocation25 + $0x198] sm:$0xff] }
 0x866   : > { %10112 = vmatprep.subr.mxu0 %v8974_v36 }
 0x867   : > { %10113 = vmatpush3.msra.mxu0 %v8958_v4  ;;  %v9000_v4 = vld [vmem:[#allocation25 + $0x190] sm:$0xff] }
 0x868   : > { %10114 = vmatprep.subr.mxu0 %v8973_v18  ;;  %v8984_v18 = vld [vmem:[#allocation25 + $0x110] sm:$0xff] }
 0x869   : > { %10115 = vmatpush3.msra.mxu0 %v8957_v50  ;;  %v8999_v50 = vld [vmem:[#allocation25 + $0x188] sm:$0xff] }
 0x86a   : > { %10116 = vmatprep.subr.mxu0 %v8972_v13 }
 0x86b   : > { %10117 = vmatpush3.msra.mxu0 %v8956_v3  ;;  %v8983_v3 = vld [vmem:[#allocation25 + $0x108] sm:$0xff] }
 0x86c   : > { %10118 = vmatprep.subr.mxu0 %v8971_v1  ;;  %v8998_v1 = vld [vmem:[#allocation25 + $0x180] sm:$0xff] }
 0x86d   : > { %10119 = vmatpush3.msra.mxu0 %v8955_v23  ;;  %v8982_v23 = vld [vmem:[#allocation25 + $0x100] sm:$0xff] }
 0x86e   : > { %10120 = vmatprep.subr.mxu0 %v8970_v10 }
 0x86f   : > { %10121 = vmatpush3.msra.mxu0 %v8954_v12 }
 0x870   : > { %10122 = vmatprep.subr.mxu0 %v8969_v40 }
 0x871   : > { %10123 = vmatpush3.msra.mxu0 %v8953_v27 }
 0x872   : > { %10124 = vmatprep.subr.mxu0 %v8968_v7  ;;  %v9391_v7 = vld [vmem:[#allocation27] ss:$0 sm:$0xff] }
 0x873   : > { %10125 = vmatpush3.msra.mxu0 %v8952_v58 }
 0x874   : > { %10126 = vmatprep.subr.mxu0 %v8967_v19 }
 0x875   : > { %10127 = vmatpush3.msra.mxu0 %v8951_v21 }
 0x876   : > { %10128 = vmatprep.subr.mxu0 %v8966_v34 }
 0x877   : > { %10129 = vmatpush3.msra.mxu0 %v8950_v46 }
 0x878   : > { %10133 = vmatprep.subr.mxu0 %v9013_v52 }
 0x918   : > { %v8866_v60 = vpop.f32.mrf.mxu0  ;;  %v8937_v33 = vpop.f32.mrf.mxu1 }
 0x919   : > { %v8867_v39 = vadd.f32 %v8866_v60, %v8783_v44  ;;  %v8938_v36 = vadd.f32 %v8937_v33, %v8791_v56 }
 0x91a   : > { %v8868_v45 = vpop.f32.mrf.mxu0  ;;  %v8939_v8 = vpop.f32.mrf.mxu1 }
 0x91b   : > { %v8869_v17 = vadd.f32 %v8868_v45, %v8787_v30  ;;  %v8940_v35 = vadd.f32 %v8939_v8, %v8795_v11  ;;  %v8942_v41 = vmul.f32 0.1, %v8867_v39  ;;  %v8944_v13 = vmul.f32 0.1, %v8938_v36 }
 0x91d   : > { %v8943_v53 = vmul.f32 0.1, %v8869_v17  ;;  %v8945_v24 = vmul.f32 0.1, %v8940_v35  ;;  %v8946_v32 = vmax.f32 %v8867_v39, %v8942_v41  ;;  %v8948_v10 = vmax.f32 %v8938_v36, %v8944_v13 }
 0x91f   : > { %v8947_v43 = vmax.f32 %v8869_v17, %v8943_v53  ;;  %v8949_v28 = vmax.f32 %v8940_v35, %v8945_v24 }
 0x921   : > { %9085 = vmatprep.mubr.f32.mxu0 %v8947_v43 }
 0x922   : > { %9086 = vmatmul.mubr.f32.vlgmr.msra.gmra.mxu0 %v8946_v32 }
 0x923   : > { %10134 = vmatpush3.msra.mxu0 %v8997_v55  ;;  %9155 = vmatprep.mubr.f32.mxu0 %v8949_v28 }
 0x924   : > { %10135 = vmatprep.subr.mxu0 %v9012_v25 }
 0x925   : > { %10136 = vmatpush3.msra.mxu0 %v8996_v48 }
 0x926   : > { %10137 = vmatprep.subr.mxu0 %v9011_v54 }
 0x927   : > { %10138 = vmatpush3.msra.mxu0 %v8995_v57 }
 0x928   : > { %10139 = vmatprep.subr.mxu0 %v9010_v0 }
 0x929   : > { %10140 = vmatpush3.msra.mxu0 %v8994_v2 }
 0x92a   : > { %10141 = vmatprep.subr.mxu0 %v9009_v20 }
 0x92b   : > { %10142 = vmatpush3.msra.mxu0 %v8993_v29 }
 0x92c   : > { %10143 = vmatprep.subr.mxu0 %v9008_v51 }
 0x92d   : > { %10144 = vmatpush3.msra.mxu0 %v8992_v42 }
 0x92e   : > { %10145 = vmatprep.subr.mxu0 %v9007_v37 }
 0x92f   : > { %10146 = vmatpush3.msra.mxu0 %v8991_v38 }
 0x930   : > { %10147 = vmatprep.subr.mxu0 %v9006_v22 }
 0x931   : > { %10148 = vmatpush3.msra.mxu0 %v8990_v5 }
 0x932   : > { %10149 = vmatprep.subr.mxu0 %v9005_v61 }
 0x933   : > { %10150 = vmatpush3.msra.mxu0 %v8989_v16 }
 0x934   : > { %10151 = vmatprep.subr.mxu0 %v9004_v14 }
 0x935   : > { %10152 = vmatpush3.msra.mxu0 %v8988_v15 }
 0x936   : > { %10153 = vmatprep.subr.mxu0 %v9003_v47 }
 0x937   : > { %10154 = vmatpush3.msra.mxu0 %v8987_v31 }
 0x938   : > { %10155 = vmatprep.subr.mxu0 %v9002_v63 }
 0x939   : > { %10156 = vmatpush3.msra.mxu0 %v8986_v49 }
 0x93a   : > { %10157 = vmatprep.subr.mxu0 %v9001_v9 }
 0x93b   : > { %10158 = vmatpush3.msra.mxu0 %v8985_v26 }
 0x93c   : > { %10159 = vmatprep.subr.mxu0 %v9000_v4 }
 0x93d   : > { %10160 = vmatpush3.msra.mxu0 %v8984_v18 }
 0x93e   : > { %10161 = vmatprep.subr.mxu0 %v8999_v50 }
 0x93f   : > { %10162 = vmatpush3.msra.mxu0 %v8983_v3 }
 0x940   : > { %10163 = vmatprep.subr.mxu0 %v8998_v1 }
 0x941   : > { %10164 = vmatpush3.msra.mxu0 %v8982_v23 }
 0x942   : > { %9156 = vmatmul.mubr.f32.vlgmr.msra.gmra.mxu0 %v8948_v10 }
 0x9e2   : > { %v10130_v12 = vpop.f32.mrf.mxu0 }
 0x9e4   : > { %v10131_v40 = vpop.f32.mrf.mxu0 }
 0x9e5   : > { %v10132_v27 = vadd.f32 %v10131_v40, %v10130_v12 }
 0x9e7   : > { %v9088_v21 = vadd.f32 %v10132_v27, %v9391_v7 }
 0xa02   : > { %v10165_v58 = vpop.f32.mrf.mxu0 }
 0xa04   : > { %v10166_v19 = vpop.f32.mrf.mxu0 }
 0xa05   : > { %v10167_v34 = vadd.f32 %v10166_v19, %v10165_v58 }
 0xa07   : > { %v9158_v46 = vadd.f32 %v10167_v34, %v9088_v21 }
 0xa09   : > { %9161 = vst [vmem:[%s619_s5] sm:$0x1] %v9158_v46 }
 0xa0a   : > { %11904 = shalt.err (!%p11901_p4)
}
 0xa0b   : > { %s11905_s3 = scalar_lea.hbm %s9173_s20, 16  ;;  %s11909_s8 = scalar_lea.hbm %s14172_s13, 32 }
 0xa0c   : > { %p11906_p2 = scmp.ne.s32.totalorder %s9173_s20, %s11905_s3  ;;  %p11910_p9 = scmp.lt.s32.totalorder %s9173_s20, %s14172_s13 }
 0xa0d   : > { %p11911_p13 = scmp.lt.s32.totalorder %s11909_s8, %s11905_s3 }
 0xa0e   : > { %p11907_p5 = pnand %p11906_p2, %p14398_p6 }
 0xa0f   : > { %p11912_p0 = por %p11911_p13, %p11910_p9 }
 0xa10   : > { %p11908_p8 = pneg %p11907_p5 }
 0xa12   : > { %p11913_p7 = pnand %p11912_p0, %p11908_p8 }
 0xa14   : > { %11916 = shalt.err (!%p11913_p7)
}
 0xa15   : > { %11415 = dma.vmem_to_hbm [thread:$0]  (%p14398_p6), %s9176_s6, 16, %s9173_s20, %s9163_s29  }
 0xa16 PF: > { %s9187_s1 = sand.u32 1, %s11967_s25   ;;  %p14399_p10 = scmp.ne.s32.totalorder %s14210_s23, 0 }
 0xa17   : > { %p14400_p11 = scmp.ge.s32.totalorder %s11979_s28, 2  ;;  %s9188_s4 = scalar_lea.sflag [#allocation9], %s9187_s1 }
 0xa19   : > { %p11459_p12 = pnand %p14400_p11, %p14399_p10 }
 0xa1b   : > { %p11460_p1 = pneg %p11459_p12 }
 0xa1d   : > { %11962 = dma.done.wait (%p11460_p1), %s9188_s4, 16  }
 0xa1e   : > { %11964 = vsyncadd (%p11460_p1), %s9188_s4, 4294967280  ;;  %p32_p3 = scmp.ge.s32.totalorder %s12226_s18, 4   ;;  %s14401_s25 = smov %s11971_s26 }
 0xa1f   : > { %s14402_s26 = smov %s11975_s27  ;;  %s14403_s27 = smov %s12237_s22 }
 0xa20   : > { %s14404_s28 = smov %s12226_s18  ;;  %34 = sbr.rel (!%p32_p3) target bundleno = 21 (0x15), region = 177 }
 0xa25   :  { %9192 = vsyncpa [#allocation8], 1 }
 0xa26   :  { %9194 = vsyncpa [#allocation8 + $0x1], 1 }
 0xa27   :  { %9195 = vsyncpa [#allocation11], 1 }
 0xa28   :  { %9196 = vsyncpa [#allocation14], 1 }
 0xa29   :  { %9197 = vsyncpa [#allocation17], 1 }
 0xa2a   :  { %9198 = vsyncpa [#allocation20], 1 }
 0xa2b   :  { %9199 = vsyncpa [#allocation23], 1 }
 0xa2c   :  { %9200 = vsyncpa [#allocation26], 1 }
 0xa2d   :  { %9201 = vsyncpa [#allocation9], 1 }
 0xa2e   :  { %9203 = vsyncpa [#allocation9 + $0x1], 1 }

</bundles_post_ra>
